<compile_context>
chip_gen: v5e
topology: v5e:2x2
jax: 0.10.0
libtpu: 0.0.40
codegen_flags: <defaults>
</compile_context>

<pallas_src>
import functools
import math

import jax
import jax.numpy as jnp
from jax.experimental import pallas as pl
from jax.experimental.pallas import tpu as pltpu

DTYPE = jnp.bfloat16
LN_EPS = 1e-5  # torch.nn.LayerNorm default


# ---------------------------------------------------------------------------
# In-kernel helpers (operate on values already loaded into vregs / VMEM)
# ---------------------------------------------------------------------------


def _layernorm(x, g, b):
    """x: (N, C) f32; g, b: (1, C) f32."""
    mu = jnp.mean(x, axis=-1, keepdims=True)
    xc = x - mu
    var = jnp.mean(xc * xc, axis=-1, keepdims=True)
    return xc * jax.lax.rsqrt(var + LN_EPS) * g + b


def _proj(x, w, b):
    """bf16 (N, Ci) @ bf16 (Ci, Co) + b -> bf16 (N, Co); f32 accumulation."""
    return (jnp.dot(x, w, preferred_element_type=jnp.float32)
            + b.astype(jnp.float32)).astype(DTYPE)


def _attn_core(q, k, v, wo, bo, num_heads):
    """Pre-projected q (Nq, I), k/v (Nk, I) in bf16.

    Per-head f32 softmax attention; head outputs are concatenated into one
    (Nq, I) staging value and a SINGLE out-projection matmul is issued
    (instead of one tiny dh-deep matmul per head). Returns f32 (Nq, C).
    """
    internal = q.shape[-1]
    dh = internal // num_heads
    scale = 1.0 / math.sqrt(dh)
    heads = []
    for h in range(num_heads):  # static unroll; everything stays on-chip
        sl = slice(h * dh, (h + 1) * dh)
        s = jax.lax.dot_general(q[:, sl], k[:, sl], (((1,), (1,)), ((), ())),
                                preferred_element_type=jnp.float32) * scale
        s = s - jnp.max(s, axis=-1, keepdims=True)
        p = jnp.exp(s)
        p = p * pl.reciprocal(jnp.sum(p, axis=-1, keepdims=True), approx=True)
        heads.append(jnp.dot(p.astype(DTYPE), v[:, sl],
                             preferred_element_type=jnp.float32).astype(DTYPE))
    o = jnp.concatenate(heads, axis=-1)                         # (Nq, internal) staging
    return (jnp.dot(o, wo, preferred_element_type=jnp.float32)
            + bo.astype(jnp.float32))


# ---------------------------------------------------------------------------
# Fused decoder kernel: patch embed + 2 TwoWayAttentionBlocks, all in VMEM
# ---------------------------------------------------------------------------


def _decoder_kernel(x_ref, pw_ref, pb_ref, qt_ref, qpe_ref, kpe_ref,
                    sa_wqkv_ref, sa_bqkv_ref, sa_wo_ref, sa_bo_ref,
                    t2i_wqkv_ref, t2i_bqkv_ref, t2i_wo_ref, t2i_bo_ref,
                    i2t_wqkv_ref, i2t_bqkv_ref, i2t_wo_ref, i2t_bo_ref,
                    mlp_w1_ref, mlp_b1_ref, mlp_w2_ref, mlp_b2_ref,
                    lng_ref, lnb_ref, out_ref, *, num_heads, num_layers):
    # Patch embedding (image-encoder stand-in): (Nk, Pdim) @ (Pdim, C) + b
    keys = _proj(x_ref[...], pw_ref[...], pb_ref[...])                  # (Nk, C) bf16
    queries = qt_ref[...]                                               # (Nq, C) bf16
    qpe_f = qpe_ref[...].astype(jnp.float32)
    kpe_f = kpe_ref[...].astype(jnp.float32)
    lng = lng_ref[...].astype(jnp.float32)                              # (4L, C)
    lnb = lnb_ref[...].astype(jnp.float32)

    Isa = sa_wqkv_ref.shape[-1] // 3     # self-attn internal dim (= C)
    Icr = t2i_wqkv_ref.shape[-1] // 3    # cross-attn internal dim (= C // downsample)

    def ln(x, idx):
        return _layernorm(x, lng[idx:idx + 1, :], lnb[idx:idx + 1, :])

    for l in range(num_layers):          # static unroll over the 2 decoder layers
        out_ref[3 * l + 0] = keys        # dec_l_input, stored as produced
        qf = queries.astype(jnp.float32)
        kf = keys.astype(jnp.float32)

        sa_wqkv = sa_wqkv_ref[l]
        sa_bqkv = sa_bqkv_ref[l]

        # --- self attention (skip_first_layer_pe on layer 0) ---
        if l == 0:
            # q = k = v = queries: one fused qkv projection (single MXU pass).
            qkv = _proj(queries, sa_wqkv, sa_bqkv)                      # (Nq, 3*Isa)
            attn = _attn_core(qkv[:, :Isa], qkv[:, Isa:2 * Isa], qkv[:, 2 * Isa:],
                              sa_wo_ref[l], sa_bo_ref[l], num_heads)
            q_res = attn                                                # queries replaced
        else:
            qpq = (qf + qpe_f).astype(DTYPE)
            # q = k = queries + qpe: one fused qk projection; v projected separately.
            qk = _proj(qpq, sa_wqkv[:, :2 * Isa], sa_bqkv[:, :2 * Isa])
            vv = _proj(queries, sa_wqkv[:, 2 * Isa:], sa_bqkv[:, 2 * Isa:])
            attn = _attn_core(qk[:, :Isa], qk[:, Isa:], vv,
                              sa_wo_ref[l], sa_bo_ref[l], num_heads)
            q_res = qf + attn
        queries = ln(q_res, 4 * l + 0).astype(DTYPE)                    # norm1
        qf = queries.astype(jnp.float32)

        # --- cross attention, tokens -> image ---
        kpk = (kf + kpe_f).astype(DTYPE)                                # keys fixed in-layer
        qpq = (qf + qpe_f).astype(DTYPE)
        q = _proj(qpq, t2i_wqkv_ref[l][:, :Icr], t2i_bqkv_ref[l][:, :Icr])
        k = _proj(kpk, t2i_wqkv_ref[l][:, Icr:2 * Icr], t2i_bqkv_ref[l][:, Icr:2 * Icr])
        v = _proj(keys, t2i_wqkv_ref[l][:, 2 * Icr:], t2i_bqkv_ref[l][:, 2 * Icr:])
        attn = _attn_core(q, k, v, t2i_wo_ref[l], t2i_bo_ref[l], num_heads)
        queries = ln(qf + attn, 4 * l + 1).astype(DTYPE)                # norm2
        qf = queries.astype(jnp.float32)

        # --- MLP (ReLU, SAM MLPBlock default) ---
        h = (jnp.dot(queries, mlp_w1_ref[l], preferred_element_type=jnp.float32)
             + mlp_b1_ref[l].astype(jnp.float32))
        h = jnp.maximum(h, 0.0).astype(DTYPE)
        m = (jnp.dot(h, mlp_w2_ref[l], preferred_element_type=jnp.float32)
             + mlp_b2_ref[l].astype(jnp.float32))
        queries = ln(qf + m, 4 * l + 2).astype(DTYPE)                   # norm3
        qf = queries.astype(jnp.float32)

        # --- cross attention, image -> tokens (q = keys+pe, k = queries+pe, v = queries) ---
        qpq = (qf + qpe_f).astype(DTYPE)
        q = _proj(kpk, i2t_wqkv_ref[l][:, :Icr], i2t_bqkv_ref[l][:, :Icr])
        k = _proj(qpq, i2t_wqkv_ref[l][:, Icr:2 * Icr], i2t_bqkv_ref[l][:, Icr:2 * Icr])
        v = _proj(queries, i2t_wqkv_ref[l][:, 2 * Icr:], i2t_bqkv_ref[l][:, 2 * Icr:])
        attn = _attn_core(q, k, v, i2t_wo_ref[l], i2t_bo_ref[l], num_heads)
        out_ref[3 * l + 1] = attn.astype(DTYPE)                         # dec_l_attn
        keys = ln(kf + attn, 4 * l + 3).astype(DTYPE)                   # norm4
        out_ref[3 * l + 2] = keys                                       # dec_l_block


# ---------------------------------------------------------------------------
# Host-side wrapper around the single pallas_call
# ---------------------------------------------------------------------------

_WEIGHT_KEYS = ('sa_wqkv', 'sa_bqkv', 'sa_wo', 'sa_bo',
                't2i_wqkv', 't2i_bqkv', 't2i_wo', 't2i_bo',
                'i2t_wqkv', 'i2t_bqkv', 'i2t_wo', 'i2t_bo',
                'mlp_w1', 'mlp_b1', 'mlp_w2', 'mlp_b2',
                'ln_g', 'ln_b')


def fused_decoder(x_patches, params):
    B, Nk, Pdim = x_patches.shape
    C = params['embed_dim']
    L = params['num_layers']
    nh = params['num_heads']
    Nq = params['query_tokens'].shape[0]

    shared = [params['patch_w'], params['patch_b'], params['query_tokens'],
              params['query_pe'], params['key_pe']]
    weights = [params[k] for k in _WEIGHT_KEYS]

    # Grid-invariant operands: whole-array VMEM residency, single buffer
    # (no per-grid-step double buffering of ~23 constant tensors).
    const_spec = pl.BlockSpec(memory_space=pltpu.MemorySpace.VMEM)
    in_specs = ([pl.BlockSpec((None, Nk, Pdim), lambda b: (b, 0, 0))]
                + [const_spec] * (len(shared) + len(weights)))
    # (B, 3L, Nk, C) output: each hooked chunk is a full contiguous block store.
    out_specs = pl.BlockSpec((None, 3 * L, Nk, C), lambda b: (b, 0, 0, 0))

    # Advisory cost estimate so XLA schedules well around the custom call.
    Icr = params['t2i_wqkv'].shape[-1] // 3
    M = params['mlp_w1'].shape[-1]

    def attn_flops(nq, nk, c, internal):
        return 2 * (nq * c * internal + 2 * nk * c * internal
                    + 2 * nq * nk * internal + nq * internal * c)

    per_layer = (attn_flops(Nq, Nq, C, C) + attn_flops(Nq, Nk, C, Icr)
                 + attn_flops(Nk, Nq, C, Icr) + 4 * Nq * C * M)
    flops = B * (2 * Nk * Pdim * C + L * per_layer)
    transcendentals = B * L * (Nq * Nq + 2 * Nq * Nk)
    bytes_in = sum(int(a.size) * a.dtype.itemsize
                   for a in [x_patches] + shared + weights)
    bytes_out = B * 3 * L * Nk * C * jnp.dtype(DTYPE).itemsize
    cost = pl.CostEstimate(flops=int(flops), transcendentals=int(transcendentals),
                           bytes_accessed=int(bytes_in + bytes_out))

    kernel = functools.partial(_decoder_kernel, num_heads=nh, num_layers=L)
    return pl.pallas_call(
        kernel,
        out_shape=jax.ShapeDtypeStruct((B, 3 * L, Nk, C), DTYPE),
        grid=(B,),
        in_specs=in_specs,
        out_specs=out_specs,
        compiler_params=pltpu.CompilerParams(
            dimension_semantics=("parallel",),            # B>1 shards across v7x's 2 TCs
            vmem_limit_bytes=48 * 1024 * 1024,            # explicit scoped-VMEM headroom
        ),
        cost_estimate=cost,
    )(x_patches, *shared, *weights)


def lisa_forward(images, params):
    """images: NCHW float. Returns {dec_i_input, dec_i_attn, dec_i_block}."""
    B, Cin, H, W = images.shape
    hw = params['grid_hw']
    C = params['embed_dim']
    L = params['num_layers']
    ph, pw = H // hw, W // hw
    Nk = hw * hw

    # Image-encoder stand-in: non-overlapping patch flatten (pure layout; stays in XLA).
    x = images.transpose(0, 2, 3, 1)                                      # NHWC
    x = x.reshape(B, hw, ph, hw, pw, Cin).transpose(0, 1, 3, 2, 4, 5)
    x = x.reshape(B, Nk, ph * pw * Cin).astype(DTYPE)

    out = fused_decoder(x, params)                                        # (B, 3L, Nk, C)

    out_dict = {}
    for l in range(L):
        for j, name in enumerate(('input', 'attn', 'block')):
            out_dict[f'dec_{l}_{name}'] = [out[:, 3 * l + j].reshape(B, hw, hw, C)]
    return out_dict


# ---------------------------------------------------------------------------
# Parameter construction (deterministic, synthetic, stacked per layer)
# ---------------------------------------------------------------------------


def init_params(key, *, embed_dim, num_heads, mlp_dim, grid_hw, n_layers, n_query,
                patch_dim, downsample_rate=2):
    C = embed_dim
    Ci = C // downsample_rate
    ks = jax.random.split(key, 12)

    def nrm(k, shape, scale=0.02):
        return (jax.random.normal(k, shape) * scale).astype(DTYPE)

    return {
        'embed_dim': C, 'grid_hw': grid_hw, 'num_heads': num_heads, 'num_layers': n_layers,
        'patch_w': nrm(ks[0], (patch_dim, C)),
        'patch_b': jnp.zeros((1, C), DTYPE),
        'query_tokens': nrm(ks[1], (n_query, C), 0.5),
        'query_pe': nrm(ks[2], (n_query, C), 0.5),
        'key_pe': nrm(ks[3], (grid_hw * grid_hw, C), 0.5),
        # self attention (internal = C)
        'sa_wqkv': nrm(ks[4], (n_layers, C, 3 * C)),
        'sa_bqkv': jnp.zeros((n_layers, 1, 3 * C), DTYPE),
        'sa_wo': nrm(ks[5], (n_layers, C, C)),
        'sa_bo': jnp.zeros((n_layers, 1, C), DTYPE),
        # cross attention token->image (internal = C // downsample_rate)
        't2i_wqkv': nrm(ks[6], (n_layers, C, 3 * Ci)),
        't2i_bqkv': jnp.zeros((n_layers, 1, 3 * Ci), DTYPE),
        't2i_wo': nrm(ks[7], (n_layers, Ci, C)),
        't2i_bo': jnp.zeros((n_layers, 1, C), DTYPE),
        # cross attention image->token
        'i2t_wqkv': nrm(ks[8], (n_layers, C, 3 * Ci)),
        'i2t_bqkv': jnp.zeros((n_layers, 1, 3 * Ci), DTYPE),
        'i2t_wo': nrm(ks[9], (n_layers, Ci, C)),
        'i2t_bo': jnp.zeros((n_layers, 1, C), DTYPE),
        # MLP
        'mlp_w1': nrm(ks[10], (n_layers, C, mlp_dim)),
        'mlp_b1': jnp.zeros((n_layers, 1, mlp_dim), DTYPE),
        'mlp_w2': nrm(ks[11], (n_layers, mlp_dim, C)),
        'mlp_b2': jnp.zeros((n_layers, 1, C), DTYPE),
        # LayerNorms (norm1..norm4 per layer), flattened to (4*L, C)
        'ln_g': jnp.ones((4 * n_layers, C), DTYPE),
        'ln_b': jnp.zeros((4 * n_layers, C), DTYPE),
    }


if __name__ == "__main__":
    # SAM mask decoder scaled down: embed 256->32, heads 8->4, mlp 2048->64,
    # image grid 64x64->8x8, image 1024x1024 -> 64x64, 2 decoder layers, 8 query tokens.
    B, Cin, H, W = 1, 3, 64, 64
    embed_dim, num_heads, mlp_dim, grid_hw, n_layers, n_query = 32, 4, 64, 8, 2, 8

    root = jax.random.PRNGKey(0)
    k_img, k_params = jax.random.split(root)
    patch_dim = (H // grid_hw) * (W // grid_hw) * Cin

    params = init_params(k_params, embed_dim=embed_dim, num_heads=num_heads,
                         mlp_dim=mlp_dim, grid_hw=grid_hw, n_layers=n_layers,
                         n_query=n_query, patch_dim=patch_dim)

    images = jax.random.normal(k_img, (B, Cin, H, W), dtype=jnp.float32)

    out = lisa_forward(images, params)
    jax.block_until_ready(out)

    expected = {f'dec_{i}_{s}' for i in range(n_layers) for s in ('input', 'attn', 'block')}
    assert set(out.keys()) == expected
    for v in out.values():
        assert v[0].shape == (B, grid_hw, grid_hw, embed_dim)
        assert bool(jnp.all(jnp.isfinite(v[0].astype(jnp.float32))))

    print("KERNEL_OK")
</pallas_src>

<mosaic_0001>
module attributes {stable_mosaic.version = 11 : i64} {
  func.func @_decoder_kernel(%arg0: i32, %arg1: memref<1x64x192xbf16, #tpu.memory_space<vmem>>, %arg2: memref<192x32xbf16, #tpu.memory_space<vmem>>, %arg3: memref<1x32xbf16, #tpu.memory_space<vmem>>, %arg4: memref<8x32xbf16, #tpu.memory_space<vmem>>, %arg5: memref<8x32xbf16, #tpu.memory_space<vmem>>, %arg6: memref<64x32xbf16, #tpu.memory_space<vmem>>, %arg7: memref<2x32x96xbf16, #tpu.memory_space<vmem>>, %arg8: memref<2x1x96xbf16, #tpu.memory_space<vmem>>, %arg9: memref<2x32x32xbf16, #tpu.memory_space<vmem>>, %arg10: memref<2x1x32xbf16, #tpu.memory_space<vmem>>, %arg11: memref<2x32x48xbf16, #tpu.memory_space<vmem>>, %arg12: memref<2x1x48xbf16, #tpu.memory_space<vmem>>, %arg13: memref<2x16x32xbf16, #tpu.memory_space<vmem>>, %arg14: memref<2x1x32xbf16, #tpu.memory_space<vmem>>, %arg15: memref<2x32x48xbf16, #tpu.memory_space<vmem>>, %arg16: memref<2x1x48xbf16, #tpu.memory_space<vmem>>, %arg17: memref<2x16x32xbf16, #tpu.memory_space<vmem>>, %arg18: memref<2x1x32xbf16, #tpu.memory_space<vmem>>, %arg19: memref<2x32x64xbf16, #tpu.memory_space<vmem>>, %arg20: memref<2x1x64xbf16, #tpu.memory_space<vmem>>, %arg21: memref<2x64x32xbf16, #tpu.memory_space<vmem>>, %arg22: memref<2x1x32xbf16, #tpu.memory_space<vmem>>, %arg23: memref<8x32xbf16, #tpu.memory_space<vmem>>, %arg24: memref<8x32xbf16, #tpu.memory_space<vmem>>, %arg25: memref<1x6x64x32xbf16, #tpu.memory_space<vmem>>) attributes {dimension_semantics = [#tpu.dimension_semantics<parallel>], iteration_bounds = array<i64: 1>, scalar_prefetch = 0 : i64, scratch_operands = 0 : i64, tpu.core_type = #tpu.core_type<tc>, window_params = [{transform_indices = @transform_0, window_bounds = array<i64: 1, 64, 192>}, {pipeline_mode = #tpu.pipeline_mode<synchronous>, transform_indices = @transform_1, window_bounds = array<i64: 192, 32>}, {pipeline_mode = #tpu.pipeline_mode<synchronous>, transform_indices = @transform_2, window_bounds = array<i64: 1, 32>}, {pipeline_mode = #tpu.pipeline_mode<synchronous>, transform_indices = @transform_3, window_bounds = array<i64: 8, 32>}, {pipeline_mode = #tpu.pipeline_mode<synchronous>, transform_indices = @transform_4, window_bounds = array<i64: 8, 32>}, {pipeline_mode = #tpu.pipeline_mode<synchronous>, transform_indices = @transform_5, window_bounds = array<i64: 64, 32>}, {pipeline_mode = #tpu.pipeline_mode<synchronous>, transform_indices = @transform_6, window_bounds = array<i64: 2, 32, 96>}, {pipeline_mode = #tpu.pipeline_mode<synchronous>, transform_indices = @transform_7, window_bounds = array<i64: 2, 1, 96>}, {pipeline_mode = #tpu.pipeline_mode<synchronous>, transform_indices = @transform_8, window_bounds = array<i64: 2, 32, 32>}, {pipeline_mode = #tpu.pipeline_mode<synchronous>, transform_indices = @transform_9, window_bounds = array<i64: 2, 1, 32>}, {pipeline_mode = #tpu.pipeline_mode<synchronous>, transform_indices = @transform_10, window_bounds = array<i64: 2, 32, 48>}, {pipeline_mode = #tpu.pipeline_mode<synchronous>, transform_indices = @transform_11, window_bounds = array<i64: 2, 1, 48>}, {pipeline_mode = #tpu.pipeline_mode<synchronous>, transform_indices = @transform_12, window_bounds = array<i64: 2, 16, 32>}, {pipeline_mode = #tpu.pipeline_mode<synchronous>, transform_indices = @transform_13, window_bounds = array<i64: 2, 1, 32>}, {pipeline_mode = #tpu.pipeline_mode<synchronous>, transform_indices = @transform_14, window_bounds = array<i64: 2, 32, 48>}, {pipeline_mode = #tpu.pipeline_mode<synchronous>, transform_indices = @transform_15, window_bounds = array<i64: 2, 1, 48>}, {pipeline_mode = #tpu.pipeline_mode<synchronous>, transform_indices = @transform_16, window_bounds = array<i64: 2, 16, 32>}, {pipeline_mode = #tpu.pipeline_mode<synchronous>, transform_indices = @transform_17, window_bounds = array<i64: 2, 1, 32>}, {pipeline_mode = #tpu.pipeline_mode<synchronous>, transform_indices = @transform_18, window_bounds = array<i64: 2, 32, 64>}, {pipeline_mode = #tpu.pipeline_mode<synchronous>, transform_indices = @transform_19, window_bounds = array<i64: 2, 1, 64>}, {pipeline_mode = #tpu.pipeline_mode<synchronous>, transform_indices = @transform_20, window_bounds = array<i64: 2, 64, 32>}, {pipeline_mode = #tpu.pipeline_mode<synchronous>, transform_indices = @transform_21, window_bounds = array<i64: 2, 1, 32>}, {pipeline_mode = #tpu.pipeline_mode<synchronous>, transform_indices = @transform_22, window_bounds = array<i64: 8, 32>}, {pipeline_mode = #tpu.pipeline_mode<synchronous>, transform_indices = @transform_23, window_bounds = array<i64: 8, 32>}, {transform_indices = @transform_24, window_bounds = array<i64: 1, 6, 64, 32>}]} {
    %c0 = arith.constant 0 : index
    %c0_0 = arith.constant 0 : index
    %c0_1 = arith.constant 0 : index
    %0 = vector.load %arg1[%c0, %c0_0, %c0_1] : memref<1x64x192xbf16, #tpu.memory_space<vmem>>, vector<1x64x192xbf16>
    %1 = vector.shape_cast %0 : vector<1x64x192xbf16> to vector<64x192xbf16>
    %c0_2 = arith.constant 0 : index
    %c0_3 = arith.constant 0 : index
    %2 = vector.load %arg2[%c0_2, %c0_3] : memref<192x32xbf16, #tpu.memory_space<vmem>>, vector<192x32xbf16>
    %c0_4 = arith.constant 0 : index
    %c0_5 = arith.constant 0 : index
    %3 = vector.load %arg3[%c0_4, %c0_5] : memref<1x32xbf16, #tpu.memory_space<vmem>>, vector<1x32xbf16>
    %cst = arith.constant dense<0.000000e+00> : vector<64x32xf32>
    %4 = tpu.matmul %1, %2, %cst {dimension_numbers = #tpu.dot_dimension_numbers<[1], [0], [0], [1], [0, 0, 1, 1], [], []>} : vector<64x192xbf16>, vector<192x32xbf16>, vector<64x32xf32> -> vector<64x32xf32>
    %5 = arith.extf %3 : vector<1x32xbf16> to vector<1x32xf32>
    %6 = vector.broadcast %5 : vector<1x32xf32> to vector<64x32xf32>
    %7 = arith.addf %4, %6 : vector<64x32xf32>
    %8 = arith.truncf %7 : vector<64x32xf32> to vector<64x32xbf16>
    %c0_6 = arith.constant 0 : index
    %c0_7 = arith.constant 0 : index
    %9 = vector.load %arg4[%c0_6, %c0_7] : memref<8x32xbf16, #tpu.memory_space<vmem>>, vector<8x32xbf16>
    %c0_8 = arith.constant 0 : index
    %c0_9 = arith.constant 0 : index
    %10 = vector.load %arg5[%c0_8, %c0_9] : memref<8x32xbf16, #tpu.memory_space<vmem>>, vector<8x32xbf16>
    %11 = arith.extf %10 : vector<8x32xbf16> to vector<8x32xf32>
    %c0_10 = arith.constant 0 : index
    %c0_11 = arith.constant 0 : index
    %12 = vector.load %arg6[%c0_10, %c0_11] : memref<64x32xbf16, #tpu.memory_space<vmem>>, vector<64x32xbf16>
    %13 = arith.extf %12 : vector<64x32xbf16> to vector<64x32xf32>
    %c0_12 = arith.constant 0 : index
    %c0_13 = arith.constant 0 : index
    %14 = vector.load %arg23[%c0_12, %c0_13] : memref<8x32xbf16, #tpu.memory_space<vmem>>, vector<8x32xbf16>
    %15 = arith.extf %14 : vector<8x32xbf16> to vector<8x32xf32>
    %c0_14 = arith.constant 0 : index
    %c0_15 = arith.constant 0 : index
    %16 = vector.load %arg24[%c0_14, %c0_15] : memref<8x32xbf16, #tpu.memory_space<vmem>>, vector<8x32xbf16>
    %17 = arith.extf %16 : vector<8x32xbf16> to vector<8x32xf32>
    %c0_16 = arith.constant 0 : index
    %c0_17 = arith.constant 0 : index
    %c0_18 = arith.constant 0 : index
    %c0_19 = arith.constant 0 : index
    %18 = vector.load %arg25[%c0_16, %c0_17, %c0_18, %c0_19] : memref<1x6x64x32xbf16, #tpu.memory_space<vmem>>, vector<1x1x64x32xbf16>
    %19 = vector.shape_cast %18 : vector<1x1x64x32xbf16> to vector<64x32xbf16>
    %20 = vector.shape_cast %8 : vector<64x32xbf16> to vector<1x1x64x32xbf16>
    tpu.vector_store %arg25[%c0_16, %c0_17, %c0_18, %c0_19], %20 {strides = array<i32>} : memref<1x6x64x32xbf16, #tpu.memory_space<vmem>>, vector<1x1x64x32xbf16>,
    %21 = arith.extf %8 : vector<64x32xbf16> to vector<64x32xf32>
    %c0_20 = arith.constant 0 : index
    %c0_21 = arith.constant 0 : index
    %c0_22 = arith.constant 0 : index
    %22 = vector.load %arg7[%c0_20, %c0_21, %c0_22] : memref<2x32x96xbf16, #tpu.memory_space<vmem>>, vector<1x32x96xbf16>
    %23 = vector.shape_cast %22 : vector<1x32x96xbf16> to vector<32x96xbf16>
    %c0_23 = arith.constant 0 : index
    %c0_24 = arith.constant 0 : index
    %c0_25 = arith.constant 0 : index
    %24 = vector.load %arg8[%c0_23, %c0_24, %c0_25] : memref<2x1x96xbf16, #tpu.memory_space<vmem>>, vector<1x1x96xbf16>
    %25 = vector.shape_cast %24 : vector<1x1x96xbf16> to vector<1x96xbf16>
    %cst_26 = arith.constant dense<0.000000e+00> : vector<8x96xf32>
    %26 = tpu.matmul %9, %23, %cst_26 {dimension_numbers = #tpu.dot_dimension_numbers<[1], [0], [0], [1], [0, 0, 1, 1], [], []>} : vector<8x32xbf16>, vector<32x96xbf16>, vector<8x96xf32> -> vector<8x96xf32>
    %27 = arith.extf %25 : vector<1x96xbf16> to vector<1x96xf32>
    %28 = vector.broadcast %27 : vector<1x96xf32> to vector<8x96xf32>
    %29 = arith.addf %26, %28 : vector<8x96xf32>
    %30 = arith.truncf %29 : vector<8x96xf32> to vector<8x96xbf16>
    %31 = vector.extract_strided_slice %30 {offsets = [0, 0], sizes = [8, 32], strides = [1, 1]} : vector<8x96xbf16> to vector<8x32xbf16>
    %32 = vector.extract_strided_slice %30 {offsets = [0, 32], sizes = [8, 32], strides = [1, 1]} : vector<8x96xbf16> to vector<8x32xbf16>
    %33 = vector.extract_strided_slice %30 {offsets = [0, 64], sizes = [8, 32], strides = [1, 1]} : vector<8x96xbf16> to vector<8x32xbf16>
    %c0_27 = arith.constant 0 : index
    %c0_28 = arith.constant 0 : index
    %c0_29 = arith.constant 0 : index
    %34 = vector.load %arg9[%c0_27, %c0_28, %c0_29] : memref<2x32x32xbf16, #tpu.memory_space<vmem>>, vector<1x32x32xbf16>
    %35 = vector.shape_cast %34 : vector<1x32x32xbf16> to vector<32x32xbf16>
    %c0_30 = arith.constant 0 : index
    %c0_31 = arith.constant 0 : index
    %c0_32 = arith.constant 0 : index
    %36 = vector.load %arg10[%c0_30, %c0_31, %c0_32] : memref<2x1x32xbf16, #tpu.memory_space<vmem>>, vector<1x1x32xbf16>
    %37 = vector.shape_cast %36 : vector<1x1x32xbf16> to vector<1x32xbf16>
    %38 = vector.extract_strided_slice %31 {offsets = [0, 0], sizes = [8, 8], strides = [1, 1]} : vector<8x32xbf16> to vector<8x8xbf16>
    %39 = vector.extract_strided_slice %32 {offsets = [0, 0], sizes = [8, 8], strides = [1, 1]} : vector<8x32xbf16> to vector<8x8xbf16>
    %cst_33 = arith.constant dense<0.000000e+00> : vector<8x8xf32>
    %40 = tpu.matmul %38, %39, %cst_33 {dimension_numbers = #tpu.dot_dimension_numbers<[1], [1], [0], [0], [0, 0, 1, 0], [], []>} : vector<8x8xbf16>, vector<8x8xbf16>, vector<8x8xf32> -> vector<8x8xf32>
    %cst_34 = arith.constant 0.353553385 : f32
    %41 = vector.broadcast %cst_34 : f32 to vector<8x8xf32>
    %42 = arith.mulf %40, %41 : vector<8x8xf32>
    %cst_35 = arith.constant dense<0xFF800000> : vector<8xf32>
    %43 = vector.multi_reduction <maximumf>, %42, %cst_35 [1] : vector<8x8xf32> to vector<8xf32>
    %44 = vector.shape_cast %43 : vector<8xf32> to vector<8x1xf32>
    %45 = vector.broadcast %44 : vector<8x1xf32> to vector<8x8xf32>
    %46 = arith.subf %42, %45 : vector<8x8xf32>
    %47 = math.exp %46 : vector<8x8xf32>
    %cst_36 = arith.constant dense<0.000000e+00> : vector<8xf32>
    %48 = vector.multi_reduction <add>, %47, %cst_36 [1] : vector<8x8xf32> to vector<8xf32>
    %49 = vector.shape_cast %48 : vector<8xf32> to vector<8x1xf32>
    %50 = tpu.reciprocal %49 {approx = true} : vector<8x1xf32> -> vector<8x1xf32>
    %51 = vector.broadcast %50 : vector<8x1xf32> to vector<8x8xf32>
    %52 = arith.mulf %47, %51 : vector<8x8xf32>
    %53 = arith.truncf %52 : vector<8x8xf32> to vector<8x8xbf16>
    %54 = vector.extract_strided_slice %33 {offsets = [0, 0], sizes = [8, 8], strides = [1, 1]} : vector<8x32xbf16> to vector<8x8xbf16>
    %cst_37 = arith.constant dense<0.000000e+00> : vector<8x8xf32>
    %55 = tpu.matmul %53, %54, %cst_37 {dimension_numbers = #tpu.dot_dimension_numbers<[1], [0], [0], [1], [0, 0, 1, 1], [], []>} : vector<8x8xbf16>, vector<8x8xbf16>, vector<8x8xf32> -> vector<8x8xf32>
    %56 = arith.truncf %55 : vector<8x8xf32> to vector<8x8xbf16>
    %57 = vector.extract_strided_slice %31 {offsets = [0, 8], sizes = [8, 8], strides = [1, 1]} : vector<8x32xbf16> to vector<8x8xbf16>
    %58 = vector.extract_strided_slice %32 {offsets = [0, 8], sizes = [8, 8], strides = [1, 1]} : vector<8x32xbf16> to vector<8x8xbf16>
    %cst_38 = arith.constant dense<0.000000e+00> : vector<8x8xf32>
    %59 = tpu.matmul %57, %58, %cst_38 {dimension_numbers = #tpu.dot_dimension_numbers<[1], [1], [0], [0], [0, 0, 1, 0], [], []>} : vector<8x8xbf16>, vector<8x8xbf16>, vector<8x8xf32> -> vector<8x8xf32>
    %cst_39 = arith.constant 0.353553385 : f32
    %60 = vector.broadcast %cst_39 : f32 to vector<8x8xf32>
    %61 = arith.mulf %59, %60 : vector<8x8xf32>
    %cst_40 = arith.constant dense<0xFF800000> : vector<8xf32>
    %62 = vector.multi_reduction <maximumf>, %61, %cst_40 [1] : vector<8x8xf32> to vector<8xf32>
    %63 = vector.shape_cast %62 : vector<8xf32> to vector<8x1xf32>
    %64 = vector.broadcast %63 : vector<8x1xf32> to vector<8x8xf32>
    %65 = arith.subf %61, %64 : vector<8x8xf32>
    %66 = math.exp %65 : vector<8x8xf32>
    %cst_41 = arith.constant dense<0.000000e+00> : vector<8xf32>
    %67 = vector.multi_reduction <add>, %66, %cst_41 [1] : vector<8x8xf32> to vector<8xf32>
    %68 = vector.shape_cast %67 : vector<8xf32> to vector<8x1xf32>
    %69 = tpu.reciprocal %68 {approx = true} : vector<8x1xf32> -> vector<8x1xf32>
    %70 = vector.broadcast %69 : vector<8x1xf32> to vector<8x8xf32>
    %71 = arith.mulf %66, %70 : vector<8x8xf32>
    %72 = arith.truncf %71 : vector<8x8xf32> to vector<8x8xbf16>
    %73 = vector.extract_strided_slice %33 {offsets = [0, 8], sizes = [8, 8], strides = [1, 1]} : vector<8x32xbf16> to vector<8x8xbf16>
    %cst_42 = arith.constant dense<0.000000e+00> : vector<8x8xf32>
    %74 = tpu.matmul %72, %73, %cst_42 {dimension_numbers = #tpu.dot_dimension_numbers<[1], [0], [0], [1], [0, 0, 1, 1], [], []>} : vector<8x8xbf16>, vector<8x8xbf16>, vector<8x8xf32> -> vector<8x8xf32>
    %75 = arith.truncf %74 : vector<8x8xf32> to vector<8x8xbf16>
    %76 = vector.extract_strided_slice %31 {offsets = [0, 16], sizes = [8, 8], strides = [1, 1]} : vector<8x32xbf16> to vector<8x8xbf16>
    %77 = vector.extract_strided_slice %32 {offsets = [0, 16], sizes = [8, 8], strides = [1, 1]} : vector<8x32xbf16> to vector<8x8xbf16>
    %cst_43 = arith.constant dense<0.000000e+00> : vector<8x8xf32>
    %78 = tpu.matmul %76, %77, %cst_43 {dimension_numbers = #tpu.dot_dimension_numbers<[1], [1], [0], [0], [0, 0, 1, 0], [], []>} : vector<8x8xbf16>, vector<8x8xbf16>, vector<8x8xf32> -> vector<8x8xf32>
    %cst_44 = arith.constant 0.353553385 : f32
    %79 = vector.broadcast %cst_44 : f32 to vector<8x8xf32>
    %80 = arith.mulf %78, %79 : vector<8x8xf32>
    %cst_45 = arith.constant dense<0xFF800000> : vector<8xf32>
    %81 = vector.multi_reduction <maximumf>, %80, %cst_45 [1] : vector<8x8xf32> to vector<8xf32>
    %82 = vector.shape_cast %81 : vector<8xf32> to vector<8x1xf32>
    %83 = vector.broadcast %82 : vector<8x1xf32> to vector<8x8xf32>
    %84 = arith.subf %80, %83 : vector<8x8xf32>
    %85 = math.exp %84 : vector<8x8xf32>
    %cst_46 = arith.constant dense<0.000000e+00> : vector<8xf32>
    %86 = vector.multi_reduction <add>, %85, %cst_46 [1] : vector<8x8xf32> to vector<8xf32>
    %87 = vector.shape_cast %86 : vector<8xf32> to vector<8x1xf32>
    %88 = tpu.reciprocal %87 {approx = true} : vector<8x1xf32> -> vector<8x1xf32>
    %89 = vector.broadcast %88 : vector<8x1xf32> to vector<8x8xf32>
    %90 = arith.mulf %85, %89 : vector<8x8xf32>
    %91 = arith.truncf %90 : vector<8x8xf32> to vector<8x8xbf16>
    %92 = vector.extract_strided_slice %33 {offsets = [0, 16], sizes = [8, 8], strides = [1, 1]} : vector<8x32xbf16> to vector<8x8xbf16>
    %cst_47 = arith.constant dense<0.000000e+00> : vector<8x8xf32>
    %93 = tpu.matmul %91, %92, %cst_47 {dimension_numbers = #tpu.dot_dimension_numbers<[1], [0], [0], [1], [0, 0, 1, 1], [], []>} : vector<8x8xbf16>, vector<8x8xbf16>, vector<8x8xf32> -> vector<8x8xf32>
    %94 = arith.truncf %93 : vector<8x8xf32> to vector<8x8xbf16>
    %95 = vector.extract_strided_slice %31 {offsets = [0, 24], sizes = [8, 8], strides = [1, 1]} : vector<8x32xbf16> to vector<8x8xbf16>
    %96 = vector.extract_strided_slice %32 {offsets = [0, 24], sizes = [8, 8], strides = [1, 1]} : vector<8x32xbf16> to vector<8x8xbf16>
    %cst_48 = arith.constant dense<0.000000e+00> : vector<8x8xf32>
    %97 = tpu.matmul %95, %96, %cst_48 {dimension_numbers = #tpu.dot_dimension_numbers<[1], [1], [0], [0], [0, 0, 1, 0], [], []>} : vector<8x8xbf16>, vector<8x8xbf16>, vector<8x8xf32> -> vector<8x8xf32>
    %cst_49 = arith.constant 0.353553385 : f32
    %98 = vector.broadcast %cst_49 : f32 to vector<8x8xf32>
    %99 = arith.mulf %97, %98 : vector<8x8xf32>
    %cst_50 = arith.constant dense<0xFF800000> : vector<8xf32>
    %100 = vector.multi_reduction <maximumf>, %99, %cst_50 [1] : vector<8x8xf32> to vector<8xf32>
    %101 = vector.shape_cast %100 : vector<8xf32> to vector<8x1xf32>
    %102 = vector.broadcast %101 : vector<8x1xf32> to vector<8x8xf32>
    %103 = arith.subf %99, %102 : vector<8x8xf32>
    %104 = math.exp %103 : vector<8x8xf32>
    %cst_51 = arith.constant dense<0.000000e+00> : vector<8xf32>
    %105 = vector.multi_reduction <add>, %104, %cst_51 [1] : vector<8x8xf32> to vector<8xf32>
    %106 = vector.shape_cast %105 : vector<8xf32> to vector<8x1xf32>
    %107 = tpu.reciprocal %106 {approx = true} : vector<8x1xf32> -> vector<8x1xf32>
    %108 = vector.broadcast %107 : vector<8x1xf32> to vector<8x8xf32>
    %109 = arith.mulf %104, %108 : vector<8x8xf32>
    %110 = arith.truncf %109 : vector<8x8xf32> to vector<8x8xbf16>
    %111 = vector.extract_strided_slice %33 {offsets = [0, 24], sizes = [8, 8], strides = [1, 1]} : vector<8x32xbf16> to vector<8x8xbf16>
    %cst_52 = arith.constant dense<0.000000e+00> : vector<8x8xf32>
    %112 = tpu.matmul %110, %111, %cst_52 {dimension_numbers = #tpu.dot_dimension_numbers<[1], [0], [0], [1], [0, 0, 1, 1], [], []>} : vector<8x8xbf16>, vector<8x8xbf16>, vector<8x8xf32> -> vector<8x8xf32>
    %113 = arith.truncf %112 : vector<8x8xf32> to vector<8x8xbf16>
    %114 = tpu.concatenate %56, %75, %94, %113 in 1 : vector<8x8xbf16>, vector<8x8xbf16>, vector<8x8xbf16>, vector<8x8xbf16> -> vector<8x32xbf16>
    %cst_53 = arith.constant dense<0.000000e+00> : vector<8x32xf32>
    %115 = tpu.matmul %114, %35, %cst_53 {dimension_numbers = #tpu.dot_dimension_numbers<[1], [0], [0], [1], [0, 0, 1, 1], [], []>} : vector<8x32xbf16>, vector<32x32xbf16>, vector<8x32xf32> -> vector<8x32xf32>
    %116 = arith.extf %37 : vector<1x32xbf16> to vector<1x32xf32>
    %117 = vector.broadcast %116 : vector<1x32xf32> to vector<8x32xf32>
    %118 = arith.addf %115, %117 : vector<8x32xf32>
    %119 = vector.extract_strided_slice %15 {offsets = [0, 0], sizes = [1, 32], strides = [1, 1]} : vector<8x32xf32> to vector<1x32xf32>
    %120 = vector.extract_strided_slice %17 {offsets = [0, 0], sizes = [1, 32], strides = [1, 1]} : vector<8x32xf32> to vector<1x32xf32>
    %cst_54 = arith.constant dense<0.000000e+00> : vector<8xf32>
    %121 = vector.multi_reduction <add>, %118, %cst_54 [1] : vector<8x32xf32> to vector<8xf32>
    %122 = vector.shape_cast %121 : vector<8xf32> to vector<8x1xf32>
    %cst_55 = arith.constant 3.200000e+01 : f32
    %123 = vector.broadcast %cst_55 : f32 to vector<8x1xf32>
    %124 = arith.divf %122, %123 : vector<8x1xf32>
    %125 = vector.broadcast %124 : vector<8x1xf32> to vector<8x32xf32>
    %126 = arith.subf %118, %125 : vector<8x32xf32>
    %127 = arith.mulf %126, %126 : vector<8x32xf32>
    %cst_56 = arith.constant dense<0.000000e+00> : vector<8xf32>
    %128 = vector.multi_reduction <add>, %127, %cst_56 [1] : vector<8x32xf32> to vector<8xf32>
    %129 = vector.shape_cast %128 : vector<8xf32> to vector<8x1xf32>
    %cst_57 = arith.constant 3.200000e+01 : f32
    %130 = vector.broadcast %cst_57 : f32 to vector<8x1xf32>
    %131 = arith.divf %129, %130 : vector<8x1xf32>
    %cst_58 = arith.constant 9.99999974E-6 : f32
    %132 = vector.broadcast %cst_58 : f32 to vector<8x1xf32>
    %133 = arith.addf %131, %132 : vector<8x1xf32>
    %134 = math.rsqrt %133 : vector<8x1xf32>
    %135 = vector.broadcast %134 : vector<8x1xf32> to vector<8x32xf32>
    %136 = arith.mulf %126, %135 : vector<8x32xf32>
    %137 = vector.broadcast %119 : vector<1x32xf32> to vector<8x32xf32>
    %138 = arith.mulf %136, %137 : vector<8x32xf32>
    %139 = vector.broadcast %120 : vector<1x32xf32> to vector<8x32xf32>
    %140 = arith.addf %138, %139 : vector<8x32xf32>
    %141 = arith.truncf %140 : vector<8x32xf32> to vector<8x32xbf16>
    %142 = arith.extf %141 : vector<8x32xbf16> to vector<8x32xf32>
    %143 = arith.addf %21, %13 : vector<64x32xf32>
    %144 = arith.truncf %143 : vector<64x32xf32> to vector<64x32xbf16>
    %145 = arith.addf %142, %11 : vector<8x32xf32>
    %146 = arith.truncf %145 : vector<8x32xf32> to vector<8x32xbf16>
    %c0_59 = arith.constant 0 : index
    %c0_60 = arith.constant 0 : index
    %c0_61 = arith.constant 0 : index
    %147 = vector.load %arg11[%c0_59, %c0_60, %c0_61] : memref<2x32x48xbf16, #tpu.memory_space<vmem>>, vector<1x32x48xbf16>
    %148 = vector.shape_cast %147 : vector<1x32x48xbf16> to vector<32x48xbf16>
    %149 = vector.extract_strided_slice %148 {offsets = [0, 0], sizes = [32, 16], strides = [1, 1]} : vector<32x48xbf16> to vector<32x16xbf16>
    %c0_62 = arith.constant 0 : index
    %c0_63 = arith.constant 0 : index
    %c0_64 = arith.constant 0 : index
    %150 = vector.load %arg12[%c0_62, %c0_63, %c0_64] : memref<2x1x48xbf16, #tpu.memory_space<vmem>>, vector<1x1x48xbf16>
    %151 = vector.shape_cast %150 : vector<1x1x48xbf16> to vector<1x48xbf16>
    %152 = vector.extract_strided_slice %151 {offsets = [0, 0], sizes = [1, 16], strides = [1, 1]} : vector<1x48xbf16> to vector<1x16xbf16>
    %cst_65 = arith.constant dense<0.000000e+00> : vector<8x16xf32>
    %153 = tpu.matmul %146, %149, %cst_65 {dimension_numbers = #tpu.dot_dimension_numbers<[1], [0], [0], [1], [0, 0, 1, 1], [], []>} : vector<8x32xbf16>, vector<32x16xbf16>, vector<8x16xf32> -> vector<8x16xf32>
    %154 = arith.extf %152 : vector<1x16xbf16> to vector<1x16xf32>
    %155 = vector.broadcast %154 : vector<1x16xf32> to vector<8x16xf32>
    %156 = arith.addf %153, %155 : vector<8x16xf32>
    %157 = arith.truncf %156 : vector<8x16xf32> to vector<8x16xbf16>
    %c0_66 = arith.constant 0 : index
    %c0_67 = arith.constant 0 : index
    %c0_68 = arith.constant 0 : index
    %158 = vector.load %arg11[%c0_66, %c0_67, %c0_68] : memref<2x32x48xbf16, #tpu.memory_space<vmem>>, vector<1x32x48xbf16>
    %159 = vector.shape_cast %158 : vector<1x32x48xbf16> to vector<32x48xbf16>
    %160 = vector.extract_strided_slice %159 {offsets = [0, 16], sizes = [32, 16], strides = [1, 1]} : vector<32x48xbf16> to vector<32x16xbf16>
    %c0_69 = arith.constant 0 : index
    %c0_70 = arith.constant 0 : index
    %c0_71 = arith.constant 0 : index
    %161 = vector.load %arg12[%c0_69, %c0_70, %c0_71] : memref<2x1x48xbf16, #tpu.memory_space<vmem>>, vector<1x1x48xbf16>
    %162 = vector.shape_cast %161 : vector<1x1x48xbf16> to vector<1x48xbf16>
    %163 = vector.extract_strided_slice %162 {offsets = [0, 16], sizes = [1, 16], strides = [1, 1]} : vector<1x48xbf16> to vector<1x16xbf16>
    %cst_72 = arith.constant dense<0.000000e+00> : vector<64x16xf32>
    %164 = tpu.matmul %144, %160, %cst_72 {dimension_numbers = #tpu.dot_dimension_numbers<[1], [0], [0], [1], [0, 0, 1, 1], [], []>} : vector<64x32xbf16>, vector<32x16xbf16>, vector<64x16xf32> -> vector<64x16xf32>
    %165 = arith.extf %163 : vector<1x16xbf16> to vector<1x16xf32>
    %166 = vector.broadcast %165 : vector<1x16xf32> to vector<64x16xf32>
    %167 = arith.addf %164, %166 : vector<64x16xf32>
    %168 = arith.truncf %167 : vector<64x16xf32> to vector<64x16xbf16>
    %c0_73 = arith.constant 0 : index
    %c0_74 = arith.constant 0 : index
    %c0_75 = arith.constant 0 : index
    %169 = vector.load %arg11[%c0_73, %c0_74, %c0_75] : memref<2x32x48xbf16, #tpu.memory_space<vmem>>, vector<1x32x48xbf16>
    %170 = vector.shape_cast %169 : vector<1x32x48xbf16> to vector<32x48xbf16>
    %171 = vector.extract_strided_slice %170 {offsets = [0, 32], sizes = [32, 16], strides = [1, 1]} : vector<32x48xbf16> to vector<32x16xbf16>
    %c0_76 = arith.constant 0 : index
    %c0_77 = arith.constant 0 : index
    %c0_78 = arith.constant 0 : index
    %172 = vector.load %arg12[%c0_76, %c0_77, %c0_78] : memref<2x1x48xbf16, #tpu.memory_space<vmem>>, vector<1x1x48xbf16>
    %173 = vector.shape_cast %172 : vector<1x1x48xbf16> to vector<1x48xbf16>
    %174 = vector.extract_strided_slice %173 {offsets = [0, 32], sizes = [1, 16], strides = [1, 1]} : vector<1x48xbf16> to vector<1x16xbf16>
    %cst_79 = arith.constant dense<0.000000e+00> : vector<64x16xf32>
    %175 = tpu.matmul %8, %171, %cst_79 {dimension_numbers = #tpu.dot_dimension_numbers<[1], [0], [0], [1], [0, 0, 1, 1], [], []>} : vector<64x32xbf16>, vector<32x16xbf16>, vector<64x16xf32> -> vector<64x16xf32>
    %176 = arith.extf %174 : vector<1x16xbf16> to vector<1x16xf32>
    %177 = vector.broadcast %176 : vector<1x16xf32> to vector<64x16xf32>
    %178 = arith.addf %175, %177 : vector<64x16xf32>
    %179 = arith.truncf %178 : vector<64x16xf32> to vector<64x16xbf16>
    %c0_80 = arith.constant 0 : index
    %c0_81 = arith.constant 0 : index
    %c0_82 = arith.constant 0 : index
    %180 = vector.load %arg13[%c0_80, %c0_81, %c0_82] : memref<2x16x32xbf16, #tpu.memory_space<vmem>>, vector<1x16x32xbf16>
    %181 = vector.shape_cast %180 : vector<1x16x32xbf16> to vector<16x32xbf16>
    %c0_83 = arith.constant 0 : index
    %c0_84 = arith.constant 0 : index
    %c0_85 = arith.constant 0 : index
    %182 = vector.load %arg14[%c0_83, %c0_84, %c0_85] : memref<2x1x32xbf16, #tpu.memory_space<vmem>>, vector<1x1x32xbf16>
    %183 = vector.shape_cast %182 : vector<1x1x32xbf16> to vector<1x32xbf16>
    %184 = vector.extract_strided_slice %157 {offsets = [0, 0], sizes = [8, 4], strides = [1, 1]} : vector<8x16xbf16> to vector<8x4xbf16>
    %185 = vector.extract_strided_slice %168 {offsets = [0, 0], sizes = [64, 4], strides = [1, 1]} : vector<64x16xbf16> to vector<64x4xbf16>
    %cst_86 = arith.constant dense<0.000000e+00> : vector<8x64xf32>
    %186 = tpu.matmul %184, %185, %cst_86 {dimension_numbers = #tpu.dot_dimension_numbers<[1], [1], [0], [0], [0, 0, 1, 0], [], []>} : vector<8x4xbf16>, vector<64x4xbf16>, vector<8x64xf32> -> vector<8x64xf32>
    %cst_87 = arith.constant 5.000000e-01 : f32
    %187 = vector.broadcast %cst_87 : f32 to vector<8x64xf32>
    %188 = arith.mulf %186, %187 : vector<8x64xf32>
    %cst_88 = arith.constant dense<0xFF800000> : vector<8xf32>
    %189 = vector.multi_reduction <maximumf>, %188, %cst_88 [1] : vector<8x64xf32> to vector<8xf32>
    %190 = vector.shape_cast %189 : vector<8xf32> to vector<8x1xf32>
    %191 = vector.broadcast %190 : vector<8x1xf32> to vector<8x64xf32>
    %192 = arith.subf %188, %191 : vector<8x64xf32>
    %193 = math.exp %192 : vector<8x64xf32>
    %cst_89 = arith.constant dense<0.000000e+00> : vector<8xf32>
    %194 = vector.multi_reduction <add>, %193, %cst_89 [1] : vector<8x64xf32> to vector<8xf32>
    %195 = vector.shape_cast %194 : vector<8xf32> to vector<8x1xf32>
    %196 = tpu.reciprocal %195 {approx = true} : vector<8x1xf32> -> vector<8x1xf32>
    %197 = vector.broadcast %196 : vector<8x1xf32> to vector<8x64xf32>
    %198 = arith.mulf %193, %197 : vector<8x64xf32>
    %199 = arith.truncf %198 : vector<8x64xf32> to vector<8x64xbf16>
    %200 = vector.extract_strided_slice %179 {offsets = [0, 0], sizes = [64, 4], strides = [1, 1]} : vector<64x16xbf16> to vector<64x4xbf16>
    %cst_90 = arith.constant dense<0.000000e+00> : vector<8x4xf32>
    %201 = tpu.matmul %199, %200, %cst_90 {dimension_numbers = #tpu.dot_dimension_numbers<[1], [0], [0], [1], [0, 0, 1, 1], [], []>} : vector<8x64xbf16>, vector<64x4xbf16>, vector<8x4xf32> -> vector<8x4xf32>
    %202 = arith.truncf %201 : vector<8x4xf32> to vector<8x4xbf16>
    %203 = vector.extract_strided_slice %157 {offsets = [0, 4], sizes = [8, 4], strides = [1, 1]} : vector<8x16xbf16> to vector<8x4xbf16>
    %204 = vector.extract_strided_slice %168 {offsets = [0, 4], sizes = [64, 4], strides = [1, 1]} : vector<64x16xbf16> to vector<64x4xbf16>
    %cst_91 = arith.constant dense<0.000000e+00> : vector<8x64xf32>
    %205 = tpu.matmul %203, %204, %cst_91 {dimension_numbers = #tpu.dot_dimension_numbers<[1], [1], [0], [0], [0, 0, 1, 0], [], []>} : vector<8x4xbf16>, vector<64x4xbf16>, vector<8x64xf32> -> vector<8x64xf32>
    %cst_92 = arith.constant 5.000000e-01 : f32
    %206 = vector.broadcast %cst_92 : f32 to vector<8x64xf32>
    %207 = arith.mulf %205, %206 : vector<8x64xf32>
    %cst_93 = arith.constant dense<0xFF800000> : vector<8xf32>
    %208 = vector.multi_reduction <maximumf>, %207, %cst_93 [1] : vector<8x64xf32> to vector<8xf32>
    %209 = vector.shape_cast %208 : vector<8xf32> to vector<8x1xf32>
    %210 = vector.broadcast %209 : vector<8x1xf32> to vector<8x64xf32>
    %211 = arith.subf %207, %210 : vector<8x64xf32>
    %212 = math.exp %211 : vector<8x64xf32>
    %cst_94 = arith.constant dense<0.000000e+00> : vector<8xf32>
    %213 = vector.multi_reduction <add>, %212, %cst_94 [1] : vector<8x64xf32> to vector<8xf32>
    %214 = vector.shape_cast %213 : vector<8xf32> to vector<8x1xf32>
    %215 = tpu.reciprocal %214 {approx = true} : vector<8x1xf32> -> vector<8x1xf32>
    %216 = vector.broadcast %215 : vector<8x1xf32> to vector<8x64xf32>
    %217 = arith.mulf %212, %216 : vector<8x64xf32>
    %218 = arith.truncf %217 : vector<8x64xf32> to vector<8x64xbf16>
    %219 = vector.extract_strided_slice %179 {offsets = [0, 4], sizes = [64, 4], strides = [1, 1]} : vector<64x16xbf16> to vector<64x4xbf16>
    %cst_95 = arith.constant dense<0.000000e+00> : vector<8x4xf32>
    %220 = tpu.matmul %218, %219, %cst_95 {dimension_numbers = #tpu.dot_dimension_numbers<[1], [0], [0], [1], [0, 0, 1, 1], [], []>} : vector<8x64xbf16>, vector<64x4xbf16>, vector<8x4xf32> -> vector<8x4xf32>
    %221 = arith.truncf %220 : vector<8x4xf32> to vector<8x4xbf16>
    %222 = vector.extract_strided_slice %157 {offsets = [0, 8], sizes = [8, 4], strides = [1, 1]} : vector<8x16xbf16> to vector<8x4xbf16>
    %223 = vector.extract_strided_slice %168 {offsets = [0, 8], sizes = [64, 4], strides = [1, 1]} : vector<64x16xbf16> to vector<64x4xbf16>
    %cst_96 = arith.constant dense<0.000000e+00> : vector<8x64xf32>
    %224 = tpu.matmul %222, %223, %cst_96 {dimension_numbers = #tpu.dot_dimension_numbers<[1], [1], [0], [0], [0, 0, 1, 0], [], []>} : vector<8x4xbf16>, vector<64x4xbf16>, vector<8x64xf32> -> vector<8x64xf32>
    %cst_97 = arith.constant 5.000000e-01 : f32
    %225 = vector.broadcast %cst_97 : f32 to vector<8x64xf32>
    %226 = arith.mulf %224, %225 : vector<8x64xf32>
    %cst_98 = arith.constant dense<0xFF800000> : vector<8xf32>
    %227 = vector.multi_reduction <maximumf>, %226, %cst_98 [1] : vector<8x64xf32> to vector<8xf32>
    %228 = vector.shape_cast %227 : vector<8xf32> to vector<8x1xf32>
    %229 = vector.broadcast %228 : vector<8x1xf32> to vector<8x64xf32>
    %230 = arith.subf %226, %229 : vector<8x64xf32>
    %231 = math.exp %230 : vector<8x64xf32>
    %cst_99 = arith.constant dense<0.000000e+00> : vector<8xf32>
    %232 = vector.multi_reduction <add>, %231, %cst_99 [1] : vector<8x64xf32> to vector<8xf32>
    %233 = vector.shape_cast %232 : vector<8xf32> to vector<8x1xf32>
    %234 = tpu.reciprocal %233 {approx = true} : vector<8x1xf32> -> vector<8x1xf32>
    %235 = vector.broadcast %234 : vector<8x1xf32> to vector<8x64xf32>
    %236 = arith.mulf %231, %235 : vector<8x64xf32>
    %237 = arith.truncf %236 : vector<8x64xf32> to vector<8x64xbf16>
    %238 = vector.extract_strided_slice %179 {offsets = [0, 8], sizes = [64, 4], strides = [1, 1]} : vector<64x16xbf16> to vector<64x4xbf16>
    %cst_100 = arith.constant dense<0.000000e+00> : vector<8x4xf32>
    %239 = tpu.matmul %237, %238, %cst_100 {dimension_numbers = #tpu.dot_dimension_numbers<[1], [0], [0], [1], [0, 0, 1, 1], [], []>} : vector<8x64xbf16>, vector<64x4xbf16>, vector<8x4xf32> -> vector<8x4xf32>
    %240 = arith.truncf %239 : vector<8x4xf32> to vector<8x4xbf16>
    %241 = vector.extract_strided_slice %157 {offsets = [0, 12], sizes = [8, 4], strides = [1, 1]} : vector<8x16xbf16> to vector<8x4xbf16>
    %242 = vector.extract_strided_slice %168 {offsets = [0, 12], sizes = [64, 4], strides = [1, 1]} : vector<64x16xbf16> to vector<64x4xbf16>
    %cst_101 = arith.constant dense<0.000000e+00> : vector<8x64xf32>
    %243 = tpu.matmul %241, %242, %cst_101 {dimension_numbers = #tpu.dot_dimension_numbers<[1], [1], [0], [0], [0, 0, 1, 0], [], []>} : vector<8x4xbf16>, vector<64x4xbf16>, vector<8x64xf32> -> vector<8x64xf32>
    %cst_102 = arith.constant 5.000000e-01 : f32
    %244 = vector.broadcast %cst_102 : f32 to vector<8x64xf32>
    %245 = arith.mulf %243, %244 : vector<8x64xf32>
    %cst_103 = arith.constant dense<0xFF800000> : vector<8xf32>
    %246 = vector.multi_reduction <maximumf>, %245, %cst_103 [1] : vector<8x64xf32> to vector<8xf32>
    %247 = vector.shape_cast %246 : vector<8xf32> to vector<8x1xf32>
    %248 = vector.broadcast %247 : vector<8x1xf32> to vector<8x64xf32>
    %249 = arith.subf %245, %248 : vector<8x64xf32>
    %250 = math.exp %249 : vector<8x64xf32>
    %cst_104 = arith.constant dense<0.000000e+00> : vector<8xf32>
    %251 = vector.multi_reduction <add>, %250, %cst_104 [1] : vector<8x64xf32> to vector<8xf32>
    %252 = vector.shape_cast %251 : vector<8xf32> to vector<8x1xf32>
    %253 = tpu.reciprocal %252 {approx = true} : vector<8x1xf32> -> vector<8x1xf32>
    %254 = vector.broadcast %253 : vector<8x1xf32> to vector<8x64xf32>
    %255 = arith.mulf %250, %254 : vector<8x64xf32>
    %256 = arith.truncf %255 : vector<8x64xf32> to vector<8x64xbf16>
    %257 = vector.extract_strided_slice %179 {offsets = [0, 12], sizes = [64, 4], strides = [1, 1]} : vector<64x16xbf16> to vector<64x4xbf16>
    %cst_105 = arith.constant dense<0.000000e+00> : vector<8x4xf32>
    %258 = tpu.matmul %256, %257, %cst_105 {dimension_numbers = #tpu.dot_dimension_numbers<[1], [0], [0], [1], [0, 0, 1, 1], [], []>} : vector<8x64xbf16>, vector<64x4xbf16>, vector<8x4xf32> -> vector<8x4xf32>
    %259 = arith.truncf %258 : vector<8x4xf32> to vector<8x4xbf16>
    %260 = tpu.concatenate %202, %221, %240, %259 in 1 : vector<8x4xbf16>, vector<8x4xbf16>, vector<8x4xbf16>, vector<8x4xbf16> -> vector<8x16xbf16>
    %cst_106 = arith.constant dense<0.000000e+00> : vector<8x32xf32>
    %261 = tpu.matmul %260, %181, %cst_106 {dimension_numbers = #tpu.dot_dimension_numbers<[1], [0], [0], [1], [0, 0, 1, 1], [], []>} : vector<8x16xbf16>, vector<16x32xbf16>, vector<8x32xf32> -> vector<8x32xf32>
    %262 = arith.extf %183 : vector<1x32xbf16> to vector<1x32xf32>
    %263 = vector.broadcast %262 : vector<1x32xf32> to vector<8x32xf32>
    %264 = arith.addf %261, %263 : vector<8x32xf32>
    %265 = arith.addf %142, %264 : vector<8x32xf32>
    %266 = vector.extract_strided_slice %15 {offsets = [1, 0], sizes = [1, 32], strides = [1, 1]} : vector<8x32xf32> to vector<1x32xf32>
    %267 = vector.extract_strided_slice %17 {offsets = [1, 0], sizes = [1, 32], strides = [1, 1]} : vector<8x32xf32> to vector<1x32xf32>
    %cst_107 = arith.constant dense<0.000000e+00> : vector<8xf32>
    %268 = vector.multi_reduction <add>, %265, %cst_107 [1] : vector<8x32xf32> to vector<8xf32>
    %269 = vector.shape_cast %268 : vector<8xf32> to vector<8x1xf32>
    %cst_108 = arith.constant 3.200000e+01 : f32
    %270 = vector.broadcast %cst_108 : f32 to vector<8x1xf32>
    %271 = arith.divf %269, %270 : vector<8x1xf32>
    %272 = vector.broadcast %271 : vector<8x1xf32> to vector<8x32xf32>
    %273 = arith.subf %265, %272 : vector<8x32xf32>
    %274 = arith.mulf %273, %273 : vector<8x32xf32>
    %cst_109 = arith.constant dense<0.000000e+00> : vector<8xf32>
    %275 = vector.multi_reduction <add>, %274, %cst_109 [1] : vector<8x32xf32> to vector<8xf32>
    %276 = vector.shape_cast %275 : vector<8xf32> to vector<8x1xf32>
    %cst_110 = arith.constant 3.200000e+01 : f32
    %277 = vector.broadcast %cst_110 : f32 to vector<8x1xf32>
    %278 = arith.divf %276, %277 : vector<8x1xf32>
    %cst_111 = arith.constant 9.99999974E-6 : f32
    %279 = vector.broadcast %cst_111 : f32 to vector<8x1xf32>
    %280 = arith.addf %278, %279 : vector<8x1xf32>
    %281 = math.rsqrt %280 : vector<8x1xf32>
    %282 = vector.broadcast %281 : vector<8x1xf32> to vector<8x32xf32>
    %283 = arith.mulf %273, %282 : vector<8x32xf32>
    %284 = vector.broadcast %266 : vector<1x32xf32> to vector<8x32xf32>
    %285 = arith.mulf %283, %284 : vector<8x32xf32>
    %286 = vector.broadcast %267 : vector<1x32xf32> to vector<8x32xf32>
    %287 = arith.addf %285, %286 : vector<8x32xf32>
    %288 = arith.truncf %287 : vector<8x32xf32> to vector<8x32xbf16>
    %289 = arith.extf %288 : vector<8x32xbf16> to vector<8x32xf32>
    %c0_112 = arith.constant 0 : index
    %c0_113 = arith.constant 0 : index
    %c0_114 = arith.constant 0 : index
    %290 = vector.load %arg19[%c0_112, %c0_113, %c0_114] : memref<2x32x64xbf16, #tpu.memory_space<vmem>>, vector<1x32x64xbf16>
    %291 = vector.shape_cast %290 : vector<1x32x64xbf16> to vector<32x64xbf16>
    %cst_115 = arith.constant dense<0.000000e+00> : vector<8x64xf32>
    %292 = tpu.matmul %288, %291, %cst_115 {dimension_numbers = #tpu.dot_dimension_numbers<[1], [0], [0], [1], [0, 0, 1, 1], [], []>} : vector<8x32xbf16>, vector<32x64xbf16>, vector<8x64xf32> -> vector<8x64xf32>
    %c0_116 = arith.constant 0 : index
    %c0_117 = arith.constant 0 : index
    %c0_118 = arith.constant 0 : index
    %293 = vector.load %arg20[%c0_116, %c0_117, %c0_118] : memref<2x1x64xbf16, #tpu.memory_space<vmem>>, vector<1x1x64xbf16>
    %294 = vector.shape_cast %293 : vector<1x1x64xbf16> to vector<1x64xbf16>
    %295 = arith.extf %294 : vector<1x64xbf16> to vector<1x64xf32>
    %296 = vector.broadcast %295 : vector<1x64xf32> to vector<8x64xf32>
    %297 = arith.addf %292, %296 : vector<8x64xf32>
    %cst_119 = arith.constant 0.000000e+00 : f32
    %298 = vector.broadcast %cst_119 : f32 to vector<8x64xf32>
    %299 = arith.maximumf %297, %298 : vector<8x64xf32>
    %300 = arith.truncf %299 : vector<8x64xf32> to vector<8x64xbf16>
    %c0_120 = arith.constant 0 : index
    %c0_121 = arith.constant 0 : index
    %c0_122 = arith.constant 0 : index
    %301 = vector.load %arg21[%c0_120, %c0_121, %c0_122] : memref<2x64x32xbf16, #tpu.memory_space<vmem>>, vector<1x64x32xbf16>
    %302 = vector.shape_cast %301 : vector<1x64x32xbf16> to vector<64x32xbf16>
    %cst_123 = arith.constant dense<0.000000e+00> : vector<8x32xf32>
    %303 = tpu.matmul %300, %302, %cst_123 {dimension_numbers = #tpu.dot_dimension_numbers<[1], [0], [0], [1], [0, 0, 1, 1], [], []>} : vector<8x64xbf16>, vector<64x32xbf16>, vector<8x32xf32> -> vector<8x32xf32>
    %c0_124 = arith.constant 0 : index
    %c0_125 = arith.constant 0 : index
    %c0_126 = arith.constant 0 : index
    %304 = vector.load %arg22[%c0_124, %c0_125, %c0_126] : memref<2x1x32xbf16, #tpu.memory_space<vmem>>, vector<1x1x32xbf16>
    %305 = vector.shape_cast %304 : vector<1x1x32xbf16> to vector<1x32xbf16>
    %306 = arith.extf %305 : vector<1x32xbf16> to vector<1x32xf32>
    %307 = vector.broadcast %306 : vector<1x32xf32> to vector<8x32xf32>
    %308 = arith.addf %303, %307 : vector<8x32xf32>
    %309 = arith.addf %289, %308 : vector<8x32xf32>
    %310 = vector.extract_strided_slice %15 {offsets = [2, 0], sizes = [1, 32], strides = [1, 1]} : vector<8x32xf32> to vector<1x32xf32>
    %311 = vector.extract_strided_slice %17 {offsets = [2, 0], sizes = [1, 32], strides = [1, 1]} : vector<8x32xf32> to vector<1x32xf32>
    %cst_127 = arith.constant dense<0.000000e+00> : vector<8xf32>
    %312 = vector.multi_reduction <add>, %309, %cst_127 [1] : vector<8x32xf32> to vector<8xf32>
    %313 = vector.shape_cast %312 : vector<8xf32> to vector<8x1xf32>
    %cst_128 = arith.constant 3.200000e+01 : f32
    %314 = vector.broadcast %cst_128 : f32 to vector<8x1xf32>
    %315 = arith.divf %313, %314 : vector<8x1xf32>
    %316 = vector.broadcast %315 : vector<8x1xf32> to vector<8x32xf32>
    %317 = arith.subf %309, %316 : vector<8x32xf32>
    %318 = arith.mulf %317, %317 : vector<8x32xf32>
    %cst_129 = arith.constant dense<0.000000e+00> : vector<8xf32>
    %319 = vector.multi_reduction <add>, %318, %cst_129 [1] : vector<8x32xf32> to vector<8xf32>
    %320 = vector.shape_cast %319 : vector<8xf32> to vector<8x1xf32>
    %cst_130 = arith.constant 3.200000e+01 : f32
    %321 = vector.broadcast %cst_130 : f32 to vector<8x1xf32>
    %322 = arith.divf %320, %321 : vector<8x1xf32>
    %cst_131 = arith.constant 9.99999974E-6 : f32
    %323 = vector.broadcast %cst_131 : f32 to vector<8x1xf32>
    %324 = arith.addf %322, %323 : vector<8x1xf32>
    %325 = math.rsqrt %324 : vector<8x1xf32>
    %326 = vector.broadcast %325 : vector<8x1xf32> to vector<8x32xf32>
    %327 = arith.mulf %317, %326 : vector<8x32xf32>
    %328 = vector.broadcast %310 : vector<1x32xf32> to vector<8x32xf32>
    %329 = arith.mulf %327, %328 : vector<8x32xf32>
    %330 = vector.broadcast %311 : vector<1x32xf32> to vector<8x32xf32>
    %331 = arith.addf %329, %330 : vector<8x32xf32>
    %332 = arith.truncf %331 : vector<8x32xf32> to vector<8x32xbf16>
    %333 = arith.extf %332 : vector<8x32xbf16> to vector<8x32xf32>
    %334 = arith.addf %333, %11 : vector<8x32xf32>
    %335 = arith.truncf %334 : vector<8x32xf32> to vector<8x32xbf16>
    %c0_132 = arith.constant 0 : index
    %c0_133 = arith.constant 0 : index
    %c0_134 = arith.constant 0 : index
    %336 = vector.load %arg15[%c0_132, %c0_133, %c0_134] : memref<2x32x48xbf16, #tpu.memory_space<vmem>>, vector<1x32x48xbf16>
    %337 = vector.shape_cast %336 : vector<1x32x48xbf16> to vector<32x48xbf16>
    %338 = vector.extract_strided_slice %337 {offsets = [0, 0], sizes = [32, 16], strides = [1, 1]} : vector<32x48xbf16> to vector<32x16xbf16>
    %c0_135 = arith.constant 0 : index
    %c0_136 = arith.constant 0 : index
    %c0_137 = arith.constant 0 : index
    %339 = vector.load %arg16[%c0_135, %c0_136, %c0_137] : memref<2x1x48xbf16, #tpu.memory_space<vmem>>, vector<1x1x48xbf16>
    %340 = vector.shape_cast %339 : vector<1x1x48xbf16> to vector<1x48xbf16>
    %341 = vector.extract_strided_slice %340 {offsets = [0, 0], sizes = [1, 16], strides = [1, 1]} : vector<1x48xbf16> to vector<1x16xbf16>
    %cst_138 = arith.constant dense<0.000000e+00> : vector<64x16xf32>
    %342 = tpu.matmul %144, %338, %cst_138 {dimension_numbers = #tpu.dot_dimension_numbers<[1], [0], [0], [1], [0, 0, 1, 1], [], []>} : vector<64x32xbf16>, vector<32x16xbf16>, vector<64x16xf32> -> vector<64x16xf32>
    %343 = arith.extf %341 : vector<1x16xbf16> to vector<1x16xf32>
    %344 = vector.broadcast %343 : vector<1x16xf32> to vector<64x16xf32>
    %345 = arith.addf %342, %344 : vector<64x16xf32>
    %346 = arith.truncf %345 : vector<64x16xf32> to vector<64x16xbf16>
    %c0_139 = arith.constant 0 : index
    %c0_140 = arith.constant 0 : index
    %c0_141 = arith.constant 0 : index
    %347 = vector.load %arg15[%c0_139, %c0_140, %c0_141] : memref<2x32x48xbf16, #tpu.memory_space<vmem>>, vector<1x32x48xbf16>
    %348 = vector.shape_cast %347 : vector<1x32x48xbf16> to vector<32x48xbf16>
    %349 = vector.extract_strided_slice %348 {offsets = [0, 16], sizes = [32, 16], strides = [1, 1]} : vector<32x48xbf16> to vector<32x16xbf16>
    %c0_142 = arith.constant 0 : index
    %c0_143 = arith.constant 0 : index
    %c0_144 = arith.constant 0 : index
    %350 = vector.load %arg16[%c0_142, %c0_143, %c0_144] : memref<2x1x48xbf16, #tpu.memory_space<vmem>>, vector<1x1x48xbf16>
    %351 = vector.shape_cast %350 : vector<1x1x48xbf16> to vector<1x48xbf16>
    %352 = vector.extract_strided_slice %351 {offsets = [0, 16], sizes = [1, 16], strides = [1, 1]} : vector<1x48xbf16> to vector<1x16xbf16>
    %cst_145 = arith.constant dense<0.000000e+00> : vector<8x16xf32>
    %353 = tpu.matmul %335, %349, %cst_145 {dimension_numbers = #tpu.dot_dimension_numbers<[1], [0], [0], [1], [0, 0, 1, 1], [], []>} : vector<8x32xbf16>, vector<32x16xbf16>, vector<8x16xf32> -> vector<8x16xf32>
    %354 = arith.extf %352 : vector<1x16xbf16> to vector<1x16xf32>
    %355 = vector.broadcast %354 : vector<1x16xf32> to vector<8x16xf32>
    %356 = arith.addf %353, %355 : vector<8x16xf32>
    %357 = arith.truncf %356 : vector<8x16xf32> to vector<8x16xbf16>
    %c0_146 = arith.constant 0 : index
    %c0_147 = arith.constant 0 : index
    %c0_148 = arith.constant 0 : index
    %358 = vector.load %arg15[%c0_146, %c0_147, %c0_148] : memref<2x32x48xbf16, #tpu.memory_space<vmem>>, vector<1x32x48xbf16>
    %359 = vector.shape_cast %358 : vector<1x32x48xbf16> to vector<32x48xbf16>
    %360 = vector.extract_strided_slice %359 {offsets = [0, 32], sizes = [32, 16], strides = [1, 1]} : vector<32x48xbf16> to vector<32x16xbf16>
    %c0_149 = arith.constant 0 : index
    %c0_150 = arith.constant 0 : index
    %c0_151 = arith.constant 0 : index
    %361 = vector.load %arg16[%c0_149, %c0_150, %c0_151] : memref<2x1x48xbf16, #tpu.memory_space<vmem>>, vector<1x1x48xbf16>
    %362 = vector.shape_cast %361 : vector<1x1x48xbf16> to vector<1x48xbf16>
    %363 = vector.extract_strided_slice %362 {offsets = [0, 32], sizes = [1, 16], strides = [1, 1]} : vector<1x48xbf16> to vector<1x16xbf16>
    %cst_152 = arith.constant dense<0.000000e+00> : vector<8x16xf32>
    %364 = tpu.matmul %332, %360, %cst_152 {dimension_numbers = #tpu.dot_dimension_numbers<[1], [0], [0], [1], [0, 0, 1, 1], [], []>} : vector<8x32xbf16>, vector<32x16xbf16>, vector<8x16xf32> -> vector<8x16xf32>
    %365 = arith.extf %363 : vector<1x16xbf16> to vector<1x16xf32>
    %366 = vector.broadcast %365 : vector<1x16xf32> to vector<8x16xf32>
    %367 = arith.addf %364, %366 : vector<8x16xf32>
    %368 = arith.truncf %367 : vector<8x16xf32> to vector<8x16xbf16>
    %c0_153 = arith.constant 0 : index
    %c0_154 = arith.constant 0 : index
    %c0_155 = arith.constant 0 : index
    %369 = vector.load %arg17[%c0_153, %c0_154, %c0_155] : memref<2x16x32xbf16, #tpu.memory_space<vmem>>, vector<1x16x32xbf16>
    %370 = vector.shape_cast %369 : vector<1x16x32xbf16> to vector<16x32xbf16>
    %c0_156 = arith.constant 0 : index
    %c0_157 = arith.constant 0 : index
    %c0_158 = arith.constant 0 : index
    %371 = vector.load %arg18[%c0_156, %c0_157, %c0_158] : memref<2x1x32xbf16, #tpu.memory_space<vmem>>, vector<1x1x32xbf16>
    %372 = vector.shape_cast %371 : vector<1x1x32xbf16> to vector<1x32xbf16>
    %373 = vector.extract_strided_slice %346 {offsets = [0, 0], sizes = [64, 4], strides = [1, 1]} : vector<64x16xbf16> to vector<64x4xbf16>
    %374 = vector.extract_strided_slice %357 {offsets = [0, 0], sizes = [8, 4], strides = [1, 1]} : vector<8x16xbf16> to vector<8x4xbf16>
    %cst_159 = arith.constant dense<0.000000e+00> : vector<64x8xf32>
    %375 = tpu.matmul %373, %374, %cst_159 {dimension_numbers = #tpu.dot_dimension_numbers<[1], [1], [0], [0], [0, 0, 1, 0], [], []>} : vector<64x4xbf16>, vector<8x4xbf16>, vector<64x8xf32> -> vector<64x8xf32>
    %cst_160 = arith.constant 5.000000e-01 : f32
    %376 = vector.broadcast %cst_160 : f32 to vector<64x8xf32>
    %377 = arith.mulf %375, %376 : vector<64x8xf32>
    %cst_161 = arith.constant dense<0xFF800000> : vector<64xf32>
    %378 = vector.multi_reduction <maximumf>, %377, %cst_161 [1] : vector<64x8xf32> to vector<64xf32>
    %379 = vector.shape_cast %378 : vector<64xf32> to vector<64x1xf32>
    %380 = vector.broadcast %379 : vector<64x1xf32> to vector<64x8xf32>
    %381 = arith.subf %377, %380 : vector<64x8xf32>
    %382 = math.exp %381 : vector<64x8xf32>
    %cst_162 = arith.constant dense<0.000000e+00> : vector<64xf32>
    %383 = vector.multi_reduction <add>, %382, %cst_162 [1] : vector<64x8xf32> to vector<64xf32>
    %384 = vector.shape_cast %383 : vector<64xf32> to vector<64x1xf32>
    %385 = tpu.reciprocal %384 {approx = true} : vector<64x1xf32> -> vector<64x1xf32>
    %386 = vector.broadcast %385 : vector<64x1xf32> to vector<64x8xf32>
    %387 = arith.mulf %382, %386 : vector<64x8xf32>
    %388 = arith.truncf %387 : vector<64x8xf32> to vector<64x8xbf16>
    %389 = vector.extract_strided_slice %368 {offsets = [0, 0], sizes = [8, 4], strides = [1, 1]} : vector<8x16xbf16> to vector<8x4xbf16>
    %cst_163 = arith.constant dense<0.000000e+00> : vector<64x4xf32>
    %390 = tpu.matmul %388, %389, %cst_163 {dimension_numbers = #tpu.dot_dimension_numbers<[1], [0], [0], [1], [0, 0, 1, 1], [], []>} : vector<64x8xbf16>, vector<8x4xbf16>, vector<64x4xf32> -> vector<64x4xf32>
    %391 = arith.truncf %390 : vector<64x4xf32> to vector<64x4xbf16>
    %392 = vector.extract_strided_slice %346 {offsets = [0, 4], sizes = [64, 4], strides = [1, 1]} : vector<64x16xbf16> to vector<64x4xbf16>
    %393 = vector.extract_strided_slice %357 {offsets = [0, 4], sizes = [8, 4], strides = [1, 1]} : vector<8x16xbf16> to vector<8x4xbf16>
    %cst_164 = arith.constant dense<0.000000e+00> : vector<64x8xf32>
    %394 = tpu.matmul %392, %393, %cst_164 {dimension_numbers = #tpu.dot_dimension_numbers<[1], [1], [0], [0], [0, 0, 1, 0], [], []>} : vector<64x4xbf16>, vector<8x4xbf16>, vector<64x8xf32> -> vector<64x8xf32>
    %cst_165 = arith.constant 5.000000e-01 : f32
    %395 = vector.broadcast %cst_165 : f32 to vector<64x8xf32>
    %396 = arith.mulf %394, %395 : vector<64x8xf32>
    %cst_166 = arith.constant dense<0xFF800000> : vector<64xf32>
    %397 = vector.multi_reduction <maximumf>, %396, %cst_166 [1] : vector<64x8xf32> to vector<64xf32>
    %398 = vector.shape_cast %397 : vector<64xf32> to vector<64x1xf32>
    %399 = vector.broadcast %398 : vector<64x1xf32> to vector<64x8xf32>
    %400 = arith.subf %396, %399 : vector<64x8xf32>
    %401 = math.exp %400 : vector<64x8xf32>
    %cst_167 = arith.constant dense<0.000000e+00> : vector<64xf32>
    %402 = vector.multi_reduction <add>, %401, %cst_167 [1] : vector<64x8xf32> to vector<64xf32>
    %403 = vector.shape_cast %402 : vector<64xf32> to vector<64x1xf32>
    %404 = tpu.reciprocal %403 {approx = true} : vector<64x1xf32> -> vector<64x1xf32>
    %405 = vector.broadcast %404 : vector<64x1xf32> to vector<64x8xf32>
    %406 = arith.mulf %401, %405 : vector<64x8xf32>
    %407 = arith.truncf %406 : vector<64x8xf32> to vector<64x8xbf16>
    %408 = vector.extract_strided_slice %368 {offsets = [0, 4], sizes = [8, 4], strides = [1, 1]} : vector<8x16xbf16> to vector<8x4xbf16>
    %cst_168 = arith.constant dense<0.000000e+00> : vector<64x4xf32>
    %409 = tpu.matmul %407, %408, %cst_168 {dimension_numbers = #tpu.dot_dimension_numbers<[1], [0], [0], [1], [0, 0, 1, 1], [], []>} : vector<64x8xbf16>, vector<8x4xbf16>, vector<64x4xf32> -> vector<64x4xf32>
    %410 = arith.truncf %409 : vector<64x4xf32> to vector<64x4xbf16>
    %411 = vector.extract_strided_slice %346 {offsets = [0, 8], sizes = [64, 4], strides = [1, 1]} : vector<64x16xbf16> to vector<64x4xbf16>
    %412 = vector.extract_strided_slice %357 {offsets = [0, 8], sizes = [8, 4], strides = [1, 1]} : vector<8x16xbf16> to vector<8x4xbf16>
    %cst_169 = arith.constant dense<0.000000e+00> : vector<64x8xf32>
    %413 = tpu.matmul %411, %412, %cst_169 {dimension_numbers = #tpu.dot_dimension_numbers<[1], [1], [0], [0], [0, 0, 1, 0], [], []>} : vector<64x4xbf16>, vector<8x4xbf16>, vector<64x8xf32> -> vector<64x8xf32>
    %cst_170 = arith.constant 5.000000e-01 : f32
    %414 = vector.broadcast %cst_170 : f32 to vector<64x8xf32>
    %415 = arith.mulf %413, %414 : vector<64x8xf32>
    %cst_171 = arith.constant dense<0xFF800000> : vector<64xf32>
    %416 = vector.multi_reduction <maximumf>, %415, %cst_171 [1] : vector<64x8xf32> to vector<64xf32>
    %417 = vector.shape_cast %416 : vector<64xf32> to vector<64x1xf32>
    %418 = vector.broadcast %417 : vector<64x1xf32> to vector<64x8xf32>
    %419 = arith.subf %415, %418 : vector<64x8xf32>
    %420 = math.exp %419 : vector<64x8xf32>
    %cst_172 = arith.constant dense<0.000000e+00> : vector<64xf32>
    %421 = vector.multi_reduction <add>, %420, %cst_172 [1] : vector<64x8xf32> to vector<64xf32>
    %422 = vector.shape_cast %421 : vector<64xf32> to vector<64x1xf32>
    %423 = tpu.reciprocal %422 {approx = true} : vector<64x1xf32> -> vector<64x1xf32>
    %424 = vector.broadcast %423 : vector<64x1xf32> to vector<64x8xf32>
    %425 = arith.mulf %420, %424 : vector<64x8xf32>
    %426 = arith.truncf %425 : vector<64x8xf32> to vector<64x8xbf16>
    %427 = vector.extract_strided_slice %368 {offsets = [0, 8], sizes = [8, 4], strides = [1, 1]} : vector<8x16xbf16> to vector<8x4xbf16>
    %cst_173 = arith.constant dense<0.000000e+00> : vector<64x4xf32>
    %428 = tpu.matmul %426, %427, %cst_173 {dimension_numbers = #tpu.dot_dimension_numbers<[1], [0], [0], [1], [0, 0, 1, 1], [], []>} : vector<64x8xbf16>, vector<8x4xbf16>, vector<64x4xf32> -> vector<64x4xf32>
    %429 = arith.truncf %428 : vector<64x4xf32> to vector<64x4xbf16>
    %430 = vector.extract_strided_slice %346 {offsets = [0, 12], sizes = [64, 4], strides = [1, 1]} : vector<64x16xbf16> to vector<64x4xbf16>
    %431 = vector.extract_strided_slice %357 {offsets = [0, 12], sizes = [8, 4], strides = [1, 1]} : vector<8x16xbf16> to vector<8x4xbf16>
    %cst_174 = arith.constant dense<0.000000e+00> : vector<64x8xf32>
    %432 = tpu.matmul %430, %431, %cst_174 {dimension_numbers = #tpu.dot_dimension_numbers<[1], [1], [0], [0], [0, 0, 1, 0], [], []>} : vector<64x4xbf16>, vector<8x4xbf16>, vector<64x8xf32> -> vector<64x8xf32>
    %cst_175 = arith.constant 5.000000e-01 : f32
    %433 = vector.broadcast %cst_175 : f32 to vector<64x8xf32>
    %434 = arith.mulf %432, %433 : vector<64x8xf32>
    %cst_176 = arith.constant dense<0xFF800000> : vector<64xf32>
    %435 = vector.multi_reduction <maximumf>, %434, %cst_176 [1] : vector<64x8xf32> to vector<64xf32>
    %436 = vector.shape_cast %435 : vector<64xf32> to vector<64x1xf32>
    %437 = vector.broadcast %436 : vector<64x1xf32> to vector<64x8xf32>
    %438 = arith.subf %434, %437 : vector<64x8xf32>
    %439 = math.exp %438 : vector<64x8xf32>
    %cst_177 = arith.constant dense<0.000000e+00> : vector<64xf32>
    %440 = vector.multi_reduction <add>, %439, %cst_177 [1] : vector<64x8xf32> to vector<64xf32>
    %441 = vector.shape_cast %440 : vector<64xf32> to vector<64x1xf32>
    %442 = tpu.reciprocal %441 {approx = true} : vector<64x1xf32> -> vector<64x1xf32>
    %443 = vector.broadcast %442 : vector<64x1xf32> to vector<64x8xf32>
    %444 = arith.mulf %439, %443 : vector<64x8xf32>
    %445 = arith.truncf %444 : vector<64x8xf32> to vector<64x8xbf16>
    %446 = vector.extract_strided_slice %368 {offsets = [0, 12], sizes = [8, 4], strides = [1, 1]} : vector<8x16xbf16> to vector<8x4xbf16>
    %cst_178 = arith.constant dense<0.000000e+00> : vector<64x4xf32>
    %447 = tpu.matmul %445, %446, %cst_178 {dimension_numbers = #tpu.dot_dimension_numbers<[1], [0], [0], [1], [0, 0, 1, 1], [], []>} : vector<64x8xbf16>, vector<8x4xbf16>, vector<64x4xf32> -> vector<64x4xf32>
    %448 = arith.truncf %447 : vector<64x4xf32> to vector<64x4xbf16>
    %449 = tpu.concatenate %391, %410, %429, %448 in 1 : vector<64x4xbf16>, vector<64x4xbf16>, vector<64x4xbf16>, vector<64x4xbf16> -> vector<64x16xbf16>
    %cst_179 = arith.constant dense<0.000000e+00> : vector<64x32xf32>
    %450 = tpu.matmul %449, %370, %cst_179 {dimension_numbers = #tpu.dot_dimension_numbers<[1], [0], [0], [1], [0, 0, 1, 1], [], []>} : vector<64x16xbf16>, vector<16x32xbf16>, vector<64x32xf32> -> vector<64x32xf32>
    %451 = arith.extf %372 : vector<1x32xbf16> to vector<1x32xf32>
    %452 = vector.broadcast %451 : vector<1x32xf32> to vector<64x32xf32>
    %453 = arith.addf %450, %452 : vector<64x32xf32>
    %454 = arith.truncf %453 : vector<64x32xf32> to vector<64x32xbf16>
    %c0_180 = arith.constant 0 : index
    %c1 = arith.constant 1 : index
    %c0_181 = arith.constant 0 : index
    %c0_182 = arith.constant 0 : index
    %455 = vector.load %arg25[%c0_180, %c1, %c0_181, %c0_182] : memref<1x6x64x32xbf16, #tpu.memory_space<vmem>>, vector<1x1x64x32xbf16>
    %456 = vector.shape_cast %455 : vector<1x1x64x32xbf16> to vector<64x32xbf16>
    %457 = vector.shape_cast %454 : vector<64x32xbf16> to vector<1x1x64x32xbf16>
    tpu.vector_store %arg25[%c0_180, %c1, %c0_181, %c0_182], %457 {strides = array<i32>} : memref<1x6x64x32xbf16, #tpu.memory_space<vmem>>, vector<1x1x64x32xbf16>,
    %458 = arith.addf %21, %453 : vector<64x32xf32>
    %459 = vector.extract_strided_slice %15 {offsets = [3, 0], sizes = [1, 32], strides = [1, 1]} : vector<8x32xf32> to vector<1x32xf32>
    %460 = vector.extract_strided_slice %17 {offsets = [3, 0], sizes = [1, 32], strides = [1, 1]} : vector<8x32xf32> to vector<1x32xf32>
    %cst_183 = arith.constant dense<0.000000e+00> : vector<64xf32>
    %461 = vector.multi_reduction <add>, %458, %cst_183 [1] : vector<64x32xf32> to vector<64xf32>
    %462 = vector.shape_cast %461 : vector<64xf32> to vector<64x1xf32>
    %cst_184 = arith.constant 3.200000e+01 : f32
    %463 = vector.broadcast %cst_184 : f32 to vector<64x1xf32>
    %464 = arith.divf %462, %463 : vector<64x1xf32>
    %465 = vector.broadcast %464 : vector<64x1xf32> to vector<64x32xf32>
    %466 = arith.subf %458, %465 : vector<64x32xf32>
    %467 = arith.mulf %466, %466 : vector<64x32xf32>
    %cst_185 = arith.constant dense<0.000000e+00> : vector<64xf32>
    %468 = vector.multi_reduction <add>, %467, %cst_185 [1] : vector<64x32xf32> to vector<64xf32>
    %469 = vector.shape_cast %468 : vector<64xf32> to vector<64x1xf32>
    %cst_186 = arith.constant 3.200000e+01 : f32
    %470 = vector.broadcast %cst_186 : f32 to vector<64x1xf32>
    %471 = arith.divf %469, %470 : vector<64x1xf32>
    %cst_187 = arith.constant 9.99999974E-6 : f32
    %472 = vector.broadcast %cst_187 : f32 to vector<64x1xf32>
    %473 = arith.addf %471, %472 : vector<64x1xf32>
    %474 = math.rsqrt %473 : vector<64x1xf32>
    %475 = vector.broadcast %474 : vector<64x1xf32> to vector<64x32xf32>
    %476 = arith.mulf %466, %475 : vector<64x32xf32>
    %477 = vector.broadcast %459 : vector<1x32xf32> to vector<64x32xf32>
    %478 = arith.mulf %476, %477 : vector<64x32xf32>
    %479 = vector.broadcast %460 : vector<1x32xf32> to vector<64x32xf32>
    %480 = arith.addf %478, %479 : vector<64x32xf32>
    %481 = arith.truncf %480 : vector<64x32xf32> to vector<64x32xbf16>
    %c0_188 = arith.constant 0 : index
    %c2 = arith.constant 2 : index
    %c0_189 = arith.constant 0 : index
    %c0_190 = arith.constant 0 : index
    %482 = vector.load %arg25[%c0_188, %c2, %c0_189, %c0_190] : memref<1x6x64x32xbf16, #tpu.memory_space<vmem>>, vector<1x1x64x32xbf16>
    %483 = vector.shape_cast %482 : vector<1x1x64x32xbf16> to vector<64x32xbf16>
    %484 = vector.shape_cast %481 : vector<64x32xbf16> to vector<1x1x64x32xbf16>
    tpu.vector_store %arg25[%c0_188, %c2, %c0_189, %c0_190], %484 {strides = array<i32>} : memref<1x6x64x32xbf16, #tpu.memory_space<vmem>>, vector<1x1x64x32xbf16>,
    %c0_191 = arith.constant 0 : index
    %c3 = arith.constant 3 : index
    %c0_192 = arith.constant 0 : index
    %c0_193 = arith.constant 0 : index
    %485 = vector.load %arg25[%c0_191, %c3, %c0_192, %c0_193] : memref<1x6x64x32xbf16, #tpu.memory_space<vmem>>, vector<1x1x64x32xbf16>
    %486 = vector.shape_cast %485 : vector<1x1x64x32xbf16> to vector<64x32xbf16>
    %487 = vector.shape_cast %481 : vector<64x32xbf16> to vector<1x1x64x32xbf16>
    tpu.vector_store %arg25[%c0_191, %c3, %c0_192, %c0_193], %487 {strides = array<i32>} : memref<1x6x64x32xbf16, #tpu.memory_space<vmem>>, vector<1x1x64x32xbf16>,
    %488 = arith.extf %332 : vector<8x32xbf16> to vector<8x32xf32>
    %489 = arith.extf %481 : vector<64x32xbf16> to vector<64x32xf32>
    %c1_194 = arith.constant 1 : index
    %c0_195 = arith.constant 0 : index
    %c0_196 = arith.constant 0 : index
    %490 = vector.load %arg7[%c1_194, %c0_195, %c0_196] : memref<2x32x96xbf16, #tpu.memory_space<vmem>>, vector<1x32x96xbf16>
    %491 = vector.shape_cast %490 : vector<1x32x96xbf16> to vector<32x96xbf16>
    %c1_197 = arith.constant 1 : index
    %c0_198 = arith.constant 0 : index
    %c0_199 = arith.constant 0 : index
    %492 = vector.load %arg8[%c1_197, %c0_198, %c0_199] : memref<2x1x96xbf16, #tpu.memory_space<vmem>>, vector<1x1x96xbf16>
    %493 = vector.shape_cast %492 : vector<1x1x96xbf16> to vector<1x96xbf16>
    %494 = arith.addf %488, %11 : vector<8x32xf32>
    %495 = arith.truncf %494 : vector<8x32xf32> to vector<8x32xbf16>
    %496 = vector.extract_strided_slice %491 {offsets = [0, 0], sizes = [32, 64], strides = [1, 1]} : vector<32x96xbf16> to vector<32x64xbf16>
    %497 = vector.extract_strided_slice %493 {offsets = [0, 0], sizes = [1, 64], strides = [1, 1]} : vector<1x96xbf16> to vector<1x64xbf16>
    %cst_200 = arith.constant dense<0.000000e+00> : vector<8x64xf32>
    %498 = tpu.matmul %495, %496, %cst_200 {dimension_numbers = #tpu.dot_dimension_numbers<[1], [0], [0], [1], [0, 0, 1, 1], [], []>} : vector<8x32xbf16>, vector<32x64xbf16>, vector<8x64xf32> -> vector<8x64xf32>
    %499 = arith.extf %497 : vector<1x64xbf16> to vector<1x64xf32>
    %500 = vector.broadcast %499 : vector<1x64xf32> to vector<8x64xf32>
    %501 = arith.addf %498, %500 : vector<8x64xf32>
    %502 = arith.truncf %501 : vector<8x64xf32> to vector<8x64xbf16>
    %503 = vector.extract_strided_slice %491 {offsets = [0, 64], sizes = [32, 32], strides = [1, 1]} : vector<32x96xbf16> to vector<32x32xbf16>
    %504 = vector.extract_strided_slice %493 {offsets = [0, 64], sizes = [1, 32], strides = [1, 1]} : vector<1x96xbf16> to vector<1x32xbf16>
    %cst_201 = arith.constant dense<0.000000e+00> : vector<8x32xf32>
    %505 = tpu.matmul %332, %503, %cst_201 {dimension_numbers = #tpu.dot_dimension_numbers<[1], [0], [0], [1], [0, 0, 1, 1], [], []>} : vector<8x32xbf16>, vector<32x32xbf16>, vector<8x32xf32> -> vector<8x32xf32>
    %506 = arith.extf %504 : vector<1x32xbf16> to vector<1x32xf32>
    %507 = vector.broadcast %506 : vector<1x32xf32> to vector<8x32xf32>
    %508 = arith.addf %505, %507 : vector<8x32xf32>
    %509 = arith.truncf %508 : vector<8x32xf32> to vector<8x32xbf16>
    %510 = vector.extract_strided_slice %502 {offsets = [0, 0], sizes = [8, 32], strides = [1, 1]} : vector<8x64xbf16> to vector<8x32xbf16>
    %511 = vector.extract_strided_slice %502 {offsets = [0, 32], sizes = [8, 32], strides = [1, 1]} : vector<8x64xbf16> to vector<8x32xbf16>
    %c1_202 = arith.constant 1 : index
    %c0_203 = arith.constant 0 : index
    %c0_204 = arith.constant 0 : index
    %512 = vector.load %arg9[%c1_202, %c0_203, %c0_204] : memref<2x32x32xbf16, #tpu.memory_space<vmem>>, vector<1x32x32xbf16>
    %513 = vector.shape_cast %512 : vector<1x32x32xbf16> to vector<32x32xbf16>
    %c1_205 = arith.constant 1 : index
    %c0_206 = arith.constant 0 : index
    %c0_207 = arith.constant 0 : index
    %514 = vector.load %arg10[%c1_205, %c0_206, %c0_207] : memref<2x1x32xbf16, #tpu.memory_space<vmem>>, vector<1x1x32xbf16>
    %515 = vector.shape_cast %514 : vector<1x1x32xbf16> to vector<1x32xbf16>
    %516 = vector.extract_strided_slice %510 {offsets = [0, 0], sizes = [8, 8], strides = [1, 1]} : vector<8x32xbf16> to vector<8x8xbf16>
    %517 = vector.extract_strided_slice %511 {offsets = [0, 0], sizes = [8, 8], strides = [1, 1]} : vector<8x32xbf16> to vector<8x8xbf16>
    %cst_208 = arith.constant dense<0.000000e+00> : vector<8x8xf32>
    %518 = tpu.matmul %516, %517, %cst_208 {dimension_numbers = #tpu.dot_dimension_numbers<[1], [1], [0], [0], [0, 0, 1, 0], [], []>} : vector<8x8xbf16>, vector<8x8xbf16>, vector<8x8xf32> -> vector<8x8xf32>
    %cst_209 = arith.constant 0.353553385 : f32
    %519 = vector.broadcast %cst_209 : f32 to vector<8x8xf32>
    %520 = arith.mulf %518, %519 : vector<8x8xf32>
    %cst_210 = arith.constant dense<0xFF800000> : vector<8xf32>
    %521 = vector.multi_reduction <maximumf>, %520, %cst_210 [1] : vector<8x8xf32> to vector<8xf32>
    %522 = vector.shape_cast %521 : vector<8xf32> to vector<8x1xf32>
    %523 = vector.broadcast %522 : vector<8x1xf32> to vector<8x8xf32>
    %524 = arith.subf %520, %523 : vector<8x8xf32>
    %525 = math.exp %524 : vector<8x8xf32>
    %cst_211 = arith.constant dense<0.000000e+00> : vector<8xf32>
    %526 = vector.multi_reduction <add>, %525, %cst_211 [1] : vector<8x8xf32> to vector<8xf32>
    %527 = vector.shape_cast %526 : vector<8xf32> to vector<8x1xf32>
    %528 = tpu.reciprocal %527 {approx = true} : vector<8x1xf32> -> vector<8x1xf32>
    %529 = vector.broadcast %528 : vector<8x1xf32> to vector<8x8xf32>
    %530 = arith.mulf %525, %529 : vector<8x8xf32>
    %531 = arith.truncf %530 : vector<8x8xf32> to vector<8x8xbf16>
    %532 = vector.extract_strided_slice %509 {offsets = [0, 0], sizes = [8, 8], strides = [1, 1]} : vector<8x32xbf16> to vector<8x8xbf16>
    %cst_212 = arith.constant dense<0.000000e+00> : vector<8x8xf32>
    %533 = tpu.matmul %531, %532, %cst_212 {dimension_numbers = #tpu.dot_dimension_numbers<[1], [0], [0], [1], [0, 0, 1, 1], [], []>} : vector<8x8xbf16>, vector<8x8xbf16>, vector<8x8xf32> -> vector<8x8xf32>
    %534 = arith.truncf %533 : vector<8x8xf32> to vector<8x8xbf16>
    %535 = vector.extract_strided_slice %510 {offsets = [0, 8], sizes = [8, 8], strides = [1, 1]} : vector<8x32xbf16> to vector<8x8xbf16>
    %536 = vector.extract_strided_slice %511 {offsets = [0, 8], sizes = [8, 8], strides = [1, 1]} : vector<8x32xbf16> to vector<8x8xbf16>
    %cst_213 = arith.constant dense<0.000000e+00> : vector<8x8xf32>
    %537 = tpu.matmul %535, %536, %cst_213 {dimension_numbers = #tpu.dot_dimension_numbers<[1], [1], [0], [0], [0, 0, 1, 0], [], []>} : vector<8x8xbf16>, vector<8x8xbf16>, vector<8x8xf32> -> vector<8x8xf32>
    %cst_214 = arith.constant 0.353553385 : f32
    %538 = vector.broadcast %cst_214 : f32 to vector<8x8xf32>
    %539 = arith.mulf %537, %538 : vector<8x8xf32>
    %cst_215 = arith.constant dense<0xFF800000> : vector<8xf32>
    %540 = vector.multi_reduction <maximumf>, %539, %cst_215 [1] : vector<8x8xf32> to vector<8xf32>
    %541 = vector.shape_cast %540 : vector<8xf32> to vector<8x1xf32>
    %542 = vector.broadcast %541 : vector<8x1xf32> to vector<8x8xf32>
    %543 = arith.subf %539, %542 : vector<8x8xf32>
    %544 = math.exp %543 : vector<8x8xf32>
    %cst_216 = arith.constant dense<0.000000e+00> : vector<8xf32>
    %545 = vector.multi_reduction <add>, %544, %cst_216 [1] : vector<8x8xf32> to vector<8xf32>
    %546 = vector.shape_cast %545 : vector<8xf32> to vector<8x1xf32>
    %547 = tpu.reciprocal %546 {approx = true} : vector<8x1xf32> -> vector<8x1xf32>
    %548 = vector.broadcast %547 : vector<8x1xf32> to vector<8x8xf32>
    %549 = arith.mulf %544, %548 : vector<8x8xf32>
    %550 = arith.truncf %549 : vector<8x8xf32> to vector<8x8xbf16>
    %551 = vector.extract_strided_slice %509 {offsets = [0, 8], sizes = [8, 8], strides = [1, 1]} : vector<8x32xbf16> to vector<8x8xbf16>
    %cst_217 = arith.constant dense<0.000000e+00> : vector<8x8xf32>
    %552 = tpu.matmul %550, %551, %cst_217 {dimension_numbers = #tpu.dot_dimension_numbers<[1], [0], [0], [1], [0, 0, 1, 1], [], []>} : vector<8x8xbf16>, vector<8x8xbf16>, vector<8x8xf32> -> vector<8x8xf32>
    %553 = arith.truncf %552 : vector<8x8xf32> to vector<8x8xbf16>
    %554 = vector.extract_strided_slice %510 {offsets = [0, 16], sizes = [8, 8], strides = [1, 1]} : vector<8x32xbf16> to vector<8x8xbf16>
    %555 = vector.extract_strided_slice %511 {offsets = [0, 16], sizes = [8, 8], strides = [1, 1]} : vector<8x32xbf16> to vector<8x8xbf16>
    %cst_218 = arith.constant dense<0.000000e+00> : vector<8x8xf32>
    %556 = tpu.matmul %554, %555, %cst_218 {dimension_numbers = #tpu.dot_dimension_numbers<[1], [1], [0], [0], [0, 0, 1, 0], [], []>} : vector<8x8xbf16>, vector<8x8xbf16>, vector<8x8xf32> -> vector<8x8xf32>
    %cst_219 = arith.constant 0.353553385 : f32
    %557 = vector.broadcast %cst_219 : f32 to vector<8x8xf32>
    %558 = arith.mulf %556, %557 : vector<8x8xf32>
    %cst_220 = arith.constant dense<0xFF800000> : vector<8xf32>
    %559 = vector.multi_reduction <maximumf>, %558, %cst_220 [1] : vector<8x8xf32> to vector<8xf32>
    %560 = vector.shape_cast %559 : vector<8xf32> to vector<8x1xf32>
    %561 = vector.broadcast %560 : vector<8x1xf32> to vector<8x8xf32>
    %562 = arith.subf %558, %561 : vector<8x8xf32>
    %563 = math.exp %562 : vector<8x8xf32>
    %cst_221 = arith.constant dense<0.000000e+00> : vector<8xf32>
    %564 = vector.multi_reduction <add>, %563, %cst_221 [1] : vector<8x8xf32> to vector<8xf32>
    %565 = vector.shape_cast %564 : vector<8xf32> to vector<8x1xf32>
    %566 = tpu.reciprocal %565 {approx = true} : vector<8x1xf32> -> vector<8x1xf32>
    %567 = vector.broadcast %566 : vector<8x1xf32> to vector<8x8xf32>
    %568 = arith.mulf %563, %567 : vector<8x8xf32>
    %569 = arith.truncf %568 : vector<8x8xf32> to vector<8x8xbf16>
    %570 = vector.extract_strided_slice %509 {offsets = [0, 16], sizes = [8, 8], strides = [1, 1]} : vector<8x32xbf16> to vector<8x8xbf16>
    %cst_222 = arith.constant dense<0.000000e+00> : vector<8x8xf32>
    %571 = tpu.matmul %569, %570, %cst_222 {dimension_numbers = #tpu.dot_dimension_numbers<[1], [0], [0], [1], [0, 0, 1, 1], [], []>} : vector<8x8xbf16>, vector<8x8xbf16>, vector<8x8xf32> -> vector<8x8xf32>
    %572 = arith.truncf %571 : vector<8x8xf32> to vector<8x8xbf16>
    %573 = vector.extract_strided_slice %510 {offsets = [0, 24], sizes = [8, 8], strides = [1, 1]} : vector<8x32xbf16> to vector<8x8xbf16>
    %574 = vector.extract_strided_slice %511 {offsets = [0, 24], sizes = [8, 8], strides = [1, 1]} : vector<8x32xbf16> to vector<8x8xbf16>
    %cst_223 = arith.constant dense<0.000000e+00> : vector<8x8xf32>
    %575 = tpu.matmul %573, %574, %cst_223 {dimension_numbers = #tpu.dot_dimension_numbers<[1], [1], [0], [0], [0, 0, 1, 0], [], []>} : vector<8x8xbf16>, vector<8x8xbf16>, vector<8x8xf32> -> vector<8x8xf32>
    %cst_224 = arith.constant 0.353553385 : f32
    %576 = vector.broadcast %cst_224 : f32 to vector<8x8xf32>
    %577 = arith.mulf %575, %576 : vector<8x8xf32>
    %cst_225 = arith.constant dense<0xFF800000> : vector<8xf32>
    %578 = vector.multi_reduction <maximumf>, %577, %cst_225 [1] : vector<8x8xf32> to vector<8xf32>
    %579 = vector.shape_cast %578 : vector<8xf32> to vector<8x1xf32>
    %580 = vector.broadcast %579 : vector<8x1xf32> to vector<8x8xf32>
    %581 = arith.subf %577, %580 : vector<8x8xf32>
    %582 = math.exp %581 : vector<8x8xf32>
    %cst_226 = arith.constant dense<0.000000e+00> : vector<8xf32>
    %583 = vector.multi_reduction <add>, %582, %cst_226 [1] : vector<8x8xf32> to vector<8xf32>
    %584 = vector.shape_cast %583 : vector<8xf32> to vector<8x1xf32>
    %585 = tpu.reciprocal %584 {approx = true} : vector<8x1xf32> -> vector<8x1xf32>
    %586 = vector.broadcast %585 : vector<8x1xf32> to vector<8x8xf32>
    %587 = arith.mulf %582, %586 : vector<8x8xf32>
    %588 = arith.truncf %587 : vector<8x8xf32> to vector<8x8xbf16>
    %589 = vector.extract_strided_slice %509 {offsets = [0, 24], sizes = [8, 8], strides = [1, 1]} : vector<8x32xbf16> to vector<8x8xbf16>
    %cst_227 = arith.constant dense<0.000000e+00> : vector<8x8xf32>
    %590 = tpu.matmul %588, %589, %cst_227 {dimension_numbers = #tpu.dot_dimension_numbers<[1], [0], [0], [1], [0, 0, 1, 1], [], []>} : vector<8x8xbf16>, vector<8x8xbf16>, vector<8x8xf32> -> vector<8x8xf32>
    %591 = arith.truncf %590 : vector<8x8xf32> to vector<8x8xbf16>
    %592 = tpu.concatenate %534, %553, %572, %591 in 1 : vector<8x8xbf16>, vector<8x8xbf16>, vector<8x8xbf16>, vector<8x8xbf16> -> vector<8x32xbf16>
    %cst_228 = arith.constant dense<0.000000e+00> : vector<8x32xf32>
    %593 = tpu.matmul %592, %513, %cst_228 {dimension_numbers = #tpu.dot_dimension_numbers<[1], [0], [0], [1], [0, 0, 1, 1], [], []>} : vector<8x32xbf16>, vector<32x32xbf16>, vector<8x32xf32> -> vector<8x32xf32>
    %594 = arith.extf %515 : vector<1x32xbf16> to vector<1x32xf32>
    %595 = vector.broadcast %594 : vector<1x32xf32> to vector<8x32xf32>
    %596 = arith.addf %593, %595 : vector<8x32xf32>
    %597 = arith.addf %488, %596 : vector<8x32xf32>
    %598 = vector.extract_strided_slice %15 {offsets = [4, 0], sizes = [1, 32], strides = [1, 1]} : vector<8x32xf32> to vector<1x32xf32>
    %599 = vector.extract_strided_slice %17 {offsets = [4, 0], sizes = [1, 32], strides = [1, 1]} : vector<8x32xf32> to vector<1x32xf32>
    %cst_229 = arith.constant dense<0.000000e+00> : vector<8xf32>
    %600 = vector.multi_reduction <add>, %597, %cst_229 [1] : vector<8x32xf32> to vector<8xf32>
    %601 = vector.shape_cast %600 : vector<8xf32> to vector<8x1xf32>
    %cst_230 = arith.constant 3.200000e+01 : f32
    %602 = vector.broadcast %cst_230 : f32 to vector<8x1xf32>
    %603 = arith.divf %601, %602 : vector<8x1xf32>
    %604 = vector.broadcast %603 : vector<8x1xf32> to vector<8x32xf32>
    %605 = arith.subf %597, %604 : vector<8x32xf32>
    %606 = arith.mulf %605, %605 : vector<8x32xf32>
    %cst_231 = arith.constant dense<0.000000e+00> : vector<8xf32>
    %607 = vector.multi_reduction <add>, %606, %cst_231 [1] : vector<8x32xf32> to vector<8xf32>
    %608 = vector.shape_cast %607 : vector<8xf32> to vector<8x1xf32>
    %cst_232 = arith.constant 3.200000e+01 : f32
    %609 = vector.broadcast %cst_232 : f32 to vector<8x1xf32>
    %610 = arith.divf %608, %609 : vector<8x1xf32>
    %cst_233 = arith.constant 9.99999974E-6 : f32
    %611 = vector.broadcast %cst_233 : f32 to vector<8x1xf32>
    %612 = arith.addf %610, %611 : vector<8x1xf32>
    %613 = math.rsqrt %612 : vector<8x1xf32>
    %614 = vector.broadcast %613 : vector<8x1xf32> to vector<8x32xf32>
    %615 = arith.mulf %605, %614 : vector<8x32xf32>
    %616 = vector.broadcast %598 : vector<1x32xf32> to vector<8x32xf32>
    %617 = arith.mulf %615, %616 : vector<8x32xf32>
    %618 = vector.broadcast %599 : vector<1x32xf32> to vector<8x32xf32>
    %619 = arith.addf %617, %618 : vector<8x32xf32>
    %620 = arith.truncf %619 : vector<8x32xf32> to vector<8x32xbf16>
    %621 = arith.extf %620 : vector<8x32xbf16> to vector<8x32xf32>
    %622 = arith.addf %489, %13 : vector<64x32xf32>
    %623 = arith.truncf %622 : vector<64x32xf32> to vector<64x32xbf16>
    %624 = arith.addf %621, %11 : vector<8x32xf32>
    %625 = arith.truncf %624 : vector<8x32xf32> to vector<8x32xbf16>
    %c1_234 = arith.constant 1 : index
    %c0_235 = arith.constant 0 : index
    %c0_236 = arith.constant 0 : index
    %626 = vector.load %arg11[%c1_234, %c0_235, %c0_236] : memref<2x32x48xbf16, #tpu.memory_space<vmem>>, vector<1x32x48xbf16>
    %627 = vector.shape_cast %626 : vector<1x32x48xbf16> to vector<32x48xbf16>
    %628 = vector.extract_strided_slice %627 {offsets = [0, 0], sizes = [32, 16], strides = [1, 1]} : vector<32x48xbf16> to vector<32x16xbf16>
    %c1_237 = arith.constant 1 : index
    %c0_238 = arith.constant 0 : index
    %c0_239 = arith.constant 0 : index
    %629 = vector.load %arg12[%c1_237, %c0_238, %c0_239] : memref<2x1x48xbf16, #tpu.memory_space<vmem>>, vector<1x1x48xbf16>
    %630 = vector.shape_cast %629 : vector<1x1x48xbf16> to vector<1x48xbf16>
    %631 = vector.extract_strided_slice %630 {offsets = [0, 0], sizes = [1, 16], strides = [1, 1]} : vector<1x48xbf16> to vector<1x16xbf16>
    %cst_240 = arith.constant dense<0.000000e+00> : vector<8x16xf32>
    %632 = tpu.matmul %625, %628, %cst_240 {dimension_numbers = #tpu.dot_dimension_numbers<[1], [0], [0], [1], [0, 0, 1, 1], [], []>} : vector<8x32xbf16>, vector<32x16xbf16>, vector<8x16xf32> -> vector<8x16xf32>
    %633 = arith.extf %631 : vector<1x16xbf16> to vector<1x16xf32>
    %634 = vector.broadcast %633 : vector<1x16xf32> to vector<8x16xf32>
    %635 = arith.addf %632, %634 : vector<8x16xf32>
    %636 = arith.truncf %635 : vector<8x16xf32> to vector<8x16xbf16>
    %c1_241 = arith.constant 1 : index
    %c0_242 = arith.constant 0 : index
    %c0_243 = arith.constant 0 : index
    %637 = vector.load %arg11[%c1_241, %c0_242, %c0_243] : memref<2x32x48xbf16, #tpu.memory_space<vmem>>, vector<1x32x48xbf16>
    %638 = vector.shape_cast %637 : vector<1x32x48xbf16> to vector<32x48xbf16>
    %639 = vector.extract_strided_slice %638 {offsets = [0, 16], sizes = [32, 16], strides = [1, 1]} : vector<32x48xbf16> to vector<32x16xbf16>
    %c1_244 = arith.constant 1 : index
    %c0_245 = arith.constant 0 : index
    %c0_246 = arith.constant 0 : index
    %640 = vector.load %arg12[%c1_244, %c0_245, %c0_246] : memref<2x1x48xbf16, #tpu.memory_space<vmem>>, vector<1x1x48xbf16>
    %641 = vector.shape_cast %640 : vector<1x1x48xbf16> to vector<1x48xbf16>
    %642 = vector.extract_strided_slice %641 {offsets = [0, 16], sizes = [1, 16], strides = [1, 1]} : vector<1x48xbf16> to vector<1x16xbf16>
    %cst_247 = arith.constant dense<0.000000e+00> : vector<64x16xf32>
    %643 = tpu.matmul %623, %639, %cst_247 {dimension_numbers = #tpu.dot_dimension_numbers<[1], [0], [0], [1], [0, 0, 1, 1], [], []>} : vector<64x32xbf16>, vector<32x16xbf16>, vector<64x16xf32> -> vector<64x16xf32>
    %644 = arith.extf %642 : vector<1x16xbf16> to vector<1x16xf32>
    %645 = vector.broadcast %644 : vector<1x16xf32> to vector<64x16xf32>
    %646 = arith.addf %643, %645 : vector<64x16xf32>
    %647 = arith.truncf %646 : vector<64x16xf32> to vector<64x16xbf16>
    %c1_248 = arith.constant 1 : index
    %c0_249 = arith.constant 0 : index
    %c0_250 = arith.constant 0 : index
    %648 = vector.load %arg11[%c1_248, %c0_249, %c0_250] : memref<2x32x48xbf16, #tpu.memory_space<vmem>>, vector<1x32x48xbf16>
    %649 = vector.shape_cast %648 : vector<1x32x48xbf16> to vector<32x48xbf16>
    %650 = vector.extract_strided_slice %649 {offsets = [0, 32], sizes = [32, 16], strides = [1, 1]} : vector<32x48xbf16> to vector<32x16xbf16>
    %c1_251 = arith.constant 1 : index
    %c0_252 = arith.constant 0 : index
    %c0_253 = arith.constant 0 : index
    %651 = vector.load %arg12[%c1_251, %c0_252, %c0_253] : memref<2x1x48xbf16, #tpu.memory_space<vmem>>, vector<1x1x48xbf16>
    %652 = vector.shape_cast %651 : vector<1x1x48xbf16> to vector<1x48xbf16>
    %653 = vector.extract_strided_slice %652 {offsets = [0, 32], sizes = [1, 16], strides = [1, 1]} : vector<1x48xbf16> to vector<1x16xbf16>
    %cst_254 = arith.constant dense<0.000000e+00> : vector<64x16xf32>
    %654 = tpu.matmul %481, %650, %cst_254 {dimension_numbers = #tpu.dot_dimension_numbers<[1], [0], [0], [1], [0, 0, 1, 1], [], []>} : vector<64x32xbf16>, vector<32x16xbf16>, vector<64x16xf32> -> vector<64x16xf32>
    %655 = arith.extf %653 : vector<1x16xbf16> to vector<1x16xf32>
    %656 = vector.broadcast %655 : vector<1x16xf32> to vector<64x16xf32>
    %657 = arith.addf %654, %656 : vector<64x16xf32>
    %658 = arith.truncf %657 : vector<64x16xf32> to vector<64x16xbf16>
    %c1_255 = arith.constant 1 : index
    %c0_256 = arith.constant 0 : index
    %c0_257 = arith.constant 0 : index
    %659 = vector.load %arg13[%c1_255, %c0_256, %c0_257] : memref<2x16x32xbf16, #tpu.memory_space<vmem>>, vector<1x16x32xbf16>
    %660 = vector.shape_cast %659 : vector<1x16x32xbf16> to vector<16x32xbf16>
    %c1_258 = arith.constant 1 : index
    %c0_259 = arith.constant 0 : index
    %c0_260 = arith.constant 0 : index
    %661 = vector.load %arg14[%c1_258, %c0_259, %c0_260] : memref<2x1x32xbf16, #tpu.memory_space<vmem>>, vector<1x1x32xbf16>
    %662 = vector.shape_cast %661 : vector<1x1x32xbf16> to vector<1x32xbf16>
    %663 = vector.extract_strided_slice %636 {offsets = [0, 0], sizes = [8, 4], strides = [1, 1]} : vector<8x16xbf16> to vector<8x4xbf16>
    %664 = vector.extract_strided_slice %647 {offsets = [0, 0], sizes = [64, 4], strides = [1, 1]} : vector<64x16xbf16> to vector<64x4xbf16>
    %cst_261 = arith.constant dense<0.000000e+00> : vector<8x64xf32>
    %665 = tpu.matmul %663, %664, %cst_261 {dimension_numbers = #tpu.dot_dimension_numbers<[1], [1], [0], [0], [0, 0, 1, 0], [], []>} : vector<8x4xbf16>, vector<64x4xbf16>, vector<8x64xf32> -> vector<8x64xf32>
    %cst_262 = arith.constant 5.000000e-01 : f32
    %666 = vector.broadcast %cst_262 : f32 to vector<8x64xf32>
    %667 = arith.mulf %665, %666 : vector<8x64xf32>
    %cst_263 = arith.constant dense<0xFF800000> : vector<8xf32>
    %668 = vector.multi_reduction <maximumf>, %667, %cst_263 [1] : vector<8x64xf32> to vector<8xf32>
    %669 = vector.shape_cast %668 : vector<8xf32> to vector<8x1xf32>
    %670 = vector.broadcast %669 : vector<8x1xf32> to vector<8x64xf32>
    %671 = arith.subf %667, %670 : vector<8x64xf32>
    %672 = math.exp %671 : vector<8x64xf32>
    %cst_264 = arith.constant dense<0.000000e+00> : vector<8xf32>
    %673 = vector.multi_reduction <add>, %672, %cst_264 [1] : vector<8x64xf32> to vector<8xf32>
    %674 = vector.shape_cast %673 : vector<8xf32> to vector<8x1xf32>
    %675 = tpu.reciprocal %674 {approx = true} : vector<8x1xf32> -> vector<8x1xf32>
    %676 = vector.broadcast %675 : vector<8x1xf32> to vector<8x64xf32>
    %677 = arith.mulf %672, %676 : vector<8x64xf32>
    %678 = arith.truncf %677 : vector<8x64xf32> to vector<8x64xbf16>
    %679 = vector.extract_strided_slice %658 {offsets = [0, 0], sizes = [64, 4], strides = [1, 1]} : vector<64x16xbf16> to vector<64x4xbf16>
    %cst_265 = arith.constant dense<0.000000e+00> : vector<8x4xf32>
    %680 = tpu.matmul %678, %679, %cst_265 {dimension_numbers = #tpu.dot_dimension_numbers<[1], [0], [0], [1], [0, 0, 1, 1], [], []>} : vector<8x64xbf16>, vector<64x4xbf16>, vector<8x4xf32> -> vector<8x4xf32>
    %681 = arith.truncf %680 : vector<8x4xf32> to vector<8x4xbf16>
    %682 = vector.extract_strided_slice %636 {offsets = [0, 4], sizes = [8, 4], strides = [1, 1]} : vector<8x16xbf16> to vector<8x4xbf16>
    %683 = vector.extract_strided_slice %647 {offsets = [0, 4], sizes = [64, 4], strides = [1, 1]} : vector<64x16xbf16> to vector<64x4xbf16>
    %cst_266 = arith.constant dense<0.000000e+00> : vector<8x64xf32>
    %684 = tpu.matmul %682, %683, %cst_266 {dimension_numbers = #tpu.dot_dimension_numbers<[1], [1], [0], [0], [0, 0, 1, 0], [], []>} : vector<8x4xbf16>, vector<64x4xbf16>, vector<8x64xf32> -> vector<8x64xf32>
    %cst_267 = arith.constant 5.000000e-01 : f32
    %685 = vector.broadcast %cst_267 : f32 to vector<8x64xf32>
    %686 = arith.mulf %684, %685 : vector<8x64xf32>
    %cst_268 = arith.constant dense<0xFF800000> : vector<8xf32>
    %687 = vector.multi_reduction <maximumf>, %686, %cst_268 [1] : vector<8x64xf32> to vector<8xf32>
    %688 = vector.shape_cast %687 : vector<8xf32> to vector<8x1xf32>
    %689 = vector.broadcast %688 : vector<8x1xf32> to vector<8x64xf32>
    %690 = arith.subf %686, %689 : vector<8x64xf32>
    %691 = math.exp %690 : vector<8x64xf32>
    %cst_269 = arith.constant dense<0.000000e+00> : vector<8xf32>
    %692 = vector.multi_reduction <add>, %691, %cst_269 [1] : vector<8x64xf32> to vector<8xf32>
    %693 = vector.shape_cast %692 : vector<8xf32> to vector<8x1xf32>
    %694 = tpu.reciprocal %693 {approx = true} : vector<8x1xf32> -> vector<8x1xf32>
    %695 = vector.broadcast %694 : vector<8x1xf32> to vector<8x64xf32>
    %696 = arith.mulf %691, %695 : vector<8x64xf32>
    %697 = arith.truncf %696 : vector<8x64xf32> to vector<8x64xbf16>
    %698 = vector.extract_strided_slice %658 {offsets = [0, 4], sizes = [64, 4], strides = [1, 1]} : vector<64x16xbf16> to vector<64x4xbf16>
    %cst_270 = arith.constant dense<0.000000e+00> : vector<8x4xf32>
    %699 = tpu.matmul %697, %698, %cst_270 {dimension_numbers = #tpu.dot_dimension_numbers<[1], [0], [0], [1], [0, 0, 1, 1], [], []>} : vector<8x64xbf16>, vector<64x4xbf16>, vector<8x4xf32> -> vector<8x4xf32>
    %700 = arith.truncf %699 : vector<8x4xf32> to vector<8x4xbf16>
    %701 = vector.extract_strided_slice %636 {offsets = [0, 8], sizes = [8, 4], strides = [1, 1]} : vector<8x16xbf16> to vector<8x4xbf16>
    %702 = vector.extract_strided_slice %647 {offsets = [0, 8], sizes = [64, 4], strides = [1, 1]} : vector<64x16xbf16> to vector<64x4xbf16>
    %cst_271 = arith.constant dense<0.000000e+00> : vector<8x64xf32>
    %703 = tpu.matmul %701, %702, %cst_271 {dimension_numbers = #tpu.dot_dimension_numbers<[1], [1], [0], [0], [0, 0, 1, 0], [], []>} : vector<8x4xbf16>, vector<64x4xbf16>, vector<8x64xf32> -> vector<8x64xf32>
    %cst_272 = arith.constant 5.000000e-01 : f32
    %704 = vector.broadcast %cst_272 : f32 to vector<8x64xf32>
    %705 = arith.mulf %703, %704 : vector<8x64xf32>
    %cst_273 = arith.constant dense<0xFF800000> : vector<8xf32>
    %706 = vector.multi_reduction <maximumf>, %705, %cst_273 [1] : vector<8x64xf32> to vector<8xf32>
    %707 = vector.shape_cast %706 : vector<8xf32> to vector<8x1xf32>
    %708 = vector.broadcast %707 : vector<8x1xf32> to vector<8x64xf32>
    %709 = arith.subf %705, %708 : vector<8x64xf32>
    %710 = math.exp %709 : vector<8x64xf32>
    %cst_274 = arith.constant dense<0.000000e+00> : vector<8xf32>
    %711 = vector.multi_reduction <add>, %710, %cst_274 [1] : vector<8x64xf32> to vector<8xf32>
    %712 = vector.shape_cast %711 : vector<8xf32> to vector<8x1xf32>
    %713 = tpu.reciprocal %712 {approx = true} : vector<8x1xf32> -> vector<8x1xf32>
    %714 = vector.broadcast %713 : vector<8x1xf32> to vector<8x64xf32>
    %715 = arith.mulf %710, %714 : vector<8x64xf32>
    %716 = arith.truncf %715 : vector<8x64xf32> to vector<8x64xbf16>
    %717 = vector.extract_strided_slice %658 {offsets = [0, 8], sizes = [64, 4], strides = [1, 1]} : vector<64x16xbf16> to vector<64x4xbf16>
    %cst_275 = arith.constant dense<0.000000e+00> : vector<8x4xf32>
    %718 = tpu.matmul %716, %717, %cst_275 {dimension_numbers = #tpu.dot_dimension_numbers<[1], [0], [0], [1], [0, 0, 1, 1], [], []>} : vector<8x64xbf16>, vector<64x4xbf16>, vector<8x4xf32> -> vector<8x4xf32>
    %719 = arith.truncf %718 : vector<8x4xf32> to vector<8x4xbf16>
    %720 = vector.extract_strided_slice %636 {offsets = [0, 12], sizes = [8, 4], strides = [1, 1]} : vector<8x16xbf16> to vector<8x4xbf16>
    %721 = vector.extract_strided_slice %647 {offsets = [0, 12], sizes = [64, 4], strides = [1, 1]} : vector<64x16xbf16> to vector<64x4xbf16>
    %cst_276 = arith.constant dense<0.000000e+00> : vector<8x64xf32>
    %722 = tpu.matmul %720, %721, %cst_276 {dimension_numbers = #tpu.dot_dimension_numbers<[1], [1], [0], [0], [0, 0, 1, 0], [], []>} : vector<8x4xbf16>, vector<64x4xbf16>, vector<8x64xf32> -> vector<8x64xf32>
    %cst_277 = arith.constant 5.000000e-01 : f32
    %723 = vector.broadcast %cst_277 : f32 to vector<8x64xf32>
    %724 = arith.mulf %722, %723 : vector<8x64xf32>
    %cst_278 = arith.constant dense<0xFF800000> : vector<8xf32>
    %725 = vector.multi_reduction <maximumf>, %724, %cst_278 [1] : vector<8x64xf32> to vector<8xf32>
    %726 = vector.shape_cast %725 : vector<8xf32> to vector<8x1xf32>
    %727 = vector.broadcast %726 : vector<8x1xf32> to vector<8x64xf32>
    %728 = arith.subf %724, %727 : vector<8x64xf32>
    %729 = math.exp %728 : vector<8x64xf32>
    %cst_279 = arith.constant dense<0.000000e+00> : vector<8xf32>
    %730 = vector.multi_reduction <add>, %729, %cst_279 [1] : vector<8x64xf32> to vector<8xf32>
    %731 = vector.shape_cast %730 : vector<8xf32> to vector<8x1xf32>
    %732 = tpu.reciprocal %731 {approx = true} : vector<8x1xf32> -> vector<8x1xf32>
    %733 = vector.broadcast %732 : vector<8x1xf32> to vector<8x64xf32>
    %734 = arith.mulf %729, %733 : vector<8x64xf32>
    %735 = arith.truncf %734 : vector<8x64xf32> to vector<8x64xbf16>
    %736 = vector.extract_strided_slice %658 {offsets = [0, 12], sizes = [64, 4], strides = [1, 1]} : vector<64x16xbf16> to vector<64x4xbf16>
    %cst_280 = arith.constant dense<0.000000e+00> : vector<8x4xf32>
    %737 = tpu.matmul %735, %736, %cst_280 {dimension_numbers = #tpu.dot_dimension_numbers<[1], [0], [0], [1], [0, 0, 1, 1], [], []>} : vector<8x64xbf16>, vector<64x4xbf16>, vector<8x4xf32> -> vector<8x4xf32>
    %738 = arith.truncf %737 : vector<8x4xf32> to vector<8x4xbf16>
    %739 = tpu.concatenate %681, %700, %719, %738 in 1 : vector<8x4xbf16>, vector<8x4xbf16>, vector<8x4xbf16>, vector<8x4xbf16> -> vector<8x16xbf16>
    %cst_281 = arith.constant dense<0.000000e+00> : vector<8x32xf32>
    %740 = tpu.matmul %739, %660, %cst_281 {dimension_numbers = #tpu.dot_dimension_numbers<[1], [0], [0], [1], [0, 0, 1, 1], [], []>} : vector<8x16xbf16>, vector<16x32xbf16>, vector<8x32xf32> -> vector<8x32xf32>
    %741 = arith.extf %662 : vector<1x32xbf16> to vector<1x32xf32>
    %742 = vector.broadcast %741 : vector<1x32xf32> to vector<8x32xf32>
    %743 = arith.addf %740, %742 : vector<8x32xf32>
    %744 = arith.addf %621, %743 : vector<8x32xf32>
    %745 = vector.extract_strided_slice %15 {offsets = [5, 0], sizes = [1, 32], strides = [1, 1]} : vector<8x32xf32> to vector<1x32xf32>
    %746 = vector.extract_strided_slice %17 {offsets = [5, 0], sizes = [1, 32], strides = [1, 1]} : vector<8x32xf32> to vector<1x32xf32>
    %cst_282 = arith.constant dense<0.000000e+00> : vector<8xf32>
    %747 = vector.multi_reduction <add>, %744, %cst_282 [1] : vector<8x32xf32> to vector<8xf32>
    %748 = vector.shape_cast %747 : vector<8xf32> to vector<8x1xf32>
    %cst_283 = arith.constant 3.200000e+01 : f32
    %749 = vector.broadcast %cst_283 : f32 to vector<8x1xf32>
    %750 = arith.divf %748, %749 : vector<8x1xf32>
    %751 = vector.broadcast %750 : vector<8x1xf32> to vector<8x32xf32>
    %752 = arith.subf %744, %751 : vector<8x32xf32>
    %753 = arith.mulf %752, %752 : vector<8x32xf32>
    %cst_284 = arith.constant dense<0.000000e+00> : vector<8xf32>
    %754 = vector.multi_reduction <add>, %753, %cst_284 [1] : vector<8x32xf32> to vector<8xf32>
    %755 = vector.shape_cast %754 : vector<8xf32> to vector<8x1xf32>
    %cst_285 = arith.constant 3.200000e+01 : f32
    %756 = vector.broadcast %cst_285 : f32 to vector<8x1xf32>
    %757 = arith.divf %755, %756 : vector<8x1xf32>
    %cst_286 = arith.constant 9.99999974E-6 : f32
    %758 = vector.broadcast %cst_286 : f32 to vector<8x1xf32>
    %759 = arith.addf %757, %758 : vector<8x1xf32>
    %760 = math.rsqrt %759 : vector<8x1xf32>
    %761 = vector.broadcast %760 : vector<8x1xf32> to vector<8x32xf32>
    %762 = arith.mulf %752, %761 : vector<8x32xf32>
    %763 = vector.broadcast %745 : vector<1x32xf32> to vector<8x32xf32>
    %764 = arith.mulf %762, %763 : vector<8x32xf32>
    %765 = vector.broadcast %746 : vector<1x32xf32> to vector<8x32xf32>
    %766 = arith.addf %764, %765 : vector<8x32xf32>
    %767 = arith.truncf %766 : vector<8x32xf32> to vector<8x32xbf16>
    %768 = arith.extf %767 : vector<8x32xbf16> to vector<8x32xf32>
    %c1_287 = arith.constant 1 : index
    %c0_288 = arith.constant 0 : index
    %c0_289 = arith.constant 0 : index
    %769 = vector.load %arg19[%c1_287, %c0_288, %c0_289] : memref<2x32x64xbf16, #tpu.memory_space<vmem>>, vector<1x32x64xbf16>
    %770 = vector.shape_cast %769 : vector<1x32x64xbf16> to vector<32x64xbf16>
    %cst_290 = arith.constant dense<0.000000e+00> : vector<8x64xf32>
    %771 = tpu.matmul %767, %770, %cst_290 {dimension_numbers = #tpu.dot_dimension_numbers<[1], [0], [0], [1], [0, 0, 1, 1], [], []>} : vector<8x32xbf16>, vector<32x64xbf16>, vector<8x64xf32> -> vector<8x64xf32>
    %c1_291 = arith.constant 1 : index
    %c0_292 = arith.constant 0 : index
    %c0_293 = arith.constant 0 : index
    %772 = vector.load %arg20[%c1_291, %c0_292, %c0_293] : memref<2x1x64xbf16, #tpu.memory_space<vmem>>, vector<1x1x64xbf16>
    %773 = vector.shape_cast %772 : vector<1x1x64xbf16> to vector<1x64xbf16>
    %774 = arith.extf %773 : vector<1x64xbf16> to vector<1x64xf32>
    %775 = vector.broadcast %774 : vector<1x64xf32> to vector<8x64xf32>
    %776 = arith.addf %771, %775 : vector<8x64xf32>
    %cst_294 = arith.constant 0.000000e+00 : f32
    %777 = vector.broadcast %cst_294 : f32 to vector<8x64xf32>
    %778 = arith.maximumf %776, %777 : vector<8x64xf32>
    %779 = arith.truncf %778 : vector<8x64xf32> to vector<8x64xbf16>
    %c1_295 = arith.constant 1 : index
    %c0_296 = arith.constant 0 : index
    %c0_297 = arith.constant 0 : index
    %780 = vector.load %arg21[%c1_295, %c0_296, %c0_297] : memref<2x64x32xbf16, #tpu.memory_space<vmem>>, vector<1x64x32xbf16>
    %781 = vector.shape_cast %780 : vector<1x64x32xbf16> to vector<64x32xbf16>
    %cst_298 = arith.constant dense<0.000000e+00> : vector<8x32xf32>
    %782 = tpu.matmul %779, %781, %cst_298 {dimension_numbers = #tpu.dot_dimension_numbers<[1], [0], [0], [1], [0, 0, 1, 1], [], []>} : vector<8x64xbf16>, vector<64x32xbf16>, vector<8x32xf32> -> vector<8x32xf32>
    %c1_299 = arith.constant 1 : index
    %c0_300 = arith.constant 0 : index
    %c0_301 = arith.constant 0 : index
    %783 = vector.load %arg22[%c1_299, %c0_300, %c0_301] : memref<2x1x32xbf16, #tpu.memory_space<vmem>>, vector<1x1x32xbf16>
    %784 = vector.shape_cast %783 : vector<1x1x32xbf16> to vector<1x32xbf16>
    %785 = arith.extf %784 : vector<1x32xbf16> to vector<1x32xf32>
    %786 = vector.broadcast %785 : vector<1x32xf32> to vector<8x32xf32>
    %787 = arith.addf %782, %786 : vector<8x32xf32>
    %788 = arith.addf %768, %787 : vector<8x32xf32>
    %789 = vector.extract_strided_slice %15 {offsets = [6, 0], sizes = [1, 32], strides = [1, 1]} : vector<8x32xf32> to vector<1x32xf32>
    %790 = vector.extract_strided_slice %17 {offsets = [6, 0], sizes = [1, 32], strides = [1, 1]} : vector<8x32xf32> to vector<1x32xf32>
    %cst_302 = arith.constant dense<0.000000e+00> : vector<8xf32>
    %791 = vector.multi_reduction <add>, %788, %cst_302 [1] : vector<8x32xf32> to vector<8xf32>
    %792 = vector.shape_cast %791 : vector<8xf32> to vector<8x1xf32>
    %cst_303 = arith.constant 3.200000e+01 : f32
    %793 = vector.broadcast %cst_303 : f32 to vector<8x1xf32>
    %794 = arith.divf %792, %793 : vector<8x1xf32>
    %795 = vector.broadcast %794 : vector<8x1xf32> to vector<8x32xf32>
    %796 = arith.subf %788, %795 : vector<8x32xf32>
    %797 = arith.mulf %796, %796 : vector<8x32xf32>
    %cst_304 = arith.constant dense<0.000000e+00> : vector<8xf32>
    %798 = vector.multi_reduction <add>, %797, %cst_304 [1] : vector<8x32xf32> to vector<8xf32>
    %799 = vector.shape_cast %798 : vector<8xf32> to vector<8x1xf32>
    %cst_305 = arith.constant 3.200000e+01 : f32
    %800 = vector.broadcast %cst_305 : f32 to vector<8x1xf32>
    %801 = arith.divf %799, %800 : vector<8x1xf32>
    %cst_306 = arith.constant 9.99999974E-6 : f32
    %802 = vector.broadcast %cst_306 : f32 to vector<8x1xf32>
    %803 = arith.addf %801, %802 : vector<8x1xf32>
    %804 = math.rsqrt %803 : vector<8x1xf32>
    %805 = vector.broadcast %804 : vector<8x1xf32> to vector<8x32xf32>
    %806 = arith.mulf %796, %805 : vector<8x32xf32>
    %807 = vector.broadcast %789 : vector<1x32xf32> to vector<8x32xf32>
    %808 = arith.mulf %806, %807 : vector<8x32xf32>
    %809 = vector.broadcast %790 : vector<1x32xf32> to vector<8x32xf32>
    %810 = arith.addf %808, %809 : vector<8x32xf32>
    %811 = arith.truncf %810 : vector<8x32xf32> to vector<8x32xbf16>
    %812 = arith.extf %811 : vector<8x32xbf16> to vector<8x32xf32>
    %813 = arith.addf %812, %11 : vector<8x32xf32>
    %814 = arith.truncf %813 : vector<8x32xf32> to vector<8x32xbf16>
    %c1_307 = arith.constant 1 : index
    %c0_308 = arith.constant 0 : index
    %c0_309 = arith.constant 0 : index
    %815 = vector.load %arg15[%c1_307, %c0_308, %c0_309] : memref<2x32x48xbf16, #tpu.memory_space<vmem>>, vector<1x32x48xbf16>
    %816 = vector.shape_cast %815 : vector<1x32x48xbf16> to vector<32x48xbf16>
    %817 = vector.extract_strided_slice %816 {offsets = [0, 0], sizes = [32, 16], strides = [1, 1]} : vector<32x48xbf16> to vector<32x16xbf16>
    %c1_310 = arith.constant 1 : index
    %c0_311 = arith.constant 0 : index
    %c0_312 = arith.constant 0 : index
    %818 = vector.load %arg16[%c1_310, %c0_311, %c0_312] : memref<2x1x48xbf16, #tpu.memory_space<vmem>>, vector<1x1x48xbf16>
    %819 = vector.shape_cast %818 : vector<1x1x48xbf16> to vector<1x48xbf16>
    %820 = vector.extract_strided_slice %819 {offsets = [0, 0], sizes = [1, 16], strides = [1, 1]} : vector<1x48xbf16> to vector<1x16xbf16>
    %cst_313 = arith.constant dense<0.000000e+00> : vector<64x16xf32>
    %821 = tpu.matmul %623, %817, %cst_313 {dimension_numbers = #tpu.dot_dimension_numbers<[1], [0], [0], [1], [0, 0, 1, 1], [], []>} : vector<64x32xbf16>, vector<32x16xbf16>, vector<64x16xf32> -> vector<64x16xf32>
    %822 = arith.extf %820 : vector<1x16xbf16> to vector<1x16xf32>
    %823 = vector.broadcast %822 : vector<1x16xf32> to vector<64x16xf32>
    %824 = arith.addf %821, %823 : vector<64x16xf32>
    %825 = arith.truncf %824 : vector<64x16xf32> to vector<64x16xbf16>
    %c1_314 = arith.constant 1 : index
    %c0_315 = arith.constant 0 : index
    %c0_316 = arith.constant 0 : index
    %826 = vector.load %arg15[%c1_314, %c0_315, %c0_316] : memref<2x32x48xbf16, #tpu.memory_space<vmem>>, vector<1x32x48xbf16>
    %827 = vector.shape_cast %826 : vector<1x32x48xbf16> to vector<32x48xbf16>
    %828 = vector.extract_strided_slice %827 {offsets = [0, 16], sizes = [32, 16], strides = [1, 1]} : vector<32x48xbf16> to vector<32x16xbf16>
    %c1_317 = arith.constant 1 : index
    %c0_318 = arith.constant 0 : index
    %c0_319 = arith.constant 0 : index
    %829 = vector.load %arg16[%c1_317, %c0_318, %c0_319] : memref<2x1x48xbf16, #tpu.memory_space<vmem>>, vector<1x1x48xbf16>
    %830 = vector.shape_cast %829 : vector<1x1x48xbf16> to vector<1x48xbf16>
    %831 = vector.extract_strided_slice %830 {offsets = [0, 16], sizes = [1, 16], strides = [1, 1]} : vector<1x48xbf16> to vector<1x16xbf16>
    %cst_320 = arith.constant dense<0.000000e+00> : vector<8x16xf32>
    %832 = tpu.matmul %814, %828, %cst_320 {dimension_numbers = #tpu.dot_dimension_numbers<[1], [0], [0], [1], [0, 0, 1, 1], [], []>} : vector<8x32xbf16>, vector<32x16xbf16>, vector<8x16xf32> -> vector<8x16xf32>
    %833 = arith.extf %831 : vector<1x16xbf16> to vector<1x16xf32>
    %834 = vector.broadcast %833 : vector<1x16xf32> to vector<8x16xf32>
    %835 = arith.addf %832, %834 : vector<8x16xf32>
    %836 = arith.truncf %835 : vector<8x16xf32> to vector<8x16xbf16>
    %c1_321 = arith.constant 1 : index
    %c0_322 = arith.constant 0 : index
    %c0_323 = arith.constant 0 : index
    %837 = vector.load %arg15[%c1_321, %c0_322, %c0_323] : memref<2x32x48xbf16, #tpu.memory_space<vmem>>, vector<1x32x48xbf16>
    %838 = vector.shape_cast %837 : vector<1x32x48xbf16> to vector<32x48xbf16>
    %839 = vector.extract_strided_slice %838 {offsets = [0, 32], sizes = [32, 16], strides = [1, 1]} : vector<32x48xbf16> to vector<32x16xbf16>
    %c1_324 = arith.constant 1 : index
    %c0_325 = arith.constant 0 : index
    %c0_326 = arith.constant 0 : index
    %840 = vector.load %arg16[%c1_324, %c0_325, %c0_326] : memref<2x1x48xbf16, #tpu.memory_space<vmem>>, vector<1x1x48xbf16>
    %841 = vector.shape_cast %840 : vector<1x1x48xbf16> to vector<1x48xbf16>
    %842 = vector.extract_strided_slice %841 {offsets = [0, 32], sizes = [1, 16], strides = [1, 1]} : vector<1x48xbf16> to vector<1x16xbf16>
    %cst_327 = arith.constant dense<0.000000e+00> : vector<8x16xf32>
    %843 = tpu.matmul %811, %839, %cst_327 {dimension_numbers = #tpu.dot_dimension_numbers<[1], [0], [0], [1], [0, 0, 1, 1], [], []>} : vector<8x32xbf16>, vector<32x16xbf16>, vector<8x16xf32> -> vector<8x16xf32>
    %844 = arith.extf %842 : vector<1x16xbf16> to vector<1x16xf32>
    %845 = vector.broadcast %844 : vector<1x16xf32> to vector<8x16xf32>
    %846 = arith.addf %843, %845 : vector<8x16xf32>
    %847 = arith.truncf %846 : vector<8x16xf32> to vector<8x16xbf16>
    %c1_328 = arith.constant 1 : index
    %c0_329 = arith.constant 0 : index
    %c0_330 = arith.constant 0 : index
    %848 = vector.load %arg17[%c1_328, %c0_329, %c0_330] : memref<2x16x32xbf16, #tpu.memory_space<vmem>>, vector<1x16x32xbf16>
    %849 = vector.shape_cast %848 : vector<1x16x32xbf16> to vector<16x32xbf16>
    %c1_331 = arith.constant 1 : index
    %c0_332 = arith.constant 0 : index
    %c0_333 = arith.constant 0 : index
    %850 = vector.load %arg18[%c1_331, %c0_332, %c0_333] : memref<2x1x32xbf16, #tpu.memory_space<vmem>>, vector<1x1x32xbf16>
    %851 = vector.shape_cast %850 : vector<1x1x32xbf16> to vector<1x32xbf16>
    %852 = vector.extract_strided_slice %825 {offsets = [0, 0], sizes = [64, 4], strides = [1, 1]} : vector<64x16xbf16> to vector<64x4xbf16>
    %853 = vector.extract_strided_slice %836 {offsets = [0, 0], sizes = [8, 4], strides = [1, 1]} : vector<8x16xbf16> to vector<8x4xbf16>
    %cst_334 = arith.constant dense<0.000000e+00> : vector<64x8xf32>
    %854 = tpu.matmul %852, %853, %cst_334 {dimension_numbers = #tpu.dot_dimension_numbers<[1], [1], [0], [0], [0, 0, 1, 0], [], []>} : vector<64x4xbf16>, vector<8x4xbf16>, vector<64x8xf32> -> vector<64x8xf32>
    %cst_335 = arith.constant 5.000000e-01 : f32
    %855 = vector.broadcast %cst_335 : f32 to vector<64x8xf32>
    %856 = arith.mulf %854, %855 : vector<64x8xf32>
    %cst_336 = arith.constant dense<0xFF800000> : vector<64xf32>
    %857 = vector.multi_reduction <maximumf>, %856, %cst_336 [1] : vector<64x8xf32> to vector<64xf32>
    %858 = vector.shape_cast %857 : vector<64xf32> to vector<64x1xf32>
    %859 = vector.broadcast %858 : vector<64x1xf32> to vector<64x8xf32>
    %860 = arith.subf %856, %859 : vector<64x8xf32>
    %861 = math.exp %860 : vector<64x8xf32>
    %cst_337 = arith.constant dense<0.000000e+00> : vector<64xf32>
    %862 = vector.multi_reduction <add>, %861, %cst_337 [1] : vector<64x8xf32> to vector<64xf32>
    %863 = vector.shape_cast %862 : vector<64xf32> to vector<64x1xf32>
    %864 = tpu.reciprocal %863 {approx = true} : vector<64x1xf32> -> vector<64x1xf32>
    %865 = vector.broadcast %864 : vector<64x1xf32> to vector<64x8xf32>
    %866 = arith.mulf %861, %865 : vector<64x8xf32>
    %867 = arith.truncf %866 : vector<64x8xf32> to vector<64x8xbf16>
    %868 = vector.extract_strided_slice %847 {offsets = [0, 0], sizes = [8, 4], strides = [1, 1]} : vector<8x16xbf16> to vector<8x4xbf16>
    %cst_338 = arith.constant dense<0.000000e+00> : vector<64x4xf32>
    %869 = tpu.matmul %867, %868, %cst_338 {dimension_numbers = #tpu.dot_dimension_numbers<[1], [0], [0], [1], [0, 0, 1, 1], [], []>} : vector<64x8xbf16>, vector<8x4xbf16>, vector<64x4xf32> -> vector<64x4xf32>
    %870 = arith.truncf %869 : vector<64x4xf32> to vector<64x4xbf16>
    %871 = vector.extract_strided_slice %825 {offsets = [0, 4], sizes = [64, 4], strides = [1, 1]} : vector<64x16xbf16> to vector<64x4xbf16>
    %872 = vector.extract_strided_slice %836 {offsets = [0, 4], sizes = [8, 4], strides = [1, 1]} : vector<8x16xbf16> to vector<8x4xbf16>
    %cst_339 = arith.constant dense<0.000000e+00> : vector<64x8xf32>
    %873 = tpu.matmul %871, %872, %cst_339 {dimension_numbers = #tpu.dot_dimension_numbers<[1], [1], [0], [0], [0, 0, 1, 0], [], []>} : vector<64x4xbf16>, vector<8x4xbf16>, vector<64x8xf32> -> vector<64x8xf32>
    %cst_340 = arith.constant 5.000000e-01 : f32
    %874 = vector.broadcast %cst_340 : f32 to vector<64x8xf32>
    %875 = arith.mulf %873, %874 : vector<64x8xf32>
    %cst_341 = arith.constant dense<0xFF800000> : vector<64xf32>
    %876 = vector.multi_reduction <maximumf>, %875, %cst_341 [1] : vector<64x8xf32> to vector<64xf32>
    %877 = vector.shape_cast %876 : vector<64xf32> to vector<64x1xf32>
    %878 = vector.broadcast %877 : vector<64x1xf32> to vector<64x8xf32>
    %879 = arith.subf %875, %878 : vector<64x8xf32>
    %880 = math.exp %879 : vector<64x8xf32>
    %cst_342 = arith.constant dense<0.000000e+00> : vector<64xf32>
    %881 = vector.multi_reduction <add>, %880, %cst_342 [1] : vector<64x8xf32> to vector<64xf32>
    %882 = vector.shape_cast %881 : vector<64xf32> to vector<64x1xf32>
    %883 = tpu.reciprocal %882 {approx = true} : vector<64x1xf32> -> vector<64x1xf32>
    %884 = vector.broadcast %883 : vector<64x1xf32> to vector<64x8xf32>
    %885 = arith.mulf %880, %884 : vector<64x8xf32>
    %886 = arith.truncf %885 : vector<64x8xf32> to vector<64x8xbf16>
    %887 = vector.extract_strided_slice %847 {offsets = [0, 4], sizes = [8, 4], strides = [1, 1]} : vector<8x16xbf16> to vector<8x4xbf16>
    %cst_343 = arith.constant dense<0.000000e+00> : vector<64x4xf32>
    %888 = tpu.matmul %886, %887, %cst_343 {dimension_numbers = #tpu.dot_dimension_numbers<[1], [0], [0], [1], [0, 0, 1, 1], [], []>} : vector<64x8xbf16>, vector<8x4xbf16>, vector<64x4xf32> -> vector<64x4xf32>
    %889 = arith.truncf %888 : vector<64x4xf32> to vector<64x4xbf16>
    %890 = vector.extract_strided_slice %825 {offsets = [0, 8], sizes = [64, 4], strides = [1, 1]} : vector<64x16xbf16> to vector<64x4xbf16>
    %891 = vector.extract_strided_slice %836 {offsets = [0, 8], sizes = [8, 4], strides = [1, 1]} : vector<8x16xbf16> to vector<8x4xbf16>
    %cst_344 = arith.constant dense<0.000000e+00> : vector<64x8xf32>
    %892 = tpu.matmul %890, %891, %cst_344 {dimension_numbers = #tpu.dot_dimension_numbers<[1], [1], [0], [0], [0, 0, 1, 0], [], []>} : vector<64x4xbf16>, vector<8x4xbf16>, vector<64x8xf32> -> vector<64x8xf32>
    %cst_345 = arith.constant 5.000000e-01 : f32
    %893 = vector.broadcast %cst_345 : f32 to vector<64x8xf32>
    %894 = arith.mulf %892, %893 : vector<64x8xf32>
    %cst_346 = arith.constant dense<0xFF800000> : vector<64xf32>
    %895 = vector.multi_reduction <maximumf>, %894, %cst_346 [1] : vector<64x8xf32> to vector<64xf32>
    %896 = vector.shape_cast %895 : vector<64xf32> to vector<64x1xf32>
    %897 = vector.broadcast %896 : vector<64x1xf32> to vector<64x8xf32>
    %898 = arith.subf %894, %897 : vector<64x8xf32>
    %899 = math.exp %898 : vector<64x8xf32>
    %cst_347 = arith.constant dense<0.000000e+00> : vector<64xf32>
    %900 = vector.multi_reduction <add>, %899, %cst_347 [1] : vector<64x8xf32> to vector<64xf32>
    %901 = vector.shape_cast %900 : vector<64xf32> to vector<64x1xf32>
    %902 = tpu.reciprocal %901 {approx = true} : vector<64x1xf32> -> vector<64x1xf32>
    %903 = vector.broadcast %902 : vector<64x1xf32> to vector<64x8xf32>
    %904 = arith.mulf %899, %903 : vector<64x8xf32>
    %905 = arith.truncf %904 : vector<64x8xf32> to vector<64x8xbf16>
    %906 = vector.extract_strided_slice %847 {offsets = [0, 8], sizes = [8, 4], strides = [1, 1]} : vector<8x16xbf16> to vector<8x4xbf16>
    %cst_348 = arith.constant dense<0.000000e+00> : vector<64x4xf32>
    %907 = tpu.matmul %905, %906, %cst_348 {dimension_numbers = #tpu.dot_dimension_numbers<[1], [0], [0], [1], [0, 0, 1, 1], [], []>} : vector<64x8xbf16>, vector<8x4xbf16>, vector<64x4xf32> -> vector<64x4xf32>
    %908 = arith.truncf %907 : vector<64x4xf32> to vector<64x4xbf16>
    %909 = vector.extract_strided_slice %825 {offsets = [0, 12], sizes = [64, 4], strides = [1, 1]} : vector<64x16xbf16> to vector<64x4xbf16>
    %910 = vector.extract_strided_slice %836 {offsets = [0, 12], sizes = [8, 4], strides = [1, 1]} : vector<8x16xbf16> to vector<8x4xbf16>
    %cst_349 = arith.constant dense<0.000000e+00> : vector<64x8xf32>
    %911 = tpu.matmul %909, %910, %cst_349 {dimension_numbers = #tpu.dot_dimension_numbers<[1], [1], [0], [0], [0, 0, 1, 0], [], []>} : vector<64x4xbf16>, vector<8x4xbf16>, vector<64x8xf32> -> vector<64x8xf32>
    %cst_350 = arith.constant 5.000000e-01 : f32
    %912 = vector.broadcast %cst_350 : f32 to vector<64x8xf32>
    %913 = arith.mulf %911, %912 : vector<64x8xf32>
    %cst_351 = arith.constant dense<0xFF800000> : vector<64xf32>
    %914 = vector.multi_reduction <maximumf>, %913, %cst_351 [1] : vector<64x8xf32> to vector<64xf32>
    %915 = vector.shape_cast %914 : vector<64xf32> to vector<64x1xf32>
    %916 = vector.broadcast %915 : vector<64x1xf32> to vector<64x8xf32>
    %917 = arith.subf %913, %916 : vector<64x8xf32>
    %918 = math.exp %917 : vector<64x8xf32>
    %cst_352 = arith.constant dense<0.000000e+00> : vector<64xf32>
    %919 = vector.multi_reduction <add>, %918, %cst_352 [1] : vector<64x8xf32> to vector<64xf32>
    %920 = vector.shape_cast %919 : vector<64xf32> to vector<64x1xf32>
    %921 = tpu.reciprocal %920 {approx = true} : vector<64x1xf32> -> vector<64x1xf32>
    %922 = vector.broadcast %921 : vector<64x1xf32> to vector<64x8xf32>
    %923 = arith.mulf %918, %922 : vector<64x8xf32>
    %924 = arith.truncf %923 : vector<64x8xf32> to vector<64x8xbf16>
    %925 = vector.extract_strided_slice %847 {offsets = [0, 12], sizes = [8, 4], strides = [1, 1]} : vector<8x16xbf16> to vector<8x4xbf16>
    %cst_353 = arith.constant dense<0.000000e+00> : vector<64x4xf32>
    %926 = tpu.matmul %924, %925, %cst_353 {dimension_numbers = #tpu.dot_dimension_numbers<[1], [0], [0], [1], [0, 0, 1, 1], [], []>} : vector<64x8xbf16>, vector<8x4xbf16>, vector<64x4xf32> -> vector<64x4xf32>
    %927 = arith.truncf %926 : vector<64x4xf32> to vector<64x4xbf16>
    %928 = tpu.concatenate %870, %889, %908, %927 in 1 : vector<64x4xbf16>, vector<64x4xbf16>, vector<64x4xbf16>, vector<64x4xbf16> -> vector<64x16xbf16>
    %cst_354 = arith.constant dense<0.000000e+00> : vector<64x32xf32>
    %929 = tpu.matmul %928, %849, %cst_354 {dimension_numbers = #tpu.dot_dimension_numbers<[1], [0], [0], [1], [0, 0, 1, 1], [], []>} : vector<64x16xbf16>, vector<16x32xbf16>, vector<64x32xf32> -> vector<64x32xf32>
    %930 = arith.extf %851 : vector<1x32xbf16> to vector<1x32xf32>
    %931 = vector.broadcast %930 : vector<1x32xf32> to vector<64x32xf32>
    %932 = arith.addf %929, %931 : vector<64x32xf32>
    %933 = arith.truncf %932 : vector<64x32xf32> to vector<64x32xbf16>
    %c0_355 = arith.constant 0 : index
    %c4 = arith.constant 4 : index
    %c0_356 = arith.constant 0 : index
    %c0_357 = arith.constant 0 : index
    %934 = vector.load %arg25[%c0_355, %c4, %c0_356, %c0_357] : memref<1x6x64x32xbf16, #tpu.memory_space<vmem>>, vector<1x1x64x32xbf16>
    %935 = vector.shape_cast %934 : vector<1x1x64x32xbf16> to vector<64x32xbf16>
    %936 = vector.shape_cast %933 : vector<64x32xbf16> to vector<1x1x64x32xbf16>
    tpu.vector_store %arg25[%c0_355, %c4, %c0_356, %c0_357], %936 {strides = array<i32>} : memref<1x6x64x32xbf16, #tpu.memory_space<vmem>>, vector<1x1x64x32xbf16>,
    %937 = arith.addf %489, %932 : vector<64x32xf32>
    %938 = vector.extract_strided_slice %15 {offsets = [7, 0], sizes = [1, 32], strides = [1, 1]} : vector<8x32xf32> to vector<1x32xf32>
    %939 = vector.extract_strided_slice %17 {offsets = [7, 0], sizes = [1, 32], strides = [1, 1]} : vector<8x32xf32> to vector<1x32xf32>
    %cst_358 = arith.constant dense<0.000000e+00> : vector<64xf32>
    %940 = vector.multi_reduction <add>, %937, %cst_358 [1] : vector<64x32xf32> to vector<64xf32>
    %941 = vector.shape_cast %940 : vector<64xf32> to vector<64x1xf32>
    %cst_359 = arith.constant 3.200000e+01 : f32
    %942 = vector.broadcast %cst_359 : f32 to vector<64x1xf32>
    %943 = arith.divf %941, %942 : vector<64x1xf32>
    %944 = vector.broadcast %943 : vector<64x1xf32> to vector<64x32xf32>
    %945 = arith.subf %937, %944 : vector<64x32xf32>
    %946 = arith.mulf %945, %945 : vector<64x32xf32>
    %cst_360 = arith.constant dense<0.000000e+00> : vector<64xf32>
    %947 = vector.multi_reduction <add>, %946, %cst_360 [1] : vector<64x32xf32> to vector<64xf32>
    %948 = vector.shape_cast %947 : vector<64xf32> to vector<64x1xf32>
    %cst_361 = arith.constant 3.200000e+01 : f32
    %949 = vector.broadcast %cst_361 : f32 to vector<64x1xf32>
    %950 = arith.divf %948, %949 : vector<64x1xf32>
    %cst_362 = arith.constant 9.99999974E-6 : f32
    %951 = vector.broadcast %cst_362 : f32 to vector<64x1xf32>
    %952 = arith.addf %950, %951 : vector<64x1xf32>
    %953 = math.rsqrt %952 : vector<64x1xf32>
    %954 = vector.broadcast %953 : vector<64x1xf32> to vector<64x32xf32>
    %955 = arith.mulf %945, %954 : vector<64x32xf32>
    %956 = vector.broadcast %938 : vector<1x32xf32> to vector<64x32xf32>
    %957 = arith.mulf %955, %956 : vector<64x32xf32>
    %958 = vector.broadcast %939 : vector<1x32xf32> to vector<64x32xf32>
    %959 = arith.addf %957, %958 : vector<64x32xf32>
    %960 = arith.truncf %959 : vector<64x32xf32> to vector<64x32xbf16>
    %c0_363 = arith.constant 0 : index
    %c5 = arith.constant 5 : index
    %c0_364 = arith.constant 0 : index
    %c0_365 = arith.constant 0 : index
    %961 = vector.load %arg25[%c0_363, %c5, %c0_364, %c0_365] : memref<1x6x64x32xbf16, #tpu.memory_space<vmem>>, vector<1x1x64x32xbf16>
    %962 = vector.shape_cast %961 : vector<1x1x64x32xbf16> to vector<64x32xbf16>
    %963 = vector.shape_cast %960 : vector<64x32xbf16> to vector<1x1x64x32xbf16>
    tpu.vector_store %arg25[%c0_363, %c5, %c0_364, %c0_365], %963 {strides = array<i32>} : memref<1x6x64x32xbf16, #tpu.memory_space<vmem>>, vector<1x1x64x32xbf16>,
    return
  }
  func.func @transform_0(%arg0: i32) -> (i32, i32, i32) {
    %c0_i32 = arith.constant 0 : i32
    %c0_i32_0 = arith.constant 0 : i32
    %c0_i32_1 = arith.constant 0 : i32
    return %arg0, %c0_i32, %c0_i32_0 : i32, i32, i32
  }
  func.func @transform_1(%arg0: i32) -> (i32, i32) {
    %c0_i32 = arith.constant 0 : i32
    %c0_i32_0 = arith.constant 0 : i32
    %c0_i32_1 = arith.constant 0 : i32
    return %c0_i32, %c0_i32_0 : i32, i32
  }
  func.func @transform_2(%arg0: i32) -> (i32, i32) {
    %c0_i32 = arith.constant 0 : i32
    %c0_i32_0 = arith.constant 0 : i32
    %c0_i32_1 = arith.constant 0 : i32
    return %c0_i32, %c0_i32_0 : i32, i32
  }
  func.func @transform_3(%arg0: i32) -> (i32, i32) {
    %c0_i32 = arith.constant 0 : i32
    %c0_i32_0 = arith.constant 0 : i32
    %c0_i32_1 = arith.constant 0 : i32
    return %c0_i32, %c0_i32_0 : i32, i32
  }
  func.func @transform_4(%arg0: i32) -> (i32, i32) {
    %c0_i32 = arith.constant 0 : i32
    %c0_i32_0 = arith.constant 0 : i32
    %c0_i32_1 = arith.constant 0 : i32
    return %c0_i32, %c0_i32_0 : i32, i32
  }
  func.func @transform_5(%arg0: i32) -> (i32, i32) {
    %c0_i32 = arith.constant 0 : i32
    %c0_i32_0 = arith.constant 0 : i32
    %c0_i32_1 = arith.constant 0 : i32
    return %c0_i32, %c0_i32_0 : i32, i32
  }
  func.func @transform_6(%arg0: i32) -> (i32, i32, i32) {
    %c0_i32 = arith.constant 0 : i32
    %c0_i32_0 = arith.constant 0 : i32
    %c0_i32_1 = arith.constant 0 : i32
    %c0_i32_2 = arith.constant 0 : i32
    return %c0_i32, %c0_i32_0, %c0_i32_1 : i32, i32, i32
  }
  func.func @transform_7(%arg0: i32) -> (i32, i32, i32) {
    %c0_i32 = arith.constant 0 : i32
    %c0_i32_0 = arith.constant 0 : i32
    %c0_i32_1 = arith.constant 0 : i32
    %c0_i32_2 = arith.constant 0 : i32
    return %c0_i32, %c0_i32_0, %c0_i32_1 : i32, i32, i32
  }
  func.func @transform_8(%arg0: i32) -> (i32, i32, i32) {
    %c0_i32 = arith.constant 0 : i32
    %c0_i32_0 = arith.constant 0 : i32
    %c0_i32_1 = arith.constant 0 : i32
    %c0_i32_2 = arith.constant 0 : i32
    return %c0_i32, %c0_i32_0, %c0_i32_1 : i32, i32, i32
  }
  func.func @transform_9(%arg0: i32) -> (i32, i32, i32) {
    %c0_i32 = arith.constant 0 : i32
    %c0_i32_0 = arith.constant 0 : i32
    %c0_i32_1 = arith.constant 0 : i32
    %c0_i32_2 = arith.constant 0 : i32
    return %c0_i32, %c0_i32_0, %c0_i32_1 : i32, i32, i32
  }
  func.func @transform_10(%arg0: i32) -> (i32, i32, i32) {
    %c0_i32 = arith.constant 0 : i32
    %c0_i32_0 = arith.constant 0 : i32
    %c0_i32_1 = arith.constant 0 : i32
    %c0_i32_2 = arith.constant 0 : i32
    return %c0_i32, %c0_i32_0, %c0_i32_1 : i32, i32, i32
  }
  func.func @transform_11(%arg0: i32) -> (i32, i32, i32) {
    %c0_i32 = arith.constant 0 : i32
    %c0_i32_0 = arith.constant 0 : i32
    %c0_i32_1 = arith.constant 0 : i32
    %c0_i32_2 = arith.constant 0 : i32
    return %c0_i32, %c0_i32_0, %c0_i32_1 : i32, i32, i32
  }
  func.func @transform_12(%arg0: i32) -> (i32, i32, i32) {
    %c0_i32 = arith.constant 0 : i32
    %c0_i32_0 = arith.constant 0 : i32
    %c0_i32_1 = arith.constant 0 : i32
    %c0_i32_2 = arith.constant 0 : i32
    return %c0_i32, %c0_i32_0, %c0_i32_1 : i32, i32, i32
  }
  func.func @transform_13(%arg0: i32) -> (i32, i32, i32) {
    %c0_i32 = arith.constant 0 : i32
    %c0_i32_0 = arith.constant 0 : i32
    %c0_i32_1 = arith.constant 0 : i32
    %c0_i32_2 = arith.constant 0 : i32
    return %c0_i32, %c0_i32_0, %c0_i32_1 : i32, i32, i32
  }
  func.func @transform_14(%arg0: i32) -> (i32, i32, i32) {
    %c0_i32 = arith.constant 0 : i32
    %c0_i32_0 = arith.constant 0 : i32
    %c0_i32_1 = arith.constant 0 : i32
    %c0_i32_2 = arith.constant 0 : i32
    return %c0_i32, %c0_i32_0, %c0_i32_1 : i32, i32, i32
  }
  func.func @transform_15(%arg0: i32) -> (i32, i32, i32) {
    %c0_i32 = arith.constant 0 : i32
    %c0_i32_0 = arith.constant 0 : i32
    %c0_i32_1 = arith.constant 0 : i32
    %c0_i32_2 = arith.constant 0 : i32
    return %c0_i32, %c0_i32_0, %c0_i32_1 : i32, i32, i32
  }
  func.func @transform_16(%arg0: i32) -> (i32, i32, i32) {
    %c0_i32 = arith.constant 0 : i32
    %c0_i32_0 = arith.constant 0 : i32
    %c0_i32_1 = arith.constant 0 : i32
    %c0_i32_2 = arith.constant 0 : i32
    return %c0_i32, %c0_i32_0, %c0_i32_1 : i32, i32, i32
  }
  func.func @transform_17(%arg0: i32) -> (i32, i32, i32) {
    %c0_i32 = arith.constant 0 : i32
    %c0_i32_0 = arith.constant 0 : i32
    %c0_i32_1 = arith.constant 0 : i32
    %c0_i32_2 = arith.constant 0 : i32
    return %c0_i32, %c0_i32_0, %c0_i32_1 : i32, i32, i32
  }
  func.func @transform_18(%arg0: i32) -> (i32, i32, i32) {
    %c0_i32 = arith.constant 0 : i32
    %c0_i32_0 = arith.constant 0 : i32
    %c0_i32_1 = arith.constant 0 : i32
    %c0_i32_2 = arith.constant 0 : i32
    return %c0_i32, %c0_i32_0, %c0_i32_1 : i32, i32, i32
  }
  func.func @transform_19(%arg0: i32) -> (i32, i32, i32) {
    %c0_i32 = arith.constant 0 : i32
    %c0_i32_0 = arith.constant 0 : i32
    %c0_i32_1 = arith.constant 0 : i32
    %c0_i32_2 = arith.constant 0 : i32
    return %c0_i32, %c0_i32_0, %c0_i32_1 : i32, i32, i32
  }
  func.func @transform_20(%arg0: i32) -> (i32, i32, i32) {
    %c0_i32 = arith.constant 0 : i32
    %c0_i32_0 = arith.constant 0 : i32
    %c0_i32_1 = arith.constant 0 : i32
    %c0_i32_2 = arith.constant 0 : i32
    return %c0_i32, %c0_i32_0, %c0_i32_1 : i32, i32, i32
  }
  func.func @transform_21(%arg0: i32) -> (i32, i32, i32) {
    %c0_i32 = arith.constant 0 : i32
    %c0_i32_0 = arith.constant 0 : i32
    %c0_i32_1 = arith.constant 0 : i32
    %c0_i32_2 = arith.constant 0 : i32
    return %c0_i32, %c0_i32_0, %c0_i32_1 : i32, i32, i32
  }
  func.func @transform_22(%arg0: i32) -> (i32, i32) {
    %c0_i32 = arith.constant 0 : i32
    %c0_i32_0 = arith.constant 0 : i32
    %c0_i32_1 = arith.constant 0 : i32
    return %c0_i32, %c0_i32_0 : i32, i32
  }
  func.func @transform_23(%arg0: i32) -> (i32, i32) {
    %c0_i32 = arith.constant 0 : i32
    %c0_i32_0 = arith.constant 0 : i32
    %c0_i32_1 = arith.constant 0 : i32
    return %c0_i32, %c0_i32_0 : i32, i32
  }
  func.func @transform_24(%arg0: i32) -> (i32, i32, i32, i32) {
    %c0_i32 = arith.constant 0 : i32
    %c0_i32_0 = arith.constant 0 : i32
    %c0_i32_1 = arith.constant 0 : i32
    %c0_i32_2 = arith.constant 0 : i32
    return %arg0, %c0_i32, %c0_i32_0, %c0_i32_1 : i32, i32, i32, i32
  }
}

</mosaic_0001>

<bundles_post_ra>
// kernel: tpu_custom_call.1
= control target key start
LH: loop header
LB: loop body
LE: loop exit
PB: predicated region body
PF: predicated region fallthrough
CT: control target
= control target key end

     0   :  { %s9030_s0 = inlined_call_operand.vmem [shape: bf16[1,64,192], index: 0, kind: input, shape index: {}]   ;;  %s9031_s1 = inlined_call_operand.vmem [shape: bf16[192,32], index: 1, kind: input, shape index: {}]   ;;  %s9032_s2 = inlined_call_operand.hbm [shape: bf16[1,32], index: 2, kind: input, shape index: {}]   ;;  %s9033_s3 = inlined_call_operand.hbm [shape: bf16[8,32], index: 3, kind: input, shape index: {}]   ;;  %s9034_s4 = inlined_call_operand.hbm [shape: bf16[8,32], index: 4, kind: input, shape index: {}]   ;;  %s9035_s5 = inlined_call_operand.vmem [shape: bf16[64,32], index: 5, kind: input, shape index: {}]   ;;  %s9036_s6 = inlined_call_operand.vmem [shape: bf16[2,32,96], index: 6, kind: input, shape index: {}]   ;;  %s9037_s7 = inlined_call_operand.vmem [shape: bf16[2,1,96], index: 7, kind: input, shape index: {}]   ;;  %s9038_s8 = inlined_call_operand.vmem [shape: bf16[2,32,32], index: 8, kind: input, shape index: {}]   ;;  %s9039_s9 = inlined_call_operand.vmem [shape: bf16[2,1,32], index: 9, kind: input, shape index: {}]   ;;  %s9040_s10 = inlined_call_operand.vmem [shape: bf16[2,32,48], index: 10, kind: input, shape index: {}]   ;;  %s9041_s11 = inlined_call_operand.vmem [shape: bf16[2,1,48], index: 11, kind: input, shape index: {}]   ;;  %s9042_s12 = inlined_call_operand.vmem [shape: bf16[2,16,32], index: 12, kind: input, shape index: {}]   ;;  %s9043_s13 = inlined_call_operand.vmem [shape: bf16[2,1,32], index: 13, kind: input, shape index: {}]   ;;  %s9044_s14 = inlined_call_operand.vmem [shape: bf16[2,32,48], index: 14, kind: input, shape index: {}]   ;;  %s9045_s15 = inlined_call_operand.vmem [shape: bf16[2,1,48], index: 15, kind: input, shape index: {}]   ;;  %s9046_s16 = inlined_call_operand.hbm [shape: bf16[2,16,32], index: 16, kind: input, shape index: {}]   ;;  %s9047_s17 = inlined_call_operand.vmem [shape: bf16[2,1,32], index: 17, kind: input, shape index: {}]   ;;  %s9048_s18 = inlined_call_operand.vmem [shape: bf16[2,32,64], index: 18, kind: input, shape index: {}]   ;;  %s9049_s19 = inlined_call_operand.vmem [shape: bf16[2,1,64], index: 19, kind: input, shape index: {}]   ;;  %s9050_s20 = inlined_call_operand.vmem [shape: bf16[2,64,32], index: 20, kind: input, shape index: {}]   ;;  %s9051_s21 = inlined_call_operand.vmem [shape: bf16[2,1,32], index: 21, kind: input, shape index: {}]   ;;  %s9052_s22 = inlined_call_operand.vmem [shape: bf16[8,32], index: 22, kind: input, shape index: {}]   ;;  %s9053_s23 = inlined_call_operand.vmem [shape: bf16[8,32], index: 23, kind: input, shape index: {}]   ;;  %s9054_s24 = inlined_call_operand.vmem [shape: bf16[1,6,64,32], index: 24, kind: output, shape index: {}]  }
   0x1   :  { %9105 = sst [smem:[#allocation16_spill]] %s9030_s0 }
   0x2   :  { %9106 = sst [smem:[#allocation17_spill]] %s9031_s1 }
   0x3   :  { %9107 = sst [smem:[#allocation18_spill]] %s9032_s2 }
   0x4   :  { %9108 = sst [smem:[#allocation19_spill]] %s9033_s3 }
   0x5   :  { %9109 = sst [smem:[#allocation20_spill]] %s9034_s4 }
   0x6   :  { %9110 = sst [smem:[#allocation21_spill]] %s9035_s5 }
   0x7   :  { %9111 = sst [smem:[#allocation22_spill]] %s9036_s6 }
   0x8   :  { %9112 = sst [smem:[#allocation23_spill]] %s9037_s7 }
   0x9   :  { %9113 = sst [smem:[#allocation24_spill]] %s9038_s8 }
   0xa   :  { %9114 = sst [smem:[#allocation25_spill]] %s9045_s15 }
   0xb   :  { %9115 = sst [smem:[#allocation26_spill]] %s9047_s17 }
   0xc   :  { %29 = vsyncpa [#allocation3], 0 }
   0xd   :  { %30 = vsyncpa [#allocation5], 0  ;;  %s9116_s27 = sld [smem:[#allocation19_spill]] }
  0x13   :  { %s52_s28 = sshll.u32 %s9116_s27, 4  ;;  %s53_s28 = int_to_ptr.hbm [resolvable:$true] %s52_s28 }
  0x14   :  { %31 = vsyncpa [#allocation8], 0  ;;  %s6375_s6 = smov [#allocation4]   ;;  %s9117_s7 = sld [smem:[#allocation18_spill]] }
  0x15   :  { %s54_s2 = sshll.u32 %s6375_s6, 4  ;;  %s6376_s3 = smov [#allocation2]   ;;  %s55_s2 = int_to_ptr.vmem [resolvable:$true] %s54_s2 }
  0x16   :  { %57 = dma.hbm_to_vmem [thread:$0]  %s53_s28, 64, %s55_s2, [#allocation5]  }
  0x17   :  { %s43_s25 = sshll.u32 %s6376_s3, 4  ;;  %s9118_s1 = sld [smem:[#allocation20_spill]]  ;;  %s44_s25 = int_to_ptr.vmem [resolvable:$true] %s43_s25 }
  0x18   :  { %s95_s27 = sshll.u32 %s9046_s16, 4  ;;  %s6377_s6 = smov [#allocation6]   ;;  %s96_s27 = int_to_ptr.hbm [resolvable:$true] %s95_s27 }
  0x19   :  { %s65_s15 = sshll.u32 %s6377_s6, 4  ;;  %s6378_s28 = smov [#allocation7]   ;;  %s66_s15 = int_to_ptr.vmem [resolvable:$true] %s65_s15 }
  0x1a   :  { %s41_s30 = sshll.u32 %s9117_s7, 4  ;;  %s97_s2 = sshll.u32 %s6378_s28, 4  ;;  %s42_s30 = int_to_ptr.hbm [resolvable:$true] %s41_s30  ;;  %s98_s2 = int_to_ptr.vmem [resolvable:$true] %s97_s2 }
  0x1b   :  { %46 = dma.hbm_to_vmem [thread:$0]  %s42_s30, 16, %s44_s25, [#allocation3]  }
  0x1c   :  { %s9069_s29 = smov 64   ;;  %s9074_s0 = smov 4  }
  0x1d   :  { %s63_s17 = sshll.u32 %s9118_s1, 4  ;;  %s64_s17 = int_to_ptr.hbm [resolvable:$true] %s63_s17 }
  0x1e   :  { %68 = dma.hbm_to_vmem [thread:$0]  %s64_s17, 64, %s66_s15, [#allocation5]  }
  0x1f   :  { %103 = dma.hbm_to_vmem [thread:$0]  %s96_s27, 256, %s98_s2, [#allocation8], %s9069_s29, %s9069_s29, %s9074_s0  }
  0x20   :  { %6369 = dma.done.wait [#allocation3], 16  }
  0x21   :  { %6370 = vsyncadd [#allocation3], 4294967280 }
  0x22   :  { %6371 = dma.done.wait [#allocation5], 128  }
  0x23   :  { %6372 = vsyncadd [#allocation5], 4294967168 }
  0x24   :  { %6373 = dma.done.wait [#allocation8], 256  }
  0x25   :  { %6374 = vsyncadd [#allocation8], 4294967040  ;;  %s9119_s30 = sld [smem:[#allocation22_spill]]  ;;  %v357_v2 = vld [vmem:[#allocation4] sm:$0xf]  ;;  %vm416_vm0 = vcmask 261120  }
  0x26   :  { %s9120_s8 = sld [smem:[#allocation23_spill]]  ;;  %s6381_s4 = smov 112   ;;  %vm444_vm1 = vcmask 64512   ;;  %vm482_vm2 = vcmask 1043456   ;;  %vm278_vm3 = vcmask 523264   ;;  %vm692_vm4 = vcmask 130048  }
  0x27   :  { %s6382_s1 = smov 120   ;;  %s6383_s5 = smov 96   ;;  %vm695_vm5 = vcmask 195584   ;;  %vm380_vm6 = vcmask 257024   ;;  %vm972_vm8 = vcmask 31744   ;;  %vm1318_vm12 = vcmask 97280  }
  0x28   :  { %s9066_s26 = smov 72   ;;  %s9067_s27 = smov 80  }
  0x29   :  { %s9068_s6 = smov 88   ;;  %s9063_s28 = smov 104  }
  0x2a   :  { %s6388_s2 = smov 56   ;;  %s6389_s16 = smov 40  }
  0x2b   :  { %v5834_v0 = vld [vmem:[%s9119_s30 + $0x8] sm:$0xff]  ;;  %v5833_v1 = vld [vmem:[%s9119_s30] sm:$0xff]  ;;  %s6390_s7 = smov 48   ;;  %s9072_s15 = smov 8  }
  0x2c   :  { %426 = vmatpush.bf16.msra.mxu2 %v5834_v0  ;;  %v401_v3 = vld [vmem:[%s9120_s8] sm:$0x1]  ;;  %s9065_s17 = smov 16   ;;  %s9071_s3 = smov 24  }
  0x2d   :  { %v402_v4 = vunpack.c.l.bf16 %v401_v3  ;;  %s9123_s0 = sld [smem:[#allocation16_spill]]  ;;  %s9135_s25 = smov 72  }
  0x2f   :  { %v403_v5 = vperm.slane %v402_v4, 0 }
  0x30   :  { %427 = vmatpush.bf16.msra.mxu2 %v5833_v1 }
  0x33   :  { %5470 = vmatmul.msk.bf16.vlgmr.msra.gmra.mxu2 %vm416_vm0, %v357_v2 }
  0xb6   :  { %v429_v6 = vpop.f32.mrf.mxu2 }
  0xb7   :  { %v430_v7 = vadd.f32 %v429_v6, %v403_v5 }
  0xb9   :  { %v433_v8 = vpack.c.bf16 %v430_v7, %v430_v7 }
  0xbb   :  { %v440_v9 = vunpack.c.l.b16 %v433_v8 }
  0xbd   :  { %v6548_v10 = vpack.c.b16 %v440_v9, %v440_v9 }
  0xbe   :  { %v431_v11 = vpop.f32.mrf.mxu2 }
  0xbf   :  { %558 = vrot.lane.b32.xlu2 %v6548_v10, %s6381_s4  ;;  %500 = vrot.lane.b32.xlu1 %v6548_v10, %s6382_s1 }
  0xc0   :  { %442 = vrot.lane.b32.xlu0 %v6548_v10, %s6383_s5 }
  0xc7   :  { %618 = vrot.lane.b32.xlu2 %v6548_v10, %s9066_s26  ;;  %560 = vrot.lane.b32.xlu1 %v6548_v10, %s9067_s27  ;;  %s9122_s27 = sld [smem:[#allocation17_spill]]  ;;  %s9129_s26 = smov 4  }
  0xc8   :  { %502 = vrot.lane.b32.xlu0 %v6548_v10, %s9068_s6  ;;  %s6396_s6 = smov 116  }
  0xd0   :  { %616 = vrot.lane.b32.xlu0 %v6548_v10, %s9063_s28  ;;  %s9132_s28 = smov 64  }
 0x119   :  { %v559_v19 = vpop.permute.xlu2 %558 }
 0x121   :  { %v619_v20 = vpop.permute.xlu2 %618 }
 0x122   :  { %v624_v21 = vsel %vm444_vm1, %v619_v20, 0 }
 0x131   :  { %v501_v12 = vpop.permute.xlu1 %500 }
 0x132   :  { %v443_v13 = vpop.permute.xlu0 %442 }
 0x133   :  { %v449_v14 = vsel %vm444_vm1, %v443_v13, 0 }
 0x134   :  { %458 = vmatpush.bf16.xpose.msra.mxu3 %v449_v14 }
 0x139   :  { %v561_v15 = vpop.permute.xlu1 %560 }
 0x13a   :  { %v566_v16 = vsel %vm444_vm1, %v561_v15, 0  ;;  %v503_v17 = vpop.permute.xlu0 %502 }
 0x13b   :  { %5471 = vmatmul.msk.bf16.vlgmr.msra.gmra.mxu3 %vm444_vm1, %v433_v8  ;;  %v508_v18 = vsel %vm444_vm1, %v503_v17, 0 }
 0x13c   :  { %517 = vmatpush.bf16.xpose.msrb.mxu3 %v508_v18 }
 0x142   :  { %v617_v22 = vpop.permute.xlu0 %616 }
 0x144   :  { %575 = vmatpush.bf16.xpose.msra.mxu3 %v566_v16 }
 0x14b   :  { %5473 = vmatmul.msk.bf16.vlgmr.msrb.gmra.mxu3 %vm444_vm1, %v501_v12 }
 0x14c   :  { %633 = vmatpush.bf16.xpose.msrb.mxu3 %v624_v21 }
 0x15b   :  { %5475 = vmatmul.msk.bf16.vlgmr.msra.gmra.mxu3 %vm444_vm1, %v559_v19 }
 0x16b   :  { %5477 = vmatmul.msk.bf16.vlgmr.msrb.gmra.mxu3 %vm444_vm1, %v617_v22 }
 0x1be   :  { %v460_v23 = vpop.f32.mrf.mxu3 }
 0x1bf   :  { %v464_v24 = vmul.f32 0.35355338, %v460_v23 }
 0x1c1   :  { %v465_v25 = vsel %vm444_vm1, %v464_v24, -inf }
 0x1c2   :  { %466 = vmax.xlane.f32.xlu1 %v465_v25 }
 0x1c6   :  { %v462_v26 = vpop.f32.mrf.mxu3 }
 0x1ce   :  { %v519_v27 = vpop.f32.mrf.mxu3 }
 0x1cf   :  { %v523_v28 = vmul.f32 0.35355338, %v519_v27 }
 0x1d1   :  { %v524_v29 = vsel %vm444_vm1, %v523_v28, -inf }
 0x1d2   :  { %525 = vmax.xlane.f32.xlu2 %v524_v29 }
 0x1d6   :  { %v521_v30 = vpop.f32.mrf.mxu3 }
 0x1de   :  { %v577_v31 = vpop.f32.mrf.mxu3 }
 0x1df   :  { %v581_v32 = vmul.f32 0.35355338, %v577_v31 }
 0x1e1   :  { %v582_v33 = vsel %vm444_vm1, %v581_v32, -inf }
 0x1e2   :  { %583 = vmax.xlane.f32.xlu0 %v582_v33 }
 0x1e6   :  { %v579_v34 = vpop.f32.mrf.mxu3 }
 0x1ee   :  { %v635_v35 = vpop.f32.mrf.mxu3 }
 0x1ef   :  { %v639_v36 = vmul.f32 0.35355338, %v635_v35 }
 0x1f1   :  { %v640_v37 = vsel %vm444_vm1, %v639_v36, -inf }
 0x1f2   :  { %641 = vmax.xlane.f32.xlu2 %v640_v37 }
 0x1f6   :  { %v637_v38 = vpop.f32.mrf.mxu3 }
 0x1f7   :  { %v5828_v38 = vld [vmem:[%s9122_s27 + $0x38] sm:$0xff] }
 0x1f8   :  { %291 = vmatpush.bf16.msra.mxu0 %v5828_v38 }
 0x20a   :  { %477 = vrot.lane.b32.xlu2 %v6548_v10, %s9069_s29  ;;  %s9124_s29 = sld [smem:[#allocation21_spill]] }
 0x235   :  { %v467_v39 = vpop.xlane.xlu1 %466 }
 0x236   :  { %v468_v40 = vsub.f32 %v464_v24, %v467_v39  ;;  %v5832_v39 = vld [vmem:[%s9122_s27 + $0x58] sm:$0xff] }
 0x237   :  { %324 = vmatpush.bf16.msra.mxu1 %v5832_v39  ;;  %v6736_v39 = vld [vmem:[%s9124_s29] sm:$0xff]  }
 0x238   :  { %v469_v41 = vmul.f32 1.442695, %v468_v40  ;;  %v5827_v40 = vld [vmem:[%s9122_s27 + $0x30] sm:$0xff] }
 0x239   :  { %292 = vmatpush.bf16.msra.mxu0 %v5827_v40 }
 0x23a   :  { %5907 = vpow2.f32 %v469_v41  ;;  %v5831_v41 = vld [vmem:[%s9122_s27 + $0x50] sm:$0xff] }
 0x23b   :  { %325 = vmatpush.bf16.msra.mxu1 %v5831_v41 }
 0x240   :  { %v5908_v42 = vpop.eup %5907 }
 0x241   :  { %v471_v43 = vsel %vm444_vm1, %v5908_v42, 0.0 }
 0x242   :  { %472 = vadd.xlane.f32.xlu1 %v471_v43  ;;  %v5830_v43 = vld [vmem:[%s9122_s27 + $0x48] sm:$0xff] }
 0x243   :  { %326 = vmatpush.bf16.msra.mxu1 %v5830_v43 }
 0x245   :  { %v526_v44 = vpop.xlane.xlu2 %525 }
 0x246   :  { %v527_v45 = vsub.f32 %v523_v28, %v526_v44  ;;  %v5825_v44 = vld [vmem:[%s9122_s27 + $0x20] sm:$0xff] }
 0x248   :  { %v528_v46 = vmul.f32 1.442695, %v527_v45  ;;  %v5829_v45 = vld [vmem:[%s9122_s27 + $0x40] sm:$0xff] }
 0x249   :  { %327 = vmatpush.bf16.msra.mxu1 %v5829_v45 }
 0x24a   :  { %5909 = vpow2.f32 %v528_v46  ;;  %v5813_v46 = vld [vmem:[%s9123_s0 + $0x4] sm:$0xf] }
 0x250   :  { %v5910_v47 = vpop.eup %5909 }
 0x251   :  { %v530_v48 = vsel %vm444_vm1, %v5910_v47, 0.0 }
 0x252   :  { %531 = vadd.xlane.f32.xlu0 %v530_v48  ;;  %v5824_v48 = vld [vmem:[%s9122_s27 + $0x18] sm:$0xff] }
 0x255   :  { %v584_v49 = vpop.xlane.xlu0 %583 }
 0x256   :  { %v585_v50 = vsub.f32 %v581_v32, %v584_v49 }
 0x258   :  { %v586_v51 = vmul.f32 1.442695, %v585_v50  ;;  %v6640_v50 = vld [vmem:[%s9040_s10 + $0x8] sm:$0xff] }
 0x259   :  { %804 = vmatpush.bf16.msrb.mxu1 %v6640_v50 }
 0x25a   :  { %5911 = vpow2.f32 %v586_v51  ;;  %v5823_v51 = vld [vmem:[%s9122_s27 + $0x10] sm:$0xff] }
 0x25b   :  { %536 = vrot.lane.b32.xlu1 %v6548_v10, %s6388_s2  ;;  %s9131_s2 = sld [smem:[#allocation25_spill]] }
 0x260   :  { %v5912_v52 = vpop.eup %5911 }
 0x261   :  { %v588_v53 = vsel %vm444_vm1, %v5912_v52, 0.0 }
 0x262   :  { %589 = vadd.xlane.f32.xlu0 %v588_v53 }
 0x263   :  { %652 = vrot.lane.b32.xlu1 %v6548_v10, %s6389_s16  ;;  %s9121_s16 = sld [smem:[#allocation24_spill]] }
 0x265   :  { %v642_v54 = vpop.xlane.xlu2 %641 }
 0x266   :  { %v643_v55 = vsub.f32 %v639_v36, %v642_v54  ;;  %v5822_v54 = vld [vmem:[%s9122_s27 + $0x8] sm:$0xff] }
 0x268   :  { %v644_v56 = vmul.f32 1.442695, %v643_v55  ;;  %v5821_v55 = vld [vmem:[%s9122_s27] sm:$0xff] }
 0x269   :  { %v5836_v36 = vld [vmem:[%s9121_s16 + $0x8] sm:$0xff]  ;;  %v5835_v37 = vld [vmem:[%s9121_s16] sm:$0xff] }
 0x26a   :  { %5913 = vpow2.f32 %v644_v56  ;;  %720 = vmatpush.bf16.msra.mxu3 %v5836_v36  ;;  %v5380_v56 = vld [vmem:[%s9123_s0] sm:$0xf] }
 0x26d   :  { %v478_v57 = vpop.permute.xlu2 %477 }
 0x26e   :  { %v484_v58 = vsel %vm482_vm2, %v478_v57, 0  ;;  %721 = vmatpush.bf16.msra.mxu3 %v5835_v37  ;;  %v5814_v57 = vld [vmem:[%s9123_s0 + $0x4] sm:$0xf0] }
 0x26f   :  { %493 = vmatpush.bf16.msrb.mxu2 %v484_v58 }
 0x270   :  { %v5914_v59 = vpop.eup %5913 }
 0x271   :  { %v646_v60 = vsel %vm444_vm1, %v5914_v59, 0.0 }
 0x272   :  { %647 = vadd.xlane.f32.xlu2 %v646_v60  ;;  %v5815_v60 = vld [vmem:[%s9123_s0 + $0x14] sm:$0xf] }
 0x276   :  { %594 = vrot.lane.b32.xlu0 %v6548_v10, %s6390_s7  ;;  %s9137_s7 = sld [smem:[#allocation26_spill]] }
 0x2b5   :  { %v473_v61 = vpop.xlane.xlu1 %472 }
 0x2b6   :  { %5915 = vrcp.f32 %v473_v61  ;;  %v5390_v61 = vld [vmem:[%s9123_s0 + $0x18] sm:$0xf0] }
 0x2bc   :  { %v5916_v62 = vpop.eup %5915 }
 0x2bd   :  { %v475_v63 = vmul.f32 %v5916_v62, %v5908_v42  ;;  %v5826_v42 = vld [vmem:[%s9122_s27 + $0x28] sm:$0xff]  ;;  %s6397_s27 = smov 12  }
 0x2be   :  { %293 = vmatpush.bf16.msra.mxu0 %v5826_v42  ;;  %v9082_v42 = vunpack.c.l.bf16 %v6736_v39 }
 0x2bf   :  { %v476_v0 = vpack.c.bf16 %v475_v63, %v475_v63  ;;  %v5381_v63 = vor.u32 %v5814_v57, %v5380_v56 }
 0x2c1   :  { %5472 = vmatmul.msk.bf16.vlgmr.msrb.gmra.mxu2 %vm444_vm1, %v476_v0 }
 0x2c2   :  { %294 = vmatpush.bf16.msra.mxu0 %v5825_v44 }
 0x2c5   :  { %v532_v1 = vpop.xlane.xlu0 %531 }
 0x2c6   :  { %5917 = vrcp.f32 %v532_v1  ;;  %295 = vmatpush.bf16.msra.mxu0 %v5824_v48  ;;  %v9083_v48 = vunpack.c.h.bf16 %v6736_v39 }
 0x2ca   :  { %296 = vmatpush.bf16.msra.mxu0 %v5823_v51 }
 0x2cc   :  { %v5918_v2 = vpop.eup %5917 }
 0x2cd   :  { %v534_v3 = vmul.f32 %v5918_v2, %v5910_v47  ;;  %v537_v4 = vpop.permute.xlu1 %536  ;;  %v5382_v47 = vld [vmem:[%s9123_s0 + $0x8] sm:$0xf0]  ;;  %v5393_v2 = vor.u32 %v5815_v60, %v5390_v61 }
 0x2ce   :  { %v542_v5 = vsel %vm482_vm2, %v537_v4, 0  ;;  %v5385_v49 = vor.u32 %v5813_v46, %v5382_v47  ;;  %297 = vmatpush.bf16.msra.mxu0 %v5822_v54  ;;  %v5388_v4 = vld [vmem:[%s9123_s0 + $0x10] sm:$0xf] }
 0x2cf   :  { %v535_v6 = vpack.c.bf16 %v534_v3, %v534_v3  ;;  %551 = vmatpush.bf16.msra.mxu2 %v542_v5  ;;  %v5816_v5 = vld [vmem:[%s9123_s0 + $0x14] sm:$0xf0] }
 0x2d0   :  { %5458 = vmatmul.msk.bf16.vlgmr.msra.gmra.mxu1 %vm278_vm3, %v5385_v49 }
 0x2d2   :  { %5474 = vmatmul.msk.bf16.vlgmr.msra.gmra.mxu2 %vm444_vm1, %v535_v6  ;;  %298 = vmatpush.bf16.msra.mxu0 %v5821_v55  ;;  %v5817_v6 = vld [vmem:[%s9123_s0 + $0x24] sm:$0xf] }
 0x2d5   :  { %v590_v7 = vpop.xlane.xlu0 %589  ;;  %v653_v9 = vpop.permute.xlu1 %652  ;;  %299 = vmatmul.bf16.vlgmr.msra.gmra.mxu0 %v5381_v63  ;;  %v6784_v63 = vld [vmem:[%s9124_s29 + $0x8] sm:$0xff]  }
 0x2d6   :  { %5919 = vrcp.f32 %v590_v7  ;;  %v658_v13 = vsel %vm482_vm2, %v653_v9, 0  ;;  %v5398_v7 = vld [vmem:[%s9123_s0 + $0x28] sm:$0xf0]  ;;  %9125 = vst [vmem:[#allocation12_spill] sm:$0xff] %v6784_v63 }
 0x2d7   :  { %v5401_v9 = vor.u32 %v5817_v6, %v5398_v7 }
 0x2dc   :  { %v5920_v8 = vpop.eup %5919 }
 0x2dd   :  { %v592_v10 = vmul.f32 %v5920_v8, %v5912_v52  ;;  %v6649_v52 = vld [vmem:[%s9040_s10] sm:$0xff]  ;;  %v5389_v8 = vor.u32 %v5816_v5, %v5388_v4  ;;  %v9080_v5 = vunpack.c.h.bf16 %v6784_v63 }
 0x2de   :  { %805 = vmatpush.bf16.msrb.mxu1 %v6649_v52 }
 0x2df   :  { %v593_v14 = vpack.c.bf16 %v592_v10, %v592_v10  ;;  %v5396_v10 = vld [vmem:[%s9123_s0 + $0x20] sm:$0xf] }
 0x2e0   :  { %5459 = vmatmul.msk.bf16.gmra.mxu1 %vm278_vm3, %v5393_v2 }
 0x2e5   :  { %v648_v15 = vpop.xlane.xlu2 %647  ;;  %304 = vmatmul.bf16.gmra.mxu0 %v5389_v8 }
 0x2e6   :  { %5921 = vrcp.f32 %v648_v15 }
 0x2e8   :  { %v595_v11 = vpop.permute.xlu0 %594 }
 0x2e9   :  { %v600_v12 = vsel %vm482_vm2, %v595_v11, 0  ;;  %v5818_v11 = vld [vmem:[%s9123_s0 + $0x24] sm:$0xf0] }
 0x2ea   :  { %609 = vmatpush.bf16.msrb.mxu2 %v600_v12  ;;  %v5819_v12 = vld [vmem:[%s9123_s0 + $0x34] sm:$0xf] }
 0x2ec   :  { %v5922_v16 = vpop.eup %5921 }
 0x2ed   :  { %5476 = vmatmul.msk.bf16.vlgmr.msrb.gmra.mxu2 %vm444_vm1, %v593_v14  ;;  %v650_v17 = vmul.f32 %v5922_v16, %v5914_v59  ;;  %v5397_v14 = vor.u32 %v5818_v11, %v5396_v10  ;;  %v5404_v16 = vld [vmem:[%s9123_s0 + $0x30] sm:$0xf] }
 0x2ee   :  { %667 = vmatpush.bf16.msra.mxu2 %v658_v13  ;;  %v5406_v13 = vld [vmem:[%s9123_s0 + $0x38] sm:$0xf0] }
 0x2ef   :  { %v651_v18 = vpack.c.bf16 %v650_v17, %v650_v17  ;;  %v5409_v15 = vor.u32 %v5819_v12, %v5406_v13  ;;  %v5820_v17 = vld [vmem:[%s9123_s0 + $0x34] sm:$0xf0]  ;;  %s9130_s0 = smov 8  }
 0x2f0   :  { %5460 = vmatmul.msk.bf16.gmra.mxu1 %vm278_vm3, %v5401_v9 }
 0x2f5   :  { %309 = vmatmul.bf16.gmra.mxu0 %v5397_v14 }
 0x2fd   :  { %5478 = vmatmul.msk.bf16.vlgmr.msra.gmra.mxu2 %vm444_vm1, %v651_v18  ;;  %v5405_v18 = vor.u32 %v5820_v17, %v5404_v16 }
 0x300   :  { %5461 = vmatmul.msk.bf16.gmra.mxu1 %vm278_vm3, %v5409_v15 }
 0x305   :  { %314 = vmatmul.bf16.gmra.mxu0 %v5405_v18 }
 0x344   :  { %v6593_v19 = vpop.f32.mrf.mxu2 }
 0x345   :  { %v499_v58 = vpack.c.bf16 %v6593_v19, %v6593_v19  ;;  %v438_v19 = vld [vmem:[%s9039_s9] sm:$0x1] }
 0x34c   :  { %v497_v20 = vpop.f32.mrf.mxu2 }
 0x34d   :  { %v780_v20 = vld [vmem:[%s9041_s11] sm:$0x1] }
 0x355   :  { %v553_v21 = vpop.f32.mrf.mxu2 }
 0x356   :  { %v557_v22 = vpack.c.bf16 %v553_v21, %v553_v21  ;;  %v167_v21 = vld [vmem:[#allocation2] sm:$0x1] }
 0x358   :  { %v675_v23 = vunpack.c.l.b16 %v557_v22  ;;  %v329_v22 = vpop.f32.mrf.mxu1 }
 0x35a   :  { %v676_v24 = vpack.c.b16 %v675_v23, %v675_v23 }
 0x35c   :  { %677 = vrot.lane.b32.xlu1 %v676_v24, %s9072_s15  ;;  %v698_v24 = vunpack.c.l.bf16 %v438_v19 }
 0x35d   :  { %v555_v25 = vpop.f32.mrf.mxu2 }
 0x35e   :  { %v781_v25 = vunpack.c.l.bf16 %v780_v20 }
 0x370   :  { %v611_v26 = vpop.f32.mrf.mxu2 }
 0x371   :  { %v615_v27 = vpack.c.bf16 %v611_v26, %v611_v26  ;;  %v168_v26 = vunpack.c.l.bf16 %v167_v21 }
 0x373   :  { %v680_v28 = vunpack.c.l.b16 %v615_v27 }
 0x375   :  { %v681_v29 = vpack.c.b16 %v680_v28, %v680_v28  ;;  %v6720_v28 = vperm.slane %v781_v25, 0 }
 0x377   :  { %682 = vrot.lane.b32.xlu0 %v681_v29, %s9065_s17  ;;  %v6722_v29 = vperm.slane %v168_v26, 0  ;;  %819 = vrot.lane.b32.xlu2 %v6720_v28, %s6381_s4  ;;  %v6841_v26 = vld [vmem:[%s9124_s29 + $0x10] sm:$0xff]  }
 0x378   :  { %v613_v30 = vpop.f32.mrf.mxu2  ;;  %9126 = vst [vmem:[#allocation13_spill] sm:$0xff] %v6841_v26 }
 0x379   :  { %v300_v30 = vpop.f32.mrf.mxu0 }
 0x37f   :  { %814 = vrot.lane.b32.xlu0 %v6640_v50, %s6381_s4  ;;  %893 = vrot.lane.b32.xlu2 %v6640_v50, %s6383_s5 }
 0x380   :  { %v669_v31 = vpop.f32.mrf.mxu2 }
 0x381   :  { %v673_v32 = vpack.c.bf16 %v669_v31, %v669_v31  ;;  %v699_v31 = vperm.slane %v698_v24, 0  ;;  %v302_v40 = vpop.f32.mrf.mxu0 }
 0x382   :  { %v303_v41 = vadd.f32 %v302_v40, %v6722_v29  ;;  %v6394_v40 = vmov 32.0  }
 0x383   :  { %v685_v33 = vunpack.c.l.b16 %v673_v32  ;;  %v301_v32 = vadd.f32 %v300_v30, %v6722_v29  ;;  %v9078_v30 = vunpack.c.h.bf16 %v6841_v26  ;;  %5923 = vrcp.f32 %v6394_v40 }
 0x385   :  { %v686_v34 = vpack.c.b16 %v685_v33, %v685_v33  ;;  %v330_v33 = vadd.f32 %v329_v22, %v301_v32 }
 0x387   :  { %687 = vrot.lane.b32.xlu1 %v686_v34, %s9071_s3  ;;  %v6729_v37 = vpack.c.bf16 %v330_v33, %v330_v33  ;;  %s9133_s3 = smov 88  }
 0x388   :  { %v671_v35 = vpop.f32.mrf.mxu2 }
 0x389   :  { %v331_v35 = vpop.f32.mrf.mxu1  ;;  %381 = vst.msk [vmem:[%s9054_s24] sm:$0xf] %vm380_vm6, %v6729_v37  ;;  %v9091_v43 = vunpack.c.l.bf16 %v6729_v37  ;;  %v879_v46 = vunpack.c.l.b16 %v6729_v37  ;;  %v305_v54 = vpop.f32.mrf.mxu0 }
 0x38a   :  { %v332_v44 = vadd.f32 %v331_v35, %v303_v41  ;;  %v306_v57 = vadd.f32 %v305_v54, %v6722_v29  ;;  %v5924_v54 = vpop.eup %5923 }
 0x38b   :  { %v762_v51 = vadd.f32 %v9082_v42, %v9091_v43  ;;  %vm735_vm7 = vweird.f32 %v5924_v54 }
 0x38c   :  { %v6749_v47 = vpack.c.bf16 %v332_v44, %v332_v44 }
 0x38e   :  { %382 = vst.msk [vmem:[%s9054_s24 + $0x4] sm:$0xf] %vm380_vm6, %v6749_v47  ;;  %v9092_v50 = vunpack.c.l.bf16 %v6749_v47 }
 0x38f   :  { %812 = vrot.lane.b32.xlu1 %v6649_v52, %s6381_s4 }
 0x390   :  { %v763_v55 = vadd.f32 %v9083_v48, %v9092_v50 }
 0x391   :  { %v334_v49 = vpop.f32.mrf.mxu1 }
 0x399   :  { %v336_v61 = vpop.f32.mrf.mxu1 }
 0x3a1   :  { %v339_v6 = vpop.f32.mrf.mxu1 }
 0x3a9   :  { %v341_v15 = vpop.f32.mrf.mxu1 }
 0x3b1   :  { %v344_v21 = vpop.f32.mrf.mxu1 }
 0x3b9   :  { %v346_v35 = vpop.f32.mrf.mxu1 }
 0x3ce   :  { %v678_v53 = vpop.permute.xlu1 %677 }
 0x3cf   :  { %v691_v62 = vsel %vm444_vm1, %v499_v58, %v678_v53  ;;  %v880_v53 = vunpack.c.l.b16 %v6749_v47  ;;  %v6770_v58 = vpack.c.bf16 %v763_v55, %v762_v51 }
 0x3d1   :  { %v6767_v56 = vpack.c.b16 %v880_v53, %v879_v46  ;;  %v6864_v46 = vld [vmem:[%s9124_s29 + $0x18] sm:$0xff]   ;;  %s6395_s29 = smov 124  }
 0x3d2   :  { %9127 = vst [vmem:[#allocation14_spill] sm:$0xff] %v6864_v46  ;;  %v9077_v51 = vunpack.c.l.bf16 %v6864_v46  ;;  %v9076_v53 = vunpack.c.h.bf16 %v6864_v46 }
 0x3e9   :  { %v683_v59 = vpop.permute.xlu0 %682 }
 0x3ea   :  { %v694_v0 = vsel %vm692_vm4, %v691_v62, %v683_v59  ;;  %v335_v59 = vadd.f32 %v334_v49, %v306_v57  ;;  %v307_v62 = vpop.f32.mrf.mxu0  ;;  %v6866_v49 = vpop.permute.xlu2 %819 }
 0x3ec   :  { %v6772_v60 = vpack.c.bf16 %v335_v59, %v335_v59  ;;  %v731_v59 = vmul.f32 32.0, %v5924_v54 }
 0x3ee   :  { %383 = vst.msk [vmem:[%s9054_s24 + $0x8] sm:$0xf] %vm380_vm6, %v6772_v60 }
 0x3f1   :  { %v815_v23 = vpop.permute.xlu0 %814 }
 0x3f2   :  { %840 = vmatpush.bf16.msrb.mxu2 %v815_v23  ;;  %v310_v9 = vpop.f32.mrf.mxu0 }
 0x3f9   :  { %v688_v1 = vpop.permute.xlu1 %687 }
 0x3fa   :  { %v697_v3 = vsel %vm695_vm5, %v694_v0, %v688_v1  ;;  %v308_v0 = vadd.f32 %v307_v62, %v6722_v29  ;;  %v9085_v1 = vunpack.c.l.bf16 %v6772_v60  ;;  %v312_v14 = vpop.f32.mrf.mxu0  ;;  %v894_v62 = vpop.permute.xlu2 %893 }
 0x3fb   :  { %5487 = vmatmul.msk.bf16.vlgmr.msra.gmra.mxu3 %vm416_vm0, %v697_v3  ;;  %v9081_v3 = vunpack.c.l.bf16 %v6784_v63  ;;  %v313_v16 = vadd.f32 %v312_v14, %v6722_v29 }
 0x3fc   :  { %v337_v2 = vadd.f32 %v336_v61, %v308_v0  ;;  %918 = vmatpush.bf16.msrb.mxu3 %v894_v62  ;;  %v732_v0 = vsub.f32 1.0, %v731_v59 }
 0x3fd   :  { %v764_v8 = vadd.f32 %v9081_v3, %v9085_v1  ;;  %v342_v17 = vadd.f32 %v341_v15, %v313_v16 }
 0x3fe   :  { %v6791_v4 = vpack.c.bf16 %v337_v2, %v337_v2  ;;  %v733_v2 = vmul.f32 %v5924_v54, %v732_v0 }
 0x3ff   :  { %v6821_v18 = vpack.c.bf16 %v342_v17, %v342_v17 }
 0x400   :  { %384 = vst.msk [vmem:[%s9054_s24 + $0xc] sm:$0xf] %vm380_vm6, %v6791_v4  ;;  %v9090_v7 = vunpack.c.l.bf16 %v6791_v4 }
 0x401   :  { %v813_v27 = vpop.permute.xlu1 %812  ;;  %386 = vst.msk [vmem:[%s9054_s24 + $0x14] sm:$0xf] %vm380_vm6, %v6821_v18  ;;  %v9088_v25 = vunpack.c.l.bf16 %v6821_v18 }
 0x402   :  { %841 = vmatpush.bf16.msrb.mxu2 %v813_v27  ;;  %v765_v10 = vadd.f32 %v9080_v5, %v9090_v7  ;;  %v315_v19 = vpop.f32.mrf.mxu0  ;;  %v9079_v27 = vunpack.c.l.bf16 %v6841_v26 }
 0x403   :  { %v316_v20 = vadd.f32 %v315_v19, %v6722_v29  ;;  %v767_v32 = vadd.f32 %v9078_v30, %v9088_v25 }
 0x404   :  { %v6809_v12 = vpack.c.bf16 %v765_v10, %v764_v8 }
 0x405   :  { %5497 = vmatmul.msk.bf16.vlgmr.msrb.gmra.mxu2 %vm416_vm0, %v6770_v58  ;;  %v345_v22 = vadd.f32 %v344_v21, %v316_v20  ;;  %v881_v20 = vunpack.c.l.b16 %v6772_v60 }
 0x407   :  { %v6829_v23 = vpack.c.bf16 %v345_v22, %v345_v22 }
 0x409   :  { %387 = vst.msk [vmem:[%s9054_s24 + $0x18] sm:$0xf] %vm380_vm6, %v6829_v23  ;;  %v9087_v44 = vunpack.c.l.bf16 %v6829_v23  ;;  %v885_v16 = vunpack.c.l.b16 %v6829_v23 }
 0x40b   :  { %v768_v55 = vadd.f32 %v9077_v51, %v9087_v44 }
 0x415   :  { %5498 = vmatmul.msk.bf16.gmra.mxu2 %vm416_vm0, %v6809_v12 }
 0x47e   :  { %v723_v34 = vpop.f32.mrf.mxu3 }
 0x47f   :  { %v6727_v36 = vadd.f32 %v723_v34, %v699_v31  ;;  %v317_v34 = vpop.f32.mrf.mxu0 }
 0x481   :  { %v727_v38 = vsel %vm416_vm0, %v6727_v36, 0.0 }
 0x482   :  { %728 = vadd.xlane.f32.xlu0 %v727_v38  ;;  %v318_v38 = vadd.f32 %v317_v34, %v6722_v29 }
 0x484   :  { %v347_v41 = vadd.f32 %v346_v35, %v318_v38 }
 0x486   :  { %v725_v45 = vpop.f32.mrf.mxu3 }
 0x487   :  { %v6859_v45 = vpack.c.bf16 %v347_v41, %v347_v41 }
 0x488   :  { %v843_v34 = vpop.f32.mrf.mxu2 }
 0x489   :  { %388 = vst.msk [vmem:[%s9054_s24 + $0x1c] sm:$0xf] %vm380_vm6, %v6859_v45  ;;  %v886_v17 = vunpack.c.l.b16 %v6859_v45 }
 0x48b   :  { %v890_v19 = vpack.c.b16 %v886_v17, %v885_v16 }
 0x496   :  { %891 = vrot.lane.b32.xlu0 %v6649_v52, %s6383_s5  ;;  %v311_v52 = vadd.f32 %v310_v9, %v6722_v29  ;;  %v9086_v29 = vunpack.c.l.bf16 %v6859_v45 }
 0x498   :  { %v340_v11 = vadd.f32 %v339_v6, %v311_v52  ;;  %v769_v57 = vadd.f32 %v9076_v53, %v9086_v29  ;;  %v734_v6 = vadd.f32 %v5924_v54, %v733_v2 }
 0x49a   :  { %v6811_v13 = vpack.c.bf16 %v340_v11, %v340_v11  ;;  %v6884_v61 = vpack.c.bf16 %v769_v57, %v768_v55  ;;  %v6888_v8 = vsel %vm735_vm7, %v5924_v54, %v734_v6 }
 0x49c   :  { %385 = vst.msk [vmem:[%s9054_s24 + $0x10] sm:$0xf] %vm380_vm6, %v6811_v13  ;;  %v9089_v24 = vunpack.c.l.bf16 %v6811_v13  ;;  %v883_v22 = vunpack.c.l.b16 %v6811_v13 }
 0x49e   :  { %v766_v31 = vadd.f32 %v9079_v27, %v9089_v24 }
 0x4a0   :  { %v6853_v33 = vpack.c.bf16 %v767_v32, %v766_v31  ;;  %v884_v31 = vunpack.c.l.b16 %v6821_v18 }
 0x4a2   :  { %5499 = vmatmul.msk.bf16.gmra.mxu2 %vm416_vm0, %v6853_v33  ;;  %v889_v32 = vpack.c.b16 %v884_v31, %v883_v22 }
 0x4b2   :  { %5500 = vmatmul.msk.bf16.gmra.mxu2 %vm416_vm0, %v6884_v61 }
 0x4f5   :  { %v729_v9 = vpop.xlane.xlu0 %728 }
 0x4f6   :  { %v737_v52 = vmul.f32 %v6888_v8, %v729_v9 }
 0x4f8   :  { %v6892_v10 = vsub.f32 %v6727_v36, %v737_v52  ;;  %v882_v36 = vunpack.c.l.b16 %v6791_v4 }
 0x4fa   :  { %v739_v11 = vmul.f32 %v6892_v10, %v6892_v10  ;;  %v888_v21 = vpack.c.b16 %v882_v36, %v881_v20 }
 0x4fc   :  { %v740_v14 = vsel %vm416_vm0, %v739_v11, 0.0 }
 0x4fd   :  { %741 = vadd.xlane.f32.xlu1 %v740_v14 }
 0x508   :  { %v892_v15 = vpop.permute.xlu0 %891 }
 0x509   :  { %919 = vmatpush.bf16.msrb.mxu3 %v892_v15 }
 0x50c   :  { %5501 = vmatmul.msk.bf16.vlgmr.msrb.gmra.mxu3 %vm416_vm0, %v6767_v56  ;;  %v845_v56 = vpop.f32.mrf.mxu2 }
 0x514   :  { %v848_v35 = vpop.f32.mrf.mxu2 }
 0x515   :  { %v849_v52 = vadd.f32 %v848_v35, %v6866_v49  ;;  %v846_v35 = vadd.f32 %v845_v56, %v6866_v49  ;;  %v376_v56 = vld [vmem:[%s9052_s22] sm:$0xf]  ;;  %s9136_s22 = smov 104  }
 0x517   :  { %v865_v17 = vpack.c.bf16 %v849_v52, %v849_v52 }
 0x51c   :  { %5502 = vmatmul.msk.bf16.gmra.mxu3 %vm416_vm0, %v888_v21  ;;  %v850_v38 = vpop.f32.mrf.mxu2 }
 0x51d   :  { %v851_v11 = vadd.f32 %v850_v38, %v6866_v49  ;;  %v962_v38 = vunpack.c.l.b16 %v865_v17 }
 0x51f   :  { %v866_v20 = vpack.c.bf16 %v851_v11, %v851_v11  ;;  %v378_v11 = vld [vmem:[%s9053_s23] sm:$0xf]  ;;  %s9145_s23 = smov 16  }
 0x525   :  { %v853_v40 = vpop.f32.mrf.mxu2 }
 0x526   :  { %v854_v54 = vadd.f32 %v853_v40, %v6866_v49  ;;  %v963_v40 = vunpack.c.l.b16 %v866_v20  ;;  %v6932_v20 = vunpack.c.l.bf16 %v378_v11 }
 0x528   :  { %v867_v57 = vpack.c.bf16 %v854_v54, %v854_v54 }
 0x52a   :  { %v964_v62 = vunpack.c.l.b16 %v867_v57 }
 0x52c   :  { %5503 = vmatmul.msk.bf16.gmra.mxu3 %vm416_vm0, %v889_v32  ;;  %v844_v32 = vadd.f32 %v843_v34, %v6866_v49 }
 0x52d   :  { %v855_v41 = vpop.f32.mrf.mxu2 }
 0x52e   :  { %v856_v55 = vadd.f32 %v855_v41, %v6866_v49  ;;  %v863_v57 = vpack.c.bf16 %v844_v32, %v844_v32  ;;  %v758_v32 = vperm.slane %v6932_v20, 0 }
 0x530   :  { %v868_v59 = vpack.c.bf16 %v856_v55, %v856_v55 }
 0x532   :  { %v965_v0 = vunpack.c.l.b16 %v868_v59  ;;  %v864_v59 = vpack.c.bf16 %v846_v35, %v846_v35 }
 0x534   :  { %v970_v6 = vpack.c.b16 %v965_v0, %v964_v62  ;;  %v969_v62 = vpack.c.b16 %v963_v40, %v962_v38  ;;  %v358_v38 = vld [vmem:[#allocation6] sm:$0xf] }
 0x535   :  { %v858_v2 = vpop.f32.mrf.mxu2 }
 0x536   :  { %v859_v9 = vadd.f32 %v858_v2, %v6866_v49  ;;  %1144 = vrot.lane.b32.xlu0 %v970_v6, %s6382_s1  ;;  %v960_v2 = vunpack.c.l.b16 %v863_v57  ;;  %v980_v40 = vsel %vm972_vm8, %v969_v62, 0 }
 0x538   :  { %v869_v16 = vpack.c.bf16 %v859_v9, %v859_v9  ;;  %v961_v9 = vunpack.c.l.b16 %v864_v59 }
 0x53a   :  { %v966_v22 = vunpack.c.l.b16 %v869_v16  ;;  %v983_v16 = vsel %vm972_vm8, %v970_v6, 0  ;;  %v968_v17 = vpack.c.b16 %v961_v9, %v960_v2 }
 0x53c   :  { %5504 = vmatmul.msk.bf16.gmra.mxu3 %vm416_vm0, %v890_v19  ;;  %v977_v57 = vsel %vm972_vm8, %v968_v17, 0 }
 0x53d   :  { %v860_v36 = vpop.f32.mrf.mxu2 }
 0x53e   :  { %v861_v21 = vadd.f32 %v860_v36, %v6866_v49  ;;  %1064 = vrot.lane.b32.xlu0 %v970_v6, %s6395_s29 }
 0x540   :  { %v870_v31 = vpack.c.bf16 %v861_v21, %v861_v21 }
 0x542   :  { %v967_v41 = vunpack.c.l.b16 %v870_v31 }
 0x544   :  { %v971_v54 = vpack.c.b16 %v967_v41, %v966_v22 }
 0x546   :  { %1226 = vrot.lane.b32.xlu2 %v971_v54, %s6396_s6  ;;  %1146 = vrot.lane.b32.xlu1 %v971_v54, %s6382_s1  ;;  %v986_v49 = vsel %vm972_vm8, %v971_v54, 0 }
 0x547   :  { %992 = vmatpush.bf16.xpose.msrb.mxu0 %v986_v49  ;;  %1062 = vrot.lane.b32.xlu0 %v969_v62, %s6395_s29 }
 0x54e   :  { %1224 = vrot.lane.b32.xlu2 %v970_v6, %s6396_s6  ;;  %1142 = vrot.lane.b32.xlu1 %v969_v62, %s6382_s1  ;;  %v6943_v6 = vunpack.c.l.bf16 %v358_v38 }
 0x54f   :  { %993 = vmatpush.bf16.xpose.msrb.mxu0 %v983_v16  ;;  %1060 = vrot.lane.b32.xlu0 %v968_v17, %s6395_s29 }
 0x550   :  { %9128 = vst [vmem:[#allocation15_spill] sm:$0xff] %v6943_v6 }
 0x556   :  { %1066 = vrot.lane.b32.xlu2 %v971_v54, %s6395_s29  ;;  %1140 = vrot.lane.b32.xlu1 %v968_v17, %s6382_s1 }
 0x557   :  { %994 = vmatpush.bf16.xpose.msrb.mxu0 %v980_v40 }
 0x55e   :  { %1222 = vrot.lane.b32.xlu2 %v969_v62, %s6396_s6 }
 0x55f   :  { %995 = vmatpush.bf16.xpose.msrb.mxu0 %v977_v57 }
 0x566   :  { %1220 = vrot.lane.b32.xlu2 %v968_v17, %s6396_s6 }
 0x570   :  { %v742_v14 = vpop.xlane.xlu1 %741 }
 0x571   :  { %v743_v15 = vmul.f32 %v742_v14, %v6888_v8  ;;  %v6929_v14 = vunpack.c.l.bf16 %v376_v56 }
 0x573   :  { %v744_v19 = vadd.f32 1e-05, %v743_v15  ;;  %v756_v21 = vperm.slane %v6929_v14, 0 }
 0x575   :  { %5925 = vrsqrt.f32 %v744_v19  ;;  %vm751_vm10 = vweird.f32 %v744_v19 }
 0x57b   :  { %v5926_v55 = vpop.eup %5925 }
 0x57c   :  { %v746_v0 = vmul.f32 %v5926_v55, %v744_v19  ;;  %vm752_vm9 = vweird.f32 %v5926_v55 }
 0x57d   :  { %vm753_vm11 = vmor %vm751_vm10, %vm752_vm9 }
 0x57e   :  { %v747_v34 = vmul.f32 %v5926_v55, %v746_v0 }
 0x580   :  { %v748_v52 = vmul.f32 0.5, %v747_v34 }
 0x582   :  { %v749_v15 = vsub.f32 1.5, %v748_v52 }
 0x584   :  { %v750_v36 = vmul.f32 %v5926_v55, %v749_v15 }
 0x586   :  { %v754_v22 = vsel %vm753_vm11, %v5926_v55, %v750_v36 }
 0x587   :  { %v755_v31 = vmul.f32 %v754_v22, %v6892_v10 }
 0x589   :  { %v757_v35 = vmul.f32 %v756_v21, %v755_v31 }
 0x58b   :  { %v759_v19 = vadd.f32 %v758_v32, %v757_v35 }
 0x58d   :  { %v760_v41 = vpack.c.bf16 %v759_v19, %v759_v19 }
 0x58f   :  { %v6945_v55 = vunpack.c.l.bf16 %v760_v41 }
 0x591   :  { %v774_v10 = vadd.f32 %v6945_v55, %v6943_v6 }
 0x593   :  { %v775_v59 = vpack.c.bf16 %v774_v10, %v774_v10 }
 0x595   :  { %5496 = vmatmul.msk.bf16.vlgmr.msrb.gmra.mxu1 %vm416_vm0, %v775_v59 }
 0x5a0   :  { %v1227_v54 = vpop.permute.xlu2 %1226 }
 0x5a1   :  { %v1241_v0 = vsel %vm972_vm8, %v1227_v54, 0 }
 0x5a2   :  { %1247 = vmatpush.bf16.xpose.msra.mxu2 %v1241_v0 }
 0x5a8   :  { %v1225_v49 = vpop.permute.xlu2 %1224  ;;  %v1145_v11 = vpop.permute.xlu0 %1144 }
 0x5a9   :  { %v1238_v34 = vsel %vm972_vm8, %v1225_v49, 0  ;;  %v1158_v36 = vsel %vm972_vm8, %v1145_v11, 0 }
 0x5aa   :  { %1248 = vmatpush.bf16.xpose.msra.mxu2 %v1238_v34 }
 0x5b0   :  { %v1067_v56 = vpop.permute.xlu2 %1066  ;;  %v1065_v21 = vpop.permute.xlu0 %1064 }
 0x5b1   :  { %v1081_v2 = vsel %vm972_vm8, %v1067_v56, 0  ;;  %v1078_v22 = vsel %vm972_vm8, %v1065_v21, 0  ;;  %v921_v56 = vpop.f32.mrf.mxu3 }
 0x5b2   :  { %1087 = vmatpush.bf16.xpose.msra.mxu0 %v1081_v2 }
 0x5b8   :  { %v1223_v9 = vpop.permute.xlu2 %1222  ;;  %v1147_v52 = vpop.permute.xlu1 %1146 }
 0x5b9   :  { %v1235_v62 = vsel %vm972_vm8, %v1223_v9, 0  ;;  %v1161_v15 = vsel %vm972_vm8, %v1147_v52, 0  ;;  %v1063_v35 = vpop.permute.xlu0 %1062  ;;  %v923_v2 = vpop.f32.mrf.mxu3 }
 0x5ba   :  { %1249 = vmatpush.bf16.xpose.msra.mxu2 %v1235_v62  ;;  %1167 = vmatpush.bf16.xpose.msra.mxu3 %v1161_v15  ;;  %v1075_v38 = vsel %vm972_vm8, %v1063_v35, 0 }
 0x5bb   :  { %1088 = vmatpush.bf16.xpose.msra.mxu0 %v1078_v22 }
 0x5c0   :  { %v1221_v16 = vpop.permute.xlu2 %1220  ;;  %v1143_v31 = vpop.permute.xlu1 %1142 }
 0x5c1   :  { %v1232_v17 = vsel %vm972_vm8, %v1221_v16, 0  ;;  %v1155_v32 = vsel %vm972_vm8, %v1143_v31, 0  ;;  %v1061_v41 = vpop.permute.xlu0 %1060  ;;  %v926_v9 = vpop.f32.mrf.mxu3 }
 0x5c2   :  { %1250 = vmatpush.bf16.xpose.msra.mxu2 %v1232_v17  ;;  %1168 = vmatpush.bf16.xpose.msra.mxu3 %v1158_v36  ;;  %v1072_v10 = vsel %vm972_vm8, %v1061_v41, 0 }
 0x5c3   :  { %1089 = vmatpush.bf16.xpose.msra.mxu0 %v1075_v38 }
 0x5c8   :  { %v1141_v40 = vpop.permute.xlu1 %1140 }
 0x5c9   :  { %v1152_v19 = vsel %vm972_vm8, %v1141_v40, 0  ;;  %v928_v62 = vpop.f32.mrf.mxu3 }
 0x5ca   :  { %1169 = vmatpush.bf16.xpose.msra.mxu3 %v1155_v32 }
 0x5cb   :  { %1090 = vmatpush.bf16.xpose.msra.mxu0 %v1072_v10 }
 0x5d1   :  { %v931_v52 = vpop.f32.mrf.mxu3 }
 0x5d2   :  { %1170 = vmatpush.bf16.xpose.msra.mxu3 %v1152_v19 }
 0x5d9   :  { %v933_v11 = vpop.f32.mrf.mxu3 }
 0x5e1   :  { %v936_v16 = vpop.f32.mrf.mxu3 }
 0x5e9   :  { %v938_v36 = vpop.f32.mrf.mxu3 }
 0x612   :  { %v807_v57 = vpop.f32.mrf.mxu1 }
 0x613   :  { %v808_v59 = vadd.f32 %v807_v57, %v6720_v28 }
 0x615   :  { %v811_v54 = vpack.c.bf16 %v808_v59, %v808_v59 }
 0x617   :  { %v1056_v0 = vunpack.c.l.b16 %v811_v54  ;;  %5505 = vmatmul.msk.bf16.vlgmr.msrb.gmra.mxu0 %vm972_vm8, %v811_v54 }
 0x619   :  { %v1057_v49 = vpack.c.b16 %v1056_v0, %v1056_v0 }
 0x61a   :  { %v809_v34 = vpop.f32.mrf.mxu1 }
 0x61b   :  { %1138 = vrot.lane.b32.xlu1 %v1057_v49, %s6382_s1  ;;  %1218 = vrot.lane.b32.xlu2 %v1057_v49, %s6396_s6 }
 0x623   :  { %1058 = vrot.lane.b32.xlu2 %v1057_v49, %s6395_s29 }
 0x62b   :  { %897 = vrot.lane.b32.xlu2 %v6720_v28, %s6383_s5 }
 0x675   :  { %v1219_v15 = vpop.permute.xlu2 %1218 }
 0x676   :  { %5511 = vmatmul.msk.bf16.vlgmr.msra.gmra.mxu2 %vm972_vm8, %v1219_v15 }
 0x67d   :  { %v1059_v17 = vpop.permute.xlu2 %1058 }
 0x67e   :  { %5507 = vmatmul.msk.bf16.vlgmr.msra.gmra.mxu0 %vm972_vm8, %v1059_v17 }
 0x685   :  { %v898_v21 = vpop.permute.xlu2 %897 }
 0x686   :  { %v937_v22 = vadd.f32 %v936_v16, %v898_v21  ;;  %v939_v31 = vadd.f32 %v938_v36, %v898_v21  ;;  %v932_v32 = vadd.f32 %v931_v52, %v898_v21  ;;  %v934_v35 = vadd.f32 %v933_v11, %v898_v21 }
 0x687   :  { %v927_v41 = vadd.f32 %v926_v9, %v898_v21  ;;  %v929_v10 = vadd.f32 %v928_v62, %v898_v21  ;;  %v922_v51 = vadd.f32 %v921_v56, %v898_v21  ;;  %v924_v16 = vadd.f32 %v923_v2, %v898_v21 }
 0x688   :  { %v947_v28 = vpack.c.bf16 %v937_v22, %v937_v22  ;;  %v948_v38 = vpack.c.bf16 %v939_v31, %v939_v31  ;;  %v945_v40 = vpack.c.bf16 %v932_v32, %v932_v32  ;;  %v946_v19 = vpack.c.bf16 %v934_v35, %v934_v35 }
 0x689   :  { %v943_v17 = vpack.c.bf16 %v927_v41, %v927_v41  ;;  %v944_v53 = vpack.c.bf16 %v929_v10, %v929_v10  ;;  %v941_v52 = vpack.c.bf16 %v922_v51, %v922_v51  ;;  %v942_v11 = vpack.c.bf16 %v924_v16, %v924_v16 }
 0x68a   :  { %v1028_v57 = vunpack.c.l.b16 %v947_v28  ;;  %v1029_v59 = vunpack.c.l.b16 %v948_v38  ;;  %v1026_v54 = vunpack.c.l.b16 %v945_v40  ;;  %v1027_v0 = vunpack.c.l.b16 %v946_v19 }
 0x68b   :  { %v1024_v9 = vunpack.c.l.b16 %v943_v17  ;;  %v1025_v62 = vunpack.c.l.b16 %v944_v53  ;;  %v1022_v31 = vunpack.c.l.b16 %v941_v52  ;;  %v1023_v32 = vunpack.c.l.b16 %v942_v11 }
 0x68c   :  { %v1033_v49 = vpack.c.b16 %v1029_v59, %v1028_v57  ;;  %v1032_v34 = vpack.c.b16 %v1027_v0, %v1026_v54 }
 0x68d   :  { %v1139_v15 = vpop.permute.xlu1 %1138  ;;  %v1031_v22 = vpack.c.b16 %v1025_v62, %v1024_v9  ;;  %v6978_v56 = vpack.c.b16 %v1023_v32, %v1022_v31 }
 0x68e   :  { %5509 = vmatmul.msk.bf16.vlgmr.msra.gmra.mxu3 %vm972_vm8, %v1139_v15  ;;  %1115 = vrot.lane.b32.xlu2 %v1033_v49, %s6395_s29 }
 0x68f   :  { %1275 = vrot.lane.b32.xlu0 %v1033_v49, %s6396_s6  ;;  %1045 = vmatpush.bf16.msra.mxu1 %v1033_v49 }
 0x690   :  { %1273 = vrot.lane.b32.xlu1 %v1032_v34, %s6396_s6 }
 0x693   :  { %1046 = vmatpush.bf16.msra.mxu1 %v1032_v34 }
 0x694   :  { %v997_v36 = vpop.f32.mrf.mxu0 }
 0x695   :  { %v1001_v21 = vmul.f32 0.5, %v997_v36 }
 0x697   :  { %1047 = vmatpush.bf16.msra.mxu1 %v1031_v22  ;;  %v1002_v35 = vsel %vm278_vm3, %v1001_v21, -inf }
 0x69b   :  { %1048 = vmatpush.bf16.msra.mxu1 %v6978_v56 }
 0x69c   :  { %v999_v2 = vpop.f32.mrf.mxu0 }
 0x6b9   :  { %1003 = vmax.xlane.f32.xlu0 %v1002_v35 }
 0x6e8   :  { %v1116_v28 = vpop.permute.xlu2 %1115 }
 0x6e9   :  { %1128 = vmatpush.bf16.msrb.mxu1 %v1116_v28 }
 0x6f9   :  { %v1252_v53 = vpop.f32.mrf.mxu2 }
 0x6fa   :  { %v1256_v51 = vmul.f32 0.5, %v1252_v53 }
 0x6fb   :  { %v1092_v38 = vpop.f32.mrf.mxu0 }
 0x6fc   :  { %v1096_v40 = vmul.f32 0.5, %v1092_v38  ;;  %v1257_v19 = vsel %vm278_vm3, %v1256_v51, -inf }
 0x6fd   :  { %1258 = vmax.xlane.f32.xlu1 %v1257_v19 }
 0x6fe   :  { %v1097_v41 = vsel %vm278_vm3, %v1096_v40, -inf }
 0x6ff   :  { %1098 = vmax.xlane.f32.xlu2 %v1097_v41 }
 0x701   :  { %v1276_v10 = vpop.permute.xlu0 %1275  ;;  %v1254_v57 = vpop.f32.mrf.mxu2 }
 0x702   :  { %1288 = vmatpush.bf16.msrb.mxu3 %v1276_v10  ;;  %v1274_v54 = vpop.permute.xlu1 %1273 }
 0x703   :  { %v1094_v59 = vpop.f32.mrf.mxu0 }
 0x706   :  { %1289 = vmatpush.bf16.msrb.mxu3 %v1274_v54 }
 0x711   :  { %v1172_v0 = vpop.f32.mrf.mxu3 }
 0x712   :  { %v1176_v15 = vmul.f32 0.5, %v1172_v0 }
 0x714   :  { %v1177_v17 = vsel %vm278_vm3, %v1176_v15, -inf }
 0x715   :  { %1178 = vmax.xlane.f32.xlu0 %v1177_v17 }
 0x717   :  { %1113 = vrot.lane.b32.xlu2 %v1032_v34, %s6395_s29 }
 0x719   :  { %v1174_v16 = vpop.f32.mrf.mxu3 }
 0x71f   :  { %1271 = vrot.lane.b32.xlu2 %v1031_v22, %s6396_s6 }
 0x727   :  { %1193 = vrot.lane.b32.xlu2 %v1032_v34, %s6382_s1 }
 0x729   :  { %1195 = vrot.lane.b32.xlu0 %v1033_v49, %s6382_s1 }
 0x72c   :  { %v1004_v9 = vpop.xlane.xlu0 %1003 }
 0x72d   :  { %v1005_v62 = vsub.f32 %v1001_v21, %v1004_v9 }
 0x72f   :  { %v1006_v52 = vmul.f32 1.442695, %v1005_v62  ;;  %1111 = vrot.lane.b32.xlu2 %v1031_v22, %s6395_s29 }
 0x731   :  { %5927 = vpow2.f32 %v1006_v52 }
 0x737   :  { %v5928_v11 = vpop.eup %5927  ;;  %1269 = vrot.lane.b32.xlu2 %v6978_v56, %s6396_s6 }
 0x738   :  { %v1008_v36 = vsel %vm278_vm3, %v5928_v11, 0.0 }
 0x739   :  { %1009 = vadd.xlane.f32.xlu1 %v1008_v36  ;;  %v7005_v36 = vld [vmem:[%s9044_s14 + $0x8] sm:$0xff] }
 0x73f   :  { %1191 = vrot.lane.b32.xlu2 %v1031_v22, %s6382_s1 }
 0x770   :  { %v1259_v31 = vpop.xlane.xlu1 %1258 }
 0x771   :  { %v1260_v32 = vsub.f32 %v1256_v51, %v1259_v31  ;;  %v7011_v31 = vld [vmem:[%s9044_s14] sm:$0xff] }
 0x772   :  { %v1099_v34 = vpop.xlane.xlu2 %1098 }
 0x773   :  { %v1261_v2 = vmul.f32 1.442695, %v1260_v32  ;;  %v1100_v49 = vsub.f32 %v1096_v40, %v1099_v34 }
 0x775   :  { %5929 = vpow2.f32 %v1261_v2  ;;  %v1101_v21 = vmul.f32 1.442695, %v1100_v49 }
 0x777   :  { %5931 = vpow2.f32 %v1101_v21 }
 0x77a   :  { %v1114_v35 = vpop.permute.xlu2 %1113 }
 0x77b   :  { %v5930_v28 = vpop.eup %5929  ;;  %1129 = vmatpush.bf16.msrb.mxu1 %v1114_v35 }
 0x77c   :  { %v1263_v53 = vsel %vm278_vm3, %v5930_v28, 0.0 }
 0x77d   :  { %v5932_v38 = vpop.eup %5931  ;;  %1264 = vadd.xlane.f32.xlu1 %v1263_v53 }
 0x77e   :  { %v1103_v19 = vsel %vm278_vm3, %v5932_v38, 0.0 }
 0x77f   :  { %1104 = vadd.xlane.f32.xlu0 %v1103_v19 }
 0x782   :  { %v1272_v41 = vpop.permute.xlu2 %1271 }
 0x783   :  { %1290 = vmatpush.bf16.msrb.mxu3 %v1272_v41 }
 0x788   :  { %v1179_v22 = vpop.xlane.xlu0 %1178 }
 0x789   :  { %v1180_v51 = vsub.f32 %v1176_v15, %v1179_v22 }
 0x78a   :  { %v1194_v10 = vpop.permute.xlu2 %1193 }
 0x78b   :  { %v1181_v57 = vmul.f32 1.442695, %v1180_v51 }
 0x78d   :  { %5933 = vpow2.f32 %v1181_v57 }
 0x792   :  { %v1112_v40 = vpop.permute.xlu2 %1111 }
 0x793   :  { %v5934_v59 = vpop.eup %5933  ;;  %1109 = vrot.lane.b32.xlu0 %v6978_v56, %s6395_s29  ;;  %1130 = vmatpush.bf16.msrb.mxu1 %v1112_v40 }
 0x794   :  { %v1183_v54 = vsel %vm278_vm3, %v5934_v59, 0.0 }
 0x795   :  { %1184 = vadd.xlane.f32.xlu1 %v1183_v54 }
 0x79a   :  { %v1270_v0 = vpop.permute.xlu2 %1269 }
 0x79b   :  { %v1196_v17 = vpop.permute.xlu0 %1195  ;;  %1291 = vmatpush.bf16.msrb.mxu3 %v1270_v0 }
 0x79c   :  { %1208 = vmatpush.bf16.msrb.mxu0 %v1196_v17 }
 0x79f   :  { %1517 = vmatpush.bf16.msra.mxu3 %v7005_v36 }
 0x7a0   :  { %1209 = vmatpush.bf16.msrb.mxu0 %v1194_v10 }
 0x7a2   :  { %v1192_v16 = vpop.permute.xlu2 %1191 }
 0x7a3   :  { %1518 = vmatpush.bf16.msra.mxu3 %v7011_v31 }
 0x7a4   :  { %1210 = vmatpush.bf16.msrb.mxu0 %v1192_v16 }
 0x7ac   :  { %v1010_v15 = vpop.xlane.xlu1 %1009 }
 0x7ad   :  { %5935 = vrcp.f32 %v1010_v15 }
 0x7ae   :  { %1189 = vrot.lane.b32.xlu1 %v6978_v56, %s6382_s1 }
 0x7b3   :  { %v5936_v9 = vpop.eup %5935 }
 0x7b4   :  { %v1012_v62 = vmul.f32 %v5936_v9, %v5928_v11 }
 0x7b6   :  { %v1013_v52 = vpack.c.bf16 %v1012_v62, %v1012_v62 }
 0x7b8   :  { %5506 = vmatmul.msk.bf16.vlgmr.msra.gmra.mxu1 %vm278_vm3, %v1013_v52 }
 0x7f0   :  { %v1265_v56 = vpop.xlane.xlu1 %1264 }
 0x7f1   :  { %5937 = vrcp.f32 %v1265_v56  ;;  %v5839_v56 = vld [vmem:[%s9042_s12] sm:$0xff] }
 0x7f2   :  { %v1105_v32 = vpop.xlane.xlu0 %1104 }
 0x7f3   :  { %5939 = vrcp.f32 %v1105_v32 }
 0x7f7   :  { %v5938_v11 = vpop.eup %5937 }
 0x7f8   :  { %v1267_v34 = vmul.f32 %v5938_v11, %v5930_v28 }
 0x7f9   :  { %v5940_v49 = vpop.eup %5939 }
 0x7fa   :  { %v1268_v2 = vpack.c.bf16 %v1267_v34, %v1267_v34  ;;  %v1107_v21 = vmul.f32 %v5940_v49, %v5932_v38 }
 0x7fc   :  { %5512 = vmatmul.msk.bf16.vlgmr.msrb.gmra.mxu3 %vm278_vm3, %v1268_v2  ;;  %v1108_v53 = vpack.c.bf16 %v1107_v21, %v1107_v21 }
 0x805   :  { %v1110_v35 = vpop.permute.xlu0 %1109 }
 0x806   :  { %1131 = vmatpush.bf16.msrb.mxu1 %v1110_v35 }
 0x808   :  { %v1185_v19 = vpop.xlane.xlu1 %1184 }
 0x809   :  { %5508 = vmatmul.msk.bf16.vlgmr.msrb.gmra.mxu1 %vm278_vm3, %v1108_v53  ;;  %5941 = vrcp.f32 %v1185_v19  ;;  %v951_v53 = vld [vmem:[%s9043_s13] sm:$0x1] }
 0x80a   :  { %v1321_v19 = vunpack.c.l.bf16 %v951_v53 }
 0x80c   :  { %5552 = vmatmul.msk.bf16.vlgmr.msra.gmra.mxu3 %vm416_vm0, %v6770_v58 }
 0x80f   :  { %v5942_v41 = vpop.eup %5941 }
 0x810   :  { %v1187_v28 = vmul.f32 %v5942_v41, %v5934_v59  ;;  %v1322_v41 = vperm.slane %v1321_v19, 0  ;;  %v5843_v19 = vld [vmem:[%s9050_s20 + $0x8] sm:$0xff] }
 0x812   :  { %v1188_v51 = vpack.c.bf16 %v1187_v28, %v1187_v28 }
 0x81c   :  { %5553 = vmatmul.msk.bf16.gmra.mxu3 %vm416_vm0, %v6809_v12 }
 0x820   :  { %v1190_v22 = vpop.permute.xlu1 %1189 }
 0x821   :  { %1211 = vmatpush.bf16.msrb.mxu0 %v1190_v22 }
 0x824   :  { %5510 = vmatmul.msk.bf16.vlgmr.msrb.gmra.mxu0 %vm278_vm3, %v1188_v51 }
 0x825   :  { %1338 = vmatpush.bf16.msra.mxu0 %v5839_v56 }
 0x82c   :  { %5554 = vmatmul.msk.bf16.gmra.mxu3 %vm416_vm0, %v6853_v33 }
 0x835   :  { %v1050_v38 = vpop.f32.mrf.mxu1 }
 0x836   :  { %v1054_v32 = vpack.c.bf16 %v1050_v38, %v1050_v38 }
 0x83c   :  { %5555 = vmatmul.msk.bf16.gmra.mxu3 %vm416_vm0, %v6884_v61 }
 0x83d   :  { %v1052_v58 = vpop.f32.mrf.mxu1 }
 0x87f   :  { %v1293_v10 = vpop.f32.mrf.mxu3 }
 0x880   :  { %v1297_v57 = vpack.c.bf16 %v1293_v10, %v1293_v10 }
 0x882   :  { %v1309_v40 = vunpack.c.l.b16 %v1297_v57 }
 0x884   :  { %v1310_v54 = vpack.c.b16 %v1309_v40, %v1309_v40 }
 0x886   :  { %v1133_v0 = vpop.f32.mrf.mxu1  ;;  %1311 = vrot.lane.b32.xlu0 %v1310_v54, %s6397_s27 }
 0x887   :  { %v1137_v12 = vpack.c.bf16 %v1133_v0, %v1133_v0  ;;  %v1295_v59 = vpop.f32.mrf.mxu3 }
 0x888   :  { %v5845_v59 = vld [vmem:[%s9050_s20 + $0x18] sm:$0xff] }
 0x889   :  { %v1299_v17 = vunpack.c.l.b16 %v1137_v12  ;;  %v5841_v12 = vld [vmem:[%s9048_s18 + $0x8] sm:$0xff]  ;;  %1452 = vmatpush.bf16.msrb.mxu0 %v5845_v59  ;;  %v1418_v59 = vld [vmem:[%s9051_s21] sm:$0x1] }
 0x88a   :  { %1401 = vmatpush.bf16.msra.mxu1 %v5841_v12 }
 0x88b   :  { %v1300_v16 = vpack.c.b16 %v1299_v17, %v1299_v17 }
 0x88d   :  { %1301 = vrot.lane.b32.xlu2 %v1300_v16, %s9129_s26 }
 0x88e   :  { %v1135_v33 = vpop.f32.mrf.mxu1 }
 0x88f   :  { %v5844_v33 = vld [vmem:[%s9050_s20 + $0x10] sm:$0xff] }
 0x890   :  { %1453 = vmatpush.bf16.msrb.mxu0 %v5844_v33 }
 0x894   :  { %1454 = vmatpush.bf16.msrb.mxu0 %v5843_v19 }
 0x8a1   :  { %v1213_v15 = vpop.f32.mrf.mxu0 }
 0x8a2   :  { %v1217_v9 = vpack.c.bf16 %v1213_v15, %v1213_v15 }
 0x8a4   :  { %v1304_v62 = vunpack.c.l.b16 %v1217_v9 }
 0x8a6   :  { %v1305_v61 = vpack.c.b16 %v1304_v62, %v1304_v62 }
 0x8a8   :  { %1306 = vrot.lane.b32.xlu2 %v1305_v61, %s9130_s0 }
 0x8a9   :  { %v1215_v52 = vpop.f32.mrf.mxu0 }
 0x8e7   :  { %v1302_v11 = vpop.permute.xlu2 %1301 }
 0x8e8   :  { %v1315_v34 = vsel %vm972_vm8, %v1054_v32, %v1302_v11  ;;  %v1367_v32 = vperm.slane %v6929_v14, 1 }
 0x8f8   :  { %v1312_v49 = vpop.permute.xlu0 %1311 }
 0x902   :  { %v1307_v2 = vpop.permute.xlu2 %1306 }
 0x903   :  { %v1317_v21 = vsel %vm444_vm1, %v1315_v34, %v1307_v2 }
 0x904   :  { %v1320_v35 = vsel %vm1318_vm12, %v1317_v21, %v1312_v49  ;;  %v1369_v49 = vperm.slane %v6932_v20, 1 }
 0x905   :  { %5517 = vmatmul.msk.bf16.vlgmr.msra.gmra.mxu0 %vm692_vm4, %v1320_v35 }
 0x982   :  { %v1340_v28 = vpop.f32.mrf.mxu0 }
 0x983   :  { %v1341_v22 = vadd.f32 %v1340_v28, %v1322_v41  ;;  %v5842_v41 = vld [vmem:[%s9050_s20] sm:$0xff] }
 0x984   :  { %1455 = vmatpush.bf16.msrb.mxu0 %v5842_v41  ;;  %v1377_v28 = vld [vmem:[%s9049_s19] sm:$0x1] }
 0x985   :  { %v1344_v51 = vadd.f32 %v1341_v22, %v6945_v55  ;;  %v5840_v55 = vld [vmem:[%s9048_s18] sm:$0xff]  ;;  %v1378_v22 = vunpack.c.l.bf16 %v1377_v28 }
 0x986   :  { %1402 = vmatpush.bf16.msra.mxu1 %v5840_v55 }
 0x987   :  { %v1345_v38 = vsel %vm416_vm0, %v1344_v51, 0.0 }
 0x988   :  { %1346 = vadd.xlane.f32.xlu2 %v1345_v38 }
 0x98a   :  { %v1342_v58 = vpop.f32.mrf.mxu0 }
 0x9fb   :  { %v1347_v10 = vpop.xlane.xlu2 %1346 }
 0x9fc   :  { %v1348_v57 = vmul.f32 %v1347_v10, %v6888_v8 }
 0x9fe   :  { %v1349_v40 = vsub.f32 %v1344_v51, %v1348_v57  ;;  %v1379_v51 = vperm.slane %v1378_v22, 0 }
 0xa00   :  { %v1350_v54 = vmul.f32 %v1349_v40, %v1349_v40 }
 0xa02   :  { %v1351_v0 = vsel %vm416_vm0, %v1350_v54, 0.0  ;;  %v1520_v54 = vpop.f32.mrf.mxu3 }
 0xa03   :  { %1352 = vadd.xlane.f32.xlu0 %v1351_v0 }
 0xa0a   :  { %v1522_v0 = vpop.f32.mrf.mxu3 }
 0xa12   :  { %v7070_v12 = vpop.f32.mrf.mxu3 }
 0xa17   :  { %1550 = vrot.lane.b32.xlu0 %v7005_v36, %s6381_s4 }
 0xa1a   :  { %v7072_v55 = vpop.f32.mrf.mxu3 }
 0xa22   :  { %v1530_v33 = vpop.f32.mrf.mxu3 }
 0xa76   :  { %v1353_v17 = vpop.xlane.xlu0 %1352 }
 0xa77   :  { %v1354_v16 = vmul.f32 %v1353_v17, %v6888_v8  ;;  %v1419_v17 = vunpack.c.l.bf16 %v1418_v59 }
 0xa79   :  { %v1355_v15 = vadd.f32 1e-05, %v1354_v16  ;;  %v1420_v16 = vperm.slane %v1419_v17, 0 }
 0xa7b   :  { %5943 = vrsqrt.f32 %v1355_v15  ;;  %vm1362_vm14 = vweird.f32 %v1355_v15 }
 0xa81   :  { %v5944_v9 = vpop.eup %5943 }
 0xa82   :  { %v1357_v62 = vmul.f32 %v5944_v9, %v1355_v15  ;;  %vm1363_vm13 = vweird.f32 %v5944_v9 }
 0xa83   :  { %vm1364_vm15 = vmor %vm1362_vm14, %vm1363_vm13 }
 0xa84   :  { %v1358_v61 = vmul.f32 %v5944_v9, %v1357_v62 }
 0xa86   :  { %v1359_v52 = vmul.f32 0.5, %v1358_v61 }
 0xa88   :  { %v1360_v56 = vsub.f32 1.5, %v1359_v52 }
 0xa8a   :  { %v1361_v11 = vmul.f32 %v5944_v9, %v1360_v56 }
 0xa8c   :  { %v1365_v34 = vsel %vm1364_vm15, %v5944_v9, %v1361_v11  ;;  %v1532_v11 = vpop.f32.mrf.mxu3 }
 0xa8d   :  { %v1366_v2 = vmul.f32 %v1365_v34, %v1349_v40 }
 0xa8f   :  { %v1368_v21 = vmul.f32 %v1367_v32, %v1366_v2  ;;  %v1496_v32 = vld [vmem:[%s9131_s2] sm:$0x1] }
 0xa90   :  { %v1497_v34 = vunpack.c.l.bf16 %v1496_v32 }
 0xa91   :  { %v1370_v35 = vadd.f32 %v1369_v49, %v1368_v21 }
 0xa92   :  { %v7081_v49 = vperm.slane %v1497_v34, 0 }
 0xa93   :  { %v1371_v53 = vpack.c.bf16 %v1370_v35, %v1370_v35 }
 0xa94   :  { %v1535_v2 = vpop.f32.mrf.mxu3  ;;  %v1533_v21 = vadd.f32 %v1532_v11, %v7081_v49  ;;  %v1531_v35 = vadd.f32 %v1530_v33, %v7081_v49 }
 0xa95   :  { %5526 = vmatmul.msk.bf16.vlgmr.msra.gmra.mxu1 %vm416_vm0, %v1371_v53  ;;  %v1372_v62 = vunpack.c.l.bf16 %v1371_v53 }
 0xa96   :  { %v1545_v19 = vpack.c.bf16 %v1533_v21, %v1533_v21  ;;  %v1544_v41 = vpack.c.bf16 %v1531_v35, %v1531_v35 }
 0xa98   :  { %v1617_v28 = vunpack.c.l.b16 %v1545_v19 }
 0xa9c   :  { %v1537_v53 = vpop.f32.mrf.mxu3 }
 0xa9d   :  { %v1538_v22 = vadd.f32 %v1537_v53, %v7081_v49 }
 0xb12   :  { %v1404_v38 = vpop.f32.mrf.mxu1 }
 0xb13   :  { %v1405_v58 = vadd.f32 %v1404_v38, %v1379_v51  ;;  %v1616_v51 = vunpack.c.l.b16 %v1544_v41  ;;  %v1536_v38 = vadd.f32 %v1535_v2, %v7081_v49 }
 0xb15   :  { %v1408_v10 = vmax.f32 %v1405_v58, 0.0  ;;  %v7089_v58 = vpack.c.b16 %v1617_v28, %v1616_v51 }
 0xb17   :  { %v1409_v57 = vpack.c.bf16 %v1408_v10, %v1408_v10  ;;  %v1547_v10 = vpack.c.bf16 %v1538_v22, %v1538_v22 }
 0xb19   :  { %5543 = vmatmul.msk.bf16.vlgmr.msrb.gmra.mxu0 %vm278_vm3, %v1409_v57  ;;  %v1546_v57 = vpack.c.bf16 %v1536_v38, %v1536_v38 }
 0xb1a   :  { %v1406_v40 = vpop.f32.mrf.mxu1 }
 0xb1b   :  { %v1619_v40 = vunpack.c.l.b16 %v1547_v10  ;;  %v1618_v59 = vunpack.c.l.b16 %v1546_v57  ;;  %v1484_v10 = vperm.slane %v6929_v14, 2  ;;  %v1486_v57 = vperm.slane %v6932_v20, 2 }
 0xb1d   :  { %v7093_v17 = vpack.c.b16 %v1619_v40, %v1618_v59 }
 0xb96   :  { %v1457_v15 = vpop.f32.mrf.mxu0 }
 0xb97   :  { %v1458_v9 = vadd.f32 %v1457_v15, %v1420_v16 }
 0xb99   :  { %v1461_v61 = vadd.f32 %v1458_v9, %v1372_v62 }
 0xb9b   :  { %v1462_v52 = vsel %vm416_vm0, %v1461_v61, 0.0 }
 0xb9c   :  { %1463 = vadd.xlane.f32.xlu1 %v1462_v52  ;;  %v1523_v52 = vadd.f32 %v1522_v0, %v7081_v49 }
 0xb9e   :  { %v1459_v56 = vpop.f32.mrf.mxu0  ;;  %v1541_v11 = vpack.c.bf16 %v1523_v52, %v1523_v52 }
 0xb9f   :  { %v1521_v56 = vadd.f32 %v1520_v54, %v7081_v49 }
 0xba0   :  { %v1613_v34 = vunpack.c.l.b16 %v1541_v11 }
 0xba1   :  { %v1540_v32 = vpack.c.bf16 %v1521_v56, %v1521_v56 }
 0xba3   :  { %v1612_v2 = vunpack.c.l.b16 %v1540_v32 }
 0xba5   :  { %v7103_v21 = vpack.c.b16 %v1613_v34, %v1612_v2  ;;  %v1526_v2 = vadd.f32 %v7070_v12, %v7081_v49 }
 0xbb5   :  { %1555 = vrot.lane.b32.xlu1 %v7081_v49, %s6381_s4 }
 0xbbd   :  { %2038 = vrot.lane.b32.xlu1 %v7089_v58, %s6382_s1 }
 0xbc5   :  { %2040 = vrot.lane.b32.xlu1 %v7093_v17, %s6382_s1 }
 0xc0f   :  { %v1464_v16 = vpop.xlane.xlu1 %1463 }
 0xc10   :  { %v1465_v33 = vmul.f32 %v1464_v16, %v6888_v8 }
 0xc12   :  { %v1466_v15 = vsub.f32 %v1461_v61, %v1465_v33  ;;  %v1551_v61 = vpop.permute.xlu0 %1550 }
 0xc13   :  { %1567 = vmatpush.bf16.msra.mxu0 %v1551_v61 }
 0xc14   :  { %v1467_v9 = vmul.f32 %v1466_v15, %v1466_v15 }
 0xc16   :  { %v1468_v62 = vsel %vm416_vm0, %v1467_v9, 0.0 }
 0xc17   :  { %1469 = vadd.xlane.f32.xlu2 %v1468_v62 }
 0xc27   :  { %v1556_v56 = vpop.permute.xlu1 %1555 }
 0xc2f   :  { %1548 = vrot.lane.b32.xlu2 %v7011_v31, %s6381_s4 }
 0xc37   :  { %2034 = vrot.lane.b32.xlu2 %v7103_v21, %s6382_s1 }
 0xc3f   :  { %1577 = vrot.lane.b32.xlu2 %v7005_v36, %s6383_s5 }
 0xc8a   :  { %v1470_v0 = vpop.xlane.xlu2 %1469 }
 0xc8b   :  { %v1471_v54 = vmul.f32 %v1470_v0, %v6888_v8 }
 0xc8d   :  { %v1472_v35 = vadd.f32 1e-05, %v1471_v54 }
 0xc8f   :  { %5945 = vrsqrt.f32 %v1472_v35  ;;  %vm1479_vm9 = vweird.f32 %v1472_v35 }
 0xc92   :  { %v1549_v19 = vpop.permute.xlu2 %1548 }
 0xc93   :  { %1568 = vmatpush.bf16.msra.mxu0 %v1549_v19 }
 0xc95   :  { %v5946_v53 = vpop.eup %5945 }
 0xc96   :  { %v1474_v41 = vmul.f32 %v5946_v53, %v1472_v35  ;;  %vm1480_vm7 = vweird.f32 %v5946_v53 }
 0xc97   :  { %vm1481_vm10 = vmor %vm1479_vm9, %vm1480_vm7 }
 0xc98   :  { %v1475_v28 = vmul.f32 %v5946_v53, %v1474_v41 }
 0xc9a   :  { %v1476_v22 = vmul.f32 0.5, %v1475_v28  ;;  %v2035_v12 = vpop.permute.xlu2 %2034 }
 0xc9c   :  { %v1477_v51 = vsub.f32 1.5, %v1476_v22 }
 0xc9e   :  { %v1478_v38 = vmul.f32 %v5946_v53, %v1477_v51 }
 0xca0   :  { %v1482_v36 = vsel %vm1481_vm10, %v5946_v53, %v1478_v38  ;;  %v1542_v53 = vpack.c.bf16 %v1526_v2, %v1526_v2 }
 0xca1   :  { %v1483_v40 = vmul.f32 %v1482_v36, %v1466_v15  ;;  %v1528_v15 = vadd.f32 %v7072_v55, %v7081_v49 }
 0xca2   :  { %v1614_v28 = vunpack.c.l.b16 %v1542_v53  ;;  %v1578_v22 = vpop.permute.xlu2 %1577 }
 0xca3   :  { %v1485_v59 = vmul.f32 %v1484_v10, %v1483_v40  ;;  %v1543_v54 = vpack.c.bf16 %v1528_v15, %v1528_v15  ;;  %1593 = vmatpush.bf16.msrb.mxu1 %v1578_v22 }
 0xca5   :  { %v1487_v16 = vadd.f32 %v1486_v57, %v1485_v59  ;;  %v1615_v41 = vunpack.c.l.b16 %v1543_v54 }
 0xca7   :  { %v7112_v33 = vpack.c.bf16 %v1487_v16, %v1487_v16  ;;  %v7133_v55 = vpack.c.b16 %v1615_v41, %v1614_v28 }
 0xca9   :  { %v9084_v9 = vunpack.c.l.bf16 %v7112_v33 }
 0xcab   :  { %v1490_v62 = vadd.f32 %v9084_v9, %v6943_v6 }
 0xcad   :  { %v7118_v52 = vpack.c.bf16 %v1490_v62, %v1490_v62 }
 0xcaf   :  { %5556 = vmatmul.msk.bf16.vlgmr.msra.gmra.mxu0 %vm416_vm0, %v7118_v52 }
 0xd2c   :  { %v1570_v11 = vpop.f32.mrf.mxu0 }
 0xd2d   :  { %v1571_v32 = vadd.f32 %v1570_v11, %v1556_v56 }
 0xd2f   :  { %v1574_v34 = vpack.c.bf16 %v1571_v32, %v1571_v32  ;;  %v2039_v32 = vpop.permute.xlu1 %2038 }
 0xd31   :  { %v1637_v61 = vsel %vm972_vm8, %v1574_v34, 0  ;;  %v1829_v0 = vunpack.c.l.b16 %v1574_v34 }
 0xd32   :  { %1646 = vmatpush.bf16.xpose.msrb.mxu2 %v1637_v61 }
 0xd33   :  { %v7127_v35 = vpack.c.b16 %v1829_v0, %v1829_v0 }
 0xd34   :  { %v1572_v19 = vpop.f32.mrf.mxu0 }
 0xd35   :  { %2042 = vrot.lane.b32.xlu0 %v7127_v35, %s6382_s1 }
 0xd37   :  { %v2041_v19 = vpop.permute.xlu1 %2040 }
 0xd39   :  { %5558 = vmatmul.msk.bf16.vlgmr.msrb.gmra.mxu2 %vm972_vm8, %v7103_v21 }
 0xd3d   :  { %2036 = vrot.lane.b32.xlu0 %v7133_v55, %s6382_s1 }
 0xd45   :  { %1575 = vrot.lane.b32.xlu0 %v7011_v31, %s6383_s5 }
 0xd49   :  { %5559 = vmatmul.msk.bf16.gmra.mxu2 %vm972_vm8, %v7133_v55 }
 0xd59   :  { %5560 = vmatmul.msk.bf16.gmra.mxu2 %vm972_vm8, %v7089_v58 }
 0xd69   :  { %5561 = vmatmul.msk.bf16.gmra.mxu2 %vm972_vm8, %v7093_v17 }
 0xda7   :  { %v2043_v51 = vpop.permute.xlu0 %2042 }
 0xda8   :  { %v2057_v38 = vsel %vm972_vm8, %v2043_v51, 0 }
 0xda9   :  { %2066 = vmatpush.bf16.xpose.msra.mxu2 %v2057_v38 }
 0xdaf   :  { %v2037_v10 = vpop.permute.xlu0 %2036 }
 0xdb0   :  { %5574 = vmatmul.msk.bf16.vlgmr.msra.gmra.mxu2 %vm972_vm8, %v2035_v12 }
 0xdb7   :  { %v1576_v31 = vpop.permute.xlu0 %1575 }
 0xdb8   :  { %1594 = vmatpush.bf16.msrb.mxu1 %v1576_v31 }
 0xdbb   :  { %5557 = vmatmul.msk.bf16.vlgmr.msrb.gmra.mxu1 %vm416_vm0, %v7112_v33 }
 0xdbc   :  { %v1648_v36 = vpop.f32.mrf.mxu2 }
 0xdbd   :  { %v1668_v57 = vmul.f32 0.5, %v1648_v36 }
 0xdbf   :  { %v1676_v40 = vsel %vm444_vm1, %v1668_v57, -inf }
 0xdc0   :  { %5575 = vmatmul.msk.bf16.gmra.mxu2 %vm972_vm8, %v2037_v10  ;;  %1677 = vmax.xlane.f32.xlu2 %v1676_v40 }
 0xdc4   :  { %v1650_v59 = vpop.f32.mrf.mxu2 }
 0xdc5   :  { %v1669_v16 = vmul.f32 0.5, %v1650_v59 }
 0xdc7   :  { %v1679_v62 = vsel %vm444_vm1, %v1669_v16, -inf }
 0xdc8   :  { %1680 = vmax.xlane.f32.xlu0 %v1679_v62 }
 0xdcc   :  { %v1653_v56 = vpop.f32.mrf.mxu2 }
 0xdcd   :  { %v1670_v11 = vmul.f32 0.5, %v1653_v56 }
 0xdcf   :  { %v1682_v15 = vsel %vm444_vm1, %v1670_v11, -inf }
 0xdd0   :  { %5576 = vmatmul.msk.bf16.gmra.mxu2 %vm972_vm8, %v2039_v32  ;;  %1683 = vmax.xlane.f32.xlu1 %v1682_v15 }
 0xdd4   :  { %v1655_v34 = vpop.f32.mrf.mxu2 }
 0xdd5   :  { %v1671_v2 = vmul.f32 0.5, %v1655_v34 }
 0xdd7   :  { %v1685_v61 = vsel %vm444_vm1, %v1671_v2, -inf }
 0xdd8   :  { %1686 = vmax.xlane.f32.xlu2 %v1685_v61 }
 0xddc   :  { %v1658_v0 = vpop.f32.mrf.mxu2 }
 0xddd   :  { %v7155_v54 = vmul.f32 0.5, %v1658_v0 }
 0xddf   :  { %v1688_v53 = vsel %vm444_vm1, %v7155_v54, -inf }
 0xde0   :  { %5577 = vmatmul.msk.bf16.gmra.mxu2 %vm972_vm8, %v2041_v19  ;;  %1689 = vmax.xlane.f32.xlu0 %v1688_v53 }
 0xde4   :  { %v1660_v41 = vpop.f32.mrf.mxu2 }
 0xde5   :  { %v7160_v28 = vmul.f32 0.5, %v1660_v41 }
 0xde7   :  { %v1691_v12 = vsel %vm444_vm1, %v7160_v28, -inf }
 0xde8   :  { %1692 = vmax.xlane.f32.xlu1 %v1691_v12 }
 0xdec   :  { %v1663_v22 = vpop.f32.mrf.mxu2 }
 0xded   :  { %v7164_v51 = vmul.f32 0.5, %v1663_v22 }
 0xdef   :  { %v1694_v38 = vsel %vm444_vm1, %v7164_v51, -inf }
 0xdf0   :  { %1695 = vmax.xlane.f32.xlu2 %v1694_v38 }
 0xdf4   :  { %v1665_v10 = vpop.f32.mrf.mxu2 }
 0xdf5   :  { %v7168_v31 = vmul.f32 0.5, %v1665_v10 }
 0xdf7   :  { %v1697_v36 = vsel %vm444_vm1, %v7168_v31, -inf }
 0xdf8   :  { %1698 = vmax.xlane.f32.xlu0 %v1697_v36 }
 0xe0c   :  { %1581 = vrot.lane.b32.xlu0 %v7081_v49, %s6383_s5 }
 0xe33   :  { %v1678_v40 = vpop.xlane.xlu2 %1677  ;;  %v2068_v59 = vpop.f32.mrf.mxu2 }
 0xe34   :  { %v1700_v62 = vsub.f32 %v1668_v57, %v1678_v40  ;;  %v7184_v12 = vmul.f32 0.5, %v2068_v59 }
 0xe36   :  { %v1708_v56 = vmul.f32 1.442695, %v1700_v62  ;;  %v2096_v40 = vsel %vm444_vm1, %v7184_v12, -inf }
 0xe38   :  { %5947 = vpow2.f32 %v1708_v56  ;;  %v7174_v32 = vpop.f32.mrf.mxu1 }
 0xe3b   :  { %v1681_v15 = vpop.xlane.xlu0 %1680  ;;  %v2070_v34 = vpop.f32.mrf.mxu2 }
 0xe3c   :  { %v1701_v61 = vsub.f32 %v1669_v16, %v1681_v15  ;;  %v7176_v0 = vmul.f32 0.5, %v2070_v34 }
 0xe3e   :  { %v7178_v19 = vpop.eup %5947  ;;  %v1710_v53 = vmul.f32 1.442695, %v1701_v61  ;;  %v2099_v41 = vsel %vm444_vm1, %v7176_v0, -inf }
 0xe3f   :  { %2100 = vmax.xlane.f32.xlu2 %v2099_v41  ;;  %v1724_v49 = vsel %vm444_vm1, %v7178_v19, 0.0 }
 0xe40   :  { %5949 = vpow2.f32 %v1710_v53  ;;  %v1598_v57 = vpop.f32.mrf.mxu1  ;;  %1725 = vadd.xlane.f32.xlu1 %v1724_v49 }
 0xe43   :  { %v1684_v22 = vpop.xlane.xlu1 %1683  ;;  %v2073_v38 = vpop.f32.mrf.mxu2 }
 0xe44   :  { %v1702_v16 = vsub.f32 %v1670_v11, %v1684_v22  ;;  %v7200_v49 = vmul.f32 0.5, %v2073_v38 }
 0xe46   :  { %v7186_v10 = vpop.eup %5949  ;;  %v1712_v36 = vmul.f32 1.442695, %v1702_v16 }
 0xe47   :  { %v1727_v62 = vsel %vm444_vm1, %v7186_v10, 0.0 }
 0xe48   :  { %5951 = vpow2.f32 %v1712_v36  ;;  %2097 = vmax.xlane.f32.xlu1 %v2096_v40  ;;  %1728 = vadd.xlane.f32.xlu2 %v1727_v62  ;;  %v2102_v40 = vsel %vm444_vm1, %v7200_v49, -inf }
 0xe4b   :  { %v1687_v56 = vpop.xlane.xlu2 %1686  ;;  %v2075_v15 = vpop.f32.mrf.mxu2 }
 0xe4c   :  { %v7192_v34 = vmul.f32 0.5, %v2075_v15  ;;  %v1703_v59 = vsub.f32 %v1671_v2, %v1687_v56 }
 0xe4e   :  { %v7194_v61 = vpop.eup %5951  ;;  %v2105_v11 = vsel %vm444_vm1, %v7192_v34, -inf  ;;  %v1714_v41 = vmul.f32 1.442695, %v1703_v59 }
 0xe4f   :  { %2106 = vmax.xlane.f32.xlu0 %v2105_v11  ;;  %v1730_v53 = vsel %vm444_vm1, %v7194_v61, 0.0 }
 0xe50   :  { %1731 = vadd.xlane.f32.xlu1 %v1730_v53  ;;  %5953 = vpow2.f32 %v1714_v41 }
 0xe53   :  { %v1690_v57 = vpop.xlane.xlu0 %1689  ;;  %v2078_v22 = vpop.f32.mrf.mxu2 }
 0xe54   :  { %v7202_v16 = vmul.f32 0.5, %v2078_v22  ;;  %v1704_v2 = vsub.f32 %v7155_v54, %v1690_v57 }
 0xe56   :  { %v2108_v36 = vsel %vm444_vm1, %v7202_v16, -inf  ;;  %v1716_v62 = vmul.f32 1.442695, %v1704_v2  ;;  %v7209_v56 = vpop.eup %5953 }
 0xe57   :  { %2109 = vmax.xlane.f32.xlu2 %v2108_v36  ;;  %v1733_v54 = vsel %vm444_vm1, %v7209_v56, 0.0 }
 0xe58   :  { %2103 = vmax.xlane.f32.xlu1 %v2102_v40  ;;  %5955 = vpow2.f32 %v1716_v62 }
 0xe5b   :  { %v1693_v38 = vpop.xlane.xlu1 %1692  ;;  %v2080_v59 = vpop.f32.mrf.mxu2 }
 0xe5c   :  { %v1705_v15 = vsub.f32 %v7160_v28, %v1693_v38  ;;  %v7225_v38 = vmul.f32 0.5, %v2080_v59 }
 0xe5e   :  { %v1718_v11 = vmul.f32 1.442695, %v1705_v15  ;;  %v7214_v53 = vpop.eup %5955 }
 0xe5f   :  { %1734 = vadd.xlane.f32.xlu2 %v1733_v54  ;;  %v1736_v2 = vsel %vm444_vm1, %v7214_v53, 0.0 }
 0xe60   :  { %5957 = vpow2.f32 %v1718_v11 }
 0xe63   :  { %v1696_v41 = vpop.xlane.xlu2 %1695  ;;  %v2083_v36 = vpop.f32.mrf.mxu2 }
 0xe64   :  { %v1706_v57 = vsub.f32 %v7164_v51, %v1696_v41  ;;  %v7223_v62 = vmul.f32 0.5, %v2083_v36  ;;  %v2111_v41 = vsel %vm444_vm1, %v7225_v38, -inf }
 0xe66   :  { %v7217_v22 = vpop.eup %5957  ;;  %v1720_v40 = vmul.f32 1.442695, %v1706_v57  ;;  %v2114_v54 = vsel %vm444_vm1, %v7223_v62, -inf }
 0xe67   :  { %1737 = vadd.xlane.f32.xlu2 %v1736_v2  ;;  %v1739_v28 = vsel %vm444_vm1, %v7217_v22, 0.0 }
 0xe68   :  { %1740 = vadd.xlane.f32.xlu1 %v1739_v28  ;;  %5959 = vpow2.f32 %v1720_v40 }
 0xe6b   :  { %v1699_v15 = vpop.xlane.xlu0 %1698  ;;  %v2085_v36 = vpop.f32.mrf.mxu2 }
 0xe6c   :  { %v1707_v11 = vsub.f32 %v7168_v31, %v1699_v15  ;;  %v7240_v28 = vmul.f32 0.5, %v2085_v36 }
 0xe6e   :  { %v1722_v51 = vmul.f32 1.442695, %v1707_v11  ;;  %v7232_v2 = vpop.eup %5959  ;;  %v2117_v11 = vsel %vm444_vm1, %v7240_v28, -inf }
 0xe6f   :  { %2115 = vmax.xlane.f32.xlu2 %v2114_v54  ;;  %v1742_v59 = vsel %vm444_vm1, %v7232_v2, 0.0 }
 0xe70   :  { %5961 = vpow2.f32 %v1722_v51  ;;  %2112 = vmax.xlane.f32.xlu1 %v2111_v41 }
 0xe76   :  { %v7234_v57 = vpop.eup %5961 }
 0xe77   :  { %1743 = vadd.xlane.f32.xlu2 %v1742_v59  ;;  %v1745_v31 = vsel %vm444_vm1, %v7234_v57, 0.0 }
 0xe78   :  { %1746 = vadd.xlane.f32.xlu1 %v1745_v31 }
 0xe7e   :  { %v1582_v40 = vpop.permute.xlu0 %1581 }
 0xe7f   :  { %v1597_v15 = vadd.f32 %v7174_v32, %v1582_v40 }
 0xe80   :  { %2118 = vmax.xlane.f32.xlu1 %v2117_v11 }
 0xe81   :  { %v1600_v51 = vpack.c.bf16 %v1597_v15, %v1597_v15 }
 0xe83   :  { %v1781_v54 = vsel %vm482_vm2, %v1600_v51, 0 }
 0xe84   :  { %1790 = vmatpush.bf16.msrb.mxu0 %v1781_v54 }
 0xeb2   :  { %v2101_v41 = vpop.xlane.xlu2 %2100 }
 0xeb3   :  { %v2121_v59 = vsub.f32 %v7176_v0, %v2101_v41  ;;  %v1726_v30 = vpop.xlane.xlu1 %1725 }
 0xeb5   :  { %v2130_v27 = vmul.f32 1.442695, %v2121_v59 }
 0xeb7   :  { %5963 = vpow2.f32 %v2130_v27 }
 0xeb8   :  { %5965 = vrcp.f32 %v1726_v30 }
 0xebb   :  { %v2098_v31 = vpop.xlane.xlu1 %2097  ;;  %v1729_v36 = vpop.xlane.xlu2 %1728 }
 0xebc   :  { %v2120_v5 = vsub.f32 %v7184_v12, %v2098_v31  ;;  %5967 = vrcp.f32 %v1729_v36 }
 0xebd   :  { %v7248_v32 = vpop.eup %5963 }
 0xebe   :  { %v2128_v40 = vmul.f32 1.442695, %v2120_v5  ;;  %v2147_v15 = vsel %vm444_vm1, %v7248_v32, 0.0  ;;  %v5966_v11 = vpop.eup %5965 }
 0xebf   :  { %2148 = vadd.xlane.f32.xlu1 %v2147_v15  ;;  %v1756_v41 = vmul.f32 %v5966_v11, %v7178_v19 }
 0xec0   :  { %5969 = vpow2.f32 %v2128_v40 }
 0xec2   :  { %v5968_v54 = vpop.eup %5967  ;;  %v2107_v0 = vpop.xlane.xlu0 %2106 }
 0xec3   :  { %v1757_v27 = vmul.f32 %v5968_v54, %v7186_v10  ;;  %v2123_v30 = vsub.f32 %v7192_v34, %v2107_v0  ;;  %v1732_v59 = vpop.xlane.xlu1 %1731 }
 0xec5   :  { %v1764_v12 = vpack.c.bf16 %v1757_v27, %v1756_v41  ;;  %v2134_v31 = vmul.f32 1.442695, %v2123_v30 }
 0xec6   :  { %v7255_v36 = vpop.eup %5969 }
 0xec7   :  { %5971 = vpow2.f32 %v2134_v31  ;;  %5562 = vmatmul.msk.bf16.vlgmr.msrb.gmra.mxu0 %vm444_vm1, %v1764_v12  ;;  %v2144_v5 = vsel %vm444_vm1, %v7255_v36, 0.0 }
 0xec8   :  { %2145 = vadd.xlane.f32.xlu2 %v2144_v5 }
 0xeca   :  { %v2110_v40 = vpop.xlane.xlu2 %2109 }
 0xecb   :  { %v2104_v15 = vpop.xlane.xlu1 %2103  ;;  %v2124_v10 = vsub.f32 %v7202_v16, %v2110_v40  ;;  %v1978_v16 = vunpack.c.l.b16 %v1600_v51 }
 0xecc   :  { %v2122_v19 = vsub.f32 %v7200_v49, %v2104_v15 }
 0xecd   :  { %v7261_v11 = vpop.eup %5971  ;;  %v2136_v0 = vmul.f32 1.442695, %v2124_v10  ;;  %v7275_v10 = vpack.c.b16 %v1978_v16, %v1978_v16 }
 0xece   :  { %v2132_v34 = vmul.f32 1.442695, %v2122_v19  ;;  %v2153_v54 = vsel %vm444_vm1, %v7261_v11, 0.0 }
 0xecf   :  { %2154 = vadd.xlane.f32.xlu1 %v2153_v54 }
 0xed0   :  { %5973 = vpow2.f32 %v2132_v34 }
 0xed1   :  { %5975 = vrcp.f32 %v1732_v59 }
 0xed2   :  { %v1735_v41 = vpop.xlane.xlu2 %1734 }
 0xed3   :  { %5977 = vrcp.f32 %v1735_v41 }
 0xed4   :  { %5979 = vpow2.f32 %v2136_v0 }
 0xed6   :  { %v7266_v27 = vpop.eup %5973 }
 0xed7   :  { %v5976_v30 = vpop.eup %5975  ;;  %v2150_v49 = vsel %vm444_vm1, %v7266_v27, 0.0 }
 0xed8   :  { %2151 = vadd.xlane.f32.xlu0 %v2150_v49  ;;  %v1758_v5 = vmul.f32 %v5976_v30, %v7194_v61 }
 0xed9   :  { %v5978_v12 = vpop.eup %5977 }
 0xeda   :  { %v1738_v31 = vpop.xlane.xlu2 %1737  ;;  %v1759_v40 = vmul.f32 %v5978_v12, %v7209_v56  ;;  %v7272_v59 = vpop.eup %5979 }
 0xedb   :  { %v1741_v15 = vpop.xlane.xlu1 %1740  ;;  %5981 = vrcp.f32 %v1738_v31  ;;  %v2156_v34 = vsel %vm444_vm1, %v7272_v59, 0.0 }
 0xedc   :  { %v1765_v19 = vpack.c.bf16 %v1759_v40, %v1758_v5  ;;  %5983 = vrcp.f32 %v1741_v15 }
 0xede   :  { %5563 = vmatmul.msk.bf16.gmra.mxu0 %vm444_vm1, %v1765_v19 }
 0xee0   :  { %2157 = vadd.xlane.f32.xlu0 %v2156_v34  ;;  %2188 = vrot.lane.b32.xlu2 %v7275_v10, %s6382_s1 }
 0xee1   :  { %v5982_v54 = vpop.eup %5981 }
 0xee2   :  { %v2116_v61 = vpop.xlane.xlu2 %2115  ;;  %v5984_v41 = vpop.eup %5983  ;;  %v1760_v12 = vmul.f32 %v5982_v54, %v7214_v53 }
 0xee3   :  { %v2126_v56 = vsub.f32 %v7223_v62, %v2116_v61  ;;  %v2113_v51 = vpop.xlane.xlu1 %2112  ;;  %v1761_v16 = vmul.f32 %v5984_v41, %v7217_v22 }
 0xee4   :  { %v2125_v0 = vsub.f32 %v7225_v38, %v2113_v51 }
 0xee5   :  { %v2140_v30 = vmul.f32 1.442695, %v2126_v56  ;;  %v1766_v40 = vpack.c.bf16 %v1761_v16, %v1760_v12 }
 0xee6   :  { %v2138_v49 = vmul.f32 1.442695, %v2125_v0 }
 0xee7   :  { %5985 = vpow2.f32 %v2140_v30 }
 0xee8   :  { %5987 = vpow2.f32 %v2138_v49  ;;  %1831 = vrot.lane.b32.xlu2 %v7127_v35, %s6395_s29 }
 0xeea   :  { %v1744_v31 = vpop.xlane.xlu2 %1743 }
 0xeeb   :  { %v1747_v5 = vpop.xlane.xlu1 %1746  ;;  %5989 = vrcp.f32 %v1744_v31 }
 0xeec   :  { %5991 = vrcp.f32 %v1747_v5 }
 0xeed   :  { %v7287_v62 = vpop.eup %5985 }
 0xeee   :  { %v7289_v15 = vpop.eup %5987  ;;  %5564 = vmatmul.msk.bf16.gmra.mxu0 %vm444_vm1, %v1766_v40  ;;  %v2162_v38 = vsel %vm444_vm1, %v7287_v62, 0.0 }
 0xeef   :  { %2163 = vadd.xlane.f32.xlu0 %v2162_v38  ;;  %v2159_v53 = vsel %vm444_vm1, %v7289_v15, 0.0 }
 0xef0   :  { %1824 = vrot.lane.b32.xlu2 %v7089_v58, %s6395_s29  ;;  %2160 = vadd.xlane.f32.xlu1 %v2159_v53 }
 0xef1   :  { %v5990_v19 = vpop.eup %5989 }
 0xef2   :  { %v5992_v61 = vpop.eup %5991  ;;  %v1762_v51 = vmul.f32 %v5990_v19, %v7232_v2 }
 0xef3   :  { %v2119_v22 = vpop.xlane.xlu1 %2118  ;;  %v1763_v54 = vmul.f32 %v5992_v61, %v7234_v57 }
 0xef4   :  { %v2127_v34 = vsub.f32 %v7240_v28, %v2119_v22 }
 0xef5   :  { %v1767_v0 = vpack.c.bf16 %v1763_v54, %v1762_v51  ;;  %v7336_v51 = vld [vmem:[%s9119_s30 + $0x10] sm:$0xff] }
 0xef6   :  { %v2142_v56 = vmul.f32 1.442695, %v2127_v34  ;;  %v5850_v34 = vld [vmem:[%s9119_s30 + $0x18] sm:$0xff] }
 0xef8   :  { %5993 = vpow2.f32 %v2142_v56  ;;  %1826 = vrot.lane.b32.xlu2 %v7093_v17, %s6395_s29 }
 0xefe   :  { %v5994_v41 = vpop.eup %5993  ;;  %5565 = vmatmul.msk.bf16.gmra.mxu0 %vm444_vm1, %v1767_v0 }
 0xeff   :  { %v2165_v30 = vsel %vm444_vm1, %v5994_v41, 0.0 }
 0xf00   :  { %2242 = vrot.lane.b32.xlu2 %v7103_v21, %s6396_s6  ;;  %2166 = vadd.xlane.f32.xlu1 %v2165_v30 }
 0xf03   :  { %1820 = vrot.lane.b32.xlu0 %v7103_v21, %s6395_s29 }
 0xf0b   :  { %2250 = vrot.lane.b32.xlu0 %v7127_v35, %s6396_s6 }
 0xf13   :  { %2244 = vrot.lane.b32.xlu0 %v7133_v55, %s6396_s6 }
 0xf19   :  { %1822 = vrot.lane.b32.xlu1 %v7133_v55, %s6395_s29 }
 0xf1b   :  { %2248 = vrot.lane.b32.xlu0 %v7093_v17, %s6396_s6 }
 0xf21   :  { %2246 = vrot.lane.b32.xlu1 %v7089_v58, %s6396_s6 }
 0xf23   :  { %2917 = vrot.lane.b32.xlu0 %v5850_v34, %s9132_s28 }
 0xf32   :  { %v2149_v2 = vpop.xlane.xlu1 %2148 }
 0xf33   :  { %5995 = vrcp.f32 %v2149_v2 }
 0xf39   :  { %v5996_v21 = vpop.eup %5995 }
 0xf3a   :  { %v2177_v35 = vmul.f32 %v5996_v21, %v7248_v32 }
 0xf3b   :  { %v2146_v57 = vpop.xlane.xlu2 %2145 }
 0xf3c   :  { %5997 = vrcp.f32 %v2146_v57 }
 0xf42   :  { %v5998_v28 = vpop.eup %5997  ;;  %v2155_v31 = vpop.xlane.xlu1 %2154 }
 0xf43   :  { %v2176_v49 = vmul.f32 %v5998_v28, %v7255_v36  ;;  %v2189_v12 = vpop.permute.xlu2 %2188  ;;  %5999 = vrcp.f32 %v2155_v31 }
 0xf44   :  { %v2203_v16 = vsel %vm482_vm2, %v2189_v12, 0 }
 0xf45   :  { %v2184_v55 = vpack.c.bf16 %v2177_v35, %v2176_v49  ;;  %2212 = vmatpush.bf16.msra.mxu0 %v2203_v16 }
 0xf48   :  { %5578 = vmatmul.msk.bf16.vlgmr.msra.gmra.mxu0 %vm444_vm1, %v2184_v55 }
 0xf49   :  { %v6000_v40 = vpop.eup %5999  ;;  %2907 = vmatpush.bf16.msrb.mxu0 %v5850_v34 }
 0xf4a   :  { %v2179_v32 = vmul.f32 %v6000_v40, %v7261_v11 }
 0xf4b   :  { %v1832_v58 = vpop.permute.xlu2 %1831  ;;  %v2152_v17 = vpop.xlane.xlu0 %2151 }
 0xf4c   :  { %v1846_v5 = vsel %vm972_vm8, %v1832_v58, 0  ;;  %6001 = vrcp.f32 %v2152_v17 }
 0xf4d   :  { %1855 = vmatpush.bf16.xpose.msra.mxu1 %v1846_v5  ;;  %2908 = vmatpush.bf16.msrb.mxu0 %v7336_v51 }
 0xf52   :  { %v6002_v38 = vpop.eup %6001 }
 0xf53   :  { %v2178_v36 = vmul.f32 %v6002_v38, %v7266_v27  ;;  %v2158_v22 = vpop.xlane.xlu0 %2157 }
 0xf54   :  { %6003 = vrcp.f32 %v2158_v22 }
 0xf55   :  { %v2185_v53 = vpack.c.bf16 %v2179_v32, %v2178_v36 }
 0xf58   :  { %5579 = vmatmul.msk.bf16.gmra.mxu0 %vm444_vm1, %v2185_v53 }
 0xf5a   :  { %v6004_v61 = vpop.eup %6003 }
 0xf5b   :  { %v2180_v11 = vmul.f32 %v6004_v61, %v7272_v59 }
 0xf62   :  { %v2164_v54 = vpop.xlane.xlu0 %2163 }
 0xf63   :  { %v2161_v19 = vpop.xlane.xlu1 %2160 }
 0xf64   :  { %6005 = vrcp.f32 %v2161_v19 }
 0xf65   :  { %6007 = vrcp.f32 %v2164_v54 }
 0xf6a   :  { %v6006_v56 = vpop.eup %6005 }
 0xf6b   :  { %v2181_v27 = vmul.f32 %v6006_v56, %v7289_v15  ;;  %v6008_v59 = vpop.eup %6007  ;;  %v7341_v15 = vpop.f32.mrf.mxu0 }
 0xf6c   :  { %v2182_v21 = vmul.f32 %v6008_v59, %v7287_v62  ;;  %v1825_v62 = vpop.permute.xlu2 %1824  ;;  %v5626_v59 = vld [vmem:[%s9120_s8 + $0x1] sm:$0x1]  ;;  %s9134_s8 = smov 80  }
 0xf6d   :  { %v2186_v0 = vpack.c.bf16 %v2181_v27, %v2180_v11 }
 0xf6f   :  { %5580 = vmatmul.msk.bf16.gmra.mxu0 %vm444_vm1, %v2186_v0 }
 0xf73   :  { %v2167_v30 = vpop.xlane.xlu1 %2166  ;;  %v7346_v16 = vpop.f32.mrf.mxu0 }
 0xf74   :  { %6009 = vrcp.f32 %v2167_v30  ;;  %v1827_v17 = vpop.permute.xlu2 %1826 }
 0xf75   :  { %v1821_v2 = vpop.permute.xlu0 %1820 }
 0xf76   :  { %5566 = vmatmul.msk.bf16.vlgmr.msra.gmra.mxu1 %vm972_vm8, %v1821_v2 }
 0xf7a   :  { %v6010_v57 = vpop.eup %6009 }
 0xf7b   :  { %v2183_v28 = vmul.f32 %v6010_v57, %v5994_v41  ;;  %v7349_v31 = vpop.f32.mrf.mxu0 }
 0xf7c   :  { %v2243_v38 = vpop.permute.xlu2 %2242 }
 0xf7d   :  { %v2251_v35 = vpop.permute.xlu0 %2250  ;;  %v2187_v49 = vpack.c.bf16 %v2183_v28, %v2182_v21  ;;  %v2887_v21 = vunpack.c.l.bf16 %v5626_v59 }
 0xf7e   :  { %v2265_v12 = vsel %vm972_vm8, %v2251_v35, 0 }
 0xf7f   :  { %2274 = vmatpush.bf16.xpose.msrb.mxu1 %v2265_v12  ;;  %5581 = vmatmul.msk.bf16.gmra.mxu0 %vm444_vm1, %v2187_v49  ;;  %v7389_v35 = vperm.slane %v2887_v21, 0 }
 0xf83   :  { %v7353_v58 = vpop.f32.mrf.mxu0 }
 0xf85   :  { %v2245_v36 = vpop.permute.xlu0 %2244 }
 0xf8b   :  { %v1823_v55 = vpop.permute.xlu1 %1822  ;;  %v7356_v41 = vpop.f32.mrf.mxu0 }
 0xf8c   :  { %5567 = vmatmul.msk.bf16.gmra.mxu1 %vm972_vm8, %v1823_v55 }
 0xf8d   :  { %v2249_v61 = vpop.permute.xlu0 %2248 }
 0xf8f   :  { %5635 = vmatmul.msk.bf16.vlgmr.msrb.gmra.mxu0 %vm416_vm0, %v7118_v52 }
 0xf93   :  { %v7358_v5 = vpop.f32.mrf.mxu0  ;;  %v2247_v22 = vpop.permute.xlu1 %2246 }
 0xf9b   :  { %v7361_v40 = vpop.f32.mrf.mxu0 }
 0xf9c   :  { %5568 = vmatmul.msk.bf16.gmra.mxu1 %vm972_vm8, %v1825_v62 }
 0xfa3   :  { %v7364_v32 = vpop.f32.mrf.mxu0 }
 0xfac   :  { %5569 = vmatmul.msk.bf16.gmra.mxu1 %vm972_vm8, %v1827_v17 }
 0xfbc   :  { %5582 = vmatmul.msk.bf16.vlgmr.msrb.gmra.mxu1 %vm972_vm8, %v2243_v38 }
 0xfc5   :  { %v7366_v52 = vpop.f32.mrf.mxu0 }
 0xfcc   :  { %5583 = vmatmul.msk.bf16.gmra.mxu1 %vm972_vm8, %v2245_v36 }
 0xfcd   :  { %v7369_v53 = vpop.f32.mrf.mxu0 }
 0xfd5   :  { %v7371_v19 = vpop.f32.mrf.mxu0 }
 0xfdc   :  { %5584 = vmatmul.msk.bf16.gmra.mxu1 %vm972_vm8, %v2247_v22 }
 0xfdd   :  { %v7374_v34 = vpop.f32.mrf.mxu0 }
 0xfec   :  { %5585 = vmatmul.msk.bf16.gmra.mxu1 %vm972_vm8, %v2249_v61  ;;  %v7377_v56 = vpop.f32.mrf.mxu0 }
 0xff3   :  { %v1857_v11 = vpop.f32.mrf.mxu1 }
 0xff4   :  { %v7379_v27 = vpop.f32.mrf.mxu0 }
 0xffb   :  { %v1859_v54 = vpop.f32.mrf.mxu1 }
 0xffc   :  { %v1878_v0 = vmul.f32 0.5, %v1859_v54  ;;  %v7381_v30 = vpop.f32.mrf.mxu0 }
 0xffe   :  { %v1888_v2 = vsel %vm444_vm1, %v1878_v0, -inf }
 0xfff   :  { %1889 = vmax.xlane.f32.xlu0 %v1888_v2 }
0x1004   :  { %v7387_v57 = vpop.f32.mrf.mxu0 }
0x1009   :  { %v1862_v28 = vpop.f32.mrf.mxu1 }
0x100c   :  { %v2910_v49 = vpop.f32.mrf.mxu0 }
0x100d   :  { %v2911_v12 = vadd.f32 %v2910_v49, %v7389_v35 }
0x100f   :  { %v2914_v55 = vpack.c.bf16 %v2911_v12, %v2911_v12 }
0x1011   :  { %v1864_v62 = vpop.f32.mrf.mxu1  ;;  %v2947_v17 = vunpack.c.l.b16 %v2914_v55 }
0x1013   :  { %v7392_v38 = vpack.c.b16 %v2947_v17, %v2947_v17  ;;  %v1877_v17 = vmul.f32 0.5, %v1857_v11 }
0x1014   :  { %v2912_v36 = vpop.f32.mrf.mxu0 }
0x1015   :  { %3005 = vrot.lane.b32.xlu1 %v7392_v38, %s9133_s3  ;;  %2949 = vrot.lane.b32.xlu2 %v7392_v38, %s6383_s5  ;;  %v7407_v36 = vmul.f32 0.5, %v1862_v28 }
0x1019   :  { %v1867_v22 = vpop.f32.mrf.mxu1 }
0x101a   :  { %v1881_v61 = vmul.f32 0.5, %v1867_v22  ;;  %v1885_v22 = vsel %vm444_vm1, %v1877_v17, -inf }
0x101c   :  { %v1897_v54 = vsel %vm444_vm1, %v1881_v61, -inf }
0x101d   :  { %1898 = vmax.xlane.f32.xlu0 %v1897_v54  ;;  %2915 = vrot.lane.b32.xlu1 %v7336_v51, %s9132_s28  ;;  %v1891_v51 = vsel %vm444_vm1, %v7407_v36, -inf  ;;  %v1880_v54 = vmul.f32 0.5, %v1864_v62 }
0x101e   :  { %3003 = vrot.lane.b32.xlu2 %v7392_v38, %s6382_s1 }
0x1021   :  { %v1869_v2 = vpop.f32.mrf.mxu1 }
0x1022   :  { %v7414_v3 = vmul.f32 0.5, %v1869_v2 }
0x1024   :  { %v1900_v11 = vsel %vm444_vm1, %v7414_v3, -inf }
0x1029   :  { %v1872_v59 = vpop.f32.mrf.mxu1 }
0x102a   :  { %v7419_v28 = vmul.f32 0.5, %v1872_v59 }
0x1031   :  { %v1874_v21 = vpop.f32.mrf.mxu1 }
0x1032   :  { %v7403_v49 = vmul.f32 0.5, %v1874_v21  ;;  %v2918_v21 = vpop.permute.xlu0 %2917 }
0x1033   :  { %2931 = vmatpush.bf16.msra.mxu1 %v2918_v21 }
0x1034   :  { %v1906_v12 = vsel %vm444_vm1, %v7403_v49, -inf }
0x1035   :  { %1907 = vmax.xlane.f32.xlu0 %v1906_v12  ;;  %v1894_v12 = vsel %vm444_vm1, %v1880_v54, -inf }
0x1039   :  { %v2276_v21 = vpop.f32.mrf.mxu1 }
0x1047   :  { %1886 = vmax.xlane.f32.xlu2 %v1885_v22  ;;  %1892 = vmax.xlane.f32.xlu1 %v1891_v51  ;;  %v1903_v22 = vsel %vm444_vm1, %v7419_v28, -inf }
0x1049   :  { %1980 = vrot.lane.b32.xlu0 %v7275_v10, %s6395_s29 }
0x104f   :  { %1895 = vmax.xlane.f32.xlu2 %v1894_v12  ;;  %1901 = vmax.xlane.f32.xlu1 %v1900_v11  ;;  %v2278_v11 = vpop.f32.mrf.mxu1 }
0x1050   :  { %v7429_v9 = vmul.f32 0.5, %v2278_v11 }
0x1057   :  { %1904 = vmax.xlane.f32.xlu2 %v1903_v22  ;;  %v2307_v22 = vsel %vm444_vm1, %v7429_v9, -inf }
0x106f   :  { %v2950_v51 = vpop.permute.xlu2 %2949 }
0x1070   :  { %v2955_v62 = vsel %vm444_vm1, %v2950_v51, 0 }
0x1071   :  { %2964 = vmatpush.bf16.xpose.msra.mxu0 %v2955_v62 }
0x1072   :  { %v1890_v2 = vpop.xlane.xlu0 %1889 }
0x1073   :  { %v1910_v42 = vsub.f32 %v1878_v0, %v1890_v2 }
0x1075   :  { %v1919_v48 = vmul.f32 1.442695, %v1910_v42 }
0x1077   :  { %6011 = vpow2.f32 %v1919_v48 }
0x1078   :  { %5642 = vmatmul.msk.bf16.vlgmr.msra.gmra.mxu0 %vm444_vm1, %v2914_v55  ;;  %v3004_v42 = vpop.permute.xlu2 %3003 }
0x107d   :  { %v7425_v12 = vpop.eup %6011 }
0x107e   :  { %v1936_v59 = vsel %vm444_vm1, %v7425_v12, 0.0 }
0x107f   :  { %1937 = vadd.xlane.f32.xlu2 %v1936_v59 }
0x1087   :  { %2308 = vmax.xlane.f32.xlu2 %v2307_v22  ;;  %v3006_v51 = vpop.permute.xlu1 %3005 }
0x1088   :  { %v3011_v0 = vsel %vm444_vm1, %v3006_v51, 0  ;;  %v2281_v51 = vpop.f32.mrf.mxu1 }
0x1089   :  { %3020 = vmatpush.bf16.xpose.msrb.mxu0 %v3011_v0 }
0x108f   :  { %v2916_v48 = vpop.permute.xlu1 %2915 }
0x1090   :  { %v1899_v55 = vpop.xlane.xlu0 %1898  ;;  %2932 = vmatpush.bf16.msra.mxu1 %v2916_v48  ;;  %5644 = vmatmul.msk.bf16.vlgmr.msrb.gmra.mxu0 %vm444_vm1, %v3004_v42 }
0x1091   :  { %v1913_v62 = vsub.f32 %v1881_v61, %v1899_v55  ;;  %v2283_v61 = vpop.f32.mrf.mxu1 }
0x1093   :  { %v1925_v2 = vmul.f32 1.442695, %v1913_v62  ;;  %5636 = vmatmul.msk.bf16.vlgmr.msra.gmra.mxu1 %vm416_vm0, %v7112_v33 }
0x1095   :  { %6013 = vpow2.f32 %v1925_v2 }
0x109b   :  { %v7437_v59 = vpop.eup %6013 }
0x109c   :  { %v1945_v11 = vsel %vm444_vm1, %v7437_v59, 0.0 }
0x109d   :  { %1946 = vadd.xlane.f32.xlu0 %v1945_v11 }
0x10a8   :  { %v1908_v22 = vpop.xlane.xlu0 %1907 }
0x10ba   :  { %v1887_v0 = vpop.xlane.xlu2 %1886  ;;  %v1893_v55 = vpop.xlane.xlu1 %1892 }
0x10bb   :  { %v1909_v1 = vsub.f32 %v1877_v17, %v1887_v0  ;;  %v1981_v29 = vpop.permute.xlu0 %1980  ;;  %v1911_v25 = vsub.f32 %v7407_v36, %v1893_v55  ;;  %v2286_v17 = vpop.f32.mrf.mxu1  ;;  %v7455_v36 = vmul.f32 0.5, %v2283_v61  ;;  %v7465_v61 = vmul.f32 0.5, %v2281_v51 }
0x10bc   :  { %v1995_v48 = vsel %vm482_vm2, %v1981_v29, 0  ;;  %v7447_v29 = vmul.f32 0.5, %v2276_v21 }
0x10bd   :  { %v1917_v42 = vmul.f32 1.442695, %v1909_v1  ;;  %2004 = vmatpush.bf16.msrb.mxu3 %v1995_v48  ;;  %v1921_v0 = vmul.f32 1.442695, %v1911_v25  ;;  %v1916_v25 = vsub.f32 %v7403_v49, %v1908_v22 }
0x10bf   :  { %6015 = vpow2.f32 %v1917_v42 }
0x10c2   :  { %v1896_v62 = vpop.xlane.xlu2 %1895  ;;  %v1902_v42 = vpop.xlane.xlu1 %1901 }
0x10c3   :  { %v1912_v2 = vsub.f32 %v1880_v54, %v1896_v62  ;;  %v2304_v54 = vsel %vm444_vm1, %v7447_v29, -inf  ;;  %v2288_v55 = vpop.f32.mrf.mxu1  ;;  %v1914_v21 = vsub.f32 %v7414_v3, %v1902_v42  ;;  %v2310_v3 = vsel %vm444_vm1, %v7465_v61, -inf }
0x10c5   :  { %v7442_v44 = vpop.eup %6015  ;;  %v1923_v24 = vmul.f32 1.442695, %v1912_v2  ;;  %v2313_v2 = vsel %vm444_vm1, %v7455_v36, -inf }
0x10c6   :  { %v1933_v11 = vsel %vm444_vm1, %v7442_v44, 0.0 }
0x10c7   :  { %6017 = vpow2.f32 %v1923_v24  ;;  %1934 = vadd.xlane.f32.xlu1 %v1933_v11  ;;  %v1931_v11 = vmul.f32 1.442695, %v1916_v25 }
0x10c8   :  { %6019 = vpow2.f32 %v1921_v0  ;;  %v1927_v0 = vmul.f32 1.442695, %v1914_v21 }
0x10c9   :  { %6021 = vpow2.f32 %v1931_v11  ;;  %v7482_v11 = vmul.f32 0.5, %v2288_v55 }
0x10ca   :  { %6023 = vpow2.f32 %v1927_v0  ;;  %v1905_v42 = vpop.xlane.xlu2 %1904 }
0x10cb   :  { %v1915_v51 = vsub.f32 %v7419_v28, %v1905_v42 }
0x10cd   :  { %v7449_v1 = vpop.eup %6017 }
0x10ce   :  { %v1942_v48 = vsel %vm444_vm1, %v7449_v1, 0.0  ;;  %v7457_v24 = vpop.eup %6019 }
0x10cf   :  { %2305 = vmax.xlane.f32.xlu1 %v2304_v54  ;;  %1943 = vadd.xlane.f32.xlu2 %v1942_v48  ;;  %v1939_v62 = vsel %vm444_vm1, %v7457_v24, 0.0  ;;  %v7467_v54 = vmul.f32 0.5, %v2286_v17  ;;  %v2291_v48 = vpop.f32.mrf.mxu1  ;;  %v7473_v22 = vpop.eup %6021 }
0x10d0   :  { %v7475_v25 = vpop.eup %6023  ;;  %v1954_v21 = vsel %vm444_vm1, %v7473_v22, 0.0  ;;  %v7494_v55 = vmul.f32 0.5, %v2291_v48 }
0x10d1   :  { %v2316_v49 = vsel %vm444_vm1, %v7467_v54, -inf  ;;  %v1948_v17 = vsel %vm444_vm1, %v7475_v25, 0.0 }
0x10d2   :  { %v2322_v43 = vsel %vm444_vm1, %v7494_v55, -inf }
0x10d7   :  { %1940 = vadd.xlane.f32.xlu1 %v1939_v62  ;;  %2314 = vmax.xlane.f32.xlu2 %v2313_v2  ;;  %v2293_v62 = vpop.f32.mrf.mxu1  ;;  %v1929_v2 = vmul.f32 1.442695, %v1915_v51 }
0x10d8   :  { %v7484_v0 = vmul.f32 0.5, %v2293_v62 }
0x10d9   :  { %6025 = vpow2.f32 %v1929_v2 }
0x10da   :  { %v2325_v28 = vsel %vm444_vm1, %v7484_v0, -inf }
0x10df   :  { %2311 = vmax.xlane.f32.xlu1 %v2310_v3  ;;  %2317 = vmax.xlane.f32.xlu2 %v2316_v49  ;;  %v2319_v3 = vsel %vm444_vm1, %v7482_v11, -inf  ;;  %v7490_v42 = vpop.eup %6025 }
0x10e0   :  { %v1951_v51 = vsel %vm444_vm1, %v7490_v42, 0.0 }
0x10e7   :  { %1949 = vadd.xlane.f32.xlu1 %v1948_v17  ;;  %1955 = vadd.xlane.f32.xlu2 %v1954_v21 }
0x10ef   :  { %2320 = vmax.xlane.f32.xlu1 %v2319_v3  ;;  %2326 = vmax.xlane.f32.xlu2 %v2325_v28 }
0x10f2   :  { %v1938_v49 = vpop.xlane.xlu2 %1937 }
0x10f5   :  { %v2966_v7 = vpop.f32.mrf.mxu0 }
0x10f7   :  { %1952 = vadd.xlane.f32.xlu1 %v1951_v51 }
0x10fa   :  { %v2309_v17 = vpop.xlane.xlu2 %2308 }
0x10fb   :  { %v2329_v21 = vsub.f32 %v7429_v9, %v2309_v17 }
0x10fd   :  { %v2338_v62 = vmul.f32 1.442695, %v2329_v21  ;;  %v2968_v2 = vpop.f32.mrf.mxu0 }
0x10ff   :  { %6027 = vpow2.f32 %v2338_v62  ;;  %2323 = vmax.xlane.f32.xlu1 %v2322_v43 }
0x1100   :  { %6029 = vrcp.f32 %v1938_v49 }
0x1105   :  { %v7499_v3 = vpop.eup %6027 }
0x1106   :  { %v2355_v28 = vsel %vm444_vm1, %v7499_v3, 0.0  ;;  %v6030_v62 = vpop.eup %6029 }
0x1107   :  { %2356 = vadd.xlane.f32.xlu0 %v2355_v28  ;;  %v1966_v28 = vmul.f32 %v6030_v62, %v7425_v12 }
0x110d   :  { %v3022_v50 = vpop.f32.mrf.mxu0 }
0x110e   :  { %v7503_v51 = vmul.f32 0.35355338, %v3022_v50 }
0x1110   :  { %v7505_v48 = vpop.f32.mrf.mxu1  ;;  %v3027_v9 = vsel %vm444_vm1, %v7503_v51, -inf }
0x1111   :  { %3028 = vmax.xlane.f32.xlu1 %v3027_v9 }
0x1115   :  { %v3024_v17 = vpop.f32.mrf.mxu0 }
0x1118   :  { %v2936_v21 = vpop.f32.mrf.mxu1 }
0x112a   :  { %2396 = vrot.lane.b32.xlu1 %v7275_v10, %s6396_s6 }
0x113a   :  { %v1935_v43 = vpop.xlane.xlu1 %1934 }
0x113b   :  { %6031 = vrcp.f32 %v1935_v43  ;;  %v7519_v43 = vmul.f32 0.35355338, %v2966_v7 }
0x1141   :  { %v6032_v2 = vpop.eup %6031 }
0x1142   :  { %v1965_v50 = vmul.f32 %v6032_v2, %v7442_v44  ;;  %v2306_v6 = vpop.xlane.xlu1 %2305  ;;  %v1944_v9 = vpop.xlane.xlu2 %1943 }
0x1143   :  { %v2328_v46 = vsub.f32 %v7447_v29, %v2306_v6 }
0x1144   :  { %v1973_v26 = vpack.c.bf16 %v1966_v28, %v1965_v50  ;;  %v1947_v28 = vpop.xlane.xlu0 %1946  ;;  %v2971_v50 = vsel %vm444_vm1, %v7519_v43, -inf }
0x1145   :  { %v2336_v63 = vmul.f32 1.442695, %v2328_v46 }
0x1146   :  { %5570 = vmatmul.msk.bf16.vlgmr.msrb.gmra.mxu3 %vm444_vm1, %v1973_v26 }
0x1147   :  { %6033 = vpow2.f32 %v2336_v63 }
0x1148   :  { %6035 = vrcp.f32 %v1944_v9 }
0x114a   :  { %v1941_v10 = vpop.xlane.xlu1 %1940  ;;  %v2315_v44 = vpop.xlane.xlu2 %2314 }
0x114b   :  { %6037 = vrcp.f32 %v1941_v10  ;;  %v2331_v62 = vsub.f32 %v7455_v36, %v2315_v44 }
0x114d   :  { %v7515_v49 = vpop.eup %6033  ;;  %v2342_v7 = vmul.f32 1.442695, %v2331_v62 }
0x114e   :  { %v2352_v17 = vsel %vm444_vm1, %v7515_v49, 0.0  ;;  %v6036_v12 = vpop.eup %6035 }
0x114f   :  { %2353 = vadd.xlane.f32.xlu2 %v2352_v17  ;;  %v1968_v46 = vmul.f32 %v6036_v12, %v7449_v1 }
0x1151   :  { %v6038_v21 = vpop.eup %6037 }
0x1152   :  { %v1967_v6 = vmul.f32 %v6038_v21, %v7457_v24  ;;  %v2312_v26 = vpop.xlane.xlu1 %2311  ;;  %v2318_v1 = vpop.xlane.xlu2 %2317 }
0x1153   :  { %v2330_v63 = vsub.f32 %v7465_v61, %v2312_v26  ;;  %v2332_v61 = vsub.f32 %v7467_v54, %v2318_v1 }
0x1154   :  { %v1974_v29 = vpack.c.bf16 %v1968_v46, %v1967_v6 }
0x1155   :  { %v2340_v2 = vmul.f32 1.442695, %v2330_v63  ;;  %v2344_v12 = vmul.f32 1.442695, %v2332_v61 }
0x1156   :  { %5571 = vmatmul.msk.bf16.gmra.mxu3 %vm444_vm1, %v1974_v29 }
0x1157   :  { %6039 = vpow2.f32 %v2340_v2  ;;  %2972 = vmax.xlane.f32.xlu2 %v2971_v50 }
0x1158   :  { %6041 = vrcp.f32 %v1947_v28 }
0x115a   :  { %v1950_v9 = vpop.xlane.xlu1 %1949  ;;  %v1956_v54 = vpop.xlane.xlu2 %1955 }
0x115b   :  { %6043 = vrcp.f32 %v1950_v9 }
0x115c   :  { %6045 = vpow2.f32 %v2342_v7 }
0x115d   :  { %v7528_v24 = vpop.eup %6039  ;;  %6047 = vpow2.f32 %v2344_v12 }
0x115e   :  { %v2358_v36 = vsel %vm444_vm1, %v7528_v24, 0.0  ;;  %v6042_v10 = vpop.eup %6041 }
0x115f   :  { %2359 = vadd.xlane.f32.xlu0 %v2358_v36  ;;  %v1969_v44 = vmul.f32 %v6042_v10, %v7437_v59 }
0x1161   :  { %v6044_v17 = vpop.eup %6043 }
0x1162   :  { %v1970_v21 = vmul.f32 %v6044_v17, %v7475_v25  ;;  %v2321_v46 = vpop.xlane.xlu1 %2320  ;;  %v7535_v6 = vpop.eup %6045 }
0x1163   :  { %v2333_v26 = vsub.f32 %v7482_v11, %v2321_v46  ;;  %v2361_v62 = vsel %vm444_vm1, %v7535_v6, 0.0  ;;  %v7541_v2 = vpop.eup %6047  ;;  %v2327_v9 = vpop.xlane.xlu2 %2326 }
0x1164   :  { %v1975_v63 = vpack.c.bf16 %v1970_v21, %v1969_v44  ;;  %v2364_v28 = vsel %vm444_vm1, %v7541_v2, 0.0  ;;  %v2335_v12 = vsub.f32 %v7484_v0, %v2327_v9 }
0x1165   :  { %v2346_v29 = vmul.f32 1.442695, %v2333_v26 }
0x1166   :  { %5572 = vmatmul.msk.bf16.gmra.mxu3 %vm444_vm1, %v1975_v63  ;;  %v2350_v21 = vmul.f32 1.442695, %v2335_v12 }
0x1167   :  { %6049 = vpow2.f32 %v2346_v29  ;;  %2362 = vadd.xlane.f32.xlu0 %v2361_v62 }
0x1168   :  { %6051 = vrcp.f32 %v1956_v54 }
0x116a   :  { %v1953_v59 = vpop.xlane.xlu1 %1952 }
0x116b   :  { %6053 = vrcp.f32 %v1953_v59 }
0x116d   :  { %v7543_v25 = vpop.eup %6049 }
0x116e   :  { %v2367_v11 = vsel %vm444_vm1, %v7543_v25, 0.0  ;;  %v6052_v50 = vpop.eup %6051 }
0x116f   :  { %2368 = vadd.xlane.f32.xlu1 %v2367_v11  ;;  %2365 = vadd.xlane.f32.xlu0 %v2364_v28  ;;  %v1972_v1 = vmul.f32 %v6052_v50, %v7473_v22 }
0x1170   :  { %2922 = vrot.lane.b32.xlu2 %v7389_v35, %s9132_s28  ;;  %s9146_s28 = smov 24  }
0x1171   :  { %v6054_v7 = vpop.eup %6053 }
0x1172   :  { %v1971_v61 = vmul.f32 %v6054_v7, %v7490_v42  ;;  %v2324_v36 = vpop.xlane.xlu1 %2323 }
0x1173   :  { %v2334_v10 = vsub.f32 %v7494_v55, %v2324_v36 }
0x1174   :  { %v1976_v17 = vpack.c.bf16 %v1972_v1, %v1971_v61 }
0x1175   :  { %v2348_v44 = vmul.f32 1.442695, %v2334_v10 }
0x1176   :  { %5573 = vmatmul.msk.bf16.gmra.mxu3 %vm444_vm1, %v1976_v17 }
0x1177   :  { %6055 = vpow2.f32 %v2348_v44 }
0x1178   :  { %6057 = vpow2.f32 %v2350_v21 }
0x117a   :  { %v2357_v63 = vpop.xlane.xlu0 %2356 }
0x117b   :  { %6059 = vrcp.f32 %v2357_v63 }
0x117d   :  { %v7556_v46 = vpop.eup %6055 }
0x117e   :  { %v2370_v35 = vsel %vm444_vm1, %v7556_v46, 0.0  ;;  %v7560_v22 = vpop.eup %6057 }
0x117f   :  { %2371 = vadd.xlane.f32.xlu0 %v2370_v35  ;;  %v2373_v42 = vsel %vm444_vm1, %v7560_v22, 0.0 }
0x1181   :  { %v6060_v54 = vpop.eup %6059 }
0x1182   :  { %v2385_v59 = vmul.f32 %v6060_v54, %v7499_v3 }
0x1184   :  { %v7566_v0 = vpop.xlane.xlu1 %3028 }
0x1187   :  { %2374 = vadd.xlane.f32.xlu0 %v2373_v42 }
0x1188   :  { %3066 = vrot.lane.b32.xlu1 %v7392_v38, %s9134_s8 }
0x119c   :  { %v2397_v55 = vpop.permute.xlu1 %2396 }
0x119d   :  { %v2411_v26 = vsel %vm482_vm2, %v2397_v55, 0 }
0x119e   :  { %2420 = vmatpush.bf16.msra.mxu3 %v2411_v26 }
0x11c2   :  { %v2354_v29 = vpop.xlane.xlu2 %2353 }
0x11c3   :  { %6061 = vrcp.f32 %v2354_v29 }
0x11c9   :  { %v6062_v62 = vpop.eup %6061 }
0x11ca   :  { %v2384_v11 = vmul.f32 %v6062_v62, %v7515_v49  ;;  %v2973_v28 = vpop.xlane.xlu2 %2972  ;;  %v2235_v62 = vpack.c.bf16 %v7369_v53, %v7369_v53 }
0x11cb   :  { %v2974_v50 = vsub.f32 %v7519_v43, %v2973_v28 }
0x11cc   :  { %v2392_v7 = vpack.c.bf16 %v2385_v59, %v2384_v11  ;;  %v2507_v11 = vunpack.c.l.b16 %v2235_v62 }
0x11cd   :  { %v2975_v1 = vmul.f32 1.442695, %v2974_v50 }
0x11ce   :  { %5586 = vmatmul.msk.bf16.vlgmr.msra.gmra.mxu3 %vm444_vm1, %v2392_v7 }
0x11cf   :  { %6063 = vpow2.f32 %v2975_v1 }
0x11d2   :  { %v2923_v9 = vpop.permute.xlu2 %2922  ;;  %v2360_v61 = vpop.xlane.xlu0 %2359 }
0x11d3   :  { %v2935_v36 = vadd.f32 %v7505_v48, %v2923_v9  ;;  %6065 = vrcp.f32 %v2360_v61 }
0x11d5   :  { %v7574_v10 = vpop.eup %6063  ;;  %v2938_v17 = vpack.c.bf16 %v2935_v36, %v2935_v36 }
0x11d6   :  { %v2977_v3 = vsel %vm444_vm1, %v7574_v10, 0.0 }
0x11d7   :  { %v3040_v12 = vunpack.c.l.b16 %v2938_v17  ;;  %2978 = vadd.xlane.f32.xlu2 %v2977_v3  ;;  %v2987_v49 = vsel %vm482_vm2, %v2938_v17, 0 }
0x11d8   :  { %2996 = vmatpush.bf16.msrb.mxu1 %v2987_v49 }
0x11d9   :  { %v7579_v43 = vpack.c.b16 %v3040_v12, %v3040_v12  ;;  %v6066_v48 = vpop.eup %6065  ;;  %v2006_v12 = vpop.f32.mrf.mxu3 }
0x11da   :  { %v2363_v44 = vpop.xlane.xlu0 %2362  ;;  %v2386_v35 = vmul.f32 %v6066_v48, %v7528_v24  ;;  %v2234_v24 = vpack.c.bf16 %v7366_v52, %v7366_v52  ;;  %v3030_v52 = vsub.f32 %v7503_v51, %v7566_v0 }
0x11db   :  { %6067 = vrcp.f32 %v2363_v44  ;;  %3042 = vrot.lane.b32.xlu0 %v7579_v43, %s6382_s1 }
0x11dc   :  { %v2506_v50 = vunpack.c.l.b16 %v2234_v24 }
0x11de   :  { %v2514_v1 = vpack.c.b16 %v2507_v11, %v2506_v50 }
0x11e1   :  { %v6068_v21 = vpop.eup %6067  ;;  %v2008_v0 = vpop.f32.mrf.mxu3 }
0x11e2   :  { %v2387_v42 = vmul.f32 %v6068_v21, %v7535_v6  ;;  %v2369_v55 = vpop.xlane.xlu1 %2368  ;;  %v2366_v26 = vpop.xlane.xlu0 %2365  ;;  %v2027_v21 = vpack.c.bf16 %v2008_v0, %v2008_v0 }
0x11e3   :  { %3064 = vrot.lane.b32.xlu0 %v7392_v38, %s6381_s4  ;;  %6069 = vrcp.f32 %v2369_v55 }
0x11e4   :  { %v2393_v63 = vpack.c.bf16 %v2387_v42, %v2386_v35  ;;  %6071 = vrcp.f32 %v2366_v26  ;;  %v2026_v35 = vpack.c.bf16 %v2006_v12, %v2006_v12  ;;  %v2237_v12 = vpack.c.bf16 %v7374_v34, %v7374_v34 }
0x11e6   :  { %5587 = vmatmul.msk.bf16.gmra.mxu3 %vm444_vm1, %v2393_v63 }
0x11e9   :  { %v6070_v29 = vpop.eup %6069  ;;  %v2011_v48 = vpop.f32.mrf.mxu3 }
0x11ea   :  { %v6072_v54 = vpop.eup %6071  ;;  %v2389_v6 = vmul.f32 %v6070_v29, %v7543_v25  ;;  %v3031_v25 = vmul.f32 1.442695, %v3030_v52 }
0x11eb   :  { %v2388_v59 = vmul.f32 %v6072_v54, %v7541_v2 }
0x11ed   :  { %v2394_v7 = vpack.c.bf16 %v2389_v6, %v2388_v59 }
0x11ef   :  { %3124 = vrot.lane.b32.xlu2 %v7392_v38, %s9135_s25 }
0x11f1   :  { %v2013_v42 = vpop.f32.mrf.mxu3 }
0x11f2   :  { %v2372_v28 = vpop.xlane.xlu0 %2371 }
0x11f3   :  { %6073 = vrcp.f32 %v2372_v28 }
0x11f6   :  { %5588 = vmatmul.msk.bf16.gmra.mxu3 %vm444_vm1, %v2394_v7 }
0x11f7   :  { %2518 = vrot.lane.b32.xlu2 %v2514_v1, %s9130_s0 }
0x11f9   :  { %v6074_v2 = vpop.eup %6073  ;;  %v2016_v26 = vpop.f32.mrf.mxu3 }
0x11fa   :  { %v3067_v53 = vpop.permute.xlu1 %3066  ;;  %v2375_v9 = vpop.xlane.xlu0 %2374  ;;  %v2390_v17 = vmul.f32 %v6074_v2, %v7556_v46  ;;  %v2479_v46 = vunpack.c.l.b16 %v2027_v21  ;;  %v2509_v21 = vunpack.c.l.b16 %v2237_v12  ;;  %v2030_v34 = vpack.c.bf16 %v2016_v26, %v2016_v26 }
0x11fb   :  { %v3072_v61 = vsel %vm444_vm1, %v3067_v53, 0  ;;  %6075 = vrcp.f32 %v2375_v9 }
0x11fc   :  { %3081 = vmatpush.bf16.xpose.msrb.mxu3 %v3072_v61  ;;  %6077 = vpow2.f32 %v3031_v25  ;;  %v2029_v25 = vpack.c.bf16 %v2013_v42, %v2013_v42 }
0x1201   :  { %v6076_v36 = vpop.eup %6075  ;;  %v2018_v63 = vpop.f32.mrf.mxu3 }
0x1202   :  { %v2391_v3 = vmul.f32 %v6076_v36, %v7560_v22  ;;  %v7604_v44 = vpop.eup %6077  ;;  %v2478_v22 = vunpack.c.l.b16 %v2026_v35 }
0x1203   :  { %v3033_v51 = vsel %vm444_vm1, %v7604_v44, 0.0 }
0x1204   :  { %v2395_v49 = vpack.c.bf16 %v2391_v3, %v2390_v17  ;;  %v2486_v55 = vpack.c.b16 %v2479_v46, %v2478_v22  ;;  %v2028_v17 = vpack.c.bf16 %v2011_v48, %v2011_v48 }
0x1206   :  { %5589 = vmatmul.msk.bf16.gmra.mxu3 %vm444_vm1, %v2395_v49  ;;  %v2480_v3 = vunpack.c.l.b16 %v2028_v17 }
0x1209   :  { %v7611_v29 = vpop.f32.mrf.mxu3 }
0x120d   :  { %3034 = vadd.xlane.f32.xlu0 %v3033_v51  ;;  %v2236_v51 = vpack.c.bf16 %v7371_v19, %v7371_v19 }
0x120f   :  { %v2508_v35 = vunpack.c.l.b16 %v2236_v51 }
0x1211   :  { %v7613_v54 = vpop.f32.mrf.mxu3  ;;  %v2515_v46 = vpack.c.b16 %v2509_v21, %v2508_v35  ;;  %v1812_v21 = vpack.c.bf16 %v7341_v15, %v7341_v15 }
0x1221   :  { %3122 = vrot.lane.b32.xlu0 %v7392_v38, %s9136_s22 }
0x1229   :  { %2490 = vrot.lane.b32.xlu0 %v2486_v55, %s9129_s26 }
0x124a   :  { %v2979_v62 = vpop.xlane.xlu2 %2978 }
0x124b   :  { %6079 = vrcp.f32 %v2979_v62 }
0x124d   :  { %v3043_v24 = vpop.permute.xlu0 %3042 }
0x124e   :  { %v3048_v6 = vsel %vm482_vm2, %v3043_v24, 0  ;;  %v2031_v24 = vpack.c.bf16 %v2018_v63, %v2018_v63 }
0x124f   :  { %3057 = vmatpush.bf16.msra.mxu1 %v3048_v6 }
0x1250   :  { %v2483_v19 = vunpack.c.l.b16 %v2031_v24 }
0x1251   :  { %v6080_v59 = vpop.eup %6079  ;;  %v2422_v11 = vpop.f32.mrf.mxu3 }
0x1252   :  { %v2981_v38 = vmul.f32 %v6080_v59, %v7574_v10  ;;  %v3125_v28 = vpop.permute.xlu2 %3124  ;;  %v2442_v53 = vpack.c.bf16 %v2422_v11, %v2422_v11  ;;  %v2481_v10 = vunpack.c.l.b16 %v2029_v25  ;;  %v2482_v11 = vunpack.c.l.b16 %v2030_v34 }
0x1253   :  { %v3130_v1 = vsel %vm444_vm1, %v3125_v28, 0  ;;  %v2239_v28 = vpack.c.bf16 %v7379_v27, %v7379_v27  ;;  %v2032_v27 = vpack.c.bf16 %v7611_v29, %v7611_v29  ;;  %v1813_v29 = vpack.c.bf16 %v7346_v16, %v7346_v16 }
0x1254   :  { %v2982_v50 = vpack.c.bf16 %v2981_v38, %v2981_v38  ;;  %v2534_v61 = vunpack.c.l.b16 %v2442_v53  ;;  %v2487_v49 = vpack.c.b16 %v2481_v10, %v2480_v3  ;;  %v5848_v38 = vld [vmem:[#allocation7] sm:$0xff] }
0x1255   :  { %v3065_v7 = vpop.permute.xlu0 %3064  ;;  %2605 = vmatpush.bf16.msrb.mxu2 %v5848_v38  ;;  %v2484_v17 = vunpack.c.l.b16 %v2032_v27  ;;  %v2459_v35 = vunpack.c.l.b16 %v1813_v29 }
0x1256   :  { %5643 = vmatmul.msk.bf16.vlgmr.msrb.gmra.mxu1 %vm444_vm1, %v2982_v50  ;;  %5646 = vmatmul.msk.bf16.vlgmr.msrb.gmra.mxu3 %vm444_vm1, %v3065_v7  ;;  %v2488_v50 = vpack.c.b16 %v2483_v19, %v2482_v11  ;;  %v2238_v7 = vpack.c.bf16 %v7377_v56, %v7377_v56 }
0x1257   :  { %3139 = vmatpush.bf16.xpose.msrb.mxu1 %v3130_v1  ;;  %v2511_v1 = vunpack.c.l.b16 %v2239_v28  ;;  %v1815_v28 = vpack.c.bf16 %v7353_v58, %v7353_v58 }
0x1258   :  { %v2510_v53 = vunpack.c.l.b16 %v2238_v7 }
0x1259   :  { %v2424_v9 = vpop.f32.mrf.mxu3 }
0x125a   :  { %v2443_v52 = vpack.c.bf16 %v2424_v9, %v2424_v9  ;;  %v2516_v9 = vpack.c.b16 %v2511_v1, %v2510_v53  ;;  %v2461_v1 = vunpack.c.l.b16 %v1815_v28 }
0x125c   :  { %v2535_v2 = vunpack.c.l.b16 %v2443_v52  ;;  %v2033_v52 = vpack.c.bf16 %v7613_v54, %v7613_v54 }
0x125e   :  { %v2542_v36 = vpack.c.b16 %v2535_v2, %v2534_v61  ;;  %v2485_v25 = vunpack.c.l.b16 %v2033_v52 }
0x1260   :  { %2546 = vrot.lane.b32.xlu1 %v2542_v36, %s6397_s27  ;;  %v2489_v10 = vpack.c.b16 %v2485_v25, %v2484_v17 }
0x1268   :  { %2492 = vrot.lane.b32.xlu1 %v2487_v49, %s9129_s26 }
0x1269   :  { %v2427_v0 = vpop.f32.mrf.mxu3 }
0x126a   :  { %v2444_v42 = vpack.c.bf16 %v2427_v0, %v2427_v0 }
0x126c   :  { %v2536_v55 = vunpack.c.l.b16 %v2444_v42 }
0x1270   :  { %2520 = vrot.lane.b32.xlu1 %v2515_v46, %s9130_s0  ;;  %v2458_v46 = vunpack.c.l.b16 %v1812_v21 }
0x1271   :  { %v2429_v48 = vpop.f32.mrf.mxu3 }
0x1272   :  { %v2445_v22 = vpack.c.bf16 %v2429_v48, %v2429_v48  ;;  %v2466_v48 = vpack.c.b16 %v2459_v35, %v2458_v46  ;;  %v1603_v35 = vld [vmem:[%s9137_s7] sm:$0x1] }
0x1274   :  { %v2537_v62 = vunpack.c.l.b16 %v2445_v22 }
0x1276   :  { %v2543_v6 = vpack.c.b16 %v2537_v62, %v2536_v55  ;;  %v2519_v55 = vpop.permute.xlu2 %2518 }
0x1278   :  { %2548 = vrot.lane.b32.xlu1 %v2543_v6, %s6397_s27 }
0x1279   :  { %v7628_v59 = vpop.f32.mrf.mxu3 }
0x1280   :  { %2494 = vrot.lane.b32.xlu1 %v2488_v50, %s9129_s26  ;;  %v3035_v63 = vpop.xlane.xlu0 %3034  ;;  %v1814_v50 = vpack.c.bf16 %v7349_v31, %v7349_v31  ;;  %v2240_v31 = vpack.c.bf16 %v7381_v30, %v7381_v30 }
0x1281   :  { %6081 = vrcp.f32 %v3035_v63  ;;  %v7635_v26 = vpop.f32.mrf.mxu3 }
0x1282   :  { %v2460_v53 = vunpack.c.l.b16 %v1814_v50  ;;  %v2512_v25 = vunpack.c.l.b16 %v2240_v31  ;;  %v9138_v50 = vunpack.c.l.bf16 %v6749_v47 }
0x1287   :  { %v6082_v61 = vpop.eup %6081 }
0x1288   :  { %v3037_v2 = vmul.f32 %v6082_v61, %v7604_v44  ;;  %2522 = vrot.lane.b32.xlu1 %v2516_v9, %s9130_s0  ;;  %v2467_v9 = vpack.c.b16 %v2461_v1, %v2460_v53 }
0x1289   :  { %v2437_v56 = vpop.f32.mrf.mxu3 }
0x128a   :  { %v3038_v36 = vpack.c.bf16 %v3037_v2, %v3037_v2  ;;  %v2448_v3 = vpack.c.bf16 %v2437_v56, %v2437_v56  ;;  %v2241_v2 = vpack.c.bf16 %v7387_v57, %v7387_v57 }
0x128c   :  { %5645 = vmatmul.msk.bf16.vlgmr.msra.gmra.mxu1 %vm444_vm1, %v3038_v36  ;;  %v2540_v49 = vunpack.c.l.b16 %v2448_v3  ;;  %v2513_v58 = vunpack.c.l.b16 %v2241_v2 }
0x128e   :  { %v2517_v36 = vpack.c.b16 %v2513_v58, %v2512_v25 }
0x1290   :  { %2496 = vrot.lane.b32.xlu1 %v2489_v10, %s9129_s26 }
0x1291   :  { %v2439_v12 = vpop.f32.mrf.mxu3 }
0x1292   :  { %v2449_v54 = vpack.c.bf16 %v2439_v12, %v2439_v12 }
0x1293   :  { %v3123_v44 = vpop.permute.xlu0 %3122 }
0x1294   :  { %v2541_v51 = vunpack.c.l.b16 %v2449_v54 }
0x1296   :  { %v2545_v0 = vpack.c.b16 %v2541_v51, %v2540_v49 }
0x1298   :  { %2552 = vrot.lane.b32.xlu1 %v2545_v0, %s6397_s27  ;;  %v2447_v0 = vpack.c.bf16 %v7635_v26, %v7635_v26 }
0x129b   :  { %v2491_v42 = vpop.permute.xlu0 %2490 }
0x129c   :  { %5648 = vmatmul.msk.bf16.vlgmr.msrb.gmra.mxu1 %vm444_vm1, %v3123_v44  ;;  %v2556_v22 = vsel %vm972_vm8, %v2466_v48, %v2491_v42  ;;  %v2446_v44 = vpack.c.bf16 %v7628_v59, %v7628_v59  ;;  %v2582_v42 = vunpack.c.l.bf16 %v1603_v35 }
0x129d   :  { %v2567_v24 = vsel %vm444_vm1, %v2556_v22, %v2519_v55 }
0x129e   :  { %v2538_v29 = vunpack.c.l.b16 %v2446_v44  ;;  %v7685_v55 = vperm.slane %v2582_v42, 0 }
0x12d2   :  { %v2547_v62 = vpop.permute.xlu1 %2546 }
0x12d3   :  { %v2575_v6 = vsel %vm1318_vm12, %v2567_v24, %v2547_v62  ;;  %v7654_v34 = vpop.f32.mrf.mxu1 }
0x12d4   :  { %5594 = vmatmul.msk.bf16.vlgmr.msrb.gmra.mxu2 %vm692_vm4, %v2575_v6 }
0x12d9   :  { %v3083_v16 = vpop.f32.mrf.mxu3 }
0x12da   :  { %v3087_v19 = vmul.f32 0.35355338, %v3083_v16  ;;  %v2493_v11 = vpop.permute.xlu1 %2492 }
0x12db   :  { %v3000_v15 = vpop.f32.mrf.mxu1  ;;  %v2559_v52 = vsel %vm972_vm8, %v2467_v9, %v2493_v11 }
0x12dc   :  { %v3088_v38 = vsel %vm444_vm1, %v3087_v19, -inf }
0x12dd   :  { %3089 = vmax.xlane.f32.xlu2 %v3088_v38 }
0x12e1   :  { %v3085_v7 = vpop.f32.mrf.mxu3 }
0x12e2   :  { %v2521_v63 = vpop.permute.xlu1 %2520 }
0x12e3   :  { %v2569_v61 = vsel %vm444_vm1, %v2559_v52, %v2521_v63 }
0x12ea   :  { %v2549_v27 = vpop.permute.xlu1 %2548 }
0x12eb   :  { %v2577_v56 = vsel %vm1318_vm12, %v2569_v61, %v2549_v27 }
0x12ec   :  { %5595 = vmatmul.msk.bf16.gmra.mxu2 %vm692_vm4, %v2577_v56 }
0x12f2   :  { %v2495_v25 = vpop.permute.xlu1 %2494 }
0x12f5   :  { %2524 = vrot.lane.b32.xlu2 %v2517_v36, %s9130_s0  ;;  %v1817_v36 = vpack.c.bf16 %v7358_v5, %v7358_v5 }
0x12fd   :  { %3158 = vrot.lane.b32.xlu2 %v7579_v43, %s9136_s22 }
0x1305   :  { %3100 = vrot.lane.b32.xlu2 %v7579_v43, %s6381_s4  ;;  %v2539_v43 = vunpack.c.l.b16 %v2447_v0 }
0x1307   :  { %v2544_v21 = vpack.c.b16 %v2539_v43, %v2538_v29  ;;  %v1819_v29 = vpack.c.bf16 %v7364_v32, %v7364_v32 }
0x1309   :  { %v3059_v17 = vpop.f32.mrf.mxu1  ;;  %v2465_v42 = vunpack.c.l.b16 %v1819_v29  ;;  %v9144_v29 = vunpack.c.l.bf16 %v6859_v45 }
0x130a   :  { %v3063_v57 = vpack.c.bf16 %v3059_v17, %v3059_v17  ;;  %v1816_v17 = vpack.c.bf16 %v7356_v41, %v7356_v41 }
0x130c   :  { %v3181_v10 = vunpack.c.l.b16 %v3063_v57 }
0x130e   :  { %v3182_v3 = vpack.c.b16 %v3181_v10, %v3181_v10  ;;  %v2463_v10 = vunpack.c.l.b16 %v1817_v36  ;;  %v9142_v36 = vunpack.c.l.bf16 %v6821_v18 }
0x1310   :  { %3183 = vrot.lane.b32.xlu2 %v3182_v3, %s9130_s0 }
0x1311   :  { %v3061_v12 = vpop.f32.mrf.mxu1 }
0x1312   :  { %v2462_v12 = vunpack.c.l.b16 %v1816_v17 }
0x1319   :  { %v3141_v54 = vpop.f32.mrf.mxu1 }
0x131a   :  { %v3145_v30 = vmul.f32 0.35355338, %v3141_v54  ;;  %v2523_v54 = vpop.permute.xlu1 %2522 }
0x131c   :  { %v3146_v49 = vsel %vm444_vm1, %v3145_v30, -inf }
0x131d   :  { %3147 = vmax.xlane.f32.xlu0 %v3146_v49  ;;  %v2468_v49 = vpack.c.b16 %v2463_v10, %v2462_v12 }
0x131f   :  { %v2562_v0 = vsel %vm972_vm8, %v2468_v49, %v2495_v25 }
0x1320   :  { %v2571_v44 = vsel %vm444_vm1, %v2562_v0, %v2523_v54 }
0x1321   :  { %v3143_v51 = vpop.f32.mrf.mxu1 }
0x1322   :  { %v9139_v51 = vunpack.c.l.bf16 %v6729_v37  ;;  %v9140_v37 = vunpack.c.l.bf16 %v6791_v4 }
0x1331   :  { %2550 = vrot.lane.b32.xlu0 %v2544_v21, %s6397_s27  ;;  %v1818_v21 = vpack.c.bf16 %v7361_v40, %v7361_v40 }
0x1350   :  { %v3090_v46 = vpop.xlane.xlu2 %3089 }
0x1351   :  { %v3091_v48 = vsub.f32 %v3087_v19, %v3090_v46  ;;  %v2497_v46 = vpop.permute.xlu1 %2496 }
0x1353   :  { %v3092_v22 = vmul.f32 1.442695, %v3091_v48  ;;  %v2464_v48 = vunpack.c.l.b16 %v1818_v21 }
0x1355   :  { %6083 = vpow2.f32 %v3092_v22 }
0x1357   :  { %v2607_v26 = vpop.f32.mrf.mxu2 }
0x1358   :  { %v2608_v62 = vadd.f32 %v2607_v26, %v7685_v55  ;;  %v2525_v59 = vpop.permute.xlu2 %2524  ;;  %v2469_v26 = vpack.c.b16 %v2465_v42, %v2464_v48 }
0x1359   :  { %v2553_v32 = vpop.permute.xlu1 %2552 }
0x135a   :  { %v2627_v24 = vpack.c.bf16 %v2608_v62, %v2608_v62 }
0x135b   :  { %v7688_v6 = vpop.eup %6083 }
0x135c   :  { %5598 = vst.msk [vmem:[%s9054_s24 + $0x20] sm:$0xf] %vm380_vm6, %v2627_v24  ;;  %v3094_v16 = vsel %vm444_vm1, %v7688_v6, 0.0 }
0x135d   :  { %3095 = vadd.xlane.f32.xlu0 %v3094_v16 }
0x135f   :  { %v2609_v19 = vpop.f32.mrf.mxu2 }
0x1360   :  { %v2610_v11 = vadd.f32 %v2609_v19, %v7685_v55  ;;  %v3159_v15 = vpop.permute.xlu2 %3158 }
0x1361   :  { %v3164_v38 = vsel %vm482_vm2, %v3159_v15, 0 }
0x1362   :  { %v2628_v28 = vpack.c.bf16 %v2610_v11, %v2610_v11  ;;  %3173 = vmatpush.bf16.msra.mxu2 %v3164_v38  ;;  %v7700_v7 = vadd.f32 %v2610_v11, %v9138_v50 }
0x1364   :  { %5599 = vst.msk [vmem:[%s9054_s24 + $0x24] sm:$0xf] %vm380_vm6, %v2628_v28  ;;  %v2655_v63 = vsel %vm416_vm0, %v7700_v7, 0.0 }
0x1365   :  { %2656 = vadd.xlane.f32.xlu0 %v2655_v63 }
0x1368   :  { %v3101_v1 = vpop.permute.xlu2 %3100 }
0x1369   :  { %v3106_v53 = vsel %vm482_vm2, %v3101_v1, 0 }
0x136a   :  { %3115 = vmatpush.bf16.msra.mxu0 %v3106_v53 }
0x136f   :  { %v2612_v9 = vpop.f32.mrf.mxu2 }
0x1370   :  { %v7710_v52 = vadd.f32 %v2612_v9, %v7685_v55 }
0x1372   :  { %v2629_v47 = vpack.c.bf16 %v7710_v52, %v7710_v52 }
0x1374   :  { %5600 = vst.msk [vmem:[%s9054_s24 + $0x28] sm:$0xf] %vm380_vm6, %v2629_v47  ;;  %v9141_v47 = vunpack.c.l.bf16 %v6811_v13 }
0x1377   :  { %v2614_v61 = vpop.f32.mrf.mxu2 }
0x1378   :  { %v2615_v27 = vadd.f32 %v2614_v61, %v7685_v55 }
0x137a   :  { %v2630_v2 = vpack.c.bf16 %v2615_v27, %v2615_v27  ;;  %v7741_v35 = vadd.f32 %v2615_v27, %v9140_v37 }
0x137c   :  { %5601 = vst.msk [vmem:[%s9054_s24 + $0x2c] sm:$0xf] %vm380_vm6, %v2630_v2  ;;  %v2661_v22 = vsel %vm416_vm0, %v7741_v35, 0.0 }
0x1390   :  { %v3148_v56 = vpop.xlane.xlu0 %3147 }
0x1391   :  { %v3149_v31 = vsub.f32 %v3145_v30, %v3148_v56  ;;  %v2644_v30 = vadd.f32 %v2608_v62, %v9139_v51  ;;  %v2565_v62 = vsel %vm972_vm8, %v2469_v26, %v2497_v46 }
0x1392   :  { %v2573_v24 = vsel %vm444_vm1, %v2565_v62, %v2525_v59 }
0x1393   :  { %v3150_v58 = vmul.f32 1.442695, %v3149_v31  ;;  %v2652_v41 = vsel %vm416_vm0, %v2644_v30, 0.0  ;;  %v2581_v16 = vsel %vm1318_vm12, %v2573_v24, %v2553_v32 }
0x1395   :  { %6085 = vpow2.f32 %v3150_v58 }
0x139b   :  { %v6086_v57 = vpop.eup %6085 }
0x139c   :  { %v3152_v3 = vsel %vm444_vm1, %v6086_v57, 0.0 }
0x139d   :  { %3153 = vadd.xlane.f32.xlu1 %v3152_v3 }
0x13a3   :  { %v2551_v43 = vpop.permute.xlu0 %2550 }
0x13a4   :  { %v2579_v5 = vsel %vm1318_vm12, %v2571_v44, %v2551_v43 }
0x13a5   :  { %2653 = vadd.xlane.f32.xlu1 %v2652_v41  ;;  %5596 = vmatmul.msk.bf16.gmra.mxu2 %vm692_vm4, %v2579_v5 }
0x13ad   :  { %2662 = vadd.xlane.f32.xlu1 %v2661_v22 }
0x13b5   :  { %5597 = vmatmul.msk.bf16.gmra.mxu2 %vm692_vm4, %v2581_v16 }
0x13d0   :  { %v3096_v4 = vpop.xlane.xlu0 %3095 }
0x13d1   :  { %6087 = vrcp.f32 %v3096_v4 }
0x13d7   :  { %v6088_v40 = vpop.eup %6087 }
0x13d8   :  { %v3098_v19 = vmul.f32 %v6088_v40, %v7688_v6  ;;  %v2657_v2 = vpop.xlane.xlu0 %2656 }
0x13d9   :  { %v2677_v31 = vmul.f32 %v2657_v2, %v6888_v8 }
0x13da   :  { %v3099_v11 = vpack.c.bf16 %v3098_v19, %v3098_v19 }
0x13dc   :  { %5647 = vmatmul.msk.bf16.vlgmr.msra.gmra.mxu0 %vm444_vm1, %v3099_v11 }
0x1410   :  { %v3154_v15 = vpop.xlane.xlu1 %3153 }
0x1411   :  { %6089 = vrcp.f32 %v3154_v15 }
0x1417   :  { %v6090_v38 = vpop.eup %6089 }
0x1418   :  { %v3156_v28 = vmul.f32 %v6090_v38, %v6086_v57  ;;  %v2654_v59 = vpop.xlane.xlu1 %2653  ;;  %v7773_v57 = vsub.f32 %v7700_v7, %v2677_v31  ;;  %v9143_v7 = vunpack.c.l.bf16 %v6829_v23 }
0x1419   :  { %v2676_v1 = vmul.f32 %v2654_v59, %v6888_v8 }
0x141a   :  { %v3157_v50 = vpack.c.bf16 %v3156_v28, %v3156_v28  ;;  %v2693_v18 = vmul.f32 %v7773_v57, %v7773_v57 }
0x141b   :  { %v7758_v61 = vsub.f32 %v2644_v30, %v2676_v1 }
0x141c   :  { %5649 = vmatmul.msk.bf16.vlgmr.msra.gmra.mxu2 %vm444_vm1, %v3157_v50  ;;  %v2703_v0 = vsel %vm416_vm0, %v2693_v18, 0.0 }
0x141d   :  { %v2692_v13 = vmul.f32 %v7758_v61, %v7758_v61 }
0x141f   :  { %v2700_v3 = vsel %vm416_vm0, %v2692_v13, 0.0 }
0x1420   :  { %v2663_v44 = vpop.xlane.xlu1 %2662 }
0x1421   :  { %v2679_v5 = vmul.f32 %v2663_v44, %v6888_v8 }
0x1423   :  { %v7802_v37 = vsub.f32 %v7741_v35, %v2679_v5 }
0x1428   :  { %v2617_v63 = vpop.f32.mrf.mxu2 }
0x1429   :  { %v2618_v53 = vadd.f32 %v2617_v63, %v7685_v55 }
0x142b   :  { %v2631_v9 = vpack.c.bf16 %v2618_v53, %v2618_v53  ;;  %v7756_v6 = vadd.f32 %v2618_v53, %v9141_v47 }
0x142d   :  { %5602 = vst.msk [vmem:[%s9054_s24 + $0x30] sm:$0xf] %vm380_vm6, %v2631_v9  ;;  %v2664_v27 = vsel %vm416_vm0, %v7756_v6, 0.0 }
0x142e   :  { %2665 = vadd.xlane.f32.xlu0 %v2664_v27 }
0x1430   :  { %v2619_v56 = vpop.f32.mrf.mxu2 }
0x1431   :  { %v2620_v58 = vadd.f32 %v2619_v56, %v7685_v55 }
0x1433   :  { %v2632_v25 = vpack.c.bf16 %v2620_v58, %v2620_v58  ;;  %v2649_v17 = vadd.f32 %v2620_v58, %v9142_v36 }
0x1435   :  { %5603 = vst.msk [vmem:[%s9054_s24 + $0x34] sm:$0xf] %vm380_vm6, %v2632_v25  ;;  %v2667_v10 = vsel %vm416_vm0, %v2649_v17, 0.0 }
0x1436   :  { %2668 = vadd.xlane.f32.xlu1 %v2667_v10  ;;  %2701 = vadd.xlane.f32.xlu0 %v2700_v3 }
0x1438   :  { %v2622_v12 = vpop.f32.mrf.mxu2 }
0x1439   :  { %v2623_v54 = vadd.f32 %v2622_v12, %v7685_v55  ;;  %v7829_v12 = vperm.slane %v6932_v20, 3 }
0x143b   :  { %v2633_v49 = vpack.c.bf16 %v2623_v54, %v2623_v54  ;;  %v7786_v51 = vadd.f32 %v2623_v54, %v9143_v7  ;;  %v5852_v7 = vld [vmem:[%s9121_s16 + $0x18] sm:$0xff] }
0x143c   :  { %3224 = vmatpush.bf16.msra.mxu3 %v5852_v7 }
0x143d   :  { %5604 = vst.msk [vmem:[%s9054_s24 + $0x38] sm:$0xf] %vm380_vm6, %v2633_v49  ;;  %v2670_v30 = vsel %vm416_vm0, %v7786_v51, 0.0 }
0x143e   :  { %2671 = vadd.xlane.f32.xlu0 %v2670_v30  ;;  %2704 = vadd.xlane.f32.xlu1 %v2703_v0 }
0x1440   :  { %v2624_v43 = vpop.f32.mrf.mxu2 }
0x1441   :  { %v2625_v23 = vadd.f32 %v2624_v43, %v7685_v55  ;;  %v2695_v55 = vmul.f32 %v7802_v37, %v7802_v37  ;;  %v5851_v43 = vld [vmem:[%s9121_s16 + $0x10] sm:$0xff] }
0x1442   :  { %3225 = vmatpush.bf16.msra.mxu3 %v5851_v43 }
0x1443   :  { %v2634_v41 = vpack.c.bf16 %v2625_v23, %v2625_v23  ;;  %v7799_v21 = vadd.f32 %v2625_v23, %v9144_v29  ;;  %v2709_v42 = vsel %vm416_vm0, %v2695_v55, 0.0  ;;  %v9147_v55 = vunpack.c.l.bf16 %v6772_v60 }
0x1445   :  { %5605 = vst.msk [vmem:[%s9054_s24 + $0x3c] sm:$0xf] %vm380_vm6, %v2634_v41  ;;  %v2673_v46 = vsel %vm416_vm0, %v7799_v21, 0.0 }
0x1446   :  { %2674 = vadd.xlane.f32.xlu1 %v2673_v46 }
0x144e   :  { %2710 = vadd.xlane.f32.xlu1 %v2709_v42  ;;  %v7857_v42 = vadd.f32 %v7710_v52, %v9147_v55 }
0x1459   :  { %v3117_v45 = vpop.f32.mrf.mxu0 }
0x145a   :  { %v3121_v48 = vpack.c.bf16 %v3117_v45, %v3117_v45 }
0x145c   :  { %v3186_v22 = vunpack.c.l.b16 %v3121_v48 }
0x145e   :  { %v3187_v35 = vpack.c.b16 %v3186_v22, %v3186_v22 }
0x1460   :  { %3188 = vrot.lane.b32.xlu2 %v3187_v35, %s9145_s23 }
0x1461   :  { %v3119_v26 = vpop.f32.mrf.mxu0 }
0x149f   :  { %v3175_v62 = vpop.f32.mrf.mxu2 }
0x14a0   :  { %v3179_v24 = vpack.c.bf16 %v3175_v62, %v3175_v62 }
0x14a1   :  { %v2666_v32 = vpop.xlane.xlu0 %2665 }
0x14a2   :  { %v3191_v16 = vunpack.c.l.b16 %v3179_v24  ;;  %v2680_v45 = vmul.f32 %v2666_v32, %v6888_v8  ;;  %v2658_v24 = vsel %vm416_vm0, %v7857_v42, 0.0 }
0x14a4   :  { %v3192_v4 = vpack.c.b16 %v3191_v16, %v3191_v16 }
0x14a6   :  { %3193 = vrot.lane.b32.xlu2 %v3192_v4, %s9146_s28 }
0x14a7   :  { %v3177_v40 = vpop.f32.mrf.mxu2 }
0x14a9   :  { %v2669_v19 = vpop.xlane.xlu1 %2668  ;;  %v2702_v11 = vpop.xlane.xlu0 %2701 }
0x14aa   :  { %v2681_v15 = vmul.f32 %v2669_v19, %v6888_v8  ;;  %v2724_v38 = vmul.f32 %v2702_v11, %v6888_v8 }
0x14ac   :  { %v7817_v28 = vsub.f32 %v2649_v17, %v2681_v15  ;;  %v2732_v50 = vadd.f32 1e-05, %v2724_v38  ;;  %v7826_v17 = vperm.slane %v6929_v14, 3 }
0x14ae   :  { %6091 = vrsqrt.f32 %v2732_v50  ;;  %v2697_v59 = vmul.f32 %v7817_v28, %v7817_v28  ;;  %vm2746_vm13 = vweird.f32 %v2732_v50 }
0x14b0   :  { %v2715_v63 = vsel %vm416_vm0, %v2697_v59, 0.0 }
0x14b1   :  { %2716 = vadd.xlane.f32.xlu1 %v2715_v63  ;;  %v2705_v1 = vpop.xlane.xlu1 %2704 }
0x14b2   :  { %v2725_v53 = vmul.f32 %v2705_v1, %v6888_v8  ;;  %v3184_v1 = vpop.permute.xlu2 %3183 }
0x14b4   :  { %v6092_v9 = vpop.eup %6091  ;;  %v2733_v47 = vadd.f32 1e-05, %v2725_v53  ;;  %v3002_v53 = vpack.c.bf16 %v7654_v34, %v7654_v34 }
0x14b5   :  { %v2741_v27 = vmul.f32 %v6092_v9, %v2732_v50  ;;  %vm2747_vm11 = vweird.f32 %v6092_v9 }
0x14b6   :  { %6093 = vrsqrt.f32 %v2733_v47  ;;  %vm2748_vm14 = vmor %vm2746_vm13, %vm2747_vm11  ;;  %vm2756_vm7 = vweird.f32 %v2733_v47 }
0x14b7   :  { %v2742_v2 = vmul.f32 %v6092_v9, %v2741_v27 }
0x14b9   :  { %v2743_v56 = vmul.f32 0.5, %v2742_v2  ;;  %v7823_v31 = vpop.xlane.xlu1 %2674 }
0x14bb   :  { %v2744_v58 = vsub.f32 1.5, %v2743_v56 }
0x14bc   :  { %v6094_v13 = vpop.eup %6093 }
0x14bd   :  { %v2745_v25 = vmul.f32 %v6092_v9, %v2744_v58  ;;  %v2751_v36 = vmul.f32 %v6094_v13, %v2733_v47  ;;  %vm2757_vm15 = vweird.f32 %v6094_v13 }
0x14be   :  { %vm2758_vm9 = vmor %vm2756_vm7, %vm2757_vm15 }
0x14bf   :  { %v2749_v10 = vsel %vm2748_vm14, %v6092_v9, %v2745_v25  ;;  %v2752_v3 = vmul.f32 %v6094_v13, %v2751_v36  ;;  %v3197_v9 = vsel %vm444_vm1, %v3002_v53, %v3184_v1 }
0x14c0   :  { %v2820_v54 = vmul.f32 %v2749_v10, %v7758_v61 }
0x14c1   :  { %v2753_v18 = vmul.f32 0.5, %v2752_v3  ;;  %v2711_v49 = vpop.xlane.xlu1 %2710 }
0x14c2   :  { %v2829_v30 = vmul.f32 %v7826_v17, %v2820_v54  ;;  %v2727_v0 = vmul.f32 %v2711_v49, %v6888_v8 }
0x14c3   :  { %v2754_v44 = vsub.f32 1.5, %v2753_v18 }
0x14c4   :  { %v2838_v5 = vadd.f32 %v7829_v12, %v2829_v30  ;;  %v2735_v61 = vadd.f32 1e-05, %v2727_v0  ;;  %v7913_v30 = vld [vmem:[%s9040_s10 + $0x18] sm:$0xff] }
0x14c5   :  { %v2755_v23 = vmul.f32 %v6094_v13, %v2754_v44  ;;  %3304 = vmatpush.bf16.msrb.mxu0 %v7913_v30 }
0x14c6   :  { %v7841_v41 = vpack.c.bf16 %v2838_v5, %v2838_v5  ;;  %6095 = vrsqrt.f32 %v2735_v61  ;;  %vm2776_vm11 = vweird.f32 %v2735_v61 }
0x14c7   :  { %v2759_v29 = vsel %vm2758_vm9, %v6094_v13, %v2755_v23 }
0x14c8   :  { %5606 = vst.msk [vmem:[%s9054_s24 + $0x40] sm:$0xf] %vm380_vm6, %v7841_v41  ;;  %v2821_v46 = vmul.f32 %v2759_v29, %v7773_v57  ;;  %v7863_v57 = vsub.f32 %v7756_v6, %v2680_v45  ;;  %v3379_v52 = vunpack.c.l.b16 %v7841_v41 }
0x14c9   :  { %5614 = vst.msk [vmem:[%s9054_s24 + $0x60] sm:$0xf] %vm380_vm6, %v7841_v41 }
0x14ca   :  { %v2830_v48 = vmul.f32 %v7826_v17, %v2821_v46  ;;  %v2696_v16 = vmul.f32 %v7863_v57, %v7863_v57  ;;  %v7939_v46 = vld [vmem:[%s9040_s10 + $0x10] sm:$0xff] }
0x14cb   :  { %3305 = vmatpush.bf16.msrb.mxu0 %v7939_v46 }
0x14cc   :  { %v6096_v22 = vpop.eup %6095  ;;  %v2839_v35 = vadd.f32 %v7829_v12, %v2830_v48  ;;  %v2712_v11 = vsel %vm416_vm0, %v2696_v16, 0.0 }
0x14cd   :  { %v2771_v26 = vmul.f32 %v6096_v22, %v2735_v61  ;;  %vm2777_vm10 = vweird.f32 %v6096_v22 }
0x14ce   :  { %v7865_v62 = vpack.c.bf16 %v2839_v35, %v2839_v35  ;;  %vm2778_vm13 = vmor %vm2776_vm11, %vm2777_vm10 }
0x14cf   :  { %v2772_v60 = vmul.f32 %v6096_v22, %v2771_v26  ;;  %2659 = vadd.xlane.f32.xlu2 %v2658_v24 }
0x14d0   :  { %5607 = vst.msk [vmem:[%s9054_s24 + $0x44] sm:$0xf] %vm380_vm6, %v7865_v62  ;;  %v3380_v32 = vunpack.c.l.b16 %v7865_v62 }
0x14d1   :  { %5615 = vst.msk [vmem:[%s9054_s24 + $0x64] sm:$0xf] %vm380_vm6, %v7865_v62  ;;  %v2773_v6 = vmul.f32 0.5, %v2772_v60 }
0x14d2   :  { %v7883_v4 = vpack.c.b16 %v3380_v32, %v3379_v52 }
0x14d3   :  { %v2774_v40 = vsub.f32 1.5, %v2773_v6 }
0x14d5   :  { %v2775_v19 = vmul.f32 %v6096_v22, %v2774_v40 }
0x14d7   :  { %v2779_v15 = vsel %vm2778_vm13, %v6096_v22, %v2775_v19  ;;  %2713 = vadd.xlane.f32.xlu2 %v2712_v11  ;;  %v2672_v11 = vpop.xlane.xlu0 %2671 }
0x14d8   :  { %v2823_v38 = vmul.f32 %v2779_v15, %v7802_v37  ;;  %v3189_v37 = vpop.permute.xlu2 %3188  ;;  %v2682_v15 = vmul.f32 %v2672_v11, %v6888_v8 }
0x14d9   :  { %v3199_v47 = vsel %vm692_vm4, %v3197_v9, %v3189_v37  ;;  %v2683_v9 = vmul.f32 %v7823_v31, %v6888_v8 }
0x14da   :  { %v2832_v50 = vmul.f32 %v7826_v17, %v2823_v38  ;;  %v5641_v38 = vld [vmem:[%s9039_s9 + $0x1] sm:$0x1] }
0x14dc   :  { %v2841_v59 = vadd.f32 %v7829_v12, %v2832_v50  ;;  %v3202_v50 = vunpack.c.l.bf16 %v5641_v38 }
0x14de   :  { %v7889_v63 = vpack.c.bf16 %v2841_v59, %v2841_v59  ;;  %v7971_v59 = vsub.f32 %v7786_v51, %v2682_v15  ;;  %v3203_v1 = vperm.slane %v3202_v50, 0 }
0x14e0   :  { %5609 = vst.msk [vmem:[%s9054_s24 + $0x4c] sm:$0xf] %vm380_vm6, %v7889_v63  ;;  %v2698_v37 = vmul.f32 %v7971_v59, %v7971_v59 }
0x14e1   :  { %5617 = vst.msk [vmem:[%s9054_s24 + $0x6c] sm:$0xf] %vm380_vm6, %v7889_v63 }
0x14ef   :  { %3312 = vrot.lane.b32.xlu2 %v7939_v46, %s6381_s4 }
0x1500   :  { %v3194_v27 = vpop.permute.xlu2 %3193 }
0x1501   :  { %v3201_v2 = vsel %vm695_vm5, %v3199_v47, %v3194_v27  ;;  %v2718_v27 = vsel %vm416_vm0, %v2698_v37, 0.0 }
0x1502   :  { %5658 = vmatmul.msk.bf16.vlgmr.msra.gmra.mxu3 %vm416_vm0, %v3201_v2  ;;  %v9148_v2 = vunpack.c.l.bf16 %v7112_v33 }
0x1524   :  { %v2717_v56 = vpop.xlane.xlu1 %2716 }
0x1525   :  { %v2729_v58 = vmul.f32 %v2717_v56, %v6888_v8 }
0x1527   :  { %v2737_v13 = vadd.f32 1e-05, %v2729_v58  ;;  %v7983_v58 = vsub.f32 %v7799_v21, %v2683_v9  ;;  %v9154_v9 = vld [vmem:[#allocation13_spill] sm:$0xff] }
0x1529   :  { %6097 = vrsqrt.f32 %v2737_v13  ;;  %vm2796_vm15 = vweird.f32 %v2737_v13 }
0x152f   :  { %v6098_v25 = vpop.eup %6097 }
0x1530   :  { %v2791_v36 = vmul.f32 %v6098_v25, %v2737_v13  ;;  %vm2797_vm14 = vweird.f32 %v6098_v25 }
0x1531   :  { %vm2798_vm7 = vmor %vm2796_vm15, %vm2797_vm14 }
0x1532   :  { %v2792_v10 = vmul.f32 %v6098_v25, %v2791_v36 }
0x1534   :  { %v2793_v3 = vmul.f32 0.5, %v2792_v10 }
0x1536   :  { %v2794_v54 = vsub.f32 1.5, %v2793_v3 }
0x1538   :  { %v2795_v34 = vmul.f32 %v6098_v25, %v2794_v54 }
0x153a   :  { %v2799_v18 = vsel %vm2798_vm7, %v6098_v25, %v2795_v34  ;;  %v2699_v25 = vmul.f32 %v7983_v58, %v7983_v58 }
0x153b   :  { %v2825_v49 = vmul.f32 %v2799_v18, %v7817_v28  ;;  %v2873_v18 = vunpack.c.l.bf16 %v7865_v62 }
0x153c   :  { %v2721_v31 = vsel %vm416_vm0, %v2699_v25, 0.0 }
0x153d   :  { %v2834_v7 = vmul.f32 %v7826_v17, %v2825_v49 }
0x153f   :  { %v2843_v0 = vadd.f32 %v7829_v12, %v2834_v7 }
0x1541   :  { %v7917_v44 = vpack.c.bf16 %v2843_v0, %v2843_v0  ;;  %v2872_v0 = vunpack.c.l.bf16 %v7841_v41 }
0x1542   :  { %v2660_v43 = vpop.xlane.xlu2 %2659 }
0x1543   :  { %5611 = vst.msk [vmem:[%s9054_s24 + $0x54] sm:$0xf] %vm380_vm6, %v7917_v44  ;;  %v2678_v28 = vmul.f32 %v2660_v43, %v6888_v8  ;;  %v3384_v19 = vunpack.c.l.b16 %v7917_v44 }
0x1544   :  { %5619 = vst.msk [vmem:[%s9054_s24 + $0x74] sm:$0xf] %vm380_vm6, %v7917_v44 }
0x1545   :  { %v7931_v5 = vsub.f32 %v7857_v42, %v2678_v28 }
0x1547   :  { %v2694_v61 = vmul.f32 %v7931_v5, %v7931_v5 }
0x1549   :  { %v2706_v23 = vsel %vm416_vm0, %v2694_v61, 0.0  ;;  %v9149_v61 = vunpack.c.h.bf16 %v6736_v39 }
0x154a   :  { %2707 = vadd.xlane.f32.xlu0 %v2706_v23  ;;  %v2714_v29 = vpop.xlane.xlu2 %2713 }
0x154b   :  { %v2728_v55 = vmul.f32 %v2714_v29, %v6888_v8  ;;  %v3261_v23 = vadd.f32 %v9149_v61, %v2873_v18 }
0x154d   :  { %v2736_v42 = vadd.f32 1e-05, %v2728_v55 }
0x154f   :  { %6099 = vrsqrt.f32 %v2736_v42  ;;  %vm2786_vm9 = vweird.f32 %v2736_v42 }
0x1552   :  { %v3313_v28 = vpop.permute.xlu2 %3312 }
0x1555   :  { %v6100_v45 = vpop.eup %6099 }
0x1556   :  { %v2781_v48 = vmul.f32 %v6100_v45, %v2736_v42  ;;  %vm2787_vm5 = vweird.f32 %v6100_v45  ;;  %v9150_v42 = vunpack.c.l.bf16 %v6736_v39 }
0x1557   :  { %vm2788_vm10 = vmor %vm2786_vm9, %vm2787_vm5 }
0x1558   :  { %v2782_v22 = vmul.f32 %v6100_v45, %v2781_v48 }
0x155a   :  { %v2783_v35 = vmul.f32 0.5, %v2782_v22 }
0x155c   :  { %v2784_v26 = vsub.f32 1.5, %v2783_v35  ;;  %v5663_v35 = vld [vmem:[%s9041_s11 + $0x1] sm:$0x1] }
0x155e   :  { %v2785_v24 = vmul.f32 %v6100_v45, %v2784_v26  ;;  %3314 = vrot.lane.b32.xlu0 %v7913_v30, %s6381_s4 }
0x1560   :  { %v2789_v60 = vsel %vm2788_vm10, %v6100_v45, %v2785_v24  ;;  %v3260_v45 = vadd.f32 %v9150_v42, %v2872_v0 }
0x1561   :  { %v2824_v52 = vmul.f32 %v2789_v60, %v7863_v57 }
0x1562   :  { %v8003_v22 = vpack.c.bf16 %v3261_v23, %v3260_v45 }
0x1563   :  { %v2833_v32 = vmul.f32 %v7826_v17, %v2824_v52  ;;  %v3382_v52 = vunpack.c.l.b16 %v7889_v63 }
0x1565   :  { %v2842_v6 = vadd.f32 %v7829_v12, %v2833_v32 }
0x1567   :  { %v7950_v16 = vpack.c.bf16 %v2842_v6, %v2842_v6 }
0x1569   :  { %5610 = vst.msk [vmem:[%s9054_s24 + $0x50] sm:$0xf] %vm380_vm6, %v7950_v16  ;;  %v3383_v40 = vunpack.c.l.b16 %v7950_v16  ;;  %v9104_v37 = vunpack.c.l.bf16 %v7950_v16 }
0x156a   :  { %5618 = vst.msk [vmem:[%s9054_s24 + $0x70] sm:$0xf] %vm380_vm6, %v7950_v16 }
0x156b   :  { %v7964_v57 = vpack.c.b16 %v3384_v19, %v3383_v40  ;;  %v2875_v40 = vunpack.c.l.bf16 %v7889_v63  ;;  %v9151_v19 = vld [vmem:[#allocation12_spill] sm:$0xff] }
0x156c   :  { %v9152_v11 = vunpack.c.l.bf16 %v9151_v19  ;;  %v9153_v38 = vunpack.c.h.bf16 %v9151_v19 }
0x156e   :  { %v3263_v50 = vadd.f32 %v9153_v38, %v2875_v40 }
0x1585   :  { %v3227_v53 = vpop.f32.mrf.mxu3 }
0x1586   :  { %v3228_v47 = vadd.f32 %v3227_v53, %v3203_v1  ;;  %v9103_v53 = vunpack.c.l.bf16 %v7917_v44 }
0x1588   :  { %v7980_v56 = vadd.f32 %v3228_v47, %v9148_v2  ;;  %2719 = vadd.xlane.f32.xlu0 %v2718_v27  ;;  %v9155_v47 = vunpack.c.l.bf16 %v9154_v9  ;;  %v9156_v2 = vunpack.c.h.bf16 %v9154_v9 }
0x158a   :  { %v3232_v51 = vsel %vm416_vm0, %v7980_v56, 0.0  ;;  %v3264_v27 = vadd.f32 %v9155_v47, %v9104_v37 }
0x158b   :  { %3233 = vadd.xlane.f32.xlu1 %v3232_v51  ;;  %v3265_v51 = vadd.f32 %v9156_v2, %v9103_v53 }
0x158d   :  { %v3229_v13 = vpop.f32.mrf.mxu3 }
0x1593   :  { %2722 = vadd.xlane.f32.xlu1 %v2721_v31 }
0x15bd   :  { %v2708_v36 = vpop.xlane.xlu0 %2707 }
0x15be   :  { %v2726_v33 = vmul.f32 %v2708_v36, %v6888_v8 }
0x15c0   :  { %v2734_v10 = vadd.f32 1e-05, %v2726_v33 }
0x15c2   :  { %6101 = vrsqrt.f32 %v2734_v10  ;;  %vm2766_vm13 = vweird.f32 %v2734_v10 }
0x15c8   :  { %v6102_v3 = vpop.eup %6101 }
0x15c9   :  { %v2761_v54 = vmul.f32 %v6102_v3, %v2734_v10  ;;  %vm2767_vm11 = vweird.f32 %v6102_v3 }
0x15ca   :  { %vm2768_vm14 = vmor %vm2766_vm13, %vm2767_vm11 }
0x15cb   :  { %v2762_v21 = vmul.f32 %v6102_v3, %v2761_v54 }
0x15cd   :  { %v2763_v34 = vmul.f32 0.5, %v2762_v21 }
0x15cf   :  { %v2764_v49 = vsub.f32 1.5, %v2763_v34 }
0x15d0   :  { %v3315_v7 = vpop.permute.xlu0 %3314 }
0x15d1   :  { %v2765_v43 = vmul.f32 %v6102_v3, %v2764_v49  ;;  %3340 = vmatpush.bf16.msra.mxu1 %v3315_v7 }
0x15d3   :  { %v2769_v29 = vsel %vm2768_vm14, %v6102_v3, %v2765_v43 }
0x15d4   :  { %v2822_v55 = vmul.f32 %v2769_v29, %v7931_v5  ;;  %v3281_v5 = vunpack.c.l.bf16 %v5663_v35 }
0x15d5   :  { %3341 = vmatpush.bf16.msra.mxu1 %v3313_v28 }
0x15d6   :  { %v2831_v48 = vmul.f32 %v7826_v17, %v2822_v55  ;;  %v8013_v60 = vperm.slane %v3281_v5, 0 }
0x15d8   :  { %v2840_v26 = vadd.f32 %v7829_v12, %v2831_v48  ;;  %5673 = vmatmul.msk.bf16.vlgmr.msra.gmra.mxu1 %vm416_vm0, %v8003_v22  ;;  %3319 = vrot.lane.b32.xlu2 %v8013_v60, %s6381_s4 }
0x15da   :  { %v8011_v24 = vpack.c.bf16 %v2840_v26, %v2840_v26 }
0x15dc   :  { %5608 = vst.msk [vmem:[%s9054_s24 + $0x48] sm:$0xf] %vm380_vm6, %v8011_v24  ;;  %v3381_v39 = vunpack.c.l.b16 %v8011_v24  ;;  %v2874_v32 = vunpack.c.l.bf16 %v8011_v24 }
0x15dd   :  { %5616 = vst.msk [vmem:[%s9054_s24 + $0x68] sm:$0xf] %vm380_vm6, %v8011_v24 }
0x15de   :  { %v8030_v6 = vpack.c.b16 %v3382_v52, %v3381_v39  ;;  %v3262_v15 = vadd.f32 %v9152_v11, %v2874_v32 }
0x15e0   :  { %3391 = vrot.lane.b32.xlu2 %v7939_v46, %s6383_s5  ;;  %v8043_v1 = vpack.c.bf16 %v3263_v50, %v3262_v15  ;;  %v8057_v46 = vpack.c.bf16 %v3265_v51, %v3264_v27 }
0x15e8   :  { %5674 = vmatmul.msk.bf16.gmra.mxu1 %vm416_vm0, %v8043_v1 }
0x15f8   :  { %5675 = vmatmul.msk.bf16.gmra.mxu1 %vm416_vm0, %v8057_v46 }
0x15fb   :  { %v2720_v13 = vpop.xlane.xlu0 %2719 }
0x15fc   :  { %v2730_v25 = vmul.f32 %v2720_v13, %v6888_v8 }
0x15fe   :  { %v2738_v31 = vadd.f32 1e-05, %v2730_v25  ;;  %v3234_v36 = vpop.xlane.xlu1 %3233 }
0x15ff   :  { %v3235_v33 = vmul.f32 %v3234_v36, %v6888_v8 }
0x1600   :  { %6103 = vrsqrt.f32 %v2738_v31  ;;  %vm2806_vm7 = vweird.f32 %v2738_v31 }
0x1601   :  { %v8064_v10 = vsub.f32 %v7980_v56, %v3235_v33 }
0x1603   :  { %v3237_v3 = vmul.f32 %v8064_v10, %v8064_v10 }
0x1605   :  { %v3238_v54 = vsel %vm416_vm0, %v3237_v3, 0.0 }
0x1606   :  { %v6104_v21 = vpop.eup %6103  ;;  %3239 = vadd.xlane.f32.xlu1 %v3238_v54  ;;  %v2723_v34 = vpop.xlane.xlu1 %2722 }
0x1607   :  { %v2801_v49 = vmul.f32 %v6104_v21, %v2738_v31  ;;  %v2731_v7 = vmul.f32 %v2723_v34, %v6888_v8  ;;  %vm2807_vm15 = vweird.f32 %v6104_v21 }
0x1608   :  { %vm2808_vm5 = vmor %vm2806_vm7, %vm2807_vm15 }
0x1609   :  { %v2802_v43 = vmul.f32 %v6104_v21, %v2801_v49  ;;  %v2739_v28 = vadd.f32 1e-05, %v2731_v7 }
0x160b   :  { %v2803_v61 = vmul.f32 0.5, %v2802_v43  ;;  %6105 = vrsqrt.f32 %v2739_v28  ;;  %vm2816_vm10 = vweird.f32 %v2739_v28 }
0x160d   :  { %v2804_v23 = vsub.f32 1.5, %v2803_v61 }
0x160f   :  { %v2805_v29 = vmul.f32 %v6104_v21, %v2804_v23 }
0x1611   :  { %v6106_v56 = vpop.eup %6105  ;;  %v2809_v55 = vsel %vm2808_vm5, %v6104_v21, %v2805_v29 }
0x1612   :  { %v2826_v42 = vmul.f32 %v2809_v55, %v7971_v59  ;;  %v2811_v45 = vmul.f32 %v6106_v56, %v2739_v28  ;;  %vm2817_vm9 = vweird.f32 %v6106_v56 }
0x1613   :  { %vm2818_vm11 = vmor %vm2816_vm10, %vm2817_vm9 }
0x1614   :  { %v2835_v48 = vmul.f32 %v7826_v17, %v2826_v42  ;;  %v2812_v35 = vmul.f32 %v6106_v56, %v2811_v45  ;;  %v3256_v42 = vperm.slane %v6932_v20, 4 }
0x1616   :  { %v2844_v26 = vadd.f32 %v7829_v12, %v2835_v48  ;;  %v2813_v5 = vmul.f32 0.5, %v2812_v35 }
0x1618   :  { %v8073_v39 = vpack.c.bf16 %v2844_v26, %v2844_v26  ;;  %v2814_v52 = vsub.f32 1.5, %v2813_v5 }
0x161a   :  { %5612 = vst.msk [vmem:[%s9054_s24 + $0x58] sm:$0xf] %vm380_vm6, %v8073_v39  ;;  %v2815_v19 = vmul.f32 %v6106_v56, %v2814_v52  ;;  %v9102_v9 = vunpack.c.l.bf16 %v8073_v39 }
0x161b   :  { %5620 = vst.msk [vmem:[%s9054_s24 + $0x78] sm:$0xf] %vm380_vm6, %v8073_v39 }
0x161c   :  { %v2819_v59 = vsel %vm2818_vm11, %v6106_v56, %v2815_v19  ;;  %v3254_v56 = vperm.slane %v6929_v14, 4 }
0x161d   :  { %v2827_v11 = vmul.f32 %v2819_v59, %v7983_v58  ;;  %v3385_v58 = vunpack.c.l.b16 %v8073_v39 }
0x161f   :  { %v2836_v15 = vmul.f32 %v7826_v17, %v2827_v11  ;;  %3393 = vrot.lane.b32.xlu1 %v7913_v30, %s6383_s5  ;;  %v9160_v11 = vld [vmem:[#allocation15_spill] sm:$0xff] }
0x1621   :  { %v2845_v38 = vadd.f32 %v7829_v12, %v2836_v15  ;;  %v9157_v12 = vld [vmem:[#allocation14_spill] sm:$0xff] }
0x1622   :  { %v9158_v30 = vunpack.c.l.bf16 %v9157_v12  ;;  %v9159_v2 = vunpack.c.h.bf16 %v9157_v12 }
0x1623   :  { %v8090_v50 = vpack.c.bf16 %v2845_v38, %v2845_v38 }
0x1624   :  { %v3266_v27 = vadd.f32 %v9158_v30, %v9102_v9 }
0x1625   :  { %5613 = vst.msk [vmem:[%s9054_s24 + $0x5c] sm:$0xf] %vm380_vm6, %v8090_v50  ;;  %v9101_v47 = vunpack.c.l.bf16 %v8090_v50  ;;  %v3386_v17 = vunpack.c.l.b16 %v8090_v50 }
0x1626   :  { %5621 = vst.msk [vmem:[%s9054_s24 + $0x7c] sm:$0xf] %vm380_vm6, %v8090_v50 }
0x1627   :  { %v3267_v51 = vadd.f32 %v9159_v2, %v9101_v47  ;;  %3397 = vrot.lane.b32.xlu1 %v8013_v60, %s6383_s5  ;;  %v8116_v13 = vpack.c.b16 %v3386_v17, %v3385_v58 }
0x1629   :  { %v8118_v25 = vpack.c.bf16 %v3267_v51, %v3266_v27 }
0x162b   :  { %5676 = vmatmul.msk.bf16.gmra.mxu1 %vm416_vm0, %v8118_v25 }
0x1632   :  { %v3320_v28 = vpop.permute.xlu2 %3319 }
0x163a   :  { %v3392_v26 = vpop.permute.xlu2 %3391 }
0x1655   :  { %v8122_v31 = vpop.f32.mrf.mxu1 }
0x165d   :  { %v3345_v36 = vpop.f32.mrf.mxu1 }
0x1665   :  { %v3348_v21 = vpop.f32.mrf.mxu1 }
0x166d   :  { %v3350_v23 = vpop.f32.mrf.mxu1 }
0x1675   :  { %v3353_v52 = vpop.f32.mrf.mxu1 }
0x1676   :  { %v3354_v51 = vadd.f32 %v3353_v52, %v3320_v28 }
0x1679   :  { %v3240_v33 = vpop.xlane.xlu1 %3239 }
0x167a   :  { %v3241_v3 = vmul.f32 %v3240_v33, %v6888_v8 }
0x167c   :  { %v3242_v54 = vadd.f32 1e-05, %v3241_v3 }
0x167e   :  { %6107 = vrsqrt.f32 %v3242_v54  ;;  %vm3249_vm14 = vweird.f32 %v3242_v54 }
0x1684   :  { %v6108_v34 = vpop.eup %6107 }
0x1685   :  { %v3244_v49 = vmul.f32 %v6108_v34, %v3242_v54  ;;  %vm3250_vm13 = vweird.f32 %v6108_v34 }
0x1686   :  { %vm3251_vm15 = vmor %vm3249_vm14, %vm3250_vm13 }
0x1687   :  { %v3245_v7 = vmul.f32 %v6108_v34, %v3244_v49 }
0x1689   :  { %v3246_v43 = vmul.f32 0.5, %v3245_v7  ;;  %v3351_v7 = vadd.f32 %v3350_v23, %v3320_v28  ;;  %v3344_v23 = vadd.f32 %v8122_v31, %v3320_v28 }
0x168b   :  { %v3247_v61 = vsub.f32 1.5, %v3246_v43 }
0x168d   :  { %v3248_v29 = vmul.f32 %v6108_v34, %v3247_v61  ;;  %v3349_v61 = vadd.f32 %v3348_v21, %v3320_v28  ;;  %v3363_v21 = vpack.c.bf16 %v3344_v23, %v3344_v23 }
0x168f   :  { %v3252_v55 = vsel %vm3251_vm15, %v6108_v34, %v3248_v29  ;;  %v3367_v34 = vpack.c.bf16 %v3354_v51, %v3354_v51 }
0x1690   :  { %v3253_v45 = vmul.f32 %v3252_v55, %v8064_v10  ;;  %v3355_v10 = vpop.f32.mrf.mxu1 }
0x1691   :  { %v3394_v48 = vpop.permute.xlu1 %3393  ;;  %v3356_v30 = vadd.f32 %v3355_v10, %v3320_v28  ;;  %v3466_v29 = vunpack.c.l.b16 %v3367_v34 }
0x1692   :  { %v3255_v35 = vmul.f32 %v3254_v56, %v3253_v45  ;;  %3418 = vmatpush.bf16.msrb.mxu2 %v3394_v48  ;;  %v3366_v56 = vpack.c.bf16 %v3351_v7, %v3351_v7  ;;  %v3346_v45 = vadd.f32 %v3345_v36, %v3320_v28 }
0x1693   :  { %v3368_v3 = vpack.c.bf16 %v3356_v30, %v3356_v30 }
0x1694   :  { %v3257_v5 = vadd.f32 %v3256_v42, %v3255_v35  ;;  %v3365_v42 = vpack.c.bf16 %v3349_v61, %v3349_v61  ;;  %v3465_v48 = vunpack.c.l.b16 %v3366_v56 }
0x1695   :  { %v3467_v43 = vunpack.c.l.b16 %v3368_v3 }
0x1696   :  { %v3258_v19 = vpack.c.bf16 %v3257_v5, %v3257_v5  ;;  %3419 = vmatpush.bf16.msrb.mxu2 %v3392_v26  ;;  %v3464_v35 = vunpack.c.l.b16 %v3365_v42  ;;  %v3364_v26 = vpack.c.bf16 %v3346_v45, %v3346_v45 }
0x1697   :  { %v8145_v55 = vpack.c.b16 %v3467_v43, %v3466_v29 }
0x1698   :  { %v8128_v59 = vunpack.c.l.bf16 %v3258_v19  ;;  %v8152_v5 = vpack.c.b16 %v3465_v48, %v3464_v35  ;;  %v3463_v52 = vunpack.c.l.b16 %v3364_v26  ;;  %v3462_v19 = vunpack.c.l.b16 %v3363_v21 }
0x1699   :  { %5677 = vmatmul.msk.bf16.vlgmr.msrb.gmra.mxu2 %vm416_vm0, %v7883_v4 }
0x169a   :  { %v3272_v15 = vadd.f32 %v8128_v59, %v9160_v11  ;;  %v3481_v36 = vsel %vm972_vm8, %v8152_v5, 0 }
0x169c   :  { %v3273_v38 = vpack.c.bf16 %v3272_v15, %v3272_v15  ;;  %v8160_v15 = vpack.c.b16 %v3463_v52, %v3462_v19 }
0x169e   :  { %5672 = vmatmul.msk.bf16.vlgmr.msrb.gmra.mxu0 %vm416_vm0, %v3273_v38  ;;  %v3478_v31 = vsel %vm972_vm8, %v8160_v15, 0 }
0x16a8   :  { %v3358_v58 = vpop.f32.mrf.mxu1 }
0x16a9   :  { %5678 = vmatmul.msk.bf16.gmra.mxu2 %vm416_vm0, %v8030_v6  ;;  %v3359_v17 = vadd.f32 %v3358_v58, %v3320_v28 }
0x16ab   :  { %v3369_v27 = vpack.c.bf16 %v3359_v17, %v3359_v17 }
0x16ad   :  { %v3468_v4 = vunpack.c.l.b16 %v3369_v27 }
0x16b0   :  { %v3360_v12 = vpop.f32.mrf.mxu1 }
0x16b1   :  { %v3361_v2 = vadd.f32 %v3360_v12, %v3320_v28 }
0x16b3   :  { %v3370_v33 = vpack.c.bf16 %v3361_v2, %v3361_v2 }
0x16b5   :  { %v3469_v54 = vunpack.c.l.b16 %v3370_v33 }
0x16b7   :  { %v8137_v49 = vpack.c.b16 %v3469_v54, %v3468_v4 }
0x16b9   :  { %5679 = vmatmul.msk.bf16.gmra.mxu2 %vm416_vm0, %v7964_v57  ;;  %3567 = vrot.lane.b32.xlu0 %v8137_v49, %s6395_s29  ;;  %v3487_v6 = vsel %vm972_vm8, %v8137_v49, 0  ;;  %v3484_v57 = vsel %vm972_vm8, %v8145_v55, 0 }
0x16ba   :  { %3493 = vmatpush.bf16.xpose.msrb.mxu3 %v3487_v6  ;;  %v3398_v6 = vpop.permute.xlu1 %3397 }
0x16c1   :  { %3565 = vrot.lane.b32.xlu0 %v8145_v55, %s6395_s29 }
0x16c2   :  { %3494 = vmatpush.bf16.xpose.msrb.mxu3 %v3484_v57 }
0x16c9   :  { %5680 = vmatmul.msk.bf16.gmra.mxu2 %vm416_vm0, %v8116_v13  ;;  %3563 = vrot.lane.b32.xlu0 %v8152_v5, %s6395_s29 }
0x16ca   :  { %3495 = vmatpush.bf16.xpose.msrb.mxu3 %v3481_v36 }
0x16d1   :  { %3727 = vrot.lane.b32.xlu0 %v8137_v49, %s6396_s6 }
0x16d2   :  { %3496 = vmatpush.bf16.xpose.msrb.mxu3 %v3478_v31 }
0x16d9   :  { %3561 = vrot.lane.b32.xlu0 %v8160_v15, %s6395_s29 }
0x16e1   :  { %3725 = vrot.lane.b32.xlu0 %v8145_v55, %s6396_s6 }
0x16e9   :  { %3643 = vrot.lane.b32.xlu0 %v8152_v5, %s6382_s1 }
0x16f1   :  { %3641 = vrot.lane.b32.xlu0 %v8160_v15, %s6382_s1 }
0x171b   :  { %v3307_v13 = vpop.f32.mrf.mxu0 }
0x171c   :  { %v3308_v28 = vadd.f32 %v3307_v13, %v8013_v60  ;;  %v3421_v38 = vpop.f32.mrf.mxu2 }
0x171e   :  { %v3311_v10 = vpack.c.bf16 %v3308_v28, %v3308_v28 }
0x1720   :  { %v3557_v58 = vunpack.c.l.b16 %v3311_v10  ;;  %5684 = vmatmul.msk.bf16.vlgmr.msrb.gmra.mxu3 %vm972_vm8, %v3311_v10 }
0x1722   :  { %v8176_v17 = vpack.c.b16 %v3557_v58, %v3557_v58 }
0x1723   :  { %v3309_v12 = vpop.f32.mrf.mxu0 }
0x1724   :  { %v3423_v30 = vpop.f32.mrf.mxu2  ;;  %3719 = vrot.lane.b32.xlu0 %v8176_v17, %s6396_s6  ;;  %v3422_v12 = vadd.f32 %v3421_v38, %v3398_v6 }
0x1725   :  { %v3424_v13 = vadd.f32 %v3423_v30, %v3398_v6 }
0x172b   :  { %v3568_v27 = vpop.permute.xlu0 %3567 }
0x172c   :  { %v3426_v2 = vpop.f32.mrf.mxu2  ;;  %v3582_v38 = vsel %vm972_vm8, %v3568_v27, 0 }
0x172d   :  { %v3427_v52 = vadd.f32 %v3426_v2, %v3398_v6 }
0x1733   :  { %v3566_v51 = vpop.permute.xlu0 %3565 }
0x1734   :  { %v3428_v33 = vpop.f32.mrf.mxu2 }
0x1735   :  { %v3429_v35 = vadd.f32 %v3428_v33, %v3398_v6  ;;  %v3441_v33 = vpack.c.bf16 %v3422_v12, %v3422_v12 }
0x1737   :  { %v3444_v28 = vpack.c.bf16 %v3429_v35, %v3429_v35  ;;  %v3523_v30 = vunpack.c.l.b16 %v3441_v33 }
0x173b   :  { %v3564_v3 = vpop.permute.xlu0 %3563 }
0x173c   :  { %v3431_v4 = vpop.f32.mrf.mxu2 }
0x173d   :  { %v3432_v48 = vadd.f32 %v3431_v4, %v3398_v6  ;;  %v3442_v4 = vpack.c.bf16 %v3424_v13, %v3424_v13 }
0x173f   :  { %v3445_v36 = vpack.c.bf16 %v3432_v48, %v3432_v48  ;;  %v3524_v2 = vunpack.c.l.b16 %v3442_v4 }
0x1743   :  { %v3728_v54 = vpop.permute.xlu0 %3727 }
0x1744   :  { %v3742_v60 = vsel %vm972_vm8, %v3728_v54, 0  ;;  %v3433_v34 = vpop.f32.mrf.mxu2  ;;  %v3443_v54 = vpack.c.bf16 %v3427_v52, %v3427_v52 }
0x1745   :  { %3748 = vmatpush.bf16.xpose.msra.mxu2 %v3742_v60  ;;  %v3434_v29 = vadd.f32 %v3433_v34, %v3398_v6  ;;  %v3527_v60 = vunpack.c.l.b16 %v3445_v36  ;;  %v3526_v34 = vunpack.c.l.b16 %v3444_v28 }
0x1747   :  { %v3446_v26 = vpack.c.bf16 %v3434_v29, %v3434_v29 }
0x1749   :  { %v3528_v10 = vunpack.c.l.b16 %v3446_v26 }
0x174b   :  { %v3562_v7 = vpop.permute.xlu0 %3561 }
0x174c   :  { %v3436_v43 = vpop.f32.mrf.mxu2 }
0x174d   :  { %v3437_v61 = vadd.f32 %v3436_v43, %v3398_v6  ;;  %v8185_v43 = vpack.c.b16 %v3528_v10, %v3527_v60  ;;  %v8222_v10 = vld [vmem:[%s9044_s14 + $0x10] sm:$0xff] }
0x174f   :  { %v3447_v57 = vpack.c.bf16 %v3437_v61, %v3437_v61  ;;  %v3525_v61 = vunpack.c.l.b16 %v3443_v54 }
0x1751   :  { %v3529_v19 = vunpack.c.l.b16 %v3447_v57  ;;  %v8188_v29 = vpack.c.b16 %v3526_v34, %v3525_v61 }
0x1753   :  { %v3726_v56 = vpop.permute.xlu0 %3725 }
0x1754   :  { %v3438_v42 = vpop.f32.mrf.mxu2  ;;  %v3739_v45 = vsel %vm972_vm8, %v3726_v56, 0  ;;  %v8191_v56 = vpack.c.b16 %v3524_v2, %v3523_v30 }
0x1755   :  { %v3439_v23 = vadd.f32 %v3438_v42, %v3398_v6  ;;  %3749 = vmatpush.bf16.xpose.msra.mxu2 %v3739_v45  ;;  %v3579_v6 = vsel %vm972_vm8, %v3566_v51, 0  ;;  %v3576_v42 = vsel %vm972_vm8, %v3564_v3, 0  ;;  %v3573_v45 = vsel %vm972_vm8, %v3562_v7, 0 }
0x1757   :  { %v3448_v21 = vpack.c.bf16 %v3439_v23, %v3439_v23 }
0x1759   :  { %v3530_v31 = vunpack.c.l.b16 %v3448_v21 }
0x175b   :  { %v8182_v58 = vpack.c.b16 %v3530_v31, %v3529_v19  ;;  %v8215_v19 = vld [vmem:[%s9044_s14 + $0x18] sm:$0xff] }
0x175d   :  { %3546 = vmatpush.bf16.msra.mxu0 %v8182_v58 }
0x1761   :  { %3547 = vmatpush.bf16.msra.mxu0 %v8185_v43 }
0x1765   :  { %3548 = vmatpush.bf16.msra.mxu0 %v8188_v29 }
0x1769   :  { %3549 = vmatpush.bf16.msra.mxu0 %v8191_v56 }
0x176d   :  { %3588 = vmatpush.bf16.xpose.msrb.mxu0 %v3582_v38 }
0x1775   :  { %3589 = vmatpush.bf16.xpose.msrb.mxu0 %v3579_v6 }
0x177d   :  { %3590 = vmatpush.bf16.xpose.msrb.mxu0 %v3576_v42  ;;  %v5741_v42 = vld [vmem:[%s9131_s2 + $0x1] sm:$0x1] }
0x1785   :  { %3591 = vmatpush.bf16.xpose.msrb.mxu0 %v3573_v45  ;;  %v4003_v45 = vunpack.c.l.bf16 %v5741_v42 }
0x17a3   :  { %v3498_v48 = vpop.f32.mrf.mxu3 }
0x17a4   :  { %v3502_v57 = vmul.f32 0.5, %v3498_v48 }
0x17a6   :  { %v3503_v23 = vsel %vm278_vm3, %v3502_v57, -inf }
0x17a7   :  { %3504 = vmax.xlane.f32.xlu2 %v3503_v23 }
0x17ab   :  { %v3500_v35 = vpop.f32.mrf.mxu3 }
0x17bf   :  { %3647 = vrot.lane.b32.xlu2 %v8137_v49, %s6382_s1 }
0x17c7   :  { %3559 = vrot.lane.b32.xlu2 %v8176_v17, %s6395_s29 }
0x17cf   :  { %3723 = vrot.lane.b32.xlu2 %v8152_v5, %s6396_s6  ;;  %v3644_v5 = vpop.permute.xlu0 %3643 }
0x17d7   :  { %3721 = vrot.lane.b32.xlu2 %v8160_v15, %s6396_s6  ;;  %v3642_v31 = vpop.permute.xlu0 %3641 }
0x17df   :  { %3616 = vrot.lane.b32.xlu2 %v8182_v58, %s6395_s29  ;;  %v3720_v12 = vpop.permute.xlu0 %3719 }
0x181a   :  { %v3505_v27 = vpop.xlane.xlu2 %3504 }
0x181b   :  { %v3506_v51 = vsub.f32 %v3502_v57, %v3505_v27  ;;  %v8259_v57 = vperm.slane %v4003_v45, 0 }
0x181d   :  { %v3507_v3 = vmul.f32 1.442695, %v3506_v51 }
0x181f   :  { %6109 = vpow2.f32 %v3507_v3 }
0x1822   :  { %v3648_v7 = vpop.permute.xlu2 %3647 }
0x1823   :  { %v3662_v26 = vsel %vm972_vm8, %v3648_v7, 0 }
0x1824   :  { %3668 = vmatpush.bf16.xpose.msrb.mxu1 %v3662_v26 }
0x1825   :  { %v6110_v49 = vpop.eup %6109 }
0x1826   :  { %v3509_v21 = vsel %vm278_vm3, %v6110_v49, 0.0 }
0x1827   :  { %3510 = vadd.xlane.f32.xlu1 %v3509_v21 }
0x182a   :  { %v3560_v52 = vpop.permute.xlu2 %3559 }
0x1832   :  { %v3724_v36 = vpop.permute.xlu2 %3723 }
0x1833   :  { %v3736_v15 = vsel %vm972_vm8, %v3724_v36, 0 }
0x1834   :  { %3750 = vmatpush.bf16.xpose.msra.mxu2 %v3736_v15 }
0x183a   :  { %v3722_v13 = vpop.permute.xlu2 %3721 }
0x183b   :  { %v3733_v28 = vsel %vm972_vm8, %v3722_v13, 0 }
0x183c   :  { %3751 = vmatpush.bf16.xpose.msra.mxu2 %v3733_v28 }
0x1840   :  { %3645 = vrot.lane.b32.xlu1 %v8145_v55, %s6382_s1 }
0x1842   :  { %v3617_v54 = vpop.permute.xlu2 %3616 }
0x1843   :  { %3629 = vmatpush.bf16.msra.mxu3 %v3617_v54  ;;  %5690 = vmatmul.msk.bf16.vlgmr.msra.gmra.mxu2 %vm972_vm8, %v3720_v12 }
0x1844   :  { %4023 = vmatpush.bf16.msrb.mxu2 %v8215_v19 }
0x1848   :  { %4024 = vmatpush.bf16.msrb.mxu2 %v8222_v10  ;;  %3639 = vrot.lane.b32.xlu1 %v8176_v17, %s6382_s1 }
0x1853   :  { %5750 = vmatmul.msk.bf16.vlgmr.msrb.gmra.mxu2 %vm416_vm0, %v8003_v22  ;;  %v3656_v22 = vsel %vm972_vm8, %v3644_v5, 0 }
0x1863   :  { %5751 = vmatmul.msk.bf16.gmra.mxu2 %vm416_vm0, %v8043_v1  ;;  %v3653_v1 = vsel %vm972_vm8, %v3642_v31, 0 }
0x1873   :  { %5752 = vmatmul.msk.bf16.gmra.mxu2 %vm416_vm0, %v8057_v46 }
0x1883   :  { %5753 = vmatmul.msk.bf16.gmra.mxu2 %vm416_vm0, %v8118_v25 }
0x189a   :  { %v3511_v55 = vpop.xlane.xlu1 %3510 }
0x189b   :  { %6111 = vrcp.f32 %v3511_v55 }
0x18a1   :  { %v6112_v60 = vpop.eup %6111 }
0x18a2   :  { %v3513_v4 = vmul.f32 %v6112_v60, %v6110_v49 }
0x18a4   :  { %v3514_v34 = vpack.c.bf16 %v3513_v4, %v3513_v4 }
0x18a6   :  { %5685 = vmatmul.msk.bf16.vlgmr.msra.gmra.mxu0 %vm278_vm3, %v3514_v34 }
0x18b2   :  { %v3646_v17 = vpop.permute.xlu1 %3645 }
0x18b3   :  { %v3659_v33 = vsel %vm972_vm8, %v3646_v17, 0 }
0x18b4   :  { %3669 = vmatpush.bf16.xpose.msrb.mxu1 %v3659_v33 }
0x18b6   :  { %5686 = vmatmul.msk.bf16.vlgmr.msrb.gmra.mxu0 %vm972_vm8, %v3560_v52 }
0x18ba   :  { %v3640_v2 = vpop.permute.xlu1 %3639 }
0x18bc   :  { %3670 = vmatpush.bf16.xpose.msrb.mxu1 %v3656_v22 }
0x18c4   :  { %3671 = vmatpush.bf16.xpose.msrb.mxu1 %v3653_v1 }
0x18c6   :  { %v3753_v46 = vpop.f32.mrf.mxu2 }
0x18c7   :  { %v8243_v25 = vmul.f32 0.5, %v3753_v46 }
0x18c9   :  { %v3758_v61 = vsel %vm278_vm3, %v8243_v25, -inf }
0x18ca   :  { %3759 = vmax.xlane.f32.xlu0 %v3758_v61 }
0x18cb   :  { %5688 = vmatmul.msk.bf16.vlgmr.msrb.gmra.mxu1 %vm972_vm8, %v3640_v2 }
0x18ce   :  { %v3755_v30 = vpop.f32.mrf.mxu2 }
0x18d6   :  { %v8248_v38 = vpop.f32.mrf.mxu2 }
0x18de   :  { %3614 = vrot.lane.b32.xlu0 %v8185_v43, %s6395_s29  ;;  %v8252_v6 = vpop.f32.mrf.mxu2 }
0x18e6   :  { %3696 = vrot.lane.b32.xlu0 %v8182_v58, %s6382_s1  ;;  %v4031_v48 = vpop.f32.mrf.mxu2 }
0x18e7   :  { %v4032_v23 = vadd.f32 %v4031_v48, %v8259_v57 }
0x18e9   :  { %v4048_v27 = vpack.c.bf16 %v4032_v23, %v4032_v23 }
0x18eb   :  { %v4122_v7 = vunpack.c.l.b16 %v4048_v27 }
0x18ee   :  { %3694 = vrot.lane.b32.xlu0 %v8185_v43, %s6382_s1  ;;  %v4033_v35 = vpop.f32.mrf.mxu2 }
0x18ef   :  { %v4034_v51 = vadd.f32 %v4033_v35, %v8259_v57 }
0x18f1   :  { %v4049_v3 = vpack.c.bf16 %v4034_v51, %v4034_v51 }
0x18f3   :  { %v4123_v26 = vunpack.c.l.b16 %v4049_v3 }
0x18f5   :  { %v8265_v49 = vpack.c.b16 %v4123_v26, %v4122_v7 }
0x18f6   :  { %3692 = vrot.lane.b32.xlu0 %v8188_v29, %s6382_s1 }
0x18fe   :  { %3774 = vrot.lane.b32.xlu0 %v8185_v43, %s6396_s6 }
0x1906   :  { %3690 = vrot.lane.b32.xlu0 %v8191_v56, %s6382_s1 }
0x190e   :  { %3772 = vrot.lane.b32.xlu0 %v8188_v29, %s6396_s6 }
0x1923   :  { %v8275_v21 = vpop.f32.mrf.mxu0 }
0x192b   :  { %v3553_v52 = vpop.f32.mrf.mxu0 }
0x1933   :  { %v3593_v5 = vpop.f32.mrf.mxu0 }
0x1934   :  { %v3597_v36 = vmul.f32 0.5, %v3593_v5 }
0x1936   :  { %v3598_v15 = vsel %vm278_vm3, %v3597_v36, -inf }
0x1937   :  { %3599 = vmax.xlane.f32.xlu2 %v3598_v15 }
0x193b   :  { %v3595_v31 = vpop.f32.mrf.mxu0 }
0x193d   :  { %v3760_v13 = vpop.xlane.xlu0 %3759 }
0x193e   :  { %v3761_v35 = vsub.f32 %v8243_v25, %v3760_v13 }
0x1940   :  { %v3762_v51 = vmul.f32 1.442695, %v3761_v35 }
0x1948   :  { %v3673_v28 = vpop.f32.mrf.mxu1 }
0x1949   :  { %v3677_v12 = vmul.f32 0.5, %v3673_v28 }
0x194b   :  { %v3678_v43 = vsel %vm278_vm3, %v3677_v12, -inf }
0x194c   :  { %3679 = vmax.xlane.f32.xlu1 %v3678_v43 }
0x194f   :  { %3610 = vrot.lane.b32.xlu2 %v8191_v56, %s6395_s29 }
0x1950   :  { %v3675_v54 = vpop.f32.mrf.mxu1  ;;  %v3615_v55 = vpop.permute.xlu0 %3614 }
0x1951   :  { %3630 = vmatpush.bf16.msra.mxu3 %v3615_v55 }
0x1958   :  { %v3697_v1 = vpop.permute.xlu0 %3696 }
0x1960   :  { %v3695_v30 = vpop.permute.xlu0 %3694 }
0x1965   :  { %3612 = vrot.lane.b32.xlu1 %v8188_v29, %s6395_s29 }
0x1968   :  { %v3693_v29 = vpop.permute.xlu0 %3692 }
0x1970   :  { %v3775_v23 = vpop.permute.xlu0 %3774 }
0x1978   :  { %v3691_v27 = vpop.permute.xlu0 %3690 }
0x1980   :  { %v3773_v13 = vpop.permute.xlu0 %3772 }
0x19aa   :  { %v3600_v60 = vpop.xlane.xlu2 %3599 }
0x19ab   :  { %v3601_v4 = vsub.f32 %v3597_v36, %v3600_v60 }
0x19ad   :  { %v3602_v34 = vmul.f32 1.442695, %v3601_v4 }
0x19af   :  { %6113 = vpow2.f32 %v3602_v34 }
0x19b2   :  { %v3611_v48 = vpop.permute.xlu2 %3610 }
0x19b5   :  { %v6114_v17 = vpop.eup %6113 }
0x19b6   :  { %v3604_v33 = vsel %vm278_vm3, %v6114_v17, 0.0 }
0x19b7   :  { %3605 = vadd.xlane.f32.xlu1 %v3604_v33 }
0x19bf   :  { %v3680_v22 = vpop.xlane.xlu1 %3679 }
0x19c0   :  { %v3681_v46 = vsub.f32 %v3677_v12, %v3680_v22 }
0x19c2   :  { %v3682_v61 = vmul.f32 1.442695, %v3681_v46 }
0x19c4   :  { %6115 = vpow2.f32 %v3682_v61 }
0x19c5   :  { %6117 = vpow2.f32 %v3762_v51 }
0x19ca   :  { %v6116_v2 = vpop.eup %6115 }
0x19cb   :  { %v3684_v42 = vsel %vm278_vm3, %v6116_v2, 0.0  ;;  %v6118_v3 = vpop.eup %6117 }
0x19cc   :  { %3685 = vadd.xlane.f32.xlu2 %v3684_v42 }
0x19d0   :  { %3776 = vrot.lane.b32.xlu1 %v8182_v58, %s6396_s6  ;;  %v3764_v58 = vsel %vm278_vm3, %v6118_v3, 0.0 }
0x19d7   :  { %v3613_v45 = vpop.permute.xlu1 %3612 }
0x19d8   :  { %3631 = vmatpush.bf16.msra.mxu3 %v3613_v45 }
0x19dc   :  { %3632 = vmatpush.bf16.msra.mxu3 %v3611_v48 }
0x19e0   :  { %3709 = vmatpush.bf16.msrb.mxu3 %v3697_v1 }
0x19e4   :  { %3710 = vmatpush.bf16.msrb.mxu3 %v3695_v30  ;;  %3770 = vrot.lane.b32.xlu2 %v8191_v56, %s6396_s6 }
0x19e8   :  { %3711 = vmatpush.bf16.msrb.mxu3 %v3693_v29 }
0x19ec   :  { %3712 = vmatpush.bf16.msrb.mxu3 %v3691_v27  ;;  %v3555_v27 = vpack.c.bf16 %v8275_v21, %v8275_v21 }
0x19fa   :  { %3765 = vadd.xlane.f32.xlu1 %v3764_v58 }
0x1a2a   :  { %v3606_v7 = vpop.xlane.xlu1 %3605 }
0x1a2b   :  { %6119 = vrcp.f32 %v3606_v7 }
0x1a31   :  { %v6120_v26 = vpop.eup %6119 }
0x1a32   :  { %v3608_v52 = vmul.f32 %v6120_v26, %v6114_v17 }
0x1a34   :  { %v3609_v5 = vpack.c.bf16 %v3608_v52, %v3608_v52  ;;  %v5683_v52 = vld [vmem:[%s9043_s13 + $0x1] sm:$0x1] }
0x1a36   :  { %5687 = vmatmul.msk.bf16.vlgmr.msra.gmra.mxu3 %vm278_vm3, %v3609_v5  ;;  %v3821_v5 = vunpack.c.l.bf16 %v5683_v52 }
0x1a3f   :  { %v3686_v36 = vpop.xlane.xlu2 %3685 }
0x1a40   :  { %6121 = vrcp.f32 %v3686_v36  ;;  %v3822_v36 = vperm.slane %v3821_v5, 0 }
0x1a42   :  { %v3777_v56 = vpop.permute.xlu1 %3776 }
0x1a43   :  { %3789 = vmatpush.bf16.msra.mxu0 %v3777_v56 }
0x1a46   :  { %v6122_v25 = vpop.eup %6121 }
0x1a47   :  { %v3688_v15 = vmul.f32 %v6122_v25, %v6116_v2  ;;  %3790 = vmatpush.bf16.msra.mxu0 %v3775_v23  ;;  %v3771_v28 = vpop.permute.xlu2 %3770  ;;  %v5855_v23 = vld [vmem:[%s9042_s12 + $0x8] sm:$0xff] }
0x1a48   :  { %3838 = vmatpush.bf16.msra.mxu3 %v5855_v23  ;;  %v5861_v23 = vld [vmem:[%s9050_s20 + $0x38] sm:$0xff] }
0x1a49   :  { %v3689_v31 = vpack.c.bf16 %v3688_v15, %v3688_v15  ;;  %3956 = vmatpush.bf16.msra.mxu1 %v5861_v23 }
0x1a4b   :  { %5689 = vmatmul.msk.bf16.vlgmr.msrb.gmra.mxu3 %vm278_vm3, %v3689_v31  ;;  %3791 = vmatpush.bf16.msra.mxu0 %v3773_v13 }
0x1a4f   :  { %3792 = vmatpush.bf16.msra.mxu0 %v3771_v28 }
0x1a6d   :  { %v3766_v12 = vpop.xlane.xlu1 %3765 }
0x1a6e   :  { %6123 = vrcp.f32 %v3766_v12 }
0x1a74   :  { %v6124_v43 = vpop.eup %6123 }
0x1a75   :  { %v3768_v54 = vmul.f32 %v6124_v43, %v6118_v3 }
0x1a77   :  { %v3769_v55 = vpack.c.bf16 %v3768_v54, %v3768_v54 }
0x1a79   :  { %5691 = vmatmul.msk.bf16.vlgmr.msra.gmra.mxu0 %vm278_vm3, %v3769_v55  ;;  %v4036_v55 = vpop.f32.mrf.mxu2 }
0x1ab9   :  { %v3634_v60 = vpop.f32.mrf.mxu3 }
0x1aba   :  { %v3638_v4 = vpack.c.bf16 %v3634_v60, %v3634_v60  ;;  %v4029_v60 = vadd.f32 %v8252_v6, %v8259_v57 }
0x1abc   :  { %v3800_v34 = vunpack.c.l.b16 %v3638_v4  ;;  %v4047_v4 = vpack.c.bf16 %v4029_v60, %v4029_v60 }
0x1abe   :  { %v3801_v17 = vpack.c.b16 %v3800_v34, %v3800_v34  ;;  %v4038_v34 = vpop.f32.mrf.mxu2 }
0x1ac0   :  { %3802 = vrot.lane.b32.xlu0 %v3801_v17, %s9129_s26 }
0x1ac1   :  { %v3636_v33 = vpop.f32.mrf.mxu3 }
0x1ac2   :  { %v4121_v33 = vunpack.c.l.b16 %v4047_v4 }
0x1ace   :  { %v3714_v22 = vpop.f32.mrf.mxu3 }
0x1acf   :  { %v3718_v1 = vpack.c.bf16 %v3714_v22, %v3714_v22  ;;  %v4039_v22 = vadd.f32 %v4038_v34, %v8259_v57 }
0x1ad1   :  { %v3805_v46 = vunpack.c.l.b16 %v3718_v1 }
0x1ad3   :  { %v3806_v61 = vpack.c.b16 %v3805_v46, %v3805_v46  ;;  %v4037_v46 = vadd.f32 %v4036_v55, %v8259_v57  ;;  %v5701_v55 = vld [vmem:[%s9049_s19 + $0x1] sm:$0x1] }
0x1ad5   :  { %3807 = vrot.lane.b32.xlu0 %v3806_v61, %s9130_s0 }
0x1ad6   :  { %v3716_v2 = vpop.f32.mrf.mxu3 }
0x1ad7   :  { %v4051_v2 = vpack.c.bf16 %v4039_v22, %v4039_v22  ;;  %v5719_v22 = vld [vmem:[%s9051_s21 + $0x1] sm:$0x1] }
0x1af6   :  { %v3794_v30 = vpop.f32.mrf.mxu0 }
0x1af7   :  { %v3798_v42 = vpack.c.bf16 %v3794_v30, %v3794_v30  ;;  %v4050_v30 = vpack.c.bf16 %v4037_v46, %v4037_v46 }
0x1af9   :  { %v3810_v29 = vunpack.c.l.b16 %v3798_v42  ;;  %v4124_v6 = vunpack.c.l.b16 %v4050_v30 }
0x1afb   :  { %v3811_v45 = vpack.c.b16 %v3810_v29, %v3810_v29  ;;  %v5857_v29 = vld [vmem:[%s9048_s18 + $0x18] sm:$0xff] }
0x1afc   :  { %3903 = vmatpush.bf16.msrb.mxu0 %v5857_v29 }
0x1afd   :  { %3812 = vrot.lane.b32.xlu1 %v3811_v45, %s6397_s27  ;;  %v5856_v45 = vld [vmem:[%s9048_s18 + $0x10] sm:$0xff] }
0x1afe   :  { %v3796_v48 = vpop.f32.mrf.mxu0 }
0x1b00   :  { %3904 = vmatpush.bf16.msrb.mxu0 %v5856_v45 }
0x1b32   :  { %v3803_v35 = vpop.permute.xlu0 %3802 }
0x1b33   :  { %v3816_v3 = vsel %vm972_vm8, %v3555_v27, %v3803_v35  ;;  %v5860_v27 = vld [vmem:[%s9050_s20 + $0x30] sm:$0xff] }
0x1b34   :  { %3957 = vmatpush.bf16.msra.mxu1 %v5860_v27 }
0x1b47   :  { %v3808_v51 = vpop.permute.xlu0 %3807 }
0x1b48   :  { %v3818_v58 = vsel %vm444_vm1, %v3816_v3, %v3808_v51 }
0x1b6f   :  { %v3813_v7 = vpop.permute.xlu1 %3812 }
0x1b70   :  { %v3820_v26 = vsel %vm1318_vm12, %v3818_v58, %v3813_v7 }
0x1b71   :  { %5696 = vmatmul.msk.bf16.vlgmr.msra.gmra.mxu3 %vm692_vm4, %v3820_v26 }
0x1bf4   :  { %v3840_v56 = vpop.f32.mrf.mxu3 }
0x1bf5   :  { %v3841_v25 = vadd.f32 %v3840_v56, %v3822_v36  ;;  %v3867_v56 = vperm.slane %v6929_v14, 5 }
0x1bf7   :  { %v3844_v21 = vadd.f32 %v3841_v25, %v8128_v59  ;;  %v4027_v59 = vadd.f32 %v8248_v38, %v8259_v57  ;;  %v4125_v38 = vunpack.c.l.b16 %v4051_v2 }
0x1bf9   :  { %v3845_v15 = vsel %vm416_vm0, %v3844_v21, 0.0  ;;  %v4046_v17 = vpack.c.bf16 %v4027_v59, %v4027_v59  ;;  %v8327_v42 = vpack.c.b16 %v4125_v38, %v4124_v6 }
0x1bfa   :  { %3846 = vadd.xlane.f32.xlu0 %v3845_v15 }
0x1bfb   :  { %v4120_v1 = vunpack.c.l.b16 %v4046_v17 }
0x1bfc   :  { %v3842_v31 = vpop.f32.mrf.mxu3 }
0x1bfd   :  { %v8323_v61 = vpack.c.b16 %v4121_v33, %v4120_v1  ;;  %v3923_v1 = vunpack.c.l.bf16 %v5719_v22 }
0x1bff   :  { %v3924_v46 = vperm.slane %v3923_v1, 0 }
0x1c6d   :  { %v3847_v13 = vpop.xlane.xlu0 %3846 }
0x1c6e   :  { %v3848_v28 = vmul.f32 %v3847_v13, %v6888_v8 }
0x1c70   :  { %v3849_v12 = vsub.f32 %v3844_v21, %v3848_v28  ;;  %v3869_v21 = vperm.slane %v6932_v20, 5 }
0x1c72   :  { %v3850_v43 = vmul.f32 %v3849_v12, %v3849_v12 }
0x1c74   :  { %v3851_v54 = vsel %vm416_vm0, %v3850_v43, 0.0  ;;  %v5859_v43 = vld [vmem:[%s9050_s20 + $0x28] sm:$0xff] }
0x1c75   :  { %3852 = vadd.xlane.f32.xlu2 %v3851_v54  ;;  %3958 = vmatpush.bf16.msra.mxu1 %v5859_v43  ;;  %v5858_v54 = vld [vmem:[%s9050_s20 + $0x20] sm:$0xff] }
0x1c79   :  { %3959 = vmatpush.bf16.msra.mxu1 %v5858_v54 }
0x1c8d   :  { %4056 = vrot.lane.b32.xlu2 %v8215_v19, %s6381_s4 }
0x1c95   :  { %4081 = vrot.lane.b32.xlu2 %v8222_v10, %s6383_s5 }
0x1c9d   :  { %4328 = vrot.lane.b32.xlu2 %v8323_v61, %s6395_s29 }
0x1ca5   :  { %4332 = vrot.lane.b32.xlu2 %v8327_v42, %s6395_s29 }
0x1ce8   :  { %v3853_v48 = vpop.xlane.xlu2 %3852 }
0x1ce9   :  { %v3854_v35 = vmul.f32 %v3853_v48, %v6888_v8  ;;  %v4041_v48 = vpop.f32.mrf.mxu2 }
0x1cea   :  { %v4042_v27 = vadd.f32 %v4041_v48, %v8259_v57 }
0x1ceb   :  { %v3855_v51 = vadd.f32 1e-05, %v3854_v35 }
0x1ced   :  { %6125 = vrsqrt.f32 %v3855_v51  ;;  %vm3862_vm5 = vweird.f32 %v3855_v51 }
0x1cf0   :  { %v4057_v3 = vpop.permute.xlu2 %4056 }
0x1cf1   :  { %4073 = vmatpush.bf16.msrb.mxu3 %v4057_v3  ;;  %v4043_v23 = vpop.f32.mrf.mxu2  ;;  %v4052_v3 = vpack.c.bf16 %v4042_v27, %v4042_v27 }
0x1cf2   :  { %v4044_v35 = vadd.f32 %v4043_v23, %v8259_v57 }
0x1cf3   :  { %v6126_v58 = vpop.eup %6125 }
0x1cf4   :  { %v3857_v7 = vmul.f32 %v6126_v58, %v3855_v51  ;;  %vm3863_vm7 = vweird.f32 %v6126_v58  ;;  %v4053_v51 = vpack.c.bf16 %v4044_v35, %v4044_v35 }
0x1cf5   :  { %vm3864_vm9 = vmor %vm3862_vm5, %vm3863_vm7 }
0x1cf6   :  { %v3858_v26 = vmul.f32 %v6126_v58, %v3857_v7  ;;  %v4126_v7 = vunpack.c.l.b16 %v4052_v3 }
0x1cf8   :  { %v3859_v52 = vmul.f32 0.5, %v3858_v26  ;;  %v4082_v22 = vpop.permute.xlu2 %4081 }
0x1cfa   :  { %v3860_v5 = vsub.f32 1.5, %v3859_v52 }
0x1cfc   :  { %v3861_v36 = vmul.f32 %v6126_v58, %v3860_v5 }
0x1cfe   :  { %v3865_v25 = vsel %vm3864_vm9, %v6126_v58, %v3861_v36  ;;  %v4127_v58 = vunpack.c.l.b16 %v4053_v51 }
0x1cff   :  { %v3866_v15 = vmul.f32 %v3865_v25, %v3849_v12  ;;  %v3880_v12 = vunpack.c.l.bf16 %v5701_v55 }
0x1d00   :  { %v8365_v26 = vpack.c.b16 %v4127_v58, %v4126_v7 }
0x1d01   :  { %v3868_v31 = vmul.f32 %v3867_v56, %v3866_v15  ;;  %v3881_v60 = vperm.slane %v3880_v12, 0 }
0x1d03   :  { %v3870_v13 = vadd.f32 %v3869_v21, %v3868_v31 }
0x1d05   :  { %v3871_v28 = vpack.c.bf16 %v3870_v13, %v3870_v13 }
0x1d07   :  { %5710 = vmatmul.msk.bf16.vlgmr.msrb.gmra.mxu0 %vm416_vm0, %v3871_v28  ;;  %v3872_v30 = vunpack.c.l.bf16 %v3871_v28 }
0x1d84   :  { %v3906_v59 = vpop.f32.mrf.mxu0 }
0x1d85   :  { %v3907_v4 = vadd.f32 %v3906_v59, %v3881_v60 }
0x1d87   :  { %v3910_v34 = vmax.f32 %v3907_v4, 0.0 }
0x1d89   :  { %v3911_v17 = vpack.c.bf16 %v3910_v34, %v3910_v34 }
0x1d8b   :  { %5736 = vmatmul.msk.bf16.vlgmr.msra.gmra.mxu1 %vm278_vm3, %v3911_v17 }
0x1d8c   :  { %v3908_v33 = vpop.f32.mrf.mxu0 }
0x1e08   :  { %v3961_v2 = vpop.f32.mrf.mxu1 }
0x1e09   :  { %v3962_v38 = vadd.f32 %v3961_v2, %v3924_v46 }
0x1e0b   :  { %v3965_v6 = vadd.f32 %v3962_v38, %v3872_v30 }
0x1e0d   :  { %v3966_v29 = vsel %vm416_vm0, %v3965_v6, 0.0 }
0x1e0e   :  { %3967 = vadd.xlane.f32.xlu1 %v3966_v29 }
0x1e10   :  { %v3963_v45 = vpop.f32.mrf.mxu1 }
0x1e27   :  { %4061 = vrot.lane.b32.xlu1 %v8259_v57, %s6381_s4 }
0x1e2f   :  { %4334 = vrot.lane.b32.xlu1 %v8365_v26, %s6395_s29 }
0x1e37   :  { %4542 = vrot.lane.b32.xlu1 %v8323_v61, %s6382_s1 }
0x1e3f   :  { %4752 = vrot.lane.b32.xlu1 %v8265_v49, %s6396_s6 }
0x1e47   :  { %4548 = vrot.lane.b32.xlu1 %v8365_v26, %s6382_s1 }
0x1e4f   :  { %4087 = vrot.lane.b32.xlu1 %v8259_v57, %s6383_s5 }
0x1e81   :  { %v3968_v52 = vpop.xlane.xlu1 %3967 }
0x1e82   :  { %v3969_v5 = vmul.f32 %v3968_v52, %v6888_v8 }
0x1e84   :  { %v3970_v36 = vsub.f32 %v3965_v6, %v3969_v5 }
0x1e86   :  { %v3971_v56 = vmul.f32 %v3970_v36, %v3970_v36 }
0x1e88   :  { %v3972_v25 = vsel %vm416_vm0, %v3971_v56, 0.0 }
0x1e89   :  { %3973 = vadd.xlane.f32.xlu0 %v3972_v25 }
0x1e99   :  { %v4062_v30 = vpop.permute.xlu1 %4061 }
0x1e9d   :  { %4054 = vrot.lane.b32.xlu0 %v8222_v10, %s6381_s4  ;;  %v3988_v10 = vperm.slane %v6929_v14, 6 }
0x1ea1   :  { %v8389_v38 = vpop.permute.xlu1 %4334 }
0x1ea5   :  { %4083 = vrot.lane.b32.xlu0 %v8215_v19, %s6383_s5  ;;  %v3990_v19 = vperm.slane %v6932_v20, 6 }
0x1ea9   :  { %v4543_v6 = vpop.permute.xlu1 %4542 }
0x1eb1   :  { %v8391_v29 = vpop.permute.xlu1 %4752 }
0x1eb9   :  { %v8393_v45 = vpop.permute.xlu1 %4548 }
0x1ec1   :  { %v4088_v48 = vpop.permute.xlu1 %4087 }
0x1efc   :  { %v3974_v21 = vpop.xlane.xlu0 %3973 }
0x1efd   :  { %v3975_v15 = vmul.f32 %v3974_v21, %v6888_v8 }
0x1eff   :  { %v3976_v31 = vadd.f32 1e-05, %v3975_v15 }
0x1f01   :  { %6127 = vrsqrt.f32 %v3976_v31  ;;  %vm3983_vm10 = vweird.f32 %v3976_v31 }
0x1f07   :  { %v6128_v57 = vpop.eup %6127 }
0x1f08   :  { %v3978_v13 = vmul.f32 %v6128_v57, %v3976_v31  ;;  %vm3984_vm3 = vweird.f32 %v6128_v57 }
0x1f09   :  { %vm3985_vm11 = vmor %vm3983_vm10, %vm3984_vm3 }
0x1f0a   :  { %v3979_v28 = vmul.f32 %v6128_v57, %v3978_v13 }
0x1f0c   :  { %v3980_v43 = vmul.f32 0.5, %v3979_v28 }
0x1f0e   :  { %v3981_v54 = vsub.f32 1.5, %v3980_v43 }
0x1f0f   :  { %v4055_v55 = vpop.permute.xlu0 %4054 }
0x1f10   :  { %v3982_v12 = vmul.f32 %v6128_v57, %v3981_v54  ;;  %4074 = vmatpush.bf16.msrb.mxu3 %v4055_v55 }
0x1f12   :  { %v3986_v60 = vsel %vm3985_vm11, %v6128_v57, %v3982_v12 }
0x1f13   :  { %v3987_v59 = vmul.f32 %v3986_v60, %v3970_v36 }
0x1f15   :  { %v3989_v4 = vmul.f32 %v3988_v10, %v3987_v59 }
0x1f17   :  { %v3991_v34 = vadd.f32 %v3990_v19, %v3989_v4  ;;  %v4084_v17 = vpop.permute.xlu0 %4083 }
0x1f18   :  { %4099 = vmatpush.bf16.msra.mxu0 %v4084_v17 }
0x1f19   :  { %v3992_v33 = vpack.c.bf16 %v3991_v34, %v3991_v34 }
0x1f1b   :  { %v3993_v1 = vunpack.c.l.bf16 %v3992_v33 }
0x1f1c   :  { %4100 = vmatpush.bf16.msra.mxu0 %v4082_v22 }
0x1f1d   :  { %v3994_v46 = vadd.f32 %v3993_v1, %v9160_v11 }
0x1f1f   :  { %5755 = vmatmul.msk.bf16.vlgmr.msra.gmra.mxu0 %vm416_vm0, %v3992_v33  ;;  %v3995_v2 = vpack.c.bf16 %v3994_v46, %v3994_v46 }
0x1f21   :  { %5754 = vmatmul.msk.bf16.vlgmr.msrb.gmra.mxu3 %vm416_vm0, %v3995_v2 }
0x1f9c   :  { %v4102_v23 = vpop.f32.mrf.mxu0 }
0x1f9d   :  { %v4103_v35 = vadd.f32 %v4102_v23, %v4088_v48 }
0x1f9f   :  { %v4106_v27 = vpack.c.bf16 %v4103_v35, %v4103_v35 }
0x1fa1   :  { %v4289_v51 = vsel %vm482_vm2, %v4106_v27, 0  ;;  %v4486_v25 = vunpack.c.l.b16 %v4106_v27 }
0x1fa2   :  { %4298 = vmatpush.bf16.msra.mxu3 %v4289_v51 }
0x1fa3   :  { %v8410_v21 = vpack.c.b16 %v4486_v25, %v4486_v25 }
0x1fa4   :  { %v4076_v11 = vpop.f32.mrf.mxu3  ;;  %v4104_v3 = vpop.f32.mrf.mxu0 }
0x1fa5   :  { %v4077_v58 = vadd.f32 %v4076_v11, %v4062_v30 }
0x1fa7   :  { %v4080_v7 = vpack.c.bf16 %v4077_v58, %v4077_v58 }
0x1fa9   :  { %v4145_v52 = vsel %vm972_vm8, %v4080_v7, 0  ;;  %v4337_v5 = vunpack.c.l.b16 %v4080_v7 }
0x1faa   :  { %4154 = vmatpush.bf16.xpose.msrb.mxu1 %v4145_v52 }
0x1fab   :  { %v4338_v36 = vpack.c.b16 %v4337_v5, %v4337_v5 }
0x1fac   :  { %v4078_v56 = vpop.f32.mrf.mxu3 }
0x1fad   :  { %4758 = vrot.lane.b32.xlu2 %v4338_v36, %s6396_s6  ;;  %4339 = vrot.lane.b32.xlu0 %v4338_v36, %s6395_s29 }
0x1fb1   :  { %5757 = vmatmul.msk.bf16.vlgmr.msrb.gmra.mxu1 %vm972_vm8, %v8323_v61 }
0x1fb5   :  { %4544 = vrot.lane.b32.xlu2 %v8265_v49, %s6382_s1  ;;  %4330 = vrot.lane.b32.xlu0 %v8265_v49, %s6395_s29 }
0x1fbd   :  { %4754 = vrot.lane.b32.xlu2 %v8327_v42, %s6396_s6  ;;  %4550 = vrot.lane.b32.xlu0 %v4338_v36, %s6382_s1 }
0x1fc1   :  { %5758 = vmatmul.msk.bf16.gmra.mxu1 %vm972_vm8, %v8265_v49  ;;  %v4329_v49 = vpop.permute.xlu2 %4328 }
0x1fc5   :  { %4750 = vrot.lane.b32.xlu0 %v8323_v61, %s6396_s6  ;;  %4488 = vrot.lane.b32.xlu2 %v8410_v21, %s6395_s29 }
0x1fc9   :  { %v4333_v15 = vpop.permute.xlu2 %4332 }
0x1fcd   :  { %4546 = vrot.lane.b32.xlu0 %v8327_v42, %s6382_s1 }
0x1fd1   :  { %5759 = vmatmul.msk.bf16.gmra.mxu1 %vm972_vm8, %v8327_v42 }
0x1fd5   :  { %4756 = vrot.lane.b32.xlu0 %v8365_v26, %s6396_s6 }
0x1fe1   :  { %5760 = vmatmul.msk.bf16.gmra.mxu1 %vm972_vm8, %v8365_v26 }
0x2007   :  { %v4759_v31 = vpop.permute.xlu2 %4758 }
0x2008   :  { %v4773_v55 = vsel %vm972_vm8, %v4759_v31, 0 }
0x200f   :  { %v4545_v57 = vpop.permute.xlu2 %4544 }
0x2017   :  { %v4755_v61 = vpop.permute.xlu2 %4754 }
0x201f   :  { %v4340_v13 = vpop.permute.xlu0 %4339  ;;  %v4489_v28 = vpop.permute.xlu2 %4488 }
0x2020   :  { %v4354_v43 = vsel %vm972_vm8, %v4340_v13, 0  ;;  %v4503_v54 = vsel %vm482_vm2, %v4489_v28, 0 }
0x2021   :  { %4363 = vmatpush.bf16.xpose.msrb.mxu0 %v4354_v43  ;;  %4512 = vmatpush.bf16.msra.mxu2 %v4503_v54 }
0x2027   :  { %v4331_v42 = vpop.permute.xlu0 %4330 }
0x2028   :  { %5765 = vmatmul.msk.bf16.vlgmr.msrb.gmra.mxu0 %vm972_vm8, %v4329_v49 }
0x2029   :  { %4782 = vmatpush.bf16.xpose.msra.mxu0 %v4773_v55 }
0x202e   :  { %v4156_v26 = vpop.f32.mrf.mxu1 }
0x202f   :  { %v4176_v12 = vmul.f32 0.5, %v4156_v26  ;;  %v4551_v10 = vpop.permute.xlu0 %4550 }
0x2030   :  { %v4565_v60 = vsel %vm972_vm8, %v4551_v10, 0 }
0x2031   :  { %4574 = vmatpush.bf16.xpose.msra.mxu1 %v4565_v60  ;;  %v4184_v19 = vsel %vm444_vm1, %v4176_v12, -inf }
0x2032   :  { %4185 = vmax.xlane.f32.xlu2 %v4184_v19 }
0x2036   :  { %v4158_v59 = vpop.f32.mrf.mxu1 }
0x2037   :  { %v8430_v4 = vmul.f32 0.5, %v4158_v59  ;;  %v4751_v30 = vpop.permute.xlu0 %4750 }
0x2038   :  { %5766 = vmatmul.msk.bf16.gmra.mxu0 %vm972_vm8, %v4331_v42  ;;  %5773 = vmatmul.msk.bf16.vlgmr.msra.gmra.mxu1 %vm972_vm8, %v4543_v6 }
0x2039   :  { %v4187_v34 = vsel %vm444_vm1, %v8430_v4, -inf }
0x203a   :  { %4188 = vmax.xlane.f32.xlu1 %v4187_v34 }
0x203e   :  { %v4161_v17 = vpop.f32.mrf.mxu1 }
0x203f   :  { %v8436_v33 = vmul.f32 0.5, %v4161_v17  ;;  %v4547_v27 = vpop.permute.xlu0 %4546 }
0x2041   :  { %v4190_v22 = vsel %vm444_vm1, %v8436_v33, -inf }
0x2042   :  { %4191 = vmax.xlane.f32.xlu0 %v4190_v22 }
0x2046   :  { %v4163_v1 = vpop.f32.mrf.mxu1 }
0x2047   :  { %v8440_v46 = vmul.f32 0.5, %v4163_v1  ;;  %v4757_v36 = vpop.permute.xlu0 %4756 }
0x2048   :  { %5767 = vmatmul.msk.bf16.gmra.mxu0 %vm972_vm8, %v4333_v15  ;;  %5774 = vmatmul.msk.bf16.gmra.mxu1 %vm972_vm8, %v4545_v57 }
0x2049   :  { %v4193_v2 = vsel %vm444_vm1, %v8440_v46, -inf }
0x204a   :  { %4194 = vmax.xlane.f32.xlu2 %v4193_v2 }
0x204e   :  { %v4166_v6 = vpop.f32.mrf.mxu1 }
0x204f   :  { %v8446_v48 = vmul.f32 0.5, %v4166_v6 }
0x2051   :  { %v4196_v23 = vsel %vm444_vm1, %v8446_v48, -inf }
0x2052   :  { %4197 = vmax.xlane.f32.xlu0 %v4196_v23 }
0x2056   :  { %v4168_v35 = vpop.f32.mrf.mxu1 }
0x2057   :  { %v8450_v51 = vmul.f32 0.5, %v4168_v35 }
0x2058   :  { %5768 = vmatmul.msk.bf16.gmra.mxu0 %vm972_vm8, %v8389_v38  ;;  %5775 = vmatmul.msk.bf16.gmra.mxu1 %vm972_vm8, %v4547_v27 }
0x2059   :  { %v4199_v11 = vsel %vm444_vm1, %v8450_v51, -inf }
0x205a   :  { %4200 = vmax.xlane.f32.xlu2 %v4199_v11 }
0x205e   :  { %v4171_v3 = vpop.f32.mrf.mxu1 }
0x205f   :  { %v8457_v58 = vmul.f32 0.5, %v4171_v3 }
0x2061   :  { %v4202_v7 = vsel %vm444_vm1, %v8457_v58, -inf }
0x2062   :  { %4203 = vmax.xlane.f32.xlu2 %v4202_v7 }
0x2066   :  { %v4173_v52 = vpop.f32.mrf.mxu1 }
0x2067   :  { %v8461_v5 = vmul.f32 0.5, %v4173_v52 }
0x2068   :  { %5776 = vmatmul.msk.bf16.gmra.mxu1 %vm972_vm8, %v8393_v45  ;;  %5781 = vmatmul.msk.bf16.vlgmr.msra.gmra.mxu0 %vm972_vm8, %v4751_v30 }
0x2069   :  { %v4205_v38 = vsel %vm444_vm1, %v8461_v5, -inf }
0x206a   :  { %4206 = vmax.xlane.f32.xlu0 %v4205_v38 }
0x2078   :  { %5782 = vmatmul.msk.bf16.gmra.mxu0 %vm972_vm8, %v8391_v29 }
0x2088   :  { %5783 = vmatmul.msk.bf16.gmra.mxu0 %vm972_vm8, %v4755_v61 }
0x2098   :  { %5784 = vmatmul.msk.bf16.gmra.mxu0 %vm972_vm8, %v4757_v36 }
0x20a5   :  { %v4365_v56 = vpop.f32.mrf.mxu0  ;;  %v4186_v25 = vpop.xlane.xlu2 %4185 }
0x20a6   :  { %v8472_v49 = vmul.f32 0.5, %v4365_v56  ;;  %v4208_v15 = vsub.f32 %v4176_v12, %v4186_v25 }
0x20a8   :  { %v4393_v45 = vsel %vm444_vm1, %v8472_v49, -inf  ;;  %v4216_v31 = vmul.f32 1.442695, %v4208_v15 }
0x20a9   :  { %4394 = vmax.xlane.f32.xlu0 %v4393_v45 }
0x20aa   :  { %6129 = vpow2.f32 %v4216_v31 }
0x20ad   :  { %v4367_v57 = vpop.f32.mrf.mxu0  ;;  %v4189_v34 = vpop.xlane.xlu1 %4188 }
0x20ae   :  { %v8476_v13 = vmul.f32 0.5, %v4367_v57  ;;  %v4209_v30 = vsub.f32 %v8430_v4, %v4189_v34 }
0x20b0   :  { %v4396_v29 = vsel %vm444_vm1, %v8476_v13, -inf  ;;  %v8480_v61 = vpop.eup %6129  ;;  %v4218_v35 = vmul.f32 1.442695, %v4209_v30 }
0x20b1   :  { %4397 = vmax.xlane.f32.xlu2 %v4396_v29  ;;  %v4232_v55 = vsel %vm444_vm1, %v8480_v61, 0.0 }
0x20b2   :  { %6131 = vpow2.f32 %v4218_v35 }
0x20b5   :  { %v4370_v28 = vpop.f32.mrf.mxu0  ;;  %v4576_v43 = vpop.f32.mrf.mxu1 }
0x20b6   :  { %v8482_v54 = vmul.f32 0.5, %v4576_v43  ;;  %v4192_v17 = vpop.xlane.xlu0 %4191  ;;  %v8496_v22 = vmul.f32 0.5, %v4370_v28 }
0x20b7   :  { %v4210_v6 = vsub.f32 %v8436_v33, %v4192_v17 }
0x20b8   :  { %v4604_v42 = vsel %vm444_vm1, %v8482_v54, -inf  ;;  %v4399_v23 = vsel %vm444_vm1, %v8496_v22, -inf  ;;  %v8510_v56 = vpop.eup %6131 }
0x20b9   :  { %4233 = vadd.xlane.f32.xlu2 %v4232_v55  ;;  %4605 = vmax.xlane.f32.xlu1 %v4604_v42  ;;  %v4220_v27 = vmul.f32 1.442695, %v4210_v6  ;;  %v4235_v57 = vsel %vm444_vm1, %v8510_v56, 0.0 }
0x20bb   :  { %6133 = vpow2.f32 %v4220_v27 }
0x20bd   :  { %v4372_v26 = vpop.f32.mrf.mxu0  ;;  %v4578_v10 = vpop.f32.mrf.mxu1 }
0x20be   :  { %v8488_v12 = vmul.f32 0.5, %v4372_v26  ;;  %v8490_v60 = vmul.f32 0.5, %v4578_v10  ;;  %v4195_v11 = vpop.xlane.xlu2 %4194 }
0x20bf   :  { %v4211_v31 = vsub.f32 %v8440_v46, %v4195_v11 }
0x20c0   :  { %v4402_v19 = vsel %vm444_vm1, %v8488_v12, -inf  ;;  %v4607_v59 = vsel %vm444_vm1, %v8490_v60, -inf }
0x20c1   :  { %4403 = vmax.xlane.f32.xlu2 %v4402_v19  ;;  %4608 = vmax.xlane.f32.xlu0 %v4607_v59  ;;  %v8512_v15 = vpop.eup %6133  ;;  %v4222_v28 = vmul.f32 1.442695, %v4211_v31 }
0x20c2   :  { %v4238_v29 = vsel %vm444_vm1, %v8512_v15, 0.0 }
0x20c3   :  { %6135 = vpow2.f32 %v4222_v28 }
0x20c5   :  { %v4375_v1 = vpop.f32.mrf.mxu0  ;;  %v4581_v2 = vpop.f32.mrf.mxu1 }
0x20c6   :  { %v8502_v3 = vmul.f32 0.5, %v4581_v2  ;;  %v8519_v43 = vmul.f32 0.5, %v4375_v1  ;;  %v4198_v30 = vpop.xlane.xlu0 %4197 }
0x20c7   :  { %v4212_v11 = vsub.f32 %v8446_v48, %v4198_v30 }
0x20c8   :  { %v4610_v4 = vsel %vm444_vm1, %v8502_v3, -inf  ;;  %v4405_v34 = vsel %vm444_vm1, %v8519_v43, -inf }
0x20c9   :  { %4400 = vmax.xlane.f32.xlu0 %v4399_v23  ;;  %v8533_v35 = vpop.eup %6135 }
0x20cd   :  { %v4377_v7 = vpop.f32.mrf.mxu0  ;;  %v4583_v52 = vpop.f32.mrf.mxu1 }
0x20ce   :  { %v8504_v38 = vmul.f32 0.5, %v4583_v52  ;;  %v4201_v36 = vpop.xlane.xlu2 %4200 }
0x20cf   :  { %v4213_v46 = vsub.f32 %v8450_v51, %v4201_v36  ;;  %v4224_v36 = vmul.f32 1.442695, %v4212_v11 }
0x20d0   :  { %v4613_v33 = vsel %vm444_vm1, %v8504_v38, -inf }
0x20d1   :  { %4611 = vmax.xlane.f32.xlu0 %v4610_v4  ;;  %4614 = vmax.xlane.f32.xlu1 %v4613_v33  ;;  %v4226_v2 = vmul.f32 1.442695, %v4213_v46  ;;  %v4241_v4 = vsel %vm444_vm1, %v8533_v35, 0.0 }
0x20d3   :  { %6137 = vpow2.f32 %v4226_v2 }
0x20d5   :  { %v4380_v25 = vpop.f32.mrf.mxu0  ;;  %v4586_v45 = vpop.f32.mrf.mxu1 }
0x20d6   :  { %v8521_v55 = vmul.f32 0.5, %v4586_v45  ;;  %v4204_v26 = vpop.xlane.xlu2 %4203  ;;  %v8535_v51 = vmul.f32 0.5, %v4380_v25  ;;  %v8546_v25 = vmul.f32 0.5, %v4377_v7 }
0x20d7   :  { %v4214_v59 = vsub.f32 %v8457_v58, %v4204_v26 }
0x20d8   :  { %v4616_v17 = vsel %vm444_vm1, %v8521_v55, -inf  ;;  %v4411_v33 = vsel %vm444_vm1, %v8535_v51, -inf  ;;  %v4408_v28 = vsel %vm444_vm1, %v8546_v25, -inf }
0x20d9   :  { %4236 = vadd.xlane.f32.xlu0 %v4235_v57  ;;  %4239 = vadd.xlane.f32.xlu1 %v4238_v29  ;;  %v4228_v6 = vmul.f32 1.442695, %v4214_v59  ;;  %v8548_v48 = vpop.eup %6137 }
0x20da   :  { %v4247_v26 = vsel %vm444_vm1, %v8548_v48, 0.0 }
0x20db   :  { %6139 = vpow2.f32 %v4228_v6 }
0x20dc   :  { %6141 = vpow2.f32 %v4224_v36 }
0x20dd   :  { %v4382_v42 = vpop.f32.mrf.mxu0  ;;  %v4588_v10 = vpop.f32.mrf.mxu1 }
0x20de   :  { %v8523_v19 = vmul.f32 0.5, %v4588_v10  ;;  %v4207_v45 = vpop.xlane.xlu0 %4206 }
0x20df   :  { %v4215_v29 = vsub.f32 %v8461_v5, %v4207_v45 }
0x20e0   :  { %v4619_v1 = vsel %vm444_vm1, %v8523_v19, -inf }
0x20e1   :  { %4406 = vmax.xlane.f32.xlu1 %v4405_v34  ;;  %4617 = vmax.xlane.f32.xlu0 %v4616_v17  ;;  %v8550_v57 = vpop.eup %6139  ;;  %v4230_v10 = vmul.f32 1.442695, %v4215_v29 }
0x20e2   :  { %4620 = vmax.xlane.f32.xlu2 %v4619_v1  ;;  %v4250_v7 = vsel %vm444_vm1, %v8550_v57, 0.0  ;;  %v8561_v34 = vpop.eup %6141  ;;  %v8567_v1 = vmul.f32 0.5, %v4382_v42 }
0x20e3   :  { %6143 = vpow2.f32 %v4230_v10  ;;  %v4244_v5 = vsel %vm444_vm1, %v8561_v34, 0.0 }
0x20e4   :  { %v4414_v6 = vsel %vm444_vm1, %v8567_v1, -inf }
0x20e5   :  { %v4784_v23 = vpop.f32.mrf.mxu0  ;;  %v4591_v58 = vpop.f32.mrf.mxu1 }
0x20e6   :  { %v8537_v27 = vmul.f32 0.5, %v4591_v58  ;;  %v8559_v46 = vmul.f32 0.5, %v4784_v23 }
0x20e8   :  { %v4622_v52 = vsel %vm444_vm1, %v8537_v27, -inf  ;;  %v4812_v17 = vsel %vm444_vm1, %v8559_v46, -inf }
0x20e9   :  { %4623 = vmax.xlane.f32.xlu1 %v4622_v52  ;;  %4242 = vadd.xlane.f32.xlu0 %v4241_v4  ;;  %v8569_v30 = vpop.eup %6143 }
0x20ea   :  { %4412 = vmax.xlane.f32.xlu2 %v4411_v33  ;;  %v4253_v23 = vsel %vm444_vm1, %v8569_v30, 0.0 }
0x20ed   :  { %v4786_v31 = vpop.f32.mrf.mxu0 }
0x20ee   :  { %v8575_v58 = vmul.f32 0.5, %v4786_v31 }
0x20f0   :  { %v4815_v42 = vsel %vm444_vm1, %v8575_v58, -inf }
0x20f1   :  { %4409 = vmax.xlane.f32.xlu0 %v4408_v28  ;;  %4248 = vadd.xlane.f32.xlu1 %v4247_v26 }
0x20f2   :  { %4251 = vadd.xlane.f32.xlu2 %v4250_v7 }
0x20f5   :  { %v4789_v59 = vpop.f32.mrf.mxu0 }
0x20f6   :  { %v8583_v33 = vmul.f32 0.5, %v4789_v59 }
0x20f8   :  { %v4818_v31 = vsel %vm444_vm1, %v8583_v33, -inf }
0x20f9   :  { %4245 = vadd.xlane.f32.xlu0 %v4244_v5  ;;  %4813 = vmax.xlane.f32.xlu1 %v4812_v17 }
0x20fd   :  { %v4791_v2 = vpop.f32.mrf.mxu0 }
0x20fe   :  { %v8577_v11 = vmul.f32 0.5, %v4791_v2 }
0x2100   :  { %v4821_v4 = vsel %vm444_vm1, %v8577_v11, -inf }
0x2101   :  { %4415 = vmax.xlane.f32.xlu0 %v4414_v6  ;;  %4254 = vadd.xlane.f32.xlu1 %v4253_v23 }
0x2105   :  { %v4794_v52 = vpop.f32.mrf.mxu0 }
0x2106   :  { %v8585_v36 = vmul.f32 0.5, %v4794_v52 }
0x2108   :  { %v4824_v29 = vsel %vm444_vm1, %v8585_v36, -inf }
0x2109   :  { %4816 = vmax.xlane.f32.xlu0 %v4815_v42  ;;  %4822 = vmax.xlane.f32.xlu1 %v4821_v4 }
0x210d   :  { %v4796_v45 = vpop.f32.mrf.mxu0 }
0x210e   :  { %v8591_v28 = vmul.f32 0.5, %v4796_v45 }
0x2110   :  { %v4827_v7 = vsel %vm444_vm1, %v8591_v28, -inf }
0x2111   :  { %4819 = vmax.xlane.f32.xlu0 %v4818_v31  ;;  %4825 = vmax.xlane.f32.xlu1 %v4824_v29 }
0x2115   :  { %v4799_v26 = vpop.f32.mrf.mxu0 }
0x2119   :  { %4828 = vmax.xlane.f32.xlu0 %v4827_v7 }
0x211c   :  { %v4395_v10 = vpop.xlane.xlu0 %4394 }
0x211d   :  { %v4417_v59 = vsub.f32 %v8472_v49, %v4395_v10  ;;  %v4801_v5 = vpop.f32.mrf.mxu0  ;;  %v8605_v49 = vmul.f32 0.5, %v4799_v26 }
0x211e   :  { %v8596_v17 = vmul.f32 0.5, %v4801_v5  ;;  %v4593_v5 = vpop.f32.mrf.mxu1 }
0x211f   :  { %v4425_v2 = vmul.f32 1.442695, %v4417_v59  ;;  %v4830_v59 = vsel %vm444_vm1, %v8605_v49, -inf }
0x2120   :  { %v4833_v6 = vsel %vm444_vm1, %v8596_v17, -inf }
0x2121   :  { %6145 = vpow2.f32 %v4425_v2  ;;  %4834 = vmax.xlane.f32.xlu1 %v4833_v6  ;;  %v8614_v6 = vmul.f32 0.5, %v4593_v5 }
0x2124   :  { %v4398_v23 = vpop.xlane.xlu2 %4397 }
0x2125   :  { %v4418_v52 = vsub.f32 %v8476_v13, %v4398_v23 }
0x2127   :  { %v8601_v42 = vpop.eup %6145  ;;  %v4427_v4 = vmul.f32 1.442695, %v4418_v52 }
0x2128   :  { %v4441_v45 = vsel %vm444_vm1, %v8601_v42, 0.0 }
0x2129   :  { %6147 = vpow2.f32 %v4427_v4  ;;  %4442 = vadd.xlane.f32.xlu2 %v4441_v45 }
0x212c   :  { %v4234_v31 = vpop.xlane.xlu2 %4233  ;;  %v4606_v29 = vpop.xlane.xlu1 %4605 }
0x212d   :  { %v4628_v10 = vsub.f32 %v8482_v54, %v4606_v29  ;;  %v4625_v29 = vsel %vm444_vm1, %v8614_v6, -inf }
0x212f   :  { %v8607_v7 = vpop.eup %6147  ;;  %v4636_v2 = vmul.f32 1.442695, %v4628_v10 }
0x2130   :  { %v4444_v13 = vsel %vm444_vm1, %v8607_v7, 0.0 }
0x2131   :  { %4831 = vmax.xlane.f32.xlu2 %v4830_v59  ;;  %4445 = vadd.xlane.f32.xlu0 %v4444_v13  ;;  %6149 = vpow2.f32 %v4636_v2 }
0x2134   :  { %v4404_v26 = vpop.xlane.xlu2 %4403  ;;  %v4609_v23 = vpop.xlane.xlu0 %4608 }
0x2135   :  { %v4420_v52 = vsub.f32 %v8488_v12, %v4404_v26  ;;  %v4629_v4 = vsub.f32 %v8490_v60, %v4609_v23 }
0x2137   :  { %v4431_v54 = vmul.f32 1.442695, %v4420_v52  ;;  %v4638_v45 = vmul.f32 1.442695, %v4629_v4  ;;  %v8620_v59 = vpop.eup %6149 }
0x2138   :  { %v4652_v60 = vsel %vm444_vm1, %v8620_v59, 0.0 }
0x2139   :  { %6151 = vpow2.f32 %v4431_v54  ;;  %4626 = vmax.xlane.f32.xlu0 %v4625_v29 }
0x213a   :  { %6153 = vpow2.f32 %v4638_v45 }
0x213c   :  { %v4401_v10 = vpop.xlane.xlu0 %4400 }
0x213d   :  { %v4419_v13 = vsub.f32 %v8496_v22, %v4401_v10 }
0x213f   :  { %v8623_v5 = vpop.eup %6151  ;;  %v4429_v12 = vmul.f32 1.442695, %v4419_v13 }
0x2140   :  { %v8625_v47 = vpop.eup %6153  ;;  %v4450_v2 = vsel %vm444_vm1, %v8623_v5, 0.0 }
0x2141   :  { %v4655_v26 = vsel %vm444_vm1, %v8625_v47, 0.0  ;;  %4653 = vadd.xlane.f32.xlu0 %v4652_v60  ;;  %4451 = vadd.xlane.f32.xlu1 %v4450_v2  ;;  %6155 = vpow2.f32 %v4429_v12 }
0x2142   :  { %4656 = vadd.xlane.f32.xlu2 %v4655_v26  ;;  %6157 = vrcp.f32 %v4234_v31 }
0x2144   :  { %v4612_v23 = vpop.xlane.xlu0 %4611  ;;  %v4615_v22 = vpop.xlane.xlu1 %4614 }
0x2147   :  { %v8633_v52 = vpop.eup %6155 }
0x2148   :  { %v4447_v4 = vsel %vm444_vm1, %v8633_v52, 0.0  ;;  %v6158_v29 = vpop.eup %6157 }
0x2149   :  { %v4264_v13 = vmul.f32 %v6158_v29, %v8480_v61  ;;  %v4630_v29 = vsub.f32 %v8502_v3, %v4612_v23  ;;  %v4631_v23 = vsub.f32 %v8504_v38, %v4615_v22 }
0x214a   :  { %4448 = vadd.xlane.f32.xlu2 %v4447_v4 }
0x214c   :  { %v4237_v54 = vpop.xlane.xlu0 %4236  ;;  %v4240_v45 = vpop.xlane.xlu1 %4239 }
0x214d   :  { %6159 = vrcp.f32 %v4237_v54 }
0x2153   :  { %v6160_v10 = vpop.eup %6159 }
0x2154   :  { %v4265_v60 = vmul.f32 %v6160_v10, %v8510_v56  ;;  %v4407_v12 = vpop.xlane.xlu1 %4406  ;;  %v8639_v2 = vpop.xlane.xlu0 %4617 }
0x2155   :  { %v4421_v26 = vsub.f32 %v8519_v43, %v4407_v12  ;;  %v8642_v9 = vpop.xlane.xlu2 %4620 }
0x2156   :  { %v4272_v53 = vpack.c.bf16 %v4265_v60, %v4264_v13 }
0x2157   :  { %v4433_v37 = vmul.f32 1.442695, %v4421_v26 }
0x2158   :  { %5761 = vmatmul.msk.bf16.vlgmr.msra.gmra.mxu3 %vm444_vm1, %v4272_v53  ;;  %v4640_v53 = vmul.f32 1.442695, %v4630_v29 }
0x2159   :  { %6161 = vpow2.f32 %v4433_v37 }
0x215a   :  { %6163 = vrcp.f32 %v4240_v45 }
0x215c   :  { %v8645_v31 = vpop.xlane.xlu1 %4623  ;;  %v4243_v4 = vpop.xlane.xlu0 %4242 }
0x215d   :  { %6165 = vrcp.f32 %v4243_v4  ;;  %v4413_v61 = vpop.xlane.xlu2 %4412 }
0x215e   :  { %v4423_v56 = vsub.f32 %v8535_v51, %v4413_v61 }
0x215f   :  { %v8648_v54 = vpop.eup %6161 }
0x2160   :  { %v4437_v43 = vmul.f32 1.442695, %v4423_v56  ;;  %v4453_v10 = vsel %vm444_vm1, %v8648_v54, 0.0  ;;  %v6164_v13 = vpop.eup %6163 }
0x2161   :  { %4454 = vadd.xlane.f32.xlu0 %v4453_v10  ;;  %v4266_v45 = vmul.f32 %v6164_v13, %v8512_v15  ;;  %v4642_v15 = vmul.f32 1.442695, %v4631_v23 }
0x2162   :  { %6167 = vpow2.f32 %v4437_v43 }
0x2163   :  { %v6166_v37 = vpop.eup %6165  ;;  %6169 = vpow2.f32 %v4640_v53 }
0x2164   :  { %v4267_v60 = vmul.f32 %v6166_v37, %v8533_v35  ;;  %v4410_v12 = vpop.xlane.xlu0 %4409  ;;  %v4249_v26 = vpop.xlane.xlu1 %4248 }
0x2165   :  { %v4422_v51 = vsub.f32 %v8546_v25, %v4410_v12 }
0x2166   :  { %v4273_v4 = vpack.c.bf16 %v4267_v60, %v4266_v45 }
0x2167   :  { %v4435_v61 = vmul.f32 1.442695, %v4422_v51 }
0x2168   :  { %v8656_v3 = vpop.eup %6167  ;;  %5762 = vmatmul.msk.bf16.gmra.mxu3 %vm444_vm1, %v4273_v4 }
0x2169   :  { %6171 = vpow2.f32 %v4435_v61  ;;  %v4459_v56 = vsel %vm444_vm1, %v8656_v3, 0.0  ;;  %v8663_v43 = vpop.eup %6169 }
0x216a   :  { %4460 = vadd.xlane.f32.xlu0 %v4459_v56  ;;  %6173 = vrcp.f32 %v4249_v26  ;;  %v4658_v37 = vsel %vm444_vm1, %v8663_v43, 0.0  ;;  %v4252_v56 = vpop.xlane.xlu2 %4251 }
0x216c   :  { %v4246_v35 = vpop.xlane.xlu0 %4245  ;;  %v4814_v29 = vpop.xlane.xlu1 %4813 }
0x216d   :  { %6175 = vrcp.f32 %v4246_v35  ;;  %v4836_v25 = vsub.f32 %v8559_v46, %v4814_v29 }
0x216e   :  { %6177 = vpow2.f32 %v4642_v15 }
0x216f   :  { %v8665_v10 = vpop.eup %6171  ;;  %v4844_v13 = vmul.f32 1.442695, %v4836_v25 }
0x2170   :  { %v4456_v38 = vsel %vm444_vm1, %v8665_v10, 0.0  ;;  %v6174_v22 = vpop.eup %6173 }
0x2171   :  { %6179 = vpow2.f32 %v4844_v13  ;;  %4457 = vadd.xlane.f32.xlu1 %v4456_v38  ;;  %v4269_v45 = vmul.f32 %v6174_v22, %v8548_v48 }
0x2172   :  { %4659 = vadd.xlane.f32.xlu0 %v4658_v37 }
0x2173   :  { %v6176_v53 = vpop.eup %6175 }
0x2174   :  { %v4268_v46 = vmul.f32 %v6176_v53, %v8561_v34  ;;  %v4416_v60 = vpop.xlane.xlu0 %4415  ;;  %v4255_v26 = vpop.xlane.xlu1 %4254 }
0x2175   :  { %v4424_v12 = vsub.f32 %v8567_v1, %v4416_v60  ;;  %v8674_v51 = vpop.eup %6177  ;;  %6181 = vrcp.f32 %v4255_v26 }
0x2176   :  { %v4274_v4 = vpack.c.bf16 %v4269_v45, %v4268_v46  ;;  %v4661_v48 = vsel %vm444_vm1, %v8674_v51, 0.0 }
0x2177   :  { %v8676_v61 = vpop.eup %6179  ;;  %v4439_v23 = vmul.f32 1.442695, %v4424_v12 }
0x2178   :  { %5763 = vmatmul.msk.bf16.gmra.mxu3 %vm444_vm1, %v4274_v4  ;;  %v4860_v15 = vsel %vm444_vm1, %v8676_v61, 0.0 }
0x2179   :  { %6183 = vpow2.f32 %v4439_v23  ;;  %4861 = vadd.xlane.f32.xlu1 %v4860_v15 }
0x217a   :  { %4662 = vadd.xlane.f32.xlu0 %v4661_v48  ;;  %6185 = vrcp.f32 %v4252_v56 }
0x217b   :  { %v6182_v35 = vpop.eup %6181 }
0x217c   :  { %v4817_v34 = vpop.xlane.xlu0 %4816  ;;  %v4271_v22 = vmul.f32 %v6182_v35, %v8569_v30  ;;  %v4823_v30 = vpop.xlane.xlu1 %4822 }
0x217d   :  { %v4837_v1 = vsub.f32 %v8575_v58, %v4817_v34  ;;  %v4633_v58 = vsub.f32 %v8523_v19, %v8642_v9 }
0x217f   :  { %v8684_v29 = vpop.eup %6183  ;;  %v4846_v25 = vmul.f32 1.442695, %v4837_v1  ;;  %v4646_v4 = vmul.f32 1.442695, %v4633_v58 }
0x2180   :  { %v4462_v13 = vsel %vm444_vm1, %v8684_v29, 0.0  ;;  %v6186_v38 = vpop.eup %6185 }
0x2181   :  { %6187 = vpow2.f32 %v4846_v25  ;;  %4463 = vadd.xlane.f32.xlu2 %v4462_v13  ;;  %v4270_v37 = vmul.f32 %v6186_v38, %v8550_v57 }
0x2183   :  { %v4275_v46 = vpack.c.bf16 %v4271_v22, %v4270_v37 }
0x2184   :  { %v4820_v53 = vpop.xlane.xlu0 %4819  ;;  %v4826_v19 = vpop.xlane.xlu1 %4825 }
0x2185   :  { %v4838_v45 = vsub.f32 %v8583_v33, %v4820_v53  ;;  %v4634_v33 = vsub.f32 %v8537_v27, %v8645_v31  ;;  %v4840_v15 = vsub.f32 %v8585_v36, %v4826_v19 }
0x2187   :  { %v8691_v60 = vpop.eup %6187  ;;  %v4848_v12 = vmul.f32 1.442695, %v4838_v45  ;;  %v4648_v9 = vmul.f32 1.442695, %v4634_v33  ;;  %v4852_v27 = vmul.f32 1.442695, %v4840_v15 }
0x2188   :  { %5764 = vmatmul.msk.bf16.gmra.mxu3 %vm444_vm1, %v4275_v46  ;;  %v4863_v26 = vsel %vm444_vm1, %v8691_v60, 0.0 }
0x2189   :  { %6189 = vpow2.f32 %v4848_v12  ;;  %4864 = vadd.xlane.f32.xlu0 %v4863_v26 }
0x218a   :  { %6191 = vpow2.f32 %v4646_v4 }
0x218b   :  { %6193 = vpow2.f32 %v4648_v9 }
0x218c   :  { %v4829_v31 = vpop.xlane.xlu0 %4828  ;;  %6195 = vpow2.f32 %v4852_v27 }
0x218d   :  { %v4841_v1 = vsub.f32 %v8591_v28, %v4829_v31  ;;  %v4632_v28 = vsub.f32 %v8521_v55, %v8639_v2  ;;  %v4839_v55 = vsub.f32 %v8577_v11, %v4823_v30 }
0x218f   :  { %v8698_v57 = vpop.eup %6189  ;;  %v4854_v36 = vmul.f32 1.442695, %v4841_v1  ;;  %v4850_v2 = vmul.f32 1.442695, %v4839_v55 }
0x2190   :  { %v4866_v23 = vsel %vm444_vm1, %v8698_v57, 0.0  ;;  %v8706_v56 = vpop.eup %6191 }
0x2191   :  { %4867 = vadd.xlane.f32.xlu0 %v4866_v23  ;;  %v4667_v48 = vsel %vm444_vm1, %v8706_v56, 0.0  ;;  %v8713_v34 = vpop.eup %6193  ;;  %v4644_v23 = vmul.f32 1.442695, %v4632_v28 }
0x2192   :  { %4904 = vrot.lane.b32.xlu1 %v8410_v21, %s6396_s6  ;;  %v4670_v25 = vsel %vm444_vm1, %v8713_v34, 0.0  ;;  %v8718_v38 = vpop.eup %6195 }
0x2193   :  { %v4872_v22 = vsel %vm444_vm1, %v8718_v38, 0.0 }
0x2194   :  { %v4835_v58 = vpop.xlane.xlu1 %4834 }
0x2195   :  { %v4843_v19 = vsub.f32 %v8596_v17, %v4835_v58 }
0x2199   :  { %4696 = vrot.lane.b32.xlu2 %v8410_v21, %s6382_s1  ;;  %4668 = vadd.xlane.f32.xlu0 %v4667_v48 }
0x219c   :  { %v4443_v35 = vpop.xlane.xlu2 %4442 }
0x219d   :  { %6197 = vrcp.f32 %v4443_v35 }
0x21a1   :  { %4671 = vadd.xlane.f32.xlu0 %v4670_v25 }
0x21a3   :  { %v6198_v21 = vpop.eup %6197 }
0x21a4   :  { %v4446_v13 = vpop.xlane.xlu0 %4445  ;;  %v4473_v53 = vmul.f32 %v6198_v21, %v8601_v42  ;;  %v4832_v12 = vpop.xlane.xlu2 %4831 }
0x21a5   :  { %6199 = vrcp.f32 %v4446_v13  ;;  %v4842_v11 = vsub.f32 %v8605_v49, %v4832_v12 }
0x21a6   :  { %6201 = vpow2.f32 %v4854_v36 }
0x21a7   :  { %v4856_v31 = vmul.f32 1.442695, %v4842_v11 }
0x21a9   :  { %4873 = vadd.xlane.f32.xlu0 %v4872_v22 }
0x21ab   :  { %v6200_v37 = vpop.eup %6199 }
0x21ac   :  { %v4474_v45 = vmul.f32 %v6200_v37, %v8607_v7  ;;  %v4627_v46 = vpop.xlane.xlu0 %4626  ;;  %v8727_v4 = vpop.eup %6201  ;;  %v4858_v7 = vmul.f32 1.442695, %v4843_v19 }
0x21ad   :  { %v4635_v26 = vsub.f32 %v8614_v6, %v4627_v46  ;;  %v4875_v42 = vsel %vm444_vm1, %v8727_v4, 0.0 }
0x21ae   :  { %v4481_v33 = vpack.c.bf16 %v4474_v45, %v4473_v53 }
0x21af   :  { %v4650_v9 = vmul.f32 1.442695, %v4635_v26 }
0x21b0   :  { %5769 = vmatmul.msk.bf16.vlgmr.msra.gmra.mxu2 %vm444_vm1, %v4481_v33 }
0x21b1   :  { %6203 = vpow2.f32 %v4650_v9  ;;  %4876 = vadd.xlane.f32.xlu0 %v4875_v42 }
0x21b2   :  { %6205 = vpow2.f32 %v4644_v23 }
0x21b3   :  { %6207 = vpow2.f32 %v4858_v7 }
0x21b4   :  { %6209 = vpow2.f32 %v4850_v2  ;;  %v4452_v30 = vpop.xlane.xlu1 %4451  ;;  %v4654_v46 = vpop.xlane.xlu0 %4653 }
0x21b5   :  { %v4657_v6 = vpop.xlane.xlu2 %4656  ;;  %6211 = vrcp.f32 %v4452_v30 }
0x21b7   :  { %v8734_v15 = vpop.eup %6203 }
0x21b8   :  { %v4673_v48 = vsel %vm444_vm1, %v8734_v15, 0.0  ;;  %v8738_v17 = vpop.eup %6205 }
0x21b9   :  { %4674 = vadd.xlane.f32.xlu0 %v4673_v48  ;;  %v4664_v27 = vsel %vm444_vm1, %v8738_v17, 0.0  ;;  %v8743_v35 = vpop.eup %6207 }
0x21ba   :  { %v8745_v25 = vpop.eup %6209  ;;  %v4881_v36 = vsel %vm444_vm1, %v8743_v35, 0.0 }
0x21bb   :  { %v6212_v13 = vpop.eup %6211  ;;  %v4869_v49 = vsel %vm444_vm1, %v8745_v25, 0.0 }
0x21bc   :  { %4665 = vadd.xlane.f32.xlu1 %v4664_v27  ;;  %v4476_v22 = vmul.f32 %v6212_v13, %v8623_v5 }
0x21bd   :  { %v4449_v1 = vpop.xlane.xlu2 %4448 }
0x21be   :  { %6213 = vrcp.f32 %v4449_v1 }
0x21bf   :  { %6215 = vpow2.f32 %v4856_v31 }
0x21c1   :  { %4882 = vadd.xlane.f32.xlu0 %v4881_v36 }
0x21c2   :  { %4870 = vadd.xlane.f32.xlu2 %v4869_v49 }
0x21c4   :  { %v6214_v21 = vpop.eup %6213 }
0x21c5   :  { %v4475_v37 = vmul.f32 %v6214_v21, %v8633_v52  ;;  %v8753_v28 = vpop.eup %6215 }
0x21c6   :  { %v4878_v45 = vsel %vm444_vm1, %v8753_v28, 0.0 }
0x21c7   :  { %v4482_v53 = vpack.c.bf16 %v4476_v22, %v4475_v37 }
0x21c9   :  { %5770 = vmatmul.msk.bf16.gmra.mxu2 %vm444_vm1, %v4482_v53 }
0x21ca   :  { %4879 = vadd.xlane.f32.xlu2 %v4878_v45 }
0x21d4   :  { %v4455_v58 = vpop.xlane.xlu0 %4454 }
0x21d5   :  { %6217 = vrcp.f32 %v4455_v58 }
0x21db   :  { %v4300_v12 = vpop.f32.mrf.mxu3  ;;  %v6218_v42 = vpop.eup %6217 }
0x21dc   :  { %v4320_v33 = vpack.c.bf16 %v4300_v12, %v4300_v12  ;;  %v4477_v11 = vmul.f32 %v6218_v42, %v8648_v54 }
0x21dd   :  { %v4461_v26 = vpop.xlane.xlu0 %4460 }
0x21de   :  { %v8758_v52 = vunpack.c.l.b16 %v4320_v33 }
0x21e3   :  { %v4302_v23 = vpop.f32.mrf.mxu3 }
0x21e4   :  { %v4321_v9 = vpack.c.bf16 %v4302_v23, %v4302_v23  ;;  %v4458_v5 = vpop.xlane.xlu1 %4457 }
0x21e5   :  { %6219 = vrcp.f32 %v4458_v5  ;;  %v4660_v2 = vpop.xlane.xlu0 %4659 }
0x21e6   :  { %v8760_v19 = vunpack.c.l.b16 %v4321_v9  ;;  %6221 = vrcp.f32 %v4654_v46 }
0x21e7   :  { %6223 = vrcp.f32 %v4657_v6 }
0x21e8   :  { %v4974_v55 = vpack.c.b16 %v8760_v19, %v8758_v52  ;;  %6225 = vrcp.f32 %v4461_v26 }
0x21eb   :  { %v6220_v7 = vpop.eup %6219  ;;  %v4305_v48 = vpop.f32.mrf.mxu3 }
0x21ec   :  { %v4478_v30 = vmul.f32 %v6220_v7, %v8665_v10  ;;  %v4322_v31 = vpack.c.bf16 %v4305_v48, %v4305_v48  ;;  %v6222_v37 = vpop.eup %6221  ;;  %v4862_v26 = vpop.xlane.xlu1 %4861 }
0x21ed   :  { %v4663_v49 = vpop.xlane.xlu0 %4662  ;;  %v6224_v54 = vpop.eup %6223  ;;  %v4684_v6 = vmul.f32 %v6222_v37, %v8620_v59 }
0x21ee   :  { %v4483_v27 = vpack.c.bf16 %v4478_v30, %v4477_v11  ;;  %v8767_v21 = vunpack.c.l.b16 %v4322_v31  ;;  %v6226_v53 = vpop.eup %6225  ;;  %v4685_v46 = vmul.f32 %v6224_v54, %v8625_v47 }
0x21ef   :  { %v4479_v12 = vmul.f32 %v6226_v53, %v8656_v3 }
0x21f0   :  { %5771 = vmatmul.msk.bf16.gmra.mxu2 %vm444_vm1, %v4483_v27  ;;  %v4692_v7 = vpack.c.bf16 %v4685_v46, %v4684_v6 }
0x21f3   :  { %v4307_v1 = vpop.f32.mrf.mxu3 }
0x21f4   :  { %v4323_v36 = vpack.c.bf16 %v4307_v1, %v4307_v1  ;;  %v4464_v13 = vpop.xlane.xlu2 %4463 }
0x21f5   :  { %6227 = vrcp.f32 %v4464_v13 }
0x21f6   :  { %v8769_v22 = vunpack.c.l.b16 %v4323_v36 }
0x21f8   :  { %v4975_v10 = vpack.c.b16 %v8769_v22, %v8767_v21 }
0x21fb   :  { %v6228_v45 = vpop.eup %6227  ;;  %v4310_v58 = vpop.f32.mrf.mxu3 }
0x21fc   :  { %v4480_v33 = vmul.f32 %v6228_v45, %v8684_v29  ;;  %v4697_v23 = vpop.permute.xlu2 %4696  ;;  %v4865_v9 = vpop.xlane.xlu0 %4864  ;;  %v4324_v47 = vpack.c.bf16 %v4310_v58, %v4310_v58 }
0x21fd   :  { %v4711_v5 = vsel %vm482_vm2, %v4697_v23, 0  ;;  %6229 = vrcp.f32 %v4865_v9 }
0x21fe   :  { %4720 = vmatpush.bf16.msrb.mxu3 %v4711_v5  ;;  %v4484_v42 = vpack.c.bf16 %v4480_v33, %v4479_v12  ;;  %6231 = vrcp.f32 %v4663_v49  ;;  %v8781_v11 = vunpack.c.l.b16 %v4324_v47 }
0x21ff   :  { %6233 = vrcp.f32 %v4862_v26 }
0x2200   :  { %5772 = vmatmul.msk.bf16.gmra.mxu2 %vm444_vm1, %v4484_v42  ;;  %6235 = vrcp.f32 %v4660_v2 }
0x2201   :  { %5777 = vmatmul.msk.bf16.vlgmr.msrb.gmra.mxu3 %vm444_vm1, %v4692_v7 }
0x2203   :  { %v4312_v59 = vpop.f32.mrf.mxu3  ;;  %v6230_v27 = vpop.eup %6229 }
0x2204   :  { %v4325_v3 = vpack.c.bf16 %v4312_v59, %v4312_v59  ;;  %v4905_v48 = vpop.permute.xlu1 %4904  ;;  %v4868_v31 = vpop.xlane.xlu0 %4867  ;;  %v4893_v37 = vmul.f32 %v6230_v27, %v8691_v60 }
0x2205   :  { %v4919_v29 = vsel %vm482_vm2, %v4905_v48, 0  ;;  %v6232_v1 = vpop.eup %6231 }
0x2206   :  { %v8783_v30 = vunpack.c.l.b16 %v4325_v3  ;;  %4928 = vmatpush.bf16.msrb.mxu2 %v4919_v29  ;;  %v6234_v13 = vpop.eup %6233  ;;  %v4687_v2 = vmul.f32 %v6232_v1, %v8674_v51 }
0x2207   :  { %v6236_v49 = vpop.eup %6235  ;;  %v4892_v54 = vmul.f32 %v6234_v13, %v8676_v61 }
0x2208   :  { %v4976_v36 = vpack.c.b16 %v8783_v30, %v8781_v11  ;;  %v4686_v53 = vmul.f32 %v6236_v49, %v8663_v43 }
0x2209   :  { %v4900_v45 = vpack.c.bf16 %v4893_v37, %v4892_v54 }
0x220a   :  { %v4693_v6 = vpack.c.bf16 %v4687_v2, %v4686_v53 }
0x220c   :  { %v4669_v46 = vpop.xlane.xlu0 %4668 }
0x220d   :  { %6237 = vrcp.f32 %v4669_v46 }
0x2210   :  { %5785 = vmatmul.msk.bf16.vlgmr.msrb.gmra.mxu2 %vm444_vm1, %v4900_v45 }
0x2211   :  { %5778 = vmatmul.msk.bf16.gmra.mxu3 %vm444_vm1, %v4693_v6 }
0x2213   :  { %v6238_v23 = vpop.eup %6237 }
0x2214   :  { %v4672_v58 = vpop.xlane.xlu0 %4671  ;;  %v4689_v43 = vmul.f32 %v6238_v23, %v8706_v56 }
0x221c   :  { %v4874_v12 = vpop.xlane.xlu0 %4873 }
0x2224   :  { %v4877_v26 = vpop.xlane.xlu0 %4876 }
0x222c   :  { %v4675_v5 = vpop.xlane.xlu0 %4674 }
0x222f   :  { %v4666_v33 = vpop.xlane.xlu1 %4665 }
0x2230   :  { %6239 = vrcp.f32 %v4666_v33 }
0x2231   :  { %6241 = vrcp.f32 %v4868_v31 }
0x2233   :  { %v4514_v60 = vpop.f32.mrf.mxu2 }
0x2234   :  { %v4534_v42 = vpack.c.bf16 %v4514_v60, %v4514_v60  ;;  %v4883_v33 = vpop.xlane.xlu0 %4882 }
0x2235   :  { %v4871_v51 = vpop.xlane.xlu2 %4870 }
0x2236   :  { %v6240_v61 = vpop.eup %6239  ;;  %6243 = vrcp.f32 %v4871_v51  ;;  %v4986_v27 = vunpack.c.l.b16 %v4534_v42 }
0x2237   :  { %v4688_v9 = vmul.f32 %v6240_v61, %v8738_v17  ;;  %v6242_v47 = vpop.eup %6241  ;;  %6245 = vrcp.f32 %v4675_v5 }
0x2238   :  { %v4894_v29 = vmul.f32 %v6242_v47, %v8698_v57  ;;  %6247 = vrcp.f32 %v4672_v58 }
0x2239   :  { %v4694_v7 = vpack.c.bf16 %v4689_v43, %v4688_v9  ;;  %6249 = vrcp.f32 %v4877_v26  ;;  %v8810_v9 = vpop.f32.mrf.mxu3 }
0x223a   :  { %6251 = vrcp.f32 %v4874_v12 }
0x223b   :  { %v4516_v59 = vpop.f32.mrf.mxu2  ;;  %5779 = vmatmul.msk.bf16.gmra.mxu3 %vm444_vm1, %v4694_v7 }
0x223c   :  { %v4535_v3 = vpack.c.bf16 %v4516_v59, %v4516_v59  ;;  %v6244_v48 = vpop.eup %6243 }
0x223d   :  { %v4895_v31 = vmul.f32 %v6244_v48, %v8745_v25  ;;  %v6246_v17 = vpop.eup %6245  ;;  %v4880_v46 = vpop.xlane.xlu2 %4879 }
0x223e   :  { %v4987_v1 = vunpack.c.l.b16 %v4535_v3  ;;  %v6248_v49 = vpop.eup %6247  ;;  %v4691_v37 = vmul.f32 %v6246_v17, %v8734_v15  ;;  %6253 = vrcp.f32 %v4880_v46 }
0x223f   :  { %v4901_v13 = vpack.c.bf16 %v4895_v31, %v4894_v29  ;;  %v4690_v2 = vmul.f32 %v6248_v49, %v8713_v34  ;;  %v6250_v57 = vpop.eup %6249  ;;  %6255 = vrcp.f32 %v4883_v33 }
0x2240   :  { %v4994_v56 = vpack.c.b16 %v4987_v1, %v4986_v27  ;;  %v6252_v53 = vpop.eup %6251  ;;  %v4897_v25 = vmul.f32 %v6250_v57, %v8727_v4 }
0x2241   :  { %5786 = vmatmul.msk.bf16.gmra.mxu2 %vm444_vm1, %v4901_v13  ;;  %v4695_v54 = vpack.c.bf16 %v4691_v37, %v4690_v2  ;;  %v4896_v6 = vmul.f32 %v6252_v53, %v8718_v38  ;;  %v8812_v47 = vpop.f32.mrf.mxu3 }
0x2242   :  { %4998 = vrot.lane.b32.xlu1 %v4994_v56, %s9129_s26  ;;  %v4327_v22 = vpack.c.bf16 %v8812_v47, %v8812_v47  ;;  %v5756_v47 = vld [vmem:[%s9137_s7 + $0x1] sm:$0x1] }
0x2243   :  { %v4902_v58 = vpack.c.bf16 %v4897_v25, %v4896_v6 }
0x2244   :  { %v6254_v23 = vpop.eup %6253 }
0x2245   :  { %v6256_v4 = vpop.eup %6255  ;;  %v4898_v61 = vmul.f32 %v6254_v23, %v8753_v28 }
0x2246   :  { %v4899_v38 = vmul.f32 %v6256_v4, %v8743_v35 }
0x2248   :  { %v4903_v43 = vpack.c.bf16 %v4899_v38, %v4898_v61 }
0x224b   :  { %5780 = vmatmul.msk.bf16.gmra.mxu3 %vm444_vm1, %v4695_v54 }
0x224c   :  { %v4519_v45 = vpop.f32.mrf.mxu2 }
0x224d   :  { %v4536_v12 = vpack.c.bf16 %v4519_v45, %v4519_v45 }
0x224f   :  { %v4988_v26 = vunpack.c.l.b16 %v4536_v12 }
0x2251   :  { %5787 = vmatmul.msk.bf16.gmra.mxu2 %vm444_vm1, %v4902_v58 }
0x2254   :  { %v4521_v15 = vpop.f32.mrf.mxu2 }
0x2255   :  { %v4537_v34 = vpack.c.bf16 %v4521_v15, %v4521_v15 }
0x2257   :  { %v4989_v60 = vunpack.c.l.b16 %v4537_v34 }
0x2259   :  { %v4995_v51 = vpack.c.b16 %v4989_v60, %v4988_v26 }
0x225b   :  { %5000 = vrot.lane.b32.xlu1 %v4995_v51, %s9129_s26 }
0x2261   :  { %5788 = vmatmul.msk.bf16.gmra.mxu2 %vm444_vm1, %v4903_v43 }
0x2273   :  { %v4524_v5 = vpop.f32.mrf.mxu2 }
0x2274   :  { %v4538_v42 = vpack.c.bf16 %v4524_v5, %v4524_v5 }
0x2276   :  { %v4990_v3 = vunpack.c.l.b16 %v4538_v42 }
0x227b   :  { %v4526_v7 = vpop.f32.mrf.mxu2 }
0x227c   :  { %v4539_v59 = vpack.c.bf16 %v4526_v7, %v4526_v7 }
0x227e   :  { %v4991_v48 = vunpack.c.l.b16 %v4539_v59 }
0x2280   :  { %v4996_v29 = vpack.c.b16 %v4991_v48, %v4990_v3 }
0x2282   :  { %5002 = vrot.lane.b32.xlu1 %v4996_v29, %s9129_s26 }
0x2283   :  { %v4529_v27 = vpop.f32.mrf.mxu2 }
0x2284   :  { %v4722_v28 = vpop.f32.mrf.mxu3  ;;  %v4540_v31 = vpack.c.bf16 %v4529_v27, %v4529_v27 }
0x2285   :  { %v4742_v35 = vpack.c.bf16 %v4722_v28, %v4722_v28 }
0x2286   :  { %v4992_v49 = vunpack.c.l.b16 %v4540_v31 }
0x2287   :  { %v5014_v2 = vunpack.c.l.b16 %v4742_v35 }
0x228b   :  { %v4531_v1 = vpop.f32.mrf.mxu2 }
0x228c   :  { %v4541_v56 = vpack.c.bf16 %v4531_v1, %v4531_v1  ;;  %v4724_v13 = vpop.f32.mrf.mxu3 }
0x228d   :  { %v4743_v17 = vpack.c.bf16 %v4724_v13, %v4724_v13 }
0x228e   :  { %v4993_v37 = vunpack.c.l.b16 %v4541_v56 }
0x228f   :  { %v5015_v57 = vunpack.c.l.b16 %v4743_v17 }
0x2290   :  { %v4997_v54 = vpack.c.b16 %v4993_v37, %v4992_v49 }
0x2291   :  { %v5022_v53 = vpack.c.b16 %v5015_v57, %v5014_v2 }
0x2292   :  { %5004 = vrot.lane.b32.xlu1 %v4997_v54, %s9129_s26 }
0x2293   :  { %v4930_v25 = vpop.f32.mrf.mxu2  ;;  %5026 = vrot.lane.b32.xlu2 %v5022_v53, %s9130_s0 }
0x2294   :  { %v4727_v45 = vpop.f32.mrf.mxu3  ;;  %v4950_v6 = vpack.c.bf16 %v4930_v25, %v4930_v25 }
0x2295   :  { %v4744_v46 = vpack.c.bf16 %v4727_v45, %v4727_v45 }
0x2296   :  { %v5042_v34 = vunpack.c.l.b16 %v4950_v6 }
0x2297   :  { %v5016_v60 = vunpack.c.l.b16 %v4744_v46 }
0x229b   :  { %v4932_v58 = vpop.f32.mrf.mxu2 }
0x229c   :  { %v4951_v33 = vpack.c.bf16 %v4932_v58, %v4932_v58  ;;  %v4729_v12 = vpop.f32.mrf.mxu3 }
0x229d   :  { %v4745_v15 = vpack.c.bf16 %v4729_v12, %v4729_v12 }
0x229e   :  { %v5043_v26 = vunpack.c.l.b16 %v4951_v33  ;;  %v5864_v33 = vld [vmem:[#allocation7 + $0x8] sm:$0xff] }
0x229f   :  { %v5017_v23 = vunpack.c.l.b16 %v4745_v15  ;;  %5113 = vmatpush.bf16.msrb.mxu1 %v5864_v33 }
0x22a0   :  { %v5050_v51 = vpack.c.b16 %v5043_v26, %v5042_v34 }
0x22a1   :  { %v5023_v4 = vpack.c.b16 %v5017_v23, %v5016_v60 }
0x22a2   :  { %5054 = vrot.lane.b32.xlu0 %v5050_v51, %s6397_s27 }
0x22a3   :  { %5028 = vrot.lane.b32.xlu2 %v5023_v4, %s9130_s0 }
0x22b4   :  { %v4999_v51 = vpop.permute.xlu1 %4998 }
0x22be   :  { %v4732_v61 = vpop.f32.mrf.mxu3 }
0x22bf   :  { %v4746_v43 = vpack.c.bf16 %v4732_v61, %v4732_v61  ;;  %v5064_v61 = vsel %vm972_vm8, %v4974_v55, %v4999_v51  ;;  %v9161_v51 = vunpack.c.l.bf16 %v7950_v16 }
0x22c1   :  { %v5018_v7 = vunpack.c.l.b16 %v4746_v43 }
0x22c4   :  { %v4935_v38 = vpop.f32.mrf.mxu2 }
0x22c5   :  { %v4952_v3 = vpack.c.bf16 %v4935_v38, %v4935_v38 }
0x22c6   :  { %v4734_v5 = vpop.f32.mrf.mxu3 }
0x22c7   :  { %v4747_v42 = vpack.c.bf16 %v4734_v5, %v4734_v5  ;;  %v5044_v31 = vunpack.c.l.b16 %v4952_v3 }
0x22c9   :  { %v5019_v59 = vunpack.c.l.b16 %v4747_v42 }
0x22cb   :  { %v5024_v48 = vpack.c.b16 %v5019_v59, %v5018_v7 }
0x22cc   :  { %v4937_v29 = vpop.f32.mrf.mxu2 }
0x22cd   :  { %v4953_v27 = vpack.c.bf16 %v4937_v29, %v4937_v29  ;;  %5030 = vrot.lane.b32.xlu2 %v5024_v48, %s9130_s0  ;;  %v5001_v42 = vpop.permute.xlu1 %5000 }
0x22ce   :  { %v4737_v28 = vpop.f32.mrf.mxu3  ;;  %v5067_v59 = vsel %vm972_vm8, %v4975_v10, %v5001_v42  ;;  %v4326_v10 = vpack.c.bf16 %v8810_v9, %v8810_v9 }
0x22cf   :  { %v5045_v35 = vunpack.c.l.b16 %v4953_v27  ;;  %v4748_v13 = vpack.c.bf16 %v4737_v28, %v4737_v28 }
0x22d1   :  { %v5051_v1 = vpack.c.b16 %v5045_v35, %v5044_v31  ;;  %v5020_v37 = vunpack.c.l.b16 %v4748_v13  ;;  %v4973_v31 = vunpack.c.l.b16 %v4327_v22  ;;  %v4972_v35 = vunpack.c.l.b16 %v4326_v10 }
0x22d3   :  { %5056 = vrot.lane.b32.xlu0 %v5051_v1, %s6397_s27 }
0x22d4   :  { %v4940_v56 = vpop.f32.mrf.mxu2 }
0x22d5   :  { %v4954_v57 = vpack.c.bf16 %v4940_v56, %v4940_v56  ;;  %v4977_v56 = vpack.c.b16 %v4973_v31, %v4972_v35 }
0x22d6   :  { %v4739_v17 = vpop.f32.mrf.mxu3 }
0x22d7   :  { %v4749_v49 = vpack.c.bf16 %v4739_v17, %v4739_v17  ;;  %v5046_v45 = vunpack.c.l.b16 %v4954_v57 }
0x22d9   :  { %v5021_v2 = vunpack.c.l.b16 %v4749_v49  ;;  %v5090_v49 = vunpack.c.l.bf16 %v5756_v47 }
0x22db   :  { %v5025_v54 = vpack.c.b16 %v5021_v2, %v5020_v37  ;;  %v5091_v9 = vperm.slane %v5090_v49, 0 }
0x22dc   :  { %v4942_v53 = vpop.f32.mrf.mxu2 }
0x22dd   :  { %v4955_v25 = vpack.c.bf16 %v4942_v53, %v4942_v53  ;;  %5032 = vrot.lane.b32.xlu2 %v5025_v54, %s9130_s0 }
0x22df   :  { %v5047_v6 = vunpack.c.l.b16 %v4955_v25 }
0x22e1   :  { %v5052_v46 = vpack.c.b16 %v5047_v6, %v5046_v45 }
0x22e3   :  { %5058 = vrot.lane.b32.xlu0 %v5052_v46, %s6397_s27 }
0x22e4   :  { %v4945_v58 = vpop.f32.mrf.mxu2 }
0x22e5   :  { %v4956_v12 = vpack.c.bf16 %v4945_v58, %v4945_v58 }
0x22e7   :  { %v5048_v26 = vunpack.c.l.b16 %v4956_v12 }
0x22ec   :  { %v4947_v15 = vpop.f32.mrf.mxu2 }
0x22ed   :  { %v4957_v34 = vpack.c.bf16 %v4947_v15, %v4947_v15  ;;  %v5027_v4 = vpop.permute.xlu2 %5026 }
0x22ee   :  { %v5075_v38 = vsel %vm444_vm1, %v5064_v61, %v5027_v4 }
0x22ef   :  { %v5049_v60 = vunpack.c.l.b16 %v4957_v34 }
0x22f1   :  { %v5053_v23 = vpack.c.b16 %v5049_v60, %v5048_v26 }
0x22f3   :  { %5060 = vrot.lane.b32.xlu0 %v5053_v23, %s6397_s27 }
0x22f4   :  { %v5003_v19 = vpop.permute.xlu1 %5002 }
0x22f5   :  { %v5070_v29 = vsel %vm972_vm8, %v4976_v36, %v5003_v19 }
0x22fd   :  { %v5029_v7 = vpop.permute.xlu2 %5028 }
0x22fe   :  { %v5077_v3 = vsel %vm444_vm1, %v5067_v59, %v5029_v7 }
0x2304   :  { %v5005_v1 = vpop.permute.xlu1 %5004 }
0x2305   :  { %v5073_v30 = vsel %vm972_vm8, %v4977_v56, %v5005_v1 }
0x2314   :  { %v5055_v43 = vpop.permute.xlu0 %5054 }
0x2315   :  { %v5083_v5 = vsel %vm1318_vm12, %v5075_v38, %v5055_v43  ;;  %v9162_v43 = vunpack.c.l.bf16 %v7917_v44 }
0x2316   :  { %5793 = vmatmul.msk.bf16.vlgmr.msrb.gmra.mxu1 %vm692_vm4, %v5083_v5 }
0x2327   :  { %v5031_v55 = vpop.permute.xlu2 %5030 }
0x2328   :  { %v5079_v27 = vsel %vm444_vm1, %v5070_v29, %v5031_v55  ;;  %v9164_v29 = vunpack.c.l.bf16 %v8090_v50 }
0x2337   :  { %v5033_v11 = vpop.permute.xlu2 %5032 }
0x2338   :  { %v5081_v36 = vsel %vm444_vm1, %v5073_v30, %v5033_v11 }
0x2345   :  { %v5057_v48 = vpop.permute.xlu0 %5056 }
0x2346   :  { %v5085_v52 = vsel %vm1318_vm12, %v5077_v3, %v5057_v48  ;;  %v9163_v3 = vunpack.c.l.bf16 %v8073_v39 }
0x2347   :  { %5794 = vmatmul.msk.bf16.gmra.mxu1 %vm692_vm4, %v5085_v52 }
0x2355   :  { %v5059_v28 = vpop.permute.xlu0 %5058 }
0x2356   :  { %v5087_v21 = vsel %vm1318_vm12, %v5079_v27, %v5059_v28 }
0x2357   :  { %5795 = vmatmul.msk.bf16.gmra.mxu1 %vm692_vm4, %v5087_v21 }
0x2365   :  { %v5061_v13 = vpop.permute.xlu0 %5060 }
0x2366   :  { %v5089_v17 = vsel %vm1318_vm12, %v5081_v36, %v5061_v13 }
0x2367   :  { %5796 = vmatmul.msk.bf16.gmra.mxu1 %vm692_vm4, %v5089_v17 }
0x2393   :  { %v5115_v37 = vpop.f32.mrf.mxu1 }
0x2394   :  { %v5116_v2 = vadd.f32 %v5115_v37, %v5091_v9 }
0x2396   :  { %v5135_v57 = vpack.c.bf16 %v5116_v2, %v5116_v2  ;;  %v5152_v54 = vadd.f32 %v5116_v2, %v2872_v0 }
0x2398   :  { %5797 = vst.msk [vmem:[%s9054_s24 + $0x80] sm:$0xf] %vm380_vm6, %v5135_v57  ;;  %v5160_v53 = vsel %vm416_vm0, %v5152_v54, 0.0 }
0x2399   :  { %5161 = vadd.xlane.f32.xlu1 %v5160_v53 }
0x239b   :  { %v5117_v25 = vpop.f32.mrf.mxu1 }
0x239c   :  { %v5118_v45 = vadd.f32 %v5117_v25, %v5091_v9 }
0x239e   :  { %v5136_v6 = vpack.c.bf16 %v5118_v45, %v5118_v45  ;;  %v5153_v46 = vadd.f32 %v5118_v45, %v2873_v18 }
0x23a0   :  { %5798 = vst.msk [vmem:[%s9054_s24 + $0x84] sm:$0xf] %vm380_vm6, %v5136_v6  ;;  %v5163_v41 = vsel %vm416_vm0, %v5153_v46, 0.0 }
0x23a1   :  { %5164 = vadd.xlane.f32.xlu2 %v5163_v41 }
0x23c4   :  { %v5120_v0 = vpop.f32.mrf.mxu1 }
0x23c5   :  { %v5121_v58 = vadd.f32 %v5120_v0, %v5091_v9 }
0x23c7   :  { %v5137_v33 = vpack.c.bf16 %v5121_v58, %v5121_v58  ;;  %v5154_v12 = vadd.f32 %v5121_v58, %v2874_v32 }
0x23c9   :  { %5799 = vst.msk [vmem:[%s9054_s24 + $0x88] sm:$0xf] %vm380_vm6, %v5137_v33  ;;  %v5166_v62 = vsel %vm416_vm0, %v5154_v12, 0.0 }
0x23ca   :  { %5167 = vadd.xlane.f32.xlu0 %v5166_v62 }
0x23cc   :  { %v5122_v18 = vpop.f32.mrf.mxu1 }
0x23cd   :  { %v5123_v15 = vadd.f32 %v5122_v18, %v5091_v9 }
0x23cf   :  { %v5138_v34 = vpack.c.bf16 %v5123_v15, %v5123_v15  ;;  %v5155_v26 = vadd.f32 %v5123_v15, %v2875_v40 }
0x23d1   :  { %5800 = vst.msk [vmem:[%s9054_s24 + $0x8c] sm:$0xf] %vm380_vm6, %v5138_v34  ;;  %v5169_v24 = vsel %vm416_vm0, %v5155_v26, 0.0 }
0x23d2   :  { %5170 = vadd.xlane.f32.xlu2 %v5169_v24 }
0x23d4   :  { %v5125_v32 = vpop.f32.mrf.mxu1 }
0x23d5   :  { %v5126_v60 = vadd.f32 %v5125_v32, %v5091_v9 }
0x23d7   :  { %v5139_v23 = vpack.c.bf16 %v5126_v60, %v5126_v60  ;;  %v5156_v4 = vadd.f32 %v5126_v60, %v9161_v51 }
0x23d9   :  { %5801 = vst.msk [vmem:[%s9054_s24 + $0x90] sm:$0xf] %vm380_vm6, %v5139_v23  ;;  %v5172_v63 = vsel %vm416_vm0, %v5156_v4, 0.0 }
0x23da   :  { %5173 = vadd.xlane.f32.xlu1 %v5172_v63 }
0x23dc   :  { %v5127_v40 = vpop.f32.mrf.mxu1 }
0x23dd   :  { %v5128_v61 = vadd.f32 %v5127_v40, %v5091_v9 }
0x23df   :  { %v5140_v38 = vpack.c.bf16 %v5128_v61, %v5128_v61  ;;  %v5157_v5 = vadd.f32 %v5128_v61, %v9162_v43 }
0x23e1   :  { %5802 = vst.msk [vmem:[%s9054_s24 + $0x94] sm:$0xf] %vm380_vm6, %v5140_v38  ;;  %v5175_v16 = vsel %vm416_vm0, %v5157_v5, 0.0 }
0x23e2   :  { %5176 = vadd.xlane.f32.xlu0 %v5175_v16 }
0x23e4   :  { %v5130_v42 = vpop.f32.mrf.mxu1 }
0x23e5   :  { %v5131_v7 = vadd.f32 %v5130_v42, %v5091_v9 }
0x23e7   :  { %v5141_v59 = vpack.c.bf16 %v5131_v7, %v5131_v7  ;;  %v5158_v48 = vadd.f32 %v5131_v7, %v9163_v3 }
0x23e9   :  { %5803 = vst.msk [vmem:[%s9054_s24 + $0x98] sm:$0xf] %vm380_vm6, %v5141_v59  ;;  %v5178_v44 = vsel %vm416_vm0, %v5158_v48, 0.0 }
0x23ea   :  { %5179 = vadd.xlane.f32.xlu2 %v5178_v44  ;;  %v8963_v44 = vperm.slane %v6929_v14, 7 }
0x23ec   :  { %v5132_v52 = vpop.f32.mrf.mxu1 }
0x23ed   :  { %v5133_v19 = vadd.f32 %v5132_v52, %v5091_v9 }
0x23ef   :  { %v5142_v55 = vpack.c.bf16 %v5133_v19, %v5133_v19  ;;  %v5159_v27 = vadd.f32 %v5133_v19, %v9164_v29 }
0x23f1   :  { %5804 = vst.msk [vmem:[%s9054_s24 + $0x9c] sm:$0xf] %vm380_vm6, %v5142_v55  ;;  %v5181_v39 = vsel %vm416_vm0, %v5159_v27, 0.0  ;;  %v8966_v55 = vperm.slane %v6932_v20, 7 }
0x23f2   :  { %5182 = vadd.xlane.f32.xlu1 %v5181_v39 }
0x240c   :  { %v5162_v28 = vpop.xlane.xlu1 %5161 }
0x240d   :  { %v5184_v21 = vmul.f32 %v5162_v28, %v6888_v8 }
0x240f   :  { %v8913_v22 = vsub.f32 %v5152_v54, %v5184_v21 }
0x2411   :  { %v5200_v10 = vmul.f32 %v8913_v22, %v8913_v22 }
0x2413   :  { %v5208_v31 = vsel %vm416_vm0, %v5200_v10, 0.0 }
0x2414   :  { %5209 = vadd.xlane.f32.xlu0 %v5208_v31  ;;  %v5165_v50 = vpop.xlane.xlu2 %5164 }
0x2415   :  { %v5185_v35 = vmul.f32 %v5165_v50, %v6888_v8 }
0x2417   :  { %v8919_v1 = vsub.f32 %v5153_v46, %v5185_v35 }
0x2419   :  { %v5201_v56 = vmul.f32 %v8919_v1, %v8919_v1 }
0x241b   :  { %v5211_v11 = vsel %vm416_vm0, %v5201_v56, 0.0 }
0x241c   :  { %5212 = vadd.xlane.f32.xlu2 %v5211_v11 }
0x243d   :  { %v5168_v30 = vpop.xlane.xlu0 %5167 }
0x243e   :  { %v5186_v36 = vmul.f32 %v5168_v30, %v6888_v8 }
0x2440   :  { %v8925_v13 = vsub.f32 %v5154_v12, %v5186_v36 }
0x2442   :  { %v5202_v17 = vmul.f32 %v8925_v13, %v8925_v13 }
0x2444   :  { %v5214_v47 = vsel %vm416_vm0, %v5202_v17, 0.0 }
0x2445   :  { %5215 = vadd.xlane.f32.xlu1 %v5214_v47  ;;  %v5171_v49 = vpop.xlane.xlu2 %5170 }
0x2446   :  { %v5187_v9 = vmul.f32 %v5171_v49, %v6888_v8 }
0x2448   :  { %v8931_v37 = vsub.f32 %v5155_v26, %v5187_v9 }
0x244a   :  { %v5203_v2 = vmul.f32 %v8931_v37, %v8931_v37 }
0x244c   :  { %v5217_v57 = vsel %vm416_vm0, %v5203_v2, 0.0 }
0x244d   :  { %v5174_v54 = vpop.xlane.xlu1 %5173  ;;  %5218 = vadd.xlane.f32.xlu0 %v5217_v57 }
0x244e   :  { %v5188_v53 = vmul.f32 %v5174_v54, %v6888_v8 }
0x2450   :  { %v8937_v25 = vsub.f32 %v5156_v4, %v5188_v53 }
0x2452   :  { %v5204_v45 = vmul.f32 %v8937_v25, %v8937_v25 }
0x2454   :  { %v5220_v6 = vsel %vm416_vm0, %v5204_v45, 0.0 }
0x2455   :  { %v5177_v46 = vpop.xlane.xlu0 %5176  ;;  %5221 = vadd.xlane.f32.xlu2 %v5220_v6 }
0x2456   :  { %v5189_v41 = vmul.f32 %v5177_v46, %v6888_v8 }
0x2458   :  { %v8943_v0 = vsub.f32 %v5157_v5, %v5189_v41 }
0x245a   :  { %v5205_v58 = vmul.f32 %v8943_v0, %v8943_v0 }
0x245c   :  { %v5223_v33 = vsel %vm416_vm0, %v5205_v58, 0.0 }
0x245d   :  { %5224 = vadd.xlane.f32.xlu1 %v5223_v33  ;;  %v5180_v12 = vpop.xlane.xlu2 %5179 }
0x245e   :  { %v5190_v62 = vmul.f32 %v5180_v12, %v6888_v8 }
0x2460   :  { %v8949_v18 = vsub.f32 %v5158_v48, %v5190_v62 }
0x2462   :  { %v5206_v15 = vmul.f32 %v8949_v18, %v8949_v18 }
0x2464   :  { %v5226_v34 = vsel %vm416_vm0, %v5206_v15, 0.0 }
0x2465   :  { %v5183_v26 = vpop.xlane.xlu1 %5182  ;;  %5227 = vadd.xlane.f32.xlu0 %v5226_v34 }
0x2466   :  { %v5191_v24 = vmul.f32 %v5183_v26, %v6888_v8 }
0x2468   :  { %v8955_v32 = vsub.f32 %v5159_v27, %v5191_v24 }
0x246a   :  { %v5207_v60 = vmul.f32 %v8955_v32, %v8955_v32 }
0x246c   :  { %v5229_v23 = vsel %vm416_vm0, %v5207_v60, 0.0 }
0x246d   :  { %5230 = vadd.xlane.f32.xlu2 %v5229_v23 }
0x2487   :  { %v5210_v51 = vpop.xlane.xlu0 %5209 }
0x2488   :  { %v5232_v4 = vmul.f32 %v5210_v51, %v6888_v8 }
0x248a   :  { %v5240_v63 = vadd.f32 1e-05, %v5232_v4 }
0x248c   :  { %6257 = vrsqrt.f32 %v5240_v63  ;;  %vm5254_vm0 = vweird.f32 %v5240_v63 }
0x248f   :  { %v5213_v40 = vpop.xlane.xlu2 %5212 }
0x2490   :  { %v5233_v61 = vmul.f32 %v5213_v40, %v6888_v8 }
0x2492   :  { %v6258_v38 = vpop.eup %6257  ;;  %v5241_v43 = vadd.f32 1e-05, %v5233_v61 }
0x2493   :  { %v5249_v5 = vmul.f32 %v6258_v38, %v5240_v63  ;;  %vm5255_vm1 = vweird.f32 %v6258_v38 }
0x2494   :  { %6259 = vrsqrt.f32 %v5241_v43  ;;  %vm5256_vm2 = vmor %vm5254_vm0, %vm5255_vm1  ;;  %vm5264_vm8 = vweird.f32 %v5241_v43 }
0x2495   :  { %v5250_v16 = vmul.f32 %v6258_v38, %v5249_v5 }
0x2497   :  { %v5251_v42 = vmul.f32 0.5, %v5250_v16 }
0x2499   :  { %v5252_v7 = vsub.f32 1.5, %v5251_v42 }
0x249a   :  { %v6260_v59 = vpop.eup %6259 }
0x249b   :  { %v5253_v3 = vmul.f32 %v6258_v38, %v5252_v7  ;;  %v5259_v48 = vmul.f32 %v6260_v59, %v5241_v43  ;;  %vm5265_vm4 = vweird.f32 %v6260_v59 }
0x249c   :  { %vm5266_vm12 = vmor %vm5264_vm8, %vm5265_vm4 }
0x249d   :  { %v5257_v52 = vsel %vm5256_vm2, %v6258_v38, %v5253_v3  ;;  %v5260_v19 = vmul.f32 %v6260_v59, %v5259_v48 }
0x249e   :  { %v5328_v29 = vmul.f32 %v5257_v52, %v8913_v22 }
0x249f   :  { %v5261_v27 = vmul.f32 0.5, %v5260_v19 }
0x24a0   :  { %v5337_v39 = vmul.f32 %v8963_v44, %v5328_v29 }
0x24a1   :  { %v5262_v28 = vsub.f32 1.5, %v5261_v27 }
0x24a2   :  { %v5346_v21 = vadd.f32 %v8966_v55, %v5337_v39 }
0x24a3   :  { %v5263_v10 = vmul.f32 %v6260_v59, %v5262_v28 }
0x24a4   :  { %v5354_v31 = vpack.c.bf16 %v5346_v21, %v5346_v21 }
0x24a5   :  { %v5267_v14 = vsel %vm5266_vm12, %v6260_v59, %v5263_v10 }
0x24a6   :  { %5805 = vst.msk [vmem:[%s9054_s24 + $0xa0] sm:$0xf] %vm380_vm6, %v5354_v31  ;;  %v5329_v20 = vmul.f32 %v5267_v14, %v8919_v1 }
0x24a8   :  { %v5338_v22 = vmul.f32 %v8963_v44, %v5329_v20 }
0x24aa   :  { %v5347_v50 = vadd.f32 %v8966_v55, %v5338_v22 }
0x24ac   :  { %v5355_v35 = vpack.c.bf16 %v5347_v50, %v5347_v50 }
0x24ae   :  { %5806 = vst.msk [vmem:[%s9054_s24 + $0xa4] sm:$0xf] %vm380_vm6, %v5355_v35 }
0x24b8   :  { %v5216_v56 = vpop.xlane.xlu1 %5215 }
0x24b9   :  { %v5234_v11 = vmul.f32 %v5216_v56, %v6888_v8 }
0x24bb   :  { %v5242_v30 = vadd.f32 1e-05, %v5234_v11 }
0x24bd   :  { %6261 = vrsqrt.f32 %v5242_v30  ;;  %vm5274_vm14 = vweird.f32 %v5242_v30 }
0x24c0   :  { %v5219_v36 = vpop.xlane.xlu0 %5218 }
0x24c1   :  { %v5235_v17 = vmul.f32 %v5219_v36, %v6888_v8 }
0x24c3   :  { %v6262_v47 = vpop.eup %6261  ;;  %v5243_v1 = vadd.f32 1e-05, %v5235_v17 }
0x24c4   :  { %v5269_v49 = vmul.f32 %v6262_v47, %v5242_v30  ;;  %vm5275_vm13 = vweird.f32 %v6262_v47 }
0x24c5   :  { %6263 = vrsqrt.f32 %v5243_v1  ;;  %vm5276_vm15 = vmor %vm5274_vm14, %vm5275_vm13  ;;  %vm5284_vm5 = vweird.f32 %v5243_v1 }
0x24c6   :  { %v5270_v9 = vmul.f32 %v6262_v47, %v5269_v49 }
0x24c8   :  { %v5271_v2 = vmul.f32 0.5, %v5270_v9  ;;  %v5222_v57 = vpop.xlane.xlu2 %5221 }
0x24c9   :  { %v5236_v54 = vmul.f32 %v5222_v57, %v6888_v8 }
0x24ca   :  { %v5272_v53 = vsub.f32 1.5, %v5271_v2 }
0x24cb   :  { %v6264_v45 = vpop.eup %6263  ;;  %v5244_v6 = vadd.f32 1e-05, %v5236_v54 }
0x24cc   :  { %v5273_v46 = vmul.f32 %v6262_v47, %v5272_v53  ;;  %v5279_v41 = vmul.f32 %v6264_v45, %v5243_v1  ;;  %vm5285_vm7 = vweird.f32 %v6264_v45 }
0x24cd   :  { %6265 = vrsqrt.f32 %v5244_v6  ;;  %vm5286_vm9 = vmor %vm5284_vm5, %vm5285_vm7  ;;  %vm5294_vm10 = vweird.f32 %v5244_v6 }
0x24ce   :  { %v5277_v58 = vsel %vm5276_vm15, %v6262_v47, %v5273_v46  ;;  %v5280_v33 = vmul.f32 %v6264_v45, %v5279_v41 }
0x24cf   :  { %v5330_v12 = vmul.f32 %v5277_v58, %v8925_v13 }
0x24d0   :  { %v5281_v62 = vmul.f32 0.5, %v5280_v33  ;;  %v5225_v15 = vpop.xlane.xlu1 %5224 }
0x24d1   :  { %v5339_v34 = vmul.f32 %v8963_v44, %v5330_v12  ;;  %v5237_v26 = vmul.f32 %v5225_v15, %v6888_v8 }
0x24d2   :  { %v5282_v24 = vsub.f32 1.5, %v5281_v62 }
0x24d3   :  { %v6266_v60 = vpop.eup %6265  ;;  %v5348_v23 = vadd.f32 %v8966_v55, %v5339_v34  ;;  %v5245_v51 = vadd.f32 1e-05, %v5237_v26 }
0x24d4   :  { %v5283_v4 = vmul.f32 %v6264_v45, %v5282_v24  ;;  %v5289_v63 = vmul.f32 %v6266_v60, %v5244_v6  ;;  %vm5295_vm3 = vweird.f32 %v6266_v60 }
0x24d5   :  { %v5356_v40 = vpack.c.bf16 %v5348_v23, %v5348_v23  ;;  %6267 = vrsqrt.f32 %v5245_v51  ;;  %vm5296_vm11 = vmor %vm5294_vm10, %vm5295_vm3  ;;  %vm5304_vm0 = vweird.f32 %v5245_v51 }
0x24d6   :  { %v5287_v61 = vsel %vm5286_vm9, %v6264_v45, %v5283_v4  ;;  %v5290_v13 = vmul.f32 %v6266_v60, %v5289_v63 }
0x24d7   :  { %5807 = vst.msk [vmem:[%s9054_s24 + $0xa8] sm:$0xf] %vm380_vm6, %v5356_v40  ;;  %v5331_v38 = vmul.f32 %v5287_v61, %v8931_v37 }
0x24d8   :  { %v5291_v43 = vmul.f32 0.5, %v5290_v13  ;;  %v5228_v5 = vpop.xlane.xlu0 %5227 }
0x24d9   :  { %v5340_v16 = vmul.f32 %v8963_v44, %v5331_v38  ;;  %v5238_v42 = vmul.f32 %v5228_v5, %v6888_v8 }
0x24da   :  { %v5292_v7 = vsub.f32 1.5, %v5291_v43 }
0x24db   :  { %v6268_v59 = vpop.eup %6267  ;;  %v5349_v3 = vadd.f32 %v8966_v55, %v5340_v16  ;;  %v5246_v48 = vadd.f32 1e-05, %v5238_v42 }
0x24dc   :  { %v5293_v52 = vmul.f32 %v6266_v60, %v5292_v7  ;;  %v5299_v19 = vmul.f32 %v6268_v59, %v5245_v51  ;;  %vm5305_vm1 = vweird.f32 %v6268_v59 }
0x24dd   :  { %v5357_v29 = vpack.c.bf16 %v5349_v3, %v5349_v3  ;;  %6269 = vrsqrt.f32 %v5246_v48  ;;  %vm5306_vm2 = vmor %vm5304_vm0, %vm5305_vm1  ;;  %vm5314_vm8 = vweird.f32 %v5246_v48 }
0x24de   :  { %v5297_v27 = vsel %vm5296_vm11, %v6266_v60, %v5293_v52  ;;  %v5300_v37 = vmul.f32 %v6268_v59, %v5299_v19 }
0x24df   :  { %5808 = vst.msk [vmem:[%s9054_s24 + $0xac] sm:$0xf] %vm380_vm6, %v5357_v29  ;;  %v5332_v39 = vmul.f32 %v5297_v27, %v8937_v25 }
0x24e0   :  { %v5301_v28 = vmul.f32 0.5, %v5300_v37  ;;  %v5231_v21 = vpop.xlane.xlu2 %5230 }
0x24e1   :  { %v5341_v10 = vmul.f32 %v8963_v44, %v5332_v39  ;;  %v5239_v31 = vmul.f32 %v5231_v21, %v6888_v8 }
0x24e2   :  { %v5302_v14 = vsub.f32 1.5, %v5301_v28 }
0x24e3   :  { %v6270_v20 = vpop.eup %6269  ;;  %v5350_v22 = vadd.f32 %v8966_v55, %v5341_v10  ;;  %v5247_v50 = vadd.f32 1e-05, %v5239_v31 }
0x24e4   :  { %v5303_v35 = vmul.f32 %v6268_v59, %v5302_v14  ;;  %v5309_v56 = vmul.f32 %v6270_v20, %v5246_v48  ;;  %vm5315_vm4 = vweird.f32 %v6270_v20 }
0x24e5   :  { %v5358_v11 = vpack.c.bf16 %v5350_v22, %v5350_v22  ;;  %6271 = vrsqrt.f32 %v5247_v50  ;;  %vm5316_vm12 = vmor %vm5314_vm8, %vm5315_vm4  ;;  %vm5324_vm14 = vweird.f32 %v5247_v50 }
0x24e6   :  { %v5307_v30 = vsel %vm5306_vm2, %v6268_v59, %v5303_v35  ;;  %v5310_v25 = vmul.f32 %v6270_v20, %v5309_v56 }
0x24e7   :  { %5809 = vst.msk [vmem:[%s9054_s24 + $0xb0] sm:$0xf] %vm380_vm6, %v5358_v11  ;;  %v5333_v8 = vmul.f32 %v5307_v30, %v8943_v0 }
0x24e8   :  { %v5311_v36 = vmul.f32 0.5, %v5310_v25 }
0x24e9   :  { %v5342_v17 = vmul.f32 %v8963_v44, %v5333_v8 }
0x24ea   :  { %v5312_v47 = vsub.f32 1.5, %v5311_v36 }
0x24eb   :  { %v6272_v1 = vpop.eup %6271  ;;  %v5351_v49 = vadd.f32 %v8966_v55, %v5342_v17 }
0x24ec   :  { %v5313_v9 = vmul.f32 %v6270_v20, %v5312_v47  ;;  %v5319_v2 = vmul.f32 %v6272_v1, %v5247_v50  ;;  %vm5325_vm13 = vweird.f32 %v6272_v1 }
0x24ed   :  { %v5359_v57 = vpack.c.bf16 %v5351_v49, %v5351_v49  ;;  %vm5326_vm15 = vmor %vm5324_vm14, %vm5325_vm13 }
0x24ee   :  { %v5317_v54 = vsel %vm5316_vm12, %v6270_v20, %v5313_v9  ;;  %v5320_v53 = vmul.f32 %v6272_v1, %v5319_v2 }
0x24ef   :  { %5810 = vst.msk [vmem:[%s9054_s24 + $0xb4] sm:$0xf] %vm380_vm6, %v5359_v57  ;;  %v5334_v0 = vmul.f32 %v5317_v54, %v8949_v18 }
0x24f0   :  { %v5321_v45 = vmul.f32 0.5, %v5320_v53 }
0x24f1   :  { %v5343_v6 = vmul.f32 %v8963_v44, %v5334_v0 }
0x24f2   :  { %v5322_v46 = vsub.f32 1.5, %v5321_v45 }
0x24f3   :  { %v5352_v41 = vadd.f32 %v8966_v55, %v5343_v6 }
0x24f4   :  { %v5323_v58 = vmul.f32 %v6272_v1, %v5322_v46 }
0x24f5   :  { %v5360_v33 = vpack.c.bf16 %v5352_v41, %v5352_v41 }
0x24f6   :  { %v5327_v12 = vsel %vm5326_vm15, %v6272_v1, %v5323_v58 }
0x24f7   :  { %5811 = vst.msk [vmem:[%s9054_s24 + $0xb8] sm:$0xf] %vm380_vm6, %v5360_v33  ;;  %v5335_v62 = vmul.f32 %v5327_v12, %v8955_v32 }
0x24f9   :  { %v5344_v18 = vmul.f32 %v8963_v44, %v5335_v62 }
0x24fb   :  { %v5353_v15 = vadd.f32 %v8966_v55, %v5344_v18 }
0x24fd   :  { %v5361_v34 = vpack.c.bf16 %v5353_v15, %v5353_v15 }
0x24ff   :  { %5812 = vst.msk [vmem:[%s9054_s24 + $0xbc] sm:$0xf] %vm380_vm6, %v5361_v34 }
0x2500   :  { %5375 = vsyncpa [#allocation3], 1 }
0x2501   :  { %5376 = vsyncpa [#allocation5], 1 }
0x2502   :  { %5377 = vsyncpa [#allocation8], 1 }

</bundles_post_ra>
